<compile_context>
chip_gen: v6e
topology: v6e:2x2x1
jax: 0.10.0
libtpu: 0.0.40
codegen_flags: <defaults>
</compile_context>

<pallas_src>
import math

import jax
import jax.numpy as jnp
from jax import lax
from jax.experimental import pallas as pl
from jax.experimental.pallas import tpu as pltpu


def _pos_enc_kernel(scale_ref, bias_ref, o_ref):
    """o[r, l] = sin(row_global * scale[l] + bias[l]).

    scale/bias fold the per-lane inverse divisor 1/10000**(2i/d_model), the
    even/odd phase offset (cos(x) == sin(x + pi/2)) and, in the flat
    lane-dense layout, the within-row position offset.  Exactly one
    transcendental per element (the EUP slot is the binding unit).
    """
    tile_r, n_lanes = o_ref.shape
    r0 = pl.program_id(0) * tile_r
    row = (r0 + lax.broadcasted_iota(jnp.int32, (tile_r, n_lanes), 0)).astype(
        jnp.float32
    )
    o_ref[...] = jnp.sin(row * scale_ref[...] + bias_ref[...])


def _build_encoding(n_pos: int, d_model: int, tile_rows: int = 512) -> jax.Array:
    """Builds the (n_pos, d_model) float32 sinusoidal table with a Pallas kernel."""
    assert tile_rows % 8 == 0

    col = jnp.arange(d_model, dtype=jnp.int32)
    pair = ((col // 2) * 2).astype(jnp.float32)
    # inv_div[c] = 1 / 10000 ** (2i / d_model)  (same value for the 2i / 2i+1 pair)
    inv_div = jnp.exp(pair * (-math.log(10000.0) / float(d_model)))
    # even columns -> sin(angle), odd columns -> cos(angle) = sin(angle + pi/2)
    phase = jnp.where(col % 2 == 0, 0.0, math.pi / 2.0).astype(jnp.float32)

    if d_model % 128 != 0 and 128 % d_model == 0:
        # Lane-dense flat layout: pack 128 // d_model consecutive positions into
        # each 128-lane row so output stores are unmasked full-lane stores.
        ppr = 128 // d_model  # positions per 128-lane row
        n_lanes = 128
        lane = jnp.arange(128, dtype=jnp.int32)
        lane_inv = jnp.tile(inv_div, ppr)
        lane_phase = jnp.tile(phase, ppr)
        lane_pos_off = (lane // d_model).astype(jnp.float32)
        n_rows = pl.cdiv(n_pos, ppr)
    else:
        # Natural (pos, d_model) layout (already lane-dense if d_model % 128 == 0).
        ppr = 1
        n_lanes = d_model
        lane_inv = inv_div
        lane_phase = phase
        lane_pos_off = jnp.zeros((d_model,), jnp.float32)
        n_rows = n_pos

    # angle(r, l) = (r * ppr + pos_off[l]) * inv[l] + phase[l]
    #            =  r * scale[l] + bias[l]
    scale = (float(ppr) * lane_inv).reshape(1, n_lanes)
    bias = (lane_pos_off * lane_inv + lane_phase).reshape(1, n_lanes)

    tile_r = n_rows if n_rows <= tile_rows else tile_rows
    grid = (pl.cdiv(n_rows, tile_r),)

    enc = pl.pallas_call(
        _pos_enc_kernel,
        out_shape=jax.ShapeDtypeStruct((n_rows, n_lanes), jnp.float32),
        grid_spec=pltpu.PrefetchScalarGridSpec(
            num_scalar_prefetch=0,
            grid=grid,
            in_specs=[
                pl.BlockSpec((1, n_lanes), lambda i: (0, 0)),
                pl.BlockSpec((1, n_lanes), lambda i: (0, 0)),
            ],
            out_specs=pl.BlockSpec((tile_r, n_lanes), lambda i: (i, 0)),
        ),
        compiler_params=pltpu.CompilerParams(
            dimension_semantics=("parallel",),
        ),
    )(scale, bias)

    if n_lanes != d_model:
        # Row-major reshape is bit-identical (free); drop any padded positions.
        enc = enc.reshape(n_rows * ppr, d_model)[:n_pos]
    return enc


class PositionEmbedding:
    """Pallas/JAX equivalent of the PyTorch PositionEmbedding module.

    The table is built once at construction (matching torch __init__), so the
    forward pass does no recurring kernel work.
    """

    def __init__(self, d_model: int, max_len: int = 5000) -> None:
        self.d_model = d_model
        self.max_len = max_len
        # (1, max_len, d_model) float32
        self.encoding = _build_encoding(max_len, d_model)[None]

    def __call__(self, x: jax.Array) -> jax.Array:
        batch_size, seq_len = x.shape
        assert seq_len <= self.max_len
        return self.encoding[:, :seq_len]


def position_embedding(x: jax.Array, d_model: int, max_len: int = 5000) -> jax.Array:
    """Functional one-shot equivalent of PositionEmbedding.forward."""
    batch_size, seq_len = x.shape
    assert seq_len <= max_len
    return _build_encoding(seq_len, d_model)[None]


def _reference(seq_len: int, d_model: int) -> jnp.ndarray:
    """Pure-JAX reference matching the PyTorch __init__ construction."""
    position = jnp.arange(seq_len, dtype=jnp.float32)[:, None]
    _2i = jnp.arange(0, d_model, 2, dtype=jnp.float32)
    div_term = 10000.0 ** (_2i / d_model)
    enc = jnp.zeros((seq_len, d_model), dtype=jnp.float32)
    enc = enc.at[:, 0::2].set(jnp.sin(position / div_term))
    enc = enc.at[:, 1::2].set(jnp.cos(position / div_term))
    return enc[None]


if __name__ == "__main__":
    d_model = 32
    max_len = 5000
    batch, seq_len = 2, 8

    # x holds token ids in the PyTorch usage; only its shape matters here.
    key = jax.random.PRNGKey(0)
    x = jax.random.randint(key, (batch, seq_len), 0, 100, dtype=jnp.int32)

    pe = PositionEmbedding(d_model=d_model, max_len=max_len)
    out = pe(x)
    out = jax.block_until_ready(out)

    assert out.shape == (1, seq_len, d_model), out.shape
    assert out.dtype == jnp.float32

    ref = _reference(seq_len, d_model)
    assert jnp.allclose(out, ref, atol=1e-5, rtol=1e-5), float(
        jnp.max(jnp.abs(out - ref))
    )

    # Also exercise the functional path (computes only seq_len rows).
    out2 = jax.block_until_ready(position_embedding(x, d_model, max_len))
    assert jnp.allclose(out2, ref, atol=1e-5, rtol=1e-5)

    print("KERNEL_OK")
</pallas_src>

<mosaic_0001>
module attributes {stable_mosaic.version = 11 : i64} {
  func.func @_pos_enc_kernel(%arg0: i32, %arg1: memref<1x128xf32, #tpu.memory_space<vmem>>, %arg2: memref<1x128xf32, #tpu.memory_space<vmem>>, %arg3: memref<512x128xf32, #tpu.memory_space<vmem>>) attributes {dimension_semantics = [#tpu.dimension_semantics<parallel>], iteration_bounds = array<i64: 3>, scalar_prefetch = 0 : i64, scratch_operands = 0 : i64, tpu.core_type = #tpu.core_type<tc>, window_params = [{pipeline_mode = #tpu.pipeline_mode<synchronous>, transform_indices = @transform_0, window_bounds = array<i64: 1, 128>}, {pipeline_mode = #tpu.pipeline_mode<synchronous>, transform_indices = @transform_1, window_bounds = array<i64: 1, 128>}, {transform_indices = @transform_2, window_bounds = array<i64: 512, 128>}]} {
    %c512_i32 = arith.constant 512 : i32
    %0 = arith.muli %arg0, %c512_i32 : i32
    %1 = tpu.iota {dimensions = array<i32: 0>} : vector<512x128xi32>
    %2 = vector.broadcast %0 : i32 to vector<512x128xi32>
    %3 = arith.addi %2, %1 : vector<512x128xi32>
    %4 = arith.sitofp %3 : vector<512x128xi32> to vector<512x128xf32>
    %c0 = arith.constant 0 : index
    %c0_0 = arith.constant 0 : index
    %5 = vector.load %arg1[%c0, %c0_0] : memref<1x128xf32, #tpu.memory_space<vmem>>, vector<1x128xf32>
    %6 = vector.broadcast %5 : vector<1x128xf32> to vector<512x128xf32>
    %7 = arith.mulf %4, %6 : vector<512x128xf32>
    %c0_1 = arith.constant 0 : index
    %c0_2 = arith.constant 0 : index
    %8 = vector.load %arg2[%c0_1, %c0_2] : memref<1x128xf32, #tpu.memory_space<vmem>>, vector<1x128xf32>
    %9 = vector.broadcast %8 : vector<1x128xf32> to vector<512x128xf32>
    %10 = arith.addf %7, %9 : vector<512x128xf32>
    %11 = math.sin %10 : vector<512x128xf32>
    %c0_3 = arith.constant 0 : index
    %c0_4 = arith.constant 0 : index
    %12 = vector.load %arg3[%c0_3, %c0_4] : memref<512x128xf32, #tpu.memory_space<vmem>>, vector<512x128xf32>
    tpu.vector_store %arg3[%c0_3, %c0_4], %11 {strides = array<i32>} : memref<512x128xf32, #tpu.memory_space<vmem>>, vector<512x128xf32>,
    return
  }
  func.func @transform_0(%arg0: i32) -> (i32, i32) {
    %c0_i32 = arith.constant 0 : i32
    %c0_i32_0 = arith.constant 0 : i32
    %c0_i32_1 = arith.constant 0 : i32
    return %c0_i32, %c0_i32_0 : i32, i32
  }
  func.func @transform_1(%arg0: i32) -> (i32, i32) {
    %c0_i32 = arith.constant 0 : i32
    %c0_i32_0 = arith.constant 0 : i32
    %c0_i32_1 = arith.constant 0 : i32
    return %c0_i32, %c0_i32_0 : i32, i32
  }
  func.func @transform_2(%arg0: i32) -> (i32, i32) {
    %c0_i32 = arith.constant 0 : i32
    %c0_i32_0 = arith.constant 0 : i32
    return %arg0, %c0_i32 : i32, i32
  }
}

</mosaic_0001>

<bundles_post_ra>
// kernel: tpu_custom_call.1
= control target key start
LH: loop header
LB: loop body
LE: loop exit
PB: predicated region body
PF: predicated region fallthrough
CT: control target
= control target key end

     0   :  { %7 = vsyncpa [#allocation3], 0  ;;  %s14147_s0 = inlined_call_operand.hbm [shape: f32[1,128], index: 0, kind: input, shape index: {}]   ;;  %s14148_s1 = inlined_call_operand.vmem [shape: f32[1,128], index: 1, kind: input, shape index: {}]   ;;  %s14149_s2 = inlined_call_operand.hbm [shape: f32[1250,128], index: 2, kind: output, shape index: {}]  }
   0x1   :  { %8 = vsyncpa [#allocation4], 0 }
   0x2   :  { %10 = vsyncpa [#allocation4 + $0x1], 0  ;;  %s8240_s9 = smov 0   ;;  %s8242_s10 = smov 0  }
   0x3   :  { %s8244_s11 = smov 0   ;;  %s8246_s12 = smov 0  }
   0x4 LB: > { %s8261_s13 = sadd.s32 4294967295, %s8213_s12   ;;  %s7279_s14 = sadd.s32 4294967294, %s8213_s12   ;;  %s8213_s12 = sphi %s8246_s12, %s14594_s12   ;;  %s8209_s11 = sphi %s8244_s11, %s14593_s11   ;;  %s8205_s10 = sphi %s8242_s10, %s14592_s10   ;;  %s8201_s9 = sphi %s8240_s9, %s14591_s9  }
   0x5   : > { %s8265_s15 = sadd.s32 1, %s8213_s12   ;;  %s65_s16 = sadd.s32 1, %s8209_s11 }
   0x6   : > { %s62_s17 = ssub.s32 %s8213_s12, %s8265_s15  ;;  %p75_p0 = scmp.ne.s32.totalorder %s8209_s11, %s8205_s10 }
   0x7   : > { %p63_p1 = scmp.eq.s32.totalorder %s62_s17, 0  ;;  %p76_p2 = scmp.eq.s32.totalorder %s8261_s13, 2 }
   0x8   : > { %p81_p3 = scmp.ne.s32.totalorder %s8205_s10, %s8201_s9  ;;  %p82_p4 = scmp.eq.s32.totalorder %s7279_s14, 2 }
   0x9   : > { %s8276_s18 = scalar_select %p63_p1, %s8209_s11, %s65_s16  }
   0xa   : > { %p8278_p5 = por %p76_p2, %p75_p0  ;;  %p8282_p6 = por %p82_p4, %p81_p3 }
   0xb   : > { %p7280_p7 = scmp.ge.s32.totalorder %s8213_s12, 1  ;;  %p89_p8 = scmp.lt.s32.totalorder %s8213_s12, 4 }
   0xc   : > { %p7823_p9 = scmp.eq.s32.totalorder %s8261_s13, 0  ;;  %s8215_s22 = smov [#allocation2]  }
   0xd   : > { %p8289_p10 = pnand %p7280_p7, %p89_p8  ;;  %s102_s23 = sshll.u32 %s8215_s22, 4  ;;  %s103_s23 = int_to_ptr.vmem [resolvable:$true] %s102_s23 }
   0xe   : > { %s8134_s24 = scalar_lea.vmem %s103_s23, 16  ;;  %s8141_s25 = scalar_lea.vmem %s103_s23, 32 }
   0xf   : > { %p7815_p11 = pneg %p8289_p10  ;;  %p8135_p0 = scmp.ne.s32.totalorder %s103_s23, %s8134_s24 }
  0x10   : > { %p8142_p3 = scmp.lt.s32.totalorder %s103_s23, %s103_s23  ;;  %p8143_p4 = scmp.lt.s32.totalorder %s8141_s25, %s8134_s24 }
  0x11   : > { %p7816_p12 = pnand %p7823_p9, %p7815_p11 }
  0x12   : > { %p8144_p7 = por %p8143_p4, %p8142_p3 }
  0x13   : > { %p8125_p13 = pneg %p7816_p12 }
  0x15   : > { %p8137_p1 = pnand %p8135_p0, %p8125_p13 }
  0x17   : > { %p8138_p2 = pneg %p8137_p1 }
  0x19   : > { %p8145_p8 = pnand %p8144_p7, %p8138_p2 }
  0x1b   : > { %8148 = shalt.err (!%p8145_p8)
}
  0x1c   : > { %7818 = dma.hbm_to_vmem [thread:$0]  (!%p7816_p12), %s14147_s0, 16, %s103_s23, [#allocation3]  }
  0x1d   : > { %118 = sbr.rel (%p8289_p10) target bundleno = 1769 (0x6e9), region = 28 }
  0x22   : > { %8192 = dma.done.wait (%p7823_p9), [#allocation3], 16  }
  0x23   : > { %8194 = vsyncadd (%p7823_p9), [#allocation3], 4294967280  ;;  %v141_v0 = vlaneseq  ;;  %s7285_s28 = sshll.u32 %s8261_s13, 9  ;;  %s132_s3 = sand.u32 1, %s8205_s10  }
  0x24   : > { %v8315_v4 = vstv %s7285_s28  ;;  %s7284_s4 = sshll.u32 %s132_s3, 9  ;;  %s14087_s6 = scalar_lea.sflag [#allocation4], %s132_s3 }
  0x25   : > { %v8307_v1 = vshrl.u32 %v141_v0, 7  ;;  %14231 = vst [vmem:[#allocation9_spill] sm:$0xff] %v8315_v4  ;;  %s9691_s5 = scalar_lea.vmem [#allocation5], %s7284_s4  ;;  %s7545_s7 = sshll.u32 (%p8278_p5), %s8261_s13, 6 }
  0x26   : > { %s7206_s8 = ssub.s32 (%p8278_p5), 157, %s7545_s7 }
  0x27   : > { %14230 = vst [vmem:[#allocation8_spill] sm:$0xff] %v8307_v1  ;;  %v8310_v2 = vadd.s32 8, %v8307_v1  ;;  %v8313_v3 = vadd.s32 16, %v8307_v1  ;;  %v8318_v5 = vadd.s32 32, %v8307_v1  ;;  %v8321_v6 = vadd.s32 40, %v8307_v1  ;;  %p7207_p9 = scmp.lt.s32.totalorder (%p8278_p5), %s7206_s8, 64 }
  0x28   : > { %v8324_v7 = vadd.s32 48, %v8307_v1  ;;  %v8327_v8 = vadd.s32 56, %v8307_v1  ;;  %v8330_v9 = vadd.s32 64, %v8307_v1  ;;  %v8333_v10 = vadd.s32 72, %v8307_v1 }
  0x29   : > { %v8336_v11 = vadd.s32 80, %v8307_v1  ;;  %v8339_v12 = vadd.s32 88, %v8307_v1  ;;  %v8342_v13 = vadd.s32 96, %v8307_v1  ;;  %v8345_v14 = vadd.s32 104, %v8307_v1 }
  0x2a   : > { %v8348_v15 = vadd.s32 112, %v8307_v1  ;;  %v8351_v16 = vadd.s32 120, %v8307_v1  ;;  %v8354_v17 = vadd.s32 128, %v8307_v1  ;;  %v8357_v18 = vadd.s32 136, %v8307_v1 }
  0x2b   : > { %v8360_v19 = vadd.s32 144, %v8307_v1  ;;  %v8363_v20 = vadd.s32 152, %v8307_v1  ;;  %v8366_v21 = vadd.s32 160, %v8307_v1  ;;  %v8369_v22 = vadd.s32 168, %v8307_v1 }
  0x2c   : > { %v8372_v23 = vadd.s32 176, %v8307_v1  ;;  %v8375_v24 = vadd.s32 184, %v8307_v1  ;;  %v8378_v25 = vadd.s32 192, %v8307_v1  ;;  %v8381_v26 = vadd.s32 200, %v8307_v1 }
  0x2d   : > { %v8384_v27 = vadd.s32 208, %v8307_v1  ;;  %v8387_v28 = vadd.s32 216, %v8307_v1  ;;  %v8390_v29 = vadd.s32 224, %v8307_v1  ;;  %v8393_v30 = vadd.s32 232, %v8307_v1 }
  0x2e   : > { %v8396_v31 = vadd.s32 240, %v8307_v1  ;;  %v8399_v32 = vadd.s32 248, %v8307_v1  ;;  %v8402_v33 = vadd.s32 256, %v8307_v1  ;;  %v8405_v34 = vadd.s32 264, %v8307_v1 }
  0x2f   : > { %v8408_v35 = vadd.s32 272, %v8307_v1  ;;  %v8411_v36 = vadd.s32 280, %v8307_v1  ;;  %v8414_v37 = vadd.s32 288, %v8307_v1  ;;  %v8417_v38 = vadd.s32 296, %v8307_v1 }
  0x30   : > { %v8420_v39 = vadd.s32 304, %v8307_v1  ;;  %v8423_v40 = vadd.s32 312, %v8307_v1  ;;  %v8426_v41 = vadd.s32 320, %v8307_v1  ;;  %v8429_v42 = vadd.s32 328, %v8307_v1 }
  0x31   : > { %v8432_v43 = vadd.s32 336, %v8307_v1  ;;  %v8435_v44 = vadd.s32 344, %v8307_v1  ;;  %v8438_v45 = vadd.s32 352, %v8307_v1  ;;  %v8441_v46 = vadd.s32 360, %v8307_v1 }
  0x32   : > { %v8444_v47 = vadd.s32 368, %v8307_v1  ;;  %v8447_v48 = vadd.s32 376, %v8307_v1  ;;  %v8450_v49 = vadd.s32 384, %v8307_v1  ;;  %v8453_v50 = vadd.s32 392, %v8307_v1 }
  0x33   : > { %v8456_v51 = vadd.s32 400, %v8307_v1  ;;  %v8459_v52 = vadd.s32 408, %v8307_v1  ;;  %v8462_v53 = vadd.s32 416, %v8307_v1  ;;  %v8465_v54 = vadd.s32 424, %v8307_v1 }
  0x34   : > { %v8468_v55 = vadd.s32 432, %v8307_v1  ;;  %v8471_v56 = vadd.s32 440, %v8307_v1  ;;  %v8474_v57 = vadd.s32 448, %v8307_v1  ;;  %v8477_v58 = vadd.s32 456, %v8307_v1 }
  0x35   : > { %v8480_v59 = vadd.s32 464, %v8307_v1  ;;  %v8483_v60 = vadd.s32 472, %v8307_v1  ;;  %v8486_v61 = vadd.s32 480, %v8307_v1  ;;  %v8489_v62 = vadd.s32 488, %v8307_v1 }
  0x36   : > { %14232 = vst [vmem:[#allocation10_spill] sm:$0xff] %v8477_v58  ;;  %v8492_v63 = vadd.s32 496, %v8307_v1  ;;  %v8495_v0 = vadd.s32 504, %v8307_v1  ;;  %v8499_v58 = vadd.s32 %v8315_v4, %v8307_v1  ;;  %v8519_v1 = vadd.s32 %v8315_v4, %v8324_v7 }
  0x37   : > { %14233 = vst [vmem:[#allocation11_spill] sm:$0xff] %v8480_v59  ;;  %14234 = vst [vmem:[#allocation12_spill] sm:$0xff] %v8486_v61  ;;  %v8503_v59 = vadd.s32 %v8315_v4, %v8310_v2  ;;  %v8507_v61 = vadd.s32 %v8315_v4, %v8313_v3  ;;  %v8523_v2 = vadd.s32 %v8315_v4, %v8327_v8 }
  0x38   : > { %14235 = vst [vmem:[#allocation13_spill] sm:$0xff] %v8489_v62  ;;  %14236 = vst [vmem:[#allocation14_spill] sm:$0xff] %v8492_v63  ;;  %v8511_v62 = vadd.s32 %v8315_v4, %v8318_v5  ;;  %v8515_v63 = vadd.s32 %v8315_v4, %v8321_v6  ;;  %v8527_v3 = vadd.s32 %v8315_v4, %v8330_v9 }
  0x39   : > { %14237 = vst [vmem:[#allocation15_spill] sm:$0xff] %v8507_v61  ;;  %v8531_v5 = vadd.s32 %v8315_v4, %v8333_v10  ;;  %v8535_v6 = vadd.s32 %v8315_v4, %v8336_v11  ;;  %v8539_v7 = vadd.s32 %v8315_v4, %v8339_v12  ;;  %v8543_v8 = vadd.s32 %v8315_v4, %v8342_v13 }
  0x3a   : > { %v8547_v9 = vadd.s32 %v8315_v4, %v8345_v14  ;;  %v8551_v10 = vadd.s32 %v8315_v4, %v8348_v15  ;;  %v8555_v11 = vadd.s32 %v8315_v4, %v8351_v16  ;;  %v8559_v12 = vadd.s32 %v8315_v4, %v8354_v17 }
  0x3b   : > { %v8563_v13 = vadd.s32 %v8315_v4, %v8357_v18  ;;  %v8567_v14 = vadd.s32 %v8315_v4, %v8360_v19  ;;  %v8571_v15 = vadd.s32 %v8315_v4, %v8363_v20  ;;  %v8575_v16 = vadd.s32 %v8315_v4, %v8366_v21 }
  0x3c   : > { %v8579_v17 = vadd.s32 %v8315_v4, %v8369_v22  ;;  %v8583_v18 = vadd.s32 %v8315_v4, %v8372_v23  ;;  %v8587_v19 = vadd.s32 %v8315_v4, %v8375_v24  ;;  %v8591_v20 = vadd.s32 %v8315_v4, %v8378_v25 }
  0x3d   : > { %v8595_v21 = vadd.s32 %v8315_v4, %v8381_v26  ;;  %v8599_v22 = vadd.s32 %v8315_v4, %v8384_v27  ;;  %v8603_v23 = vadd.s32 %v8315_v4, %v8387_v28  ;;  %v8607_v24 = vadd.s32 %v8315_v4, %v8390_v29 }
  0x3e   : > { %v8611_v25 = vadd.s32 %v8315_v4, %v8393_v30  ;;  %v8615_v26 = vadd.s32 %v8315_v4, %v8396_v31  ;;  %v8619_v27 = vadd.s32 %v8315_v4, %v8399_v32  ;;  %v8623_v28 = vadd.s32 %v8315_v4, %v8402_v33 }
  0x3f   : > { %v8627_v29 = vadd.s32 %v8315_v4, %v8405_v34  ;;  %v8631_v30 = vadd.s32 %v8315_v4, %v8408_v35  ;;  %v8635_v31 = vadd.s32 %v8315_v4, %v8411_v36  ;;  %v8639_v32 = vadd.s32 %v8315_v4, %v8414_v37 }
  0x40   : > { %v8643_v33 = vadd.s32 %v8315_v4, %v8417_v38  ;;  %v8647_v34 = vadd.s32 %v8315_v4, %v8420_v39  ;;  %v8651_v35 = vadd.s32 %v8315_v4, %v8423_v40  ;;  %v8655_v36 = vadd.s32 %v8315_v4, %v8426_v41 }
  0x41   : > { %v8659_v37 = vadd.s32 %v8315_v4, %v8429_v42  ;;  %v8663_v38 = vadd.s32 %v8315_v4, %v8432_v43  ;;  %v8667_v39 = vadd.s32 %v8315_v4, %v8435_v44  ;;  %v8671_v40 = vadd.s32 %v8315_v4, %v8438_v45 }
  0x42   : > { %v8675_v41 = vadd.s32 %v8315_v4, %v8441_v46  ;;  %v8679_v42 = vadd.s32 %v8315_v4, %v8444_v47  ;;  %v8683_v43 = vadd.s32 %v8315_v4, %v8447_v48  ;;  %v8687_v44 = vadd.s32 %v8315_v4, %v8450_v49 }
  0x43   : > { %14238 = vst [vmem:[#allocation16_spill] sm:$0xff] %v8667_v39  ;;  %14239 = vst [vmem:[#allocation17_spill] sm:$0xff] %v8671_v40  ;;  %v8691_v45 = vadd.s32 %v8315_v4, %v8453_v50  ;;  %v8695_v46 = vadd.s32 %v8315_v4, %v8456_v51  ;;  %v8699_v47 = vadd.s32 %v8315_v4, %v8459_v52  ;;  %v8806_v40 = vld [vmem:[#allocation2] ss:$0 sm:$0xff]  ;;  %v14271_v39 = vcvt.s32.f32 %v8499_v58 }
  0x44   : > { %14240 = vst [vmem:[#allocation18_spill] sm:$0xff] %v8679_v42  ;;  %14241 = vst [vmem:[#allocation19_spill] sm:$0xff] %v8683_v43  ;;  %v8703_v48 = vadd.s32 %v8315_v4, %v8462_v53  ;;  %v8707_v49 = vadd.s32 %v8315_v4, %v8465_v54  ;;  %v8711_v50 = vadd.s32 %v8315_v4, %v8468_v55  ;;  %v14275_v58 = vcvt.s32.f32 %v8519_v1 }
  0x45   : > { %14242 = vst [vmem:[#allocation20_spill] sm:$0xff] %v8687_v44  ;;  %14243 = vst [vmem:[#allocation21_spill] sm:$0xff] %v8695_v46  ;;  %v8715_v51 = vadd.s32 %v8315_v4, %v8471_v56  ;;  %v8719_v52 = vadd.s32 %v8315_v4, %v8474_v57  ;;  %v8731_v55 = vadd.s32 %v8315_v4, %v8483_v60  ;;  %v14279_v1 = vcvt.s32.f32 %v8535_v6 }
  0x46   : > { %14244 = vst [vmem:[#allocation22_spill] sm:$0xff] %v8699_v47  ;;  %14245 = vst [vmem:[#allocation23_spill] sm:$0xff] %v8703_v48  ;;  %v14249_v47 = vld [vmem:[#allocation10_spill] sm:$0xff]  ;;  %v14251_v48 = vld [vmem:[#allocation11_spill] sm:$0xff]  ;;  %v14283_v6 = vcvt.s32.f32 %v8551_v10  ;;  %v14287_v10 = vcvt.s32.f32 %v8567_v14  ;;  %v14291_v14 = vcvt.s32.f32 %v8583_v18  ;;  %v14295_v18 = vcvt.s32.f32 %v8599_v22 }
  0x47   : > { %14246 = vst [vmem:[#allocation24_spill] sm:$0xff] %v8711_v50  ;;  %14247 = vst [vmem:[#allocation25_spill] sm:$0xff] %v8715_v51  ;;  %v8723_v53 = vadd.s32 %v8315_v4, %v14249_v47  ;;  %v8727_v54 = vadd.s32 %v8315_v4, %v14251_v48  ;;  %v14253_v50 = vld [vmem:[#allocation12_spill] sm:$0xff]  ;;  %v14255_v51 = vld [vmem:[#allocation13_spill] sm:$0xff]  ;;  %v8747_v48 = vadd.s32 %v8315_v4, %v8495_v0  ;;  %v14299_v22 = vcvt.s32.f32 %v8615_v26 }
  0x48   : > { %14248 = vst [vmem:[#allocation26_spill] sm:$0xff] %v8719_v52  ;;  %v8735_v56 = vadd.s32 %v8315_v4, %v14253_v50  ;;  %v8739_v57 = vadd.s32 %v8315_v4, %v14255_v51  ;;  %v14257_v52 = vld [vmem:[#allocation14_spill] sm:$0xff]  ;;  %v14274_v50 = vcvt.s32.f32 %v8515_v63  ;;  %v14278_v63 = vcvt.s32.f32 %v8531_v5 }
  0x49   : > { %14250 = vst [vmem:[#allocation10_spill] sm:$0xff] %v8723_v53  ;;  %14252 = vst [vmem:[#allocation11_spill] sm:$0xff] %v8727_v54  ;;  %v8743_v47 = vadd.s32 %v8315_v4, %v14257_v52  ;;  %v14259_v54 = vld [vmem:[#allocation8_spill] sm:$0xff]  ;;  %v14282_v5 = vcvt.s32.f32 %v8547_v9  ;;  %v14286_v9 = vcvt.s32.f32 %v8563_v13  ;;  %v14290_v13 = vcvt.s32.f32 %v8579_v17 }
  0x4a   : > { %14254 = vst [vmem:[#allocation12_spill] sm:$0xff] %v8735_v56  ;;  %14256 = vst [vmem:[#allocation13_spill] sm:$0xff] %v8739_v57  ;;  %v8750_v53 = vadd.s32 24, %v14259_v54  ;;  %v14268_v46 = vmov %v8735_v56  ;;  %v14273_v54 = vcvt.s32.f32 %v8511_v62  ;;  %v8835_v56 = vmul.f32 %v8806_v40, %v14274_v50  ;;  %v14314_v51 = vld [vmem:[#allocation16_spill] sm:$0xff]  ;;  %v14317_v4 = vld [vmem:[#allocation17_spill] sm:$0xff] }
  0x4b   : > { %14258 = vst [vmem:[#allocation14_spill] sm:$0xff] %v8743_v47  ;;  %v14277_v62 = vcvt.s32.f32 %v8527_v3  ;;  %v8855_v50 = vmul.f32 %v8806_v40, %v14278_v63  ;;  %v14281_v3 = vcvt.s32.f32 %v8543_v8  ;;  %v8875_v63 = vmul.f32 %v8806_v40, %v14282_v5 }
  0x4c   : > { %14260 = vst [vmem:[#allocation8_spill] sm:$0xff] %v8750_v53  ;;  %v8830_v60 = vmul.f32 %v8806_v40, %v14273_v54  ;;  %v14285_v8 = vcvt.s32.f32 %v8559_v12  ;;  %v8895_v5 = vmul.f32 %v8806_v40, %v14286_v9  ;;  %v14289_v12 = vcvt.s32.f32 %v8575_v16 }
  0x4d   : > { %v8850_v54 = vmul.f32 %v8806_v40, %v14277_v62  ;;  %v8870_v62 = vmul.f32 %v8806_v40, %v14281_v3  ;;  %v8915_v9 = vmul.f32 %v8806_v40, %v14290_v13  ;;  %v14293_v16 = vcvt.s32.f32 %v8591_v20 }
  0x4e   : > { %v14264_v57 = vld [vmem:[#allocation25_spill] sm:$0xff]  ;;  %v8890_v3 = vmul.f32 %v8806_v40, %v14285_v8  ;;  %v8910_v8 = vmul.f32 %v8806_v40, %v14289_v12  ;;  %v14294_v17 = vcvt.s32.f32 %v8595_v21  ;;  %v14297_v20 = vcvt.s32.f32 %v8607_v24 }
  0x4f   : > { %v326_v52 = vcvt.s32.f32 %v14264_v57  ;;  %v14265_v42 = vld [vmem:[#allocation26_spill] sm:$0xff]  ;;  %v8820_v57 = vmul.f32 %v8806_v40, %v14271_v39  ;;  %v8840_v39 = vmul.f32 %v8806_v40, %v14275_v58  ;;  %v8860_v58 = vmul.f32 %v8806_v40, %v14279_v1 }
  0x50   : > { %v327_v47 = vcvt.s32.f32 %v14265_v42  ;;  %v14266_v43 = vld [vmem:[#allocation10_spill] sm:$0xff]  ;;  %v14267_v44 = vld [vmem:[#allocation11_spill] sm:$0xff]  ;;  %v14272_v42 = vcvt.s32.f32 %v8503_v59  ;;  %v14276_v59 = vcvt.s32.f32 %v8523_v2  ;;  %v14280_v2 = vcvt.s32.f32 %v8539_v7 }
  0x51   : > { %v14269_v61 = vld [vmem:[#allocation13_spill] sm:$0xff]  ;;  %v8880_v1 = vmul.f32 %v8806_v40, %v14283_v6  ;;  %v14284_v7 = vcvt.s32.f32 %v8555_v11  ;;  %v8900_v6 = vmul.f32 %v8806_v40, %v14287_v10  ;;  %v14288_v11 = vcvt.s32.f32 %v8571_v15 }
  0x52   : > { %v14270_v53 = vld [vmem:[#allocation14_spill] sm:$0xff]  ;;  %v8825_v0 = vmul.f32 %v8806_v40, %v14272_v42  ;;  %v8845_v42 = vmul.f32 %v8806_v40, %v14276_v59  ;;  %v8865_v59 = vmul.f32 %v8806_v40, %v14280_v2  ;;  %v8920_v10 = vmul.f32 %v8806_v40, %v14291_v14 }
  0x53   : > { %v8885_v2 = vmul.f32 %v8806_v40, %v14284_v7  ;;  %v8905_v7 = vmul.f32 %v8806_v40, %v14288_v11  ;;  %v14292_v15 = vcvt.s32.f32 %v8587_v19  ;;  %v8930_v12 = vmul.f32 %v8806_v40, %v14293_v16 }
  0x54   : > { %v8935_v13 = vmul.f32 %v8806_v40, %v14294_v17  ;;  %v8940_v14 = vmul.f32 %v8806_v40, %v14295_v18  ;;  %v14296_v19 = vcvt.s32.f32 %v8603_v23  ;;  %v8950_v16 = vmul.f32 %v8806_v40, %v14297_v20 }
  0x55   : > { %v8925_v11 = vmul.f32 %v8806_v40, %v14292_v15  ;;  %v14298_v21 = vcvt.s32.f32 %v8611_v25  ;;  %v8960_v18 = vmul.f32 %v8806_v40, %v14299_v22  ;;  %v14300_v23 = vcvt.s32.f32 %v8619_v27 }
  0x56   : > { %v8945_v15 = vmul.f32 %v8806_v40, %v14296_v19  ;;  %v14301_v24 = vcvt.s32.f32 %v8623_v28  ;;  %v14302_v25 = vcvt.s32.f32 %v8627_v29  ;;  %v14303_v26 = vcvt.s32.f32 %v8631_v30 }
  0x57   : > { %v8955_v17 = vmul.f32 %v8806_v40, %v14298_v21  ;;  %v8965_v19 = vmul.f32 %v8806_v40, %v14300_v23  ;;  %v14304_v27 = vcvt.s32.f32 %v8635_v31  ;;  %v14305_v28 = vcvt.s32.f32 %v8639_v32 }
  0x58   : > { %v8970_v20 = vmul.f32 %v8806_v40, %v14301_v24  ;;  %v8975_v21 = vmul.f32 %v8806_v40, %v14302_v25  ;;  %v8980_v22 = vmul.f32 %v8806_v40, %v14303_v26  ;;  %v14306_v29 = vcvt.s32.f32 %v8643_v33 }
  0x59   : > { %v8985_v23 = vmul.f32 %v8806_v40, %v14304_v27  ;;  %v8990_v24 = vmul.f32 %v8806_v40, %v14305_v28  ;;  %v14307_v30 = vcvt.s32.f32 %v8647_v34  ;;  %v14308_v31 = vcvt.s32.f32 %v8651_v35 }
  0x5a   : > { %v8995_v25 = vmul.f32 %v8806_v40, %v14306_v29  ;;  %v14309_v32 = vcvt.s32.f32 %v8655_v36  ;;  %v14310_v33 = vcvt.s32.f32 %v8659_v37  ;;  %v14312_v34 = vcvt.s32.f32 %v8663_v38 }
  0x5b   : > { %v9000_v26 = vmul.f32 %v8806_v40, %v14307_v30  ;;  %v9005_v27 = vmul.f32 %v8806_v40, %v14308_v31  ;;  %v14315_v35 = vcvt.s32.f32 %v14314_v51  ;;  %v14318_v36 = vcvt.s32.f32 %v14317_v4 }
  0x5c   : > { %v9010_v28 = vmul.f32 %v8806_v40, %v14309_v32  ;;  %v9015_v29 = vmul.f32 %v8806_v40, %v14310_v33  ;;  %v9020_v30 = vmul.f32 %v8806_v40, %v14312_v34  ;;  %v14319_v37 = vcvt.s32.f32 %v8675_v41 }
  0x5d   : > { %v9025_v31 = vmul.f32 %v8806_v40, %v14315_v35  ;;  %v9030_v32 = vmul.f32 %v8806_v40, %v14318_v36  ;;  %v14329_v41 = vcvt.s32.f32 %v8691_v45  ;;  %v14337_v45 = vcvt.s32.f32 %v8707_v49 }
  0x5e   : > { %14311 = vst [vmem:[#allocation25_spill] sm:$0xff] %v9015_v29  ;;  %14313 = vst [vmem:[#allocation26_spill] sm:$0xff] %v9020_v30  ;;  %v9035_v33 = vmul.f32 %v8806_v40, %v14319_v37  ;;  %v14321_v29 = vld [vmem:[#allocation18_spill] sm:$0xff]  ;;  %v14324_v30 = vld [vmem:[#allocation19_spill] sm:$0xff]  ;;  %v14343_v49 = vcvt.s32.f32 %v14266_v43 }
  0x5f   : > { %14316 = vst [vmem:[#allocation10_spill] sm:$0xff] %v9025_v31  ;;  %v14322_v38 = vcvt.s32.f32 %v14321_v29  ;;  %v14325_v51 = vcvt.s32.f32 %v14324_v30  ;;  %v14327_v31 = vld [vmem:[#allocation20_spill] sm:$0xff]  ;;  %v9055_v37 = vmul.f32 %v8806_v40, %v14329_v41  ;;  %v9075_v41 = vmul.f32 %v8806_v40, %v14337_v45  ;;  %v14349_v43 = vld [vmem:[#allocation9_spill] sm:$0xff] }
  0x60   : > { %14320 = vst [vmem:[#allocation11_spill] sm:$0xff] %v9035_v33  ;;  %v14328_v4 = vcvt.s32.f32 %v14327_v31  ;;  %v14331_v33 = vld [vmem:[#allocation21_spill] sm:$0xff] }
  0x61   : > { %v9040_v34 = vmul.f32 %v8806_v40, %v14322_v38  ;;  %v9045_v35 = vmul.f32 %v8806_v40, %v14325_v51  ;;  %14330 = vst [vmem:[#allocation14_spill] sm:$0xff] %v9055_v37  ;;  %v14332_v29 = vcvt.s32.f32 %v14331_v33  ;;  %v14338_v37 = vld [vmem:[#allocation24_spill] sm:$0xff] }
  0x62   : > { %v9050_v36 = vmul.f32 %v8806_v40, %v14328_v4  ;;  %v14339_v33 = vcvt.s32.f32 %v14338_v37  ;;  %v14344_v37 = vcvt.s32.f32 %v14267_v44 }
  0x63   : > { %14323 = vst [vmem:[#allocation12_spill] sm:$0xff] %v9040_v34  ;;  %14326 = vst [vmem:[#allocation13_spill] sm:$0xff] %v9045_v35  ;;  %v9060_v38 = vmul.f32 %v8806_v40, %v14332_v29  ;;  %v14333_v34 = vld [vmem:[#allocation22_spill] sm:$0xff]  ;;  %v14335_v35 = vld [vmem:[#allocation23_spill] sm:$0xff] }
  0x64   : > { %v14334_v30 = vcvt.s32.f32 %v14333_v34  ;;  %v14336_v31 = vcvt.s32.f32 %v14335_v35  ;;  %v9080_v29 = vmul.f32 %v8806_v40, %v14339_v33  ;;  %v9083_v34 = vmul.f32 %v8806_v40, %v326_v52  ;;  %v9091_v35 = vld [vmem:[%s14148_s1] ss:$0 sm:$0xff] }
  0x65   : > { %v9101_v45 = vmul.f32 %v8806_v40, %v14344_v37  ;;  %v14345_v52 = vcvt.s32.f32 %v8731_v55  ;;  %v14346_v33 = vcvt.s32.f32 %v14268_v46  ;;  %v14351_v37 = vcvt.s32.f32 %v14270_v53 }
  0x66   : > { %v9065_v51 = vmul.f32 %v8806_v40, %v14334_v30  ;;  %v9070_v4 = vmul.f32 %v8806_v40, %v14336_v31  ;;  %14340 = vst [vmem:[#allocation16_spill] sm:$0xff] %v9080_v29  ;;  %14341 = vst [vmem:[#allocation17_spill] sm:$0xff] %v9083_v34  ;;  %v9086_v30 = vmul.f32 %v8806_v40, %v327_v47  ;;  %v14348_v34 = vld [vmem:[#allocation8_spill] sm:$0xff] }
  0x67   : > { %v9096_v31 = vmul.f32 %v8806_v40, %v14343_v49  ;;  %v9106_v47 = vmul.f32 %v8806_v40, %v14345_v52  ;;  %v9115_v29 = vadd.s32 %v14349_v43, %v14348_v34  ;;  %v14350_v49 = vcvt.s32.f32 %v14269_v61 }
  0x68   : > { %14342 = vst [vmem:[#allocation18_spill] sm:$0xff] %v9086_v30  ;;  %v9111_v30 = vmul.f32 %v8806_v40, %v14346_v33  ;;  %v9125_v55 = vmul.f32 %v8806_v40, %v14351_v37  ;;  %v14352_v52 = vcvt.s32.f32 %v8747_v48  ;;  %v14353_v33 = vld [vmem:[#allocation15_spill] sm:$0xff]  ;;  %v9139_v61 = vadd.f32 %v9091_v35, %v8820_v57  ;;  %v14379_v37 = vld [vmem:[#allocation26_spill] sm:$0xff] }
  0x69   : > { %v9120_v44 = vmul.f32 %v8806_v40, %v14350_v49  ;;  %v9143_v53 = vadd.f32 %v9091_v35, %v8825_v0  ;;  %v9147_v43 = vadd.f32 %v9091_v35, %v8830_v60  ;;  %v9151_v48 = vadd.f32 %v9091_v35, %v8835_v56  ;;  %v14377_v49 = vld [vmem:[#allocation25_spill] sm:$0xff] }
  0x6a   : > { %14347 = vst [vmem:[#allocation19_spill] sm:$0xff] %v9111_v30  ;;  %v9130_v46 = vmul.f32 %v8806_v40, %v14352_v52  ;;  %v14354_v30 = vcvt.s32.f32 %v14353_v33  ;;  %v9159_v57 = vadd.f32 %v9091_v35, %v8845_v42  ;;  %v9163_v0 = vadd.f32 %v9091_v35, %v8850_v54  ;;  %v14381_v52 = vld [vmem:[#allocation10_spill] sm:$0xff]  ;;  %v14384_v33 = vld [vmem:[#allocation11_spill] sm:$0xff] }
  0x6b   : > { %v9167_v60 = vadd.f32 %v9091_v35, %v8855_v50  ;;  %v9171_v56 = vadd.f32 %v9091_v35, %v8860_v58  ;;  %v9179_v42 = vadd.f32 %v9091_v35, %v8870_v62  ;;  %v9183_v54 = vadd.f32 %v9091_v35, %v8875_v63 }
  0x6c   : > { %v9135_v34 = vmul.f32 %v8806_v40, %v14354_v30  ;;  %v9155_v30 = vadd.f32 %v9091_v35, %v8840_v39  ;;  %v9175_v39 = vadd.f32 %v9091_v35, %v8865_v59  ;;  %v9187_v50 = vadd.f32 %v9091_v35, %v8880_v1 }
  0x6d   : > { %v9191_v58 = vadd.f32 %v9091_v35, %v8885_v2  ;;  %v9195_v59 = vadd.f32 %v9091_v35, %v8890_v3  ;;  %v9199_v62 = vadd.f32 %v9091_v35, %v8895_v5  ;;  %v9203_v63 = vadd.f32 %v9091_v35, %v8900_v6 }
  0x6e   : > { %v9207_v1 = vadd.f32 %v9091_v35, %v8905_v7  ;;  %v9211_v2 = vadd.f32 %v9091_v35, %v8910_v8  ;;  %v9215_v3 = vadd.f32 %v9091_v35, %v8915_v9  ;;  %v9219_v5 = vadd.f32 %v9091_v35, %v8920_v10 }
  0x6f   : > { %v9223_v6 = vadd.f32 %v9091_v35, %v8925_v11  ;;  %v9227_v7 = vadd.f32 %v9091_v35, %v8930_v12  ;;  %v9231_v8 = vadd.f32 %v9091_v35, %v8935_v13  ;;  %v9235_v9 = vadd.f32 %v9091_v35, %v8940_v14 }
  0x70   : > { %14355 = vst [vmem:[#allocation20_spill] sm:$0xff] %v9207_v1  ;;  %14356 = vst [vmem:[#allocation21_spill] sm:$0xff] %v9211_v2  ;;  %v9239_v10 = vadd.f32 %v9091_v35, %v8945_v15  ;;  %v9243_v11 = vadd.f32 %v9091_v35, %v8950_v16  ;;  %v9247_v12 = vadd.f32 %v9091_v35, %v8955_v17  ;;  %vm479_vm13 = vcmp.lt.s32.totalorder %v9139_v61, 0 }
  0x71   : > { %14357 = vst [vmem:[#allocation22_spill] sm:$0xff] %v9215_v3  ;;  %14358 = vst [vmem:[#allocation23_spill] sm:$0xff] %v9219_v5  ;;  %v9251_v13 = vadd.f32 %v9091_v35, %v8960_v18  ;;  %v9255_v14 = vadd.f32 %v9091_v35, %v8965_v19  ;;  %v9259_v15 = vadd.f32 %v9091_v35, %v8970_v20 }
  0x72   : > { %14359 = vst [vmem:[#allocation24_spill] sm:$0xff] %v9223_v6  ;;  %14360 = vst [vmem:[#allocation8_spill] sm:$0xff] %v9227_v7  ;;  %v9263_v16 = vadd.f32 %v9091_v35, %v8975_v21  ;;  %v9267_v17 = vadd.f32 %v9091_v35, %v8980_v22  ;;  %v9271_v18 = vadd.f32 %v9091_v35, %v8985_v23 }
  0x73   : > { %14361 = vst [vmem:[#allocation9_spill] sm:$0xff] %v9231_v8  ;;  %14362 = vst [vmem:[#allocation15_spill] sm:$0xff] %v9235_v9  ;;  %v9275_v19 = vadd.f32 %v9091_v35, %v8990_v24  ;;  %v9279_v20 = vadd.f32 %v9091_v35, %v8995_v25  ;;  %v9283_v21 = vadd.f32 %v9091_v35, %v9000_v26 }
  0x74   : > { %14363 = vst [vmem:[#allocation27_spill] sm:$0xff] %v9239_v10  ;;  %14364 = vst [vmem:[#allocation28_spill] sm:$0xff] %v9243_v11  ;;  %v9287_v22 = vadd.f32 %v9091_v35, %v9005_v27  ;;  %v9291_v23 = vadd.f32 %v9091_v35, %v9010_v28  ;;  %v9295_v24 = vadd.f32 %v9091_v35, %v14377_v49 }
  0x75   : > { %14365 = vst [vmem:[#allocation29_spill] sm:$0xff] %v9247_v12  ;;  %14366 = vst [vmem:[#allocation30_spill] sm:$0xff] %v9251_v13  ;;  %v9299_v25 = vadd.f32 %v9091_v35, %v14379_v37  ;;  %v9303_v26 = vadd.f32 %v9091_v35, %v14381_v52  ;;  %v9307_v27 = vadd.f32 %v9091_v35, %v9030_v32  ;;  %v14418_v12 = vand.u32 2147483647, %v9139_v61 }
  0x76   : > { %14367 = vst [vmem:[#allocation31_spill] sm:$0xff] %v9255_v14  ;;  %14368 = vst [vmem:[#allocation32_spill] sm:$0xff] %v9259_v15  ;;  %v9311_v28 = vadd.f32 %v9091_v35, %v14384_v33  ;;  %v9323_v52 = vadd.f32 %v9091_v35, %v9050_v36  ;;  %v9331_v33 = vadd.f32 %v9091_v35, %v9060_v38  ;;  %v14411_v14 = vmov 2475754826  }
  0x77   : > { %14369 = vst [vmem:[#allocation33_spill] sm:$0xff] %v9263_v16  ;;  %14370 = vst [vmem:[#allocation34_spill] sm:$0xff] %v9267_v17  ;;  %v9343_v36 = vadd.f32 %v9091_v35, %v9075_v41  ;;  %v9363_v41 = vadd.f32 %v9091_v35, %v9101_v45  ;;  %v9383_v45 = vadd.f32 %v9091_v35, %v9130_v46  ;;  %vm9509_vm14 = vcmp.le.f32.partialorder %v14418_v12, 0.7853982 }
  0x78   : > { %14371 = vst [vmem:[#allocation35_spill] sm:$0xff] %v9271_v18  ;;  %14372 = vst [vmem:[#allocation36_spill] sm:$0xff] %v9275_v19 }
  0x79   : > { %14373 = vst [vmem:[#allocation37_spill] sm:$0xff] %v9279_v20  ;;  %14374 = vst [vmem:[#allocation38_spill] sm:$0xff] %v9283_v21 }
  0x7a   : > { %14375 = vst [vmem:[#allocation39_spill] sm:$0xff] %v9287_v22  ;;  %14376 = vst [vmem:[#allocation40_spill] sm:$0xff] %v9291_v23  ;;  %v14386_v23 = vld [vmem:[#allocation12_spill] sm:$0xff]  ;;  %v14209_v22 = vmov 1326507024  }
  0x7b   : > { %14378 = vst [vmem:[#allocation25_spill] sm:$0xff] %v9295_v24  ;;  %14380 = vst [vmem:[#allocation26_spill] sm:$0xff] %v9299_v25  ;;  %v9315_v49 = vadd.f32 %v9091_v35, %v14386_v23  ;;  %v14388_v24 = vld [vmem:[#allocation13_spill] sm:$0xff]  ;;  %v9335_v23 = vadd.f32 %v9091_v35, %v9065_v51 }
  0x7c   : > { %14382 = vst [vmem:[#allocation10_spill] sm:$0xff] %v9303_v26  ;;  %14383 = vst [vmem:[#allocation41_spill] sm:$0xff] %v9307_v27  ;;  %v9319_v37 = vadd.f32 %v9091_v35, %v14388_v24  ;;  %v14391_v26 = vld [vmem:[#allocation14_spill] sm:$0xff]  ;;  %v9339_v24 = vadd.f32 %v9091_v35, %v9070_v4  ;;  %v9359_v4 = vadd.f32 %v9091_v35, %v9096_v31 }
  0x7d   : > { %14385 = vst [vmem:[#allocation11_spill] sm:$0xff] %v9311_v28  ;;  %14387 = vst [vmem:[#allocation12_spill] sm:$0xff] %v9315_v49  ;;  %v9327_v32 = vadd.f32 %v9091_v35, %v14391_v26  ;;  %v9379_v31 = vadd.f32 %v9091_v35, %v9125_v55 }
  0x7e   : > { %14389 = vst [vmem:[#allocation13_spill] sm:$0xff] %v9319_v37  ;;  %14390 = vst [vmem:[#allocation42_spill] sm:$0xff] %v9323_v52  ;;  %v14397_v52 = vld [vmem:[#allocation16_spill] sm:$0xff] }
  0x7f   : > { %14392 = vst [vmem:[#allocation14_spill] sm:$0xff] %v9327_v32  ;;  %14393 = vst [vmem:[#allocation43_spill] sm:$0xff] %v9331_v33  ;;  %v9347_v26 = vadd.f32 %v9091_v35, %v14397_v52  ;;  %v14399_v32 = vld [vmem:[#allocation17_spill] sm:$0xff]  ;;  %v14401_v33 = vld [vmem:[#allocation18_spill] sm:$0xff]  ;;  %v9367_v52 = vadd.f32 %v9091_v35, %v9106_v47  ;;  %v9388_v47 = vadd.f32 %v9091_v35, %v9135_v34 }
  0x80   : > { %14394 = vst [vmem:[#allocation44_spill] sm:$0xff] %v9335_v23  ;;  %14395 = vst [vmem:[#allocation45_spill] sm:$0xff] %v9339_v24  ;;  %v9351_v38 = vadd.f32 %v9091_v35, %v14399_v32  ;;  %v9355_v51 = vadd.f32 %v9091_v35, %v14401_v33  ;;  %v9375_v33 = vadd.f32 %v9091_v35, %v9120_v44  ;;  %v274_v44 = vcvt.s32.f32 %v9115_v29 }
  0x81   : > { %14396 = vst [vmem:[#allocation46_spill] sm:$0xff] %v9343_v36  ;;  %14398 = vst [vmem:[#allocation16_spill] sm:$0xff] %v9347_v26  ;;  %v14406_v26 = vld [vmem:[#allocation19_spill] sm:$0xff]  ;;  %v688_v34 = vand.u32 2139095040, %v9388_v47 }
  0x82   : > { %14400 = vst [vmem:[#allocation17_spill] sm:$0xff] %v9351_v38  ;;  %14402 = vst [vmem:[#allocation18_spill] sm:$0xff] %v9355_v51  ;;  %v9371_v32 = vadd.f32 %v9091_v35, %v14406_v26  ;;  %v480_v26 = vand.u32 2139095040, %v9139_v61 }
  0x83   : > { %14403 = vst [vmem:[#allocation47_spill] sm:$0xff] %v9359_v4  ;;  %14404 = vst [vmem:[#allocation48_spill] sm:$0xff] %v9363_v41  ;;  %v14187_v41 = vand.u32 2147483647, %v9139_v61  ;;  %v345_v4 = vmul.f32 %v8806_v40, %v274_v44  ;;  %v689_v36 = vshrl.u32 %v688_v34, 23 }
  0x84   : > { %14405 = vst [vmem:[#allocation49_spill] sm:$0xff] %v9367_v52  ;;  %14407 = vst [vmem:[#allocation19_spill] sm:$0xff] %v9371_v32  ;;  %v14188_v32 = vand.u32 2147483647, %v9143_v53  ;;  %v481_v55 = vshrl.u32 %v480_v26, 23 }
  0x85   : > { %14408 = vst [vmem:[#allocation50_spill] sm:$0xff] %v9375_v33  ;;  %14409 = vst [vmem:[#allocation51_spill] sm:$0xff] %v9379_v31  ;;  %v584_v33 = vand.u32 2139095040, %v9143_v53  ;;  %v484_v31 = vand.u32 8388607, %v14187_v41  ;;  %v7296_v26 = vadd.s32 4294967169, %v689_v36  ;;  %v9401_v37 = vadd.f32 %v9091_v35, %v345_v4 }
  0x86   : > { %14410 = vst [vmem:[#allocation52_spill] sm:$0xff] %v9383_v45  ;;  %v588_v45 = vand.u32 8388607, %v14188_v32  ;;  %v7288_v52 = vadd.s32 4294967169, %v481_v55  ;;  %v14199_v35 = vmov 2475754826  }
  0x87   : > { %v585_v46 = vshrl.u32 %v584_v33, 23  ;;  %v485_v24 = vor.u32 8388608, %v484_v31  ;;  %v9408_v31 = vadd.s32 1, %v7296_v26  ;;  %v14201_v4 = vmov 2131351028  }
  0x88   : > { %v487_v38 = vadd.s32 1, %v7288_v52  ;;  %v589_v29 = vor.u32 8388608, %v588_v45  ;;  %v14212_v45 = vmov 683565275  }
  0x89   : > { %v7292_v51 = vadd.s32 4294967169, %v585_v46  ;;  %v9404_v28 = vshll.u32 %v485_v24, 8  ;;  %v14206_v24 = vmov 920167782   ;;  %vm696_vm11 = vcmp.gt.s32.totalorder %v9408_v31, 0 }
  0x8a   : > { %vm488_vm0 = vcmp.gt.s32.totalorder %v487_v38, 0  ;;  %v9406_v52 = vshll.u32 %v589_v29, 8 }
  0x8b   : > { %v591_v23 = vadd.s32 1, %v7292_v51  ;;  %v489_v33 = vsel %vm488_vm0, %v487_v38, 0 }
  0x8c   : > { %v490_v41 = vshrl.u32 %v489_v33, 5  ;;  %v491_v32 = vand.u32 31, %v489_v33 }
  0x8d   : > { %vm592_vm1 = vcmp.gt.s32.totalorder %v591_v23, 0 }
  0x8e   : > { %v593_v55 = vsel %vm592_vm1, %v591_v23, 0  ;;  %v492_v51 = vsub.s32 32, %v491_v32  ;;  %v494_v36 = vshll.u32 %v14212_v45, %v491_v32  ;;  %v497_v38 = vshll.u32 %v14199_v35, %v491_v32 }
  0x8f   : > { %v595_v40 = vand.u32 31, %v593_v55  ;;  %v500_v44 = vshll.u32 %v14201_v4, %v491_v32  ;;  %v14204_v23 = vmov 2102212464   ;;  %v506_v34 = vshll.u32 %v14206_v24, %v491_v32 }
  0x90   : > { %v503_v46 = vshll.u32 %v14204_v23, %v491_v32  ;;  %vm509_vm2 = vcmp.lt.s32.totalorder %v490_v41, 1  ;;  %v9415_v29 = vshrl.u32 %v593_v55, 5  ;;  %v493_v26 = vshrl.u32 %v14212_v45, %v492_v51 }
  0x91   : > { %v495_v33 = vshrl.u32 %v14199_v35, %v492_v51  ;;  %v498_v49 = vshrl.u32 %v14201_v4, %v492_v51  ;;  %v501_v27 = vshrl.u32 %v14204_v23, %v492_v51  ;;  %v504_v25 = vshrl.u32 %v14206_v24, %v492_v51 }
  0x92   : > { %v507_v21 = vshrl.u32 %v14209_v22, %v492_v51  ;;  %vm510_vm3 = vcmp.lt.s32.totalorder %v490_v41, 2  ;;  %vm512_vm4 = vcmp.lt.s32.totalorder %v490_v41, 4  ;;  %v596_v55 = vsub.s32 32, %v595_v40 }
  0x93   : > { %v496_v20 = vor.u32 %v495_v33, %v494_v36  ;;  %v499_v32 = vor.u32 %v498_v49, %v497_v38  ;;  %v502_v19 = vor.u32 %v501_v27, %v500_v44  ;;  %v505_v18 = vor.u32 %v504_v25, %v503_v46 }
  0x94   : > { %v508_v17 = vor.u32 %v507_v21, %v506_v34  ;;  %vm511_vm5 = vcmp.lt.s32.totalorder %v490_v41, 3  ;;  %v598_v35 = vshll.u32 %v14212_v45, %v595_v40  ;;  %v601_v36 = vshll.u32 %v14411_v14, %v595_v40 }
  0x95   : > { %v513_v4 = vsel %vm509_vm2, %v493_v26, %v496_v20  ;;  %v514_v16 = vsel %vm512_vm4, %v502_v19, 2102212464  ;;  %v517_v23 = vsel %vm509_vm2, %v496_v20, %v499_v32  ;;  %v521_v24 = vsel %vm509_vm2, %v499_v32, %v502_v19 }
  0x96   : > { %v515_v15 = vsel %vm511_vm5, %v499_v32, %v514_v16  ;;  %v518_v51 = vsel %vm512_vm4, %v505_v18, 920167782  ;;  %v522_v22 = vsel %vm512_vm4, %v508_v17, 1326507024  ;;  %v597_v25 = vshrl.u32 %v14212_v45, %v596_v55 }
  0x97   : > { %v519_v49 = vsel %vm511_vm5, %v502_v19, %v518_v51  ;;  %v523_v27 = vsel %vm511_vm5, %v505_v18, %v522_v22  ;;  %v599_v21 = vshrl.u32 %v14411_v14, %v596_v55  ;;  %v516_v38 = vsel %vm510_vm3, %v513_v4, %v515_v15 }
  0x98   : > { %v520_v44 = vsel %vm510_vm3, %v517_v23, %v519_v49  ;;  %v524_v46 = vsel %vm510_vm3, %v521_v24, %v523_v27  ;;  %v14412_v20 = vmov 2131351028   ;;  %v14413_v15 = vmov 2102212464  }
  0x99   : > { %v602_v34 = vshrl.u32 %v14412_v20, %v596_v55  ;;  %v9435_v16 = vmul.u32.u64.low %v9404_v28, %v524_v46  ;;  %v9436_v26 = vmul.u32.u64.high %v9404_v28, %v524_v46, %v9435_v16  ;;  %v600_v18 = vor.u32 %v599_v21, %v598_v35 }
  0x9a   : > { %v9439_v17 = vmul.u32.u64.low %v9404_v28, %v520_v44  ;;  %v9440_v19 = vmul.u32.u64.high %v9404_v28, %v520_v44, %v9439_v17  ;;  %v604_v33 = vshll.u32 %v14412_v20, %v595_v40  ;;  %v605_v4 = vshrl.u32 %v14413_v15, %v596_v55 }
  0x9b   : > { %v603_v22 = vor.u32 %v602_v34, %v601_v36  ;;  %v607_v41 = vshll.u32 %v14413_v15, %v595_v40  ;;  %v14414_v23 = vmov 920167782   ;;  %v14415_v51 = vmov 1326507024  }
  0x9c   : > { %v608_v24 = vshrl.u32 %v14414_v23, %v596_v55  ;;  %v610_v32 = vshll.u32 %v14414_v23, %v595_v40  ;;  %v611_v49 = vshrl.u32 %v14415_v51, %v596_v55  ;;  %v532_v27 = vmul.u32 %v9404_v28, %v516_v38 }
  0x9d   : > { %v606_v46 = vor.u32 %v605_v4, %v604_v33  ;;  %vm613_vm6 = vcmp.lt.s32.totalorder %v9415_v29, 1  ;;  %vm614_vm7 = vcmp.lt.s32.totalorder %v9415_v29, 2  ;;  %vm534_vm8 = vc.u32 %v9436_v26, %v9439_v17 }
  0x9e   : > { %v535_v35 = vadd.s32 1, %v9440_v19  ;;  %v609_v36 = vor.u32 %v608_v24, %v607_v41  ;;  %vm615_vm9 = vcmp.lt.s32.totalorder %v9415_v29, 3  ;;  %v612_v21 = vor.u32 %v611_v49, %v610_v32 }
  0x9f   : > { %vm616_vm10 = vcmp.lt.s32.totalorder %v9415_v29, 4  ;;  %v617_v40 = vsel %vm613_vm6, %v597_v25, %v600_v18  ;;  %v621_v55 = vsel %vm613_vm6, %v600_v18, %v603_v22  ;;  %v625_v34 = vsel %vm613_vm6, %v603_v22, %v606_v46 }
  0xa0   : > { %v536_v28 = vsel %vm534_vm8, %v535_v35, %v9440_v19  ;;  %v618_v38 = vsel %vm616_vm10, %v606_v46, 2102212464  ;;  %v622_v44 = vsel %vm616_vm10, %v609_v36, 920167782  ;;  %v626_v45 = vsel %vm616_vm10, %v612_v21, 1326507024 }
  0xa1   : > { %v537_v16 = vadd.s32 %v536_v28, %v532_v27  ;;  %v619_v33 = vsel %vm615_vm9, %v603_v22, %v618_v38  ;;  %v623_v4 = vsel %vm615_vm9, %v606_v46, %v622_v44  ;;  %v627_v24 = vsel %vm615_vm9, %v609_v36, %v626_v45 }
  0xa2   : > { %v620_v13 = vsel %vm614_vm7, %v617_v40, %v619_v33  ;;  %v624_v41 = vsel %vm614_vm7, %v621_v55, %v623_v4  ;;  %v628_v19 = vsel %vm614_vm7, %v625_v34, %v627_v24  ;;  %v697_v27 = vsel %vm696_vm11, %v9408_v31, 0 }
  0xa3   : > { %v538_v25 = vadd.s32 536870912, %v537_v16  ;;  %v9466_v18 = vmul.u32.u64.low %v9406_v52, %v624_v41  ;;  %v9467_v32 = vmul.u32.u64.high %v9406_v52, %v624_v41, %v9466_v18  ;;  %v699_v35 = vand.u32 31, %v697_v27 }
  0xa4   : > { %v9471_v22 = vmul.u32.u64.low %v9406_v52, %v628_v19  ;;  %v9472_v49 = vmul.u32.u64.high %v9406_v52, %v628_v19, %v9471_v22  ;;  %v636_v45 = vmul.u32 %v9406_v52, %v620_v13  ;;  %v14416_v36 = vand.u32 2147483647, %v9388_v47 }
  0xa5   : > { %v539_v46 = vshrl.u32 %v538_v25, 30  ;;  %v14215_v29 = vand.u32 2147483647, %v9401_v37  ;;  %v792_v40 = vand.u32 2139095040, %v9401_v37  ;;  %v639_v28 = vadd.s32 1, %v9467_v32 }
  0xa6   : > { %v692_v21 = vand.u32 8388607, %v14416_v36  ;;  %vm638_vm12 = vc.u32 %v9472_v49, %v9466_v18  ;;  %v700_v38 = vsub.s32 32, %v699_v35  ;;  %v9492_v41 = vshrl.u32 %v697_v27, 5 }
  0xa7   : > { %v540_v55 = vshll.u32 %v539_v46, 30  ;;  %v640_v13 = vsel %vm638_vm12, %v639_v28, %v9467_v32  ;;  %v793_v34 = vshrl.u32 %v792_v40, 23  ;;  %v9489_v33 = vand.u32 8388607, %v14215_v29 }
  0xa8   : > { %v641_v52 = vadd.s32 %v640_v13, %v636_v45  ;;  %v693_v44 = vor.u32 8388608, %v692_v21  ;;  %v14417_v24 = vmov 683565275   ;;  %v705_v19 = vshll.u32 %v14411_v14, %v699_v35 }
  0xa9   : > { %v9484_v31 = vsub.s32 %v537_v16, %v540_v55  ;;  %v702_v25 = vshll.u32 %v14417_v24, %v699_v35  ;;  %v703_v16 = vshrl.u32 %v14411_v14, %v700_v38  ;;  %v706_v32 = vshrl.u32 %v14412_v20, %v700_v38 }
  0xaa   : > { %v642_v22 = vadd.s32 536870912, %v641_v52  ;;  %v708_v45 = vshll.u32 %v14412_v20, %v699_v35  ;;  %v709_v21 = vshrl.u32 %v14413_v15, %v700_v38  ;;  %v711_v40 = vshll.u32 %v14413_v15, %v699_v35 }
  0xab   : > { %v543_v4 = vsub.s32 0, %v9484_v31  ;;  %v712_v27 = vshrl.u32 %v14414_v23, %v700_v38  ;;  %v563_v55 = vsub.s32 4, %v539_v46  ;;  %v714_v13 = vshll.u32 %v14414_v23, %v699_v35 }
  0xac   : > { %v9503_v28 = vshrl.u32 %v642_v22, 30  ;;  %v715_v29 = vshrl.u32 %v14415_v51, %v700_v38  ;;  %v9515_v9 = vshll.u32 %v693_v44, 8  ;;  %v7300_v8 = vadd.s32 4294967169, %v793_v34 }
  0xad   : > { %v7289_v36 = vmin.u32 %v543_v4, %v9484_v31  ;;  %v533_v4 = vadd.s32 %v9439_v17, %v9436_v26  ;;  %v701_v7 = vshrl.u32 %v14417_v24, %v700_v38  ;;  %v704_v35 = vor.u32 %v703_v16, %v702_v25 }
  0xae   : > { %v644_v22 = vshll.u32 %v9503_v28, 30  ;;  %v707_v6 = vor.u32 %v706_v32, %v705_v19  ;;  %v710_v3 = vor.u32 %v709_v21, %v708_v45  ;;  %v713_v2 = vor.u32 %v712_v27, %v711_v40 }
  0xaf   : > { %v545_v10 = vclz %v7289_v36  ;;  %vm717_vm15 = vcmp.lt.s32.totalorder %v9492_v41, 1  ;;  %v564_v12 = vsel %vm479_vm13, %v563_v55, %v539_v46  ;;  %v716_v26 = vor.u32 %v715_v29, %v714_v13 }
  0xb0   : > { %v9522_v1 = vsub.s32 %v641_v52, %v644_v22  ;;  %vm720_vm0 = vcmp.lt.s32.totalorder %v9492_v41, 4  ;;  %vm718_vm2 = vcmp.lt.s32.totalorder %v9492_v41, 2  ;;  %vm719_vm3 = vcmp.lt.s32.totalorder %v9492_v41, 3 }
  0xb1   : > { %v7290_v5 = vadd.s32 4294967294, %v545_v10  ;;  %v722_v10 = vsel %vm720_vm0, %v710_v3, 2102212464  ;;  %v721_v44 = vsel %vm717_vm15, %v701_v7, %v704_v35  ;;  %v725_v46 = vsel %vm717_vm15, %v704_v35, %v707_v6 }
  0xb2   : > { %v647_v38 = vsub.s32 0, %v9522_v1  ;;  %v726_v25 = vsel %vm720_vm0, %v713_v2, 920167782  ;;  %v729_v7 = vsel %vm717_vm15, %v707_v6, %v710_v3  ;;  %v730_v36 = vsel %vm720_vm0, %v716_v26, 1326507024 }
  0xb3   : > { %vm7291_vm1 = vcmp.lt.s32.totalorder %v7290_v5, 0  ;;  %v727_v16 = vsel %vm719_vm3, %v710_v3, %v726_v25  ;;  %v566_v21 = vsel %vm9509_vm14, 0, %v564_v12  ;;  %v797_v27 = vor.u32 8388608, %v9489_v33 }
  0xb4   : > { %v548_v17 = vsel %vm7291_vm1, 0, %v7290_v5  ;;  %v7293_v19 = vmin.u32 %v647_v38, %v9522_v1  ;;  %v723_v5 = vsel %vm719_vm3, %v707_v6, %v722_v10  ;;  %v799_v55 = vadd.s32 1, %v7300_v8 }
  0xb5   : > { %v549_v29 = vsub.s32 32, %v548_v17  ;;  %v550_v52 = vshll.u32 %v9484_v31, %v548_v17  ;;  %v553_v34 = vsub.s32 4294967266, %v548_v17  ;;  %v728_v31 = vsel %vm718_vm2, %v725_v46, %v727_v16 }
  0xb6   : > { %v649_v40 = vclz %v7293_v19  ;;  %v724_v3 = vsel %vm718_vm2, %v721_v44, %v723_v5  ;;  %v731_v6 = vsel %vm719_vm3, %v713_v2, %v730_v36  ;;  %v570_v38 = vadd.s32 3, %v566_v21 }
  0xb7   : > { %v551_v32 = vshrl.u32 %v533_v4, %v549_v29  ;;  %v554_v45 = vadd.s32 127, %v553_v34  ;;  %v732_v35 = vsel %vm718_vm2, %v729_v7, %v731_v6  ;;  %v637_v44 = vadd.s32 %v9466_v18, %v9472_v49 }
  0xb8   : > { %v7294_v4 = vadd.s32 4294967294, %v649_v40  ;;  %v9558_v26 = vmul.u32.u64.low %v9515_v9, %v728_v31  ;;  %v9559_v10 = vmul.u32.u64.high %v9515_v9, %v728_v31, %v9558_v26  ;;  %vm800_vm5 = vcmp.gt.s32.totalorder %v799_v55, 0 }
  0xb9   : > { %v552_v13 = vor.u32 %v551_v32, %v550_v52  ;;  %v555_v22 = vshll.u32 %v554_v45, 23  ;;  %v9563_v8 = vmul.u32.u64.low %v9515_v9, %v732_v35  ;;  %v9564_v17 = vmul.u32.u64.high %v9515_v9, %v732_v35, %v9563_v8 }
  0xba   : > { %vm7295_vm4 = vcmp.lt.s32.totalorder %v7294_v4, 0  ;;  %v740_v46 = vmul.u32 %v9515_v9, %v724_v3  ;;  %v801_v29 = vsel %vm800_vm5, %v799_v55, 0  ;;  %v743_v19 = vadd.s32 1, %v9559_v10 }
  0xbb   : > { %v556_v12 = vor.u32 4788187, %v555_v22  ;;  %v559_v33 = vcvt.s32.f32 %v552_v13  ;;  %v652_v41 = vsel %vm7295_vm4, 0, %v7294_v4  ;;  %vm583_vm6 = vcmp.lt.s32.totalorder %v9143_v53, 0 }
  0xbc   : > { %v653_v52 = vsub.s32 32, %v652_v41  ;;  %v654_v34 = vshll.u32 %v9522_v1, %v652_v41  ;;  %v657_v25 = vsub.s32 4294967266, %v652_v41  ;;  %vm742_vm7 = vc.u32 %v9564_v17, %v9558_v26 }
  0xbd   : > { %v557_v2 = vand.u32 2147483647, %v556_v12  ;;  %v9574_v18 = vshll.u32 %v797_v27, 8  ;;  %v744_v7 = vsel %vm742_vm7, %v743_v19, %v9559_v10  ;;  %v803_v9 = vand.u32 31, %v801_v29 }
  0xbe   : > { %v655_v49 = vshrl.u32 %v637_v44, %v653_v52  ;;  %v658_v16 = vadd.s32 127, %v657_v25  ;;  %v9577_v45 = vand.u32 3, %v570_v38  ;;  %v667_v1 = vsub.s32 4, %v9503_v28 }
  0xbf   : > { %v560_v5 = vmul.f32 %v559_v33, %v557_v2  ;;  %v745_v31 = vadd.s32 %v744_v7, %v740_v46  ;;  %v14421_v36 = vand.u32 2147483647, %v9143_v53  ;;  %v9586_v55 = vshrl.u32 %v801_v29, 5 }
  0xc0   : > { %v656_v40 = vor.u32 %v655_v49, %v654_v34  ;;  %v659_v27 = vshll.u32 %v658_v16, 23  ;;  %v804_v13 = vsub.s32 32, %v803_v9  ;;  %v806_v6 = vshll.u32 %v14417_v24, %v803_v9 }
  0xc1   : > { %v561_v32 = vxor.u32 2147483648, %v560_v5  ;;  %vm9582_vm8 = vcmp.le.f32.partialorder %v14421_v36, 0.7853982  ;;  %v746_v3 = vadd.s32 536870912, %v745_v31  ;;  %v809_v4 = vshll.u32 %v14411_v14, %v803_v9 }
  0xc2   : > { %v660_v10 = vor.u32 4788187, %v659_v27  ;;  %v663_v12 = vcvt.s32.f32 %v656_v40  ;;  %v812_v33 = vshll.u32 %v14412_v20, %v803_v9  ;;  %v807_v38 = vshrl.u32 %v14411_v14, %v804_v13 }
  0xc3   : > { %v562_v22 = vsel %vm479_vm13, %v561_v32, %v560_v5  ;;  %v747_v8 = vshrl.u32 %v746_v3, 30  ;;  %v810_v44 = vshrl.u32 %v14412_v20, %v804_v13  ;;  %v813_v41 = vshrl.u32 %v14413_v15, %v804_v13 }
  0xc4   : > { %v565_v35 = vsel %vm9509_vm14, %v9139_v61, %v562_v22  ;;  %v661_v2 = vand.u32 2147483647, %v660_v10  ;;  %v815_v46 = vshll.u32 %v14413_v15, %v803_v9  ;;  %v668_v11 = vsel %vm583_vm6, %v667_v1, %v9503_v28 }
  0xc5   : > { %7867 = vcosq.f32 %v565_v35  ;;  %vm687_vm9 = vcmp.lt.s32.totalorder %v9388_v47, 0  ;;  %v748_v29 = vshll.u32 %v747_v8, 30  ;;  %vm821_vm10 = vcmp.lt.s32.totalorder %v9586_v55, 1 }
  0xc6   : > { %7869 = vsinq.f32 %v565_v35  ;;  %v893_v52 = vand.u32 2147483647, %v9147_v43  ;;  %v664_v34 = vmul.f32 %v663_v12, %v661_v2  ;;  %v805_v25 = vshrl.u32 %v14417_v24, %v804_v13 }
  0xc7   : > { %v816_v19 = vshrl.u32 %v14414_v23, %v804_v13  ;;  %v818_v5 = vshll.u32 %v14414_v23, %v803_v9  ;;  %v9609_v49 = vsub.s32 %v745_v31, %v748_v29  ;;  %v808_v16 = vor.u32 %v807_v38, %v806_v6 }
  0xc8   : > { %v811_v7 = vor.u32 %v810_v44, %v809_v4  ;;  %v819_v28 = vshrl.u32 %v14415_v51, %v804_v13  ;;  %vm576_vm11 = vcmp.eq.s32.totalorder %v9577_v45, 2  ;;  %v665_v32 = vxor.u32 2147483648, %v664_v34 }
  0xc9   : > { %v814_v1 = vor.u32 %v813_v41, %v812_v33  ;;  %v817_v36 = vor.u32 %v816_v19, %v815_v46  ;;  %vm824_vm12 = vcmp.lt.s32.totalorder %v9586_v55, 4  ;;  %vm573_vm13 = vcmp.eq.s32.totalorder %v9577_v45, 0 }
  0xca   : > { %v670_v40 = vsel %vm9582_vm8, 0, %v668_v11  ;;  %v14424_v9 = vand.u32 2147483647, %v9388_v47  ;;  %v751_v27 = vsub.s32 0, %v9609_v49  ;;  %v771_v13 = vsub.s32 4, %v747_v8 }
  0xcb   : > { %vm823_vm15 = vcmp.lt.s32.totalorder %v9586_v55, 3  ;;  %vm572_vm0 = vcmp.lt.s32.totalorder %v9577_v45, 2  ;;  %v666_v22 = vsel %vm583_vm6, %v665_v32, %v664_v34  ;;  %v820_v3 = vor.u32 %v819_v28, %v818_v5 }
  0xcc   : > { %vm9619_vm14 = vcmp.le.f32.partialorder %v14424_v9, 0.7853982  ;;  %v826_v6 = vsel %vm824_vm12, %v814_v1, 2102212464  ;;  %v830_v4 = vsel %vm824_vm12, %v817_v36, 920167782  ;;  %vm569_vm1 = vweird.f32 %v9139_v61 }
  0xcd   : > { %v669_v35 = vsel %vm9582_vm8, %v9143_v53, %v666_v22  ;;  %v7297_v10 = vmin.u32 %v751_v27, %v9609_v49  ;;  %vm822_vm2 = vcmp.lt.s32.totalorder %v9586_v55, 2  ;;  %v829_v12 = vsel %vm821_vm10, %v808_v16, %v811_v7 }
  0xce   : > { %7871 = vcosq.f32 %v669_v35  ;;  %v825_v33 = vsel %vm821_vm10, %v805_v25, %v808_v16  ;;  %v831_v38 = vsel %vm823_vm15, %v814_v1, %v830_v4  ;;  %v896_v44 = vand.u32 2139095040, %v9147_v43 }
  0xcf   : > { %7873 = vsinq.f32 %v669_v35  ;;  %v753_v2 = vclz %v7297_v10  ;;  %v827_v21 = vsel %vm823_vm15, %v811_v7, %v826_v6  ;;  %v833_v41 = vsel %vm821_vm10, %v811_v7, %v814_v1 }
  0xd0   : > { %v674_v46 = vadd.s32 3, %v670_v40  ;;  %v772_v11 = vsel %vm687_vm9, %v771_v13, %v747_v8  ;;  %v832_v29 = vsel %vm822_vm2, %v829_v12, %v831_v38  ;;  %v834_v34 = vsel %vm824_vm12, %v820_v3, 1326507024 }
  0xd1   : > { %v7298_v25 = vadd.s32 4294967294, %v753_v2  ;;  %v835_v19 = vsel %vm823_vm15, %v817_v36, %v834_v34  ;;  %v9659_v5 = vmul.u32.u64.low %v9574_v18, %v832_v29  ;;  %v9660_v16 = vmul.u32.u64.high %v9574_v18, %v832_v29, %v9659_v5 }
  0xd2   : > { %v7868_v7 = vpop.eup %7867  ;;  %v741_v28 = vadd.s32 %v9558_v26, %v9564_v17  ;;  %v828_v8 = vsel %vm822_vm2, %v825_v33, %v827_v21  ;;  %v836_v32 = vsel %vm822_vm2, %v833_v41, %v835_v19  ;;  %v897_v1 = vshrl.u32 %v896_v44, 23 }
  0xd3   : > { %v7870_v40 = vpop.eup %7869  ;;  %v577_v36 = vxor.u32 2147483648, %v7868_v7  ;;  %vm7299_vm3 = vcmp.lt.s32.totalorder %v7298_v25, 0  ;;  %v9672_v9 = vmul.u32.u64.low %v9574_v18, %v836_v32  ;;  %v9673_v27 = vmul.u32.u64.high %v9574_v18, %v836_v32, %v9672_v9 }
  0xd4   : > { %v574_v13 = vxor.u32 2147483648, %v7870_v40  ;;  %v756_v22 = vsel %vm7299_vm3, 0, %v7298_v25  ;;  %v774_v26 = vsel %vm9619_vm14, 0, %v772_v11  ;;  %v7304_v17 = vadd.s32 4294967169, %v897_v1 }
  0xd5   : > { %v578_v55 = vsel %vm576_vm11, %v577_v36, %v7870_v40  ;;  %v757_v3 = vsub.s32 32, %v756_v22  ;;  %v758_v6 = vshll.u32 %v9609_v49, %v756_v22  ;;  %v761_v4 = vsub.s32 4294967266, %v756_v22 }
  0xd6   : > { %v575_v35 = vsel %vm573_vm13, %v7868_v7, %v574_v13  ;;  %v844_v10 = vmul.u32 %v9574_v18, %v828_v8  ;;  %v847_v12 = vadd.s32 1, %v9660_v16  ;;  %v903_v33 = vadd.s32 1, %v7304_v17 }
  0xd7   : > { %v579_v38 = vsel %vm572_vm0, %v575_v35, %v578_v55  ;;  %v675_v44 = vand.u32 3, %v674_v46  ;;  %v759_v2 = vshrl.u32 %v741_v28, %v757_v3  ;;  %v762_v21 = vadd.s32 127, %v761_v4 }
  0xd8   : > { %v580_v41 = vsel %vm569_vm1, nan, %v579_v38  ;;  %v778_v11 = vadd.s32 3, %v774_v26  ;;  %vm846_vm4 = vc.u32 %v9673_v27, %v9659_v5  ;;  %vm904_vm5 = vcmp.gt.s32.totalorder %v903_v33, 0 }
  0xd9   : > { %v760_v49 = vor.u32 %v759_v2, %v758_v6  ;;  %v763_v29 = vshll.u32 %v762_v21, 23  ;;  %v848_v18 = vsel %vm846_vm4, %v847_v12, %v9660_v16  ;;  %v905_v34 = vsel %vm904_vm5, %v903_v33, 0  ;;  %7133 = vst [vmem:[%s9691_s5] sm:$0xff] %v580_v41 }
  0xda   : > { %vm673_vm6 = vweird.f32 %v9143_v53  ;;  %v849_v45 = vadd.s32 %v848_v18, %v844_v10  ;;  %v907_v46 = vand.u32 31, %v905_v34  ;;  %vm676_vm7 = vcmp.lt.s32.totalorder %v675_v44, 2 }
  0xdb   : > { %v7872_v61 = vpop.eup %7871  ;;  %vm680_vm8 = vcmp.eq.s32.totalorder %v675_v44, 2  ;;  %v764_v25 = vor.u32 4788187, %v763_v29  ;;  %v767_v19 = vcvt.s32.f32 %v760_v49  ;;  %vm677_vm10 = vcmp.eq.s32.totalorder %v675_v44, 0 }
  0xdc   : > { %v7874_v7 = vpop.eup %7873  ;;  %v681_v28 = vxor.u32 2147483648, %v7872_v61  ;;  %v850_v8 = vadd.s32 536870912, %v849_v45  ;;  %v908_v32 = vsub.s32 32, %v907_v46  ;;  %v9695_v40 = vand.u32 3, %v778_v11 }
  0xdd   : > { %v678_v16 = vxor.u32 2147483648, %v7874_v7  ;;  %v765_v1 = vand.u32 2147483647, %v764_v25  ;;  %v900_v36 = vand.u32 8388607, %v893_v52  ;;  %v910_v22 = vshll.u32 %v14417_v24, %v907_v46 }
  0xde   : > { %v682_v9 = vsel %vm680_vm8, %v681_v28, %v7874_v7  ;;  %v9699_v13 = vshrl.u32 %v850_v8, 30  ;;  %v913_v26 = vshll.u32 %v14411_v14, %v907_v46  ;;  %v911_v3 = vshrl.u32 %v14411_v14, %v908_v32 }
  0xdf   : > { %v679_v17 = vsel %vm677_vm10, %v7872_v61, %v678_v16  ;;  %v768_v55 = vmul.f32 %v767_v19, %v765_v1  ;;  %v916_v6 = vshll.u32 %v14412_v20, %v907_v46  ;;  %v914_v10 = vshrl.u32 %v14412_v20, %v908_v32 }
  0xe0   : > { %v683_v4 = vsel %vm676_vm7, %v679_v17, %v682_v9  ;;  %v852_v35 = vshll.u32 %v9699_v13, 30  ;;  %v917_v12 = vshrl.u32 %v14413_v15, %v908_v32  ;;  %v901_v2 = vor.u32 8388608, %v900_v36 }
  0xe1   : > { %v684_v33 = vsel %vm673_vm6, nan, %v683_v4  ;;  %v769_v38 = vxor.u32 2147483648, %v768_v55  ;;  %v906_v21 = vshrl.u32 %v905_v34, 5  ;;  %v909_v11 = vshrl.u32 %v14417_v24, %v908_v32 }
  0xe2   : > { %v9711_v41 = vsub.s32 %v849_v45, %v852_v35  ;;  %v919_v49 = vshll.u32 %v14413_v15, %v907_v46  ;;  %v920_v44 = vshrl.u32 %v14414_v23, %v908_v32  ;;  %7134 = vst [vmem:[%s9691_s5 + $0x8] sm:$0xff] %v684_v33  ;;  %v912_v18 = vor.u32 %v911_v3, %v910_v22 }
  0xe3   : > { %v770_v29 = vsel %vm687_vm9, %v769_v38, %v768_v55  ;;  %v922_v61 = vshll.u32 %v14414_v23, %v907_v46  ;;  %v923_v53 = vshrl.u32 %v14415_v51, %v908_v32  ;;  %v915_v25 = vor.u32 %v914_v10, %v913_v26 }
  0xe4   : > { %v773_v34 = vsel %vm9619_vm14, %v9388_v47, %v770_v29  ;;  %v855_v45 = vsub.s32 0, %v9711_v41  ;;  %v918_v19 = vor.u32 %v917_v12, %v916_v6  ;;  %v921_v7 = vor.u32 %v920_v44, %v919_v49 }
  0xe5   : > { %7875 = vcosq.f32 %v773_v34  ;;  %v924_v28 = vor.u32 %v923_v53, %v922_v61  ;;  %vm925_vm11 = vcmp.lt.s32.totalorder %v906_v21, 1  ;;  %v941_v16 = vshll.u32 %v901_v2, 8 }
  0xe6   : > { %7877 = vsinq.f32 %v773_v34  ;;  %v7301_v8 = vmin.u32 %v855_v45, %v9711_v41  ;;  %v997_v46 = vand.u32 2147483647, %v9151_v48  ;;  %v845_v32 = vadd.s32 %v9659_v5, %v9673_v27 }
  0xe7   : > { %vm927_vm9 = vcmp.lt.s32.totalorder %v906_v21, 3  ;;  %vm928_vm12 = vcmp.lt.s32.totalorder %v906_v21, 4  ;;  %v1000_v31 = vand.u32 2139095040, %v9151_v48  ;;  %vm926_vm13 = vcmp.lt.s32.totalorder %v906_v21, 2 }
  0xe8   : > { %v857_v1 = vclz %v7301_v8  ;;  %v933_v36 = vsel %vm925_vm11, %v912_v18, %v915_v25  ;;  %v937_v9 = vsel %vm925_vm11, %v915_v25, %v918_v19  ;;  %v929_v22 = vsel %vm925_vm11, %v909_v11, %v912_v18 }
  0xe9   : > { %v930_v26 = vsel %vm928_vm12, %v918_v19, 2102212464  ;;  %v934_v17 = vsel %vm928_vm12, %v921_v7, 920167782  ;;  %v938_v55 = vsel %vm928_vm12, %v924_v28, 1326507024  ;;  %vm777_vm15 = vweird.f32 %v9388_v47 }
  0xea   : > { %v7302_v3 = vadd.s32 4294967294, %v857_v1  ;;  %v931_v6 = vsel %vm927_vm9, %v915_v25, %v930_v26  ;;  %v935_v4 = vsel %vm927_vm9, %v918_v19, %v934_v17  ;;  %v939_v35 = vsel %vm927_vm9, %v921_v7, %v938_v55 }
  0xeb   : > { %v875_v10 = vsub.s32 4, %v9699_v13  ;;  %v936_v5 = vsel %vm926_vm13, %v933_v36, %v935_v4  ;;  %v940_v27 = vsel %vm926_vm13, %v937_v9, %v939_v35  ;;  %v1001_v12 = vshrl.u32 %v1000_v31, 23 }
  0xec   : > { %vm7303_vm14 = vcmp.lt.s32.totalorder %v7302_v3, 0  ;;  %v932_v33 = vsel %vm926_vm13, %v929_v22, %v931_v6  ;;  %v9734_v38 = vmul.u32.u64.low %v941_v16, %v940_v27  ;;  %v9735_v2 = vmul.u32.u64.high %v941_v16, %v940_v27, %v9734_v38 }
  0xed   : > { %v860_v11 = vsel %vm7303_vm14, 0, %v7302_v3  ;;  %v9738_v49 = vmul.u32.u64.low %v941_v16, %v936_v5  ;;  %v9739_v44 = vmul.u32.u64.high %v941_v16, %v936_v5, %v9738_v49  ;;  %v7308_v29 = vadd.s32 4294967169, %v1001_v12 }
  0xee   : > { %vm791_vm0 = vcmp.lt.s32.totalorder %v9401_v37, 0  ;;  %v861_v18 = vsub.s32 32, %v860_v11  ;;  %v862_v61 = vshll.u32 %v9711_v41, %v860_v11  ;;  %v865_v53 = vsub.s32 4294967266, %v860_v11 }
  0xef   : > { %vm780_vm1 = vcmp.lt.s32.totalorder %v9695_v40, 2  ;;  %v14427_v21 = vand.u32 2147483647, %v9401_v37  ;;  %v9754_v45 = vsel %vm791_vm0, %v875_v10, %v9699_v13  ;;  %v1007_v25 = vadd.s32 1, %v7308_v29 }
  0xf0   : > { %v863_v19 = vshrl.u32 %v845_v32, %v861_v18  ;;  %v866_v7 = vadd.s32 127, %v865_v53  ;;  %v948_v28 = vmul.u32 %v941_v16, %v932_v33  ;;  %vm950_vm3 = vc.u32 %v9735_v2, %v9738_v49 }
  0xf1   : > { %vm9747_vm2 = vcmp.le.f32.partialorder %v14427_v21, 0.7853982  ;;  %vm781_vm4 = vcmp.eq.s32.totalorder %v9695_v40, 0  ;;  %v951_v41 = vadd.s32 1, %v9739_v44  ;;  %v1004_v8 = vand.u32 8388607, %v997_v46 }
  0xf2   : > { %vm1008_vm5 = vcmp.gt.s32.totalorder %v1007_v25, 0  ;;  %v7876_v31 = vpop.eup %7875  ;;  %vm784_vm6 = vcmp.eq.s32.totalorder %v9695_v40, 2  ;;  %v864_v13 = vor.u32 %v863_v19, %v862_v61  ;;  %v867_v1 = vshll.u32 %v866_v7, 23 }
  0xf3   : > { %v1009_v36 = vsel %vm1008_vm5, %v1007_v25, 0  ;;  %v7878_v32 = vpop.eup %7877  ;;  %v785_v9 = vxor.u32 2147483648, %v7876_v31  ;;  %v878_v16 = vsel %vm9747_vm2, 0, %v9754_v45  ;;  %v952_v22 = vsel %vm950_vm3, %v951_v41, %v9739_v44 }
  0xf4   : > { %v1011_v26 = vand.u32 31, %v1009_v36  ;;  %v782_v17 = vxor.u32 2147483648, %v7878_v32  ;;  %v868_v55 = vor.u32 4788187, %v867_v1  ;;  %v871_v3 = vcvt.s32.f32 %v864_v13 }
  0xf5   : > { %v953_v6 = vadd.s32 %v952_v22, %v948_v28  ;;  %v786_v4 = vsel %vm784_vm6, %v785_v9, %v7878_v32  ;;  %v1005_v35 = vor.u32 8388608, %v1004_v8  ;;  %v1104_v5 = vand.u32 2139095040, %v9155_v30 }
  0xf6   : > { %v1012_v10 = vsub.s32 32, %v1011_v26  ;;  %v783_v27 = vsel %vm781_vm4, %v7876_v31, %v782_v17  ;;  %v869_v12 = vand.u32 2147483647, %v868_v55  ;;  %v1010_v38 = vshrl.u32 %v1009_v36, 5 }
  0xf7   : > { %v954_v33 = vadd.s32 536870912, %v953_v6  ;;  %v787_v11 = vsel %vm780_vm1, %v783_v27, %v786_v4  ;;  %v1014_v44 = vshll.u32 %v14417_v24, %v1011_v26  ;;  %v1017_v18 = vshll.u32 %v14411_v14, %v1011_v26 }
  0xf8   : > { %v1015_v29 = vshrl.u32 %v14411_v14, %v1012_v10  ;;  %v788_v61 = vsel %vm777_vm15, nan, %v787_v11  ;;  %v872_v53 = vmul.f32 %v871_v3, %v869_v12  ;;  %v1018_v45 = vshrl.u32 %v14412_v20, %v1012_v10 }
  0xf9   : > { %v9777_v21 = vshrl.u32 %v954_v33, 30  ;;  %v1020_v25 = vshll.u32 %v14412_v20, %v1011_v26  ;;  %v1021_v19 = vshrl.u32 %v14413_v15, %v1012_v10  ;;  %v1023_v40 = vshll.u32 %v14413_v15, %v1011_v26  ;;  %7135 = vst [vmem:[%s9691_s5 + $0x10] sm:$0xff] %v788_v61 }
  0xfa   : > { %v1024_v7 = vshrl.u32 %v14414_v23, %v1012_v10  ;;  %v873_v28 = vxor.u32 2147483648, %v872_v53  ;;  %v9786_v8 = vshll.u32 %v1005_v35, 8  ;;  %v1105_v47 = vshrl.u32 %v1104_v5, 23 }
  0xfb   : > { %v956_v41 = vshll.u32 %v9777_v21, 30  ;;  %v1013_v31 = vshrl.u32 %v14417_v24, %v1012_v10  ;;  %v1016_v13 = vor.u32 %v1015_v29, %v1014_v44  ;;  %v1026_v1 = vshll.u32 %v14414_v23, %v1011_v26 }
  0xfc   : > { %v1027_v36 = vshrl.u32 %v14415_v51, %v1012_v10  ;;  %v874_v32 = vsel %vm791_vm0, %v873_v28, %v872_v53  ;;  %v1019_v22 = vor.u32 %v1018_v45, %v1017_v18  ;;  %v1025_v17 = vor.u32 %v1024_v7, %v1023_v40 }
  0xfd   : > { %v9793_v9 = vsub.s32 %v953_v6, %v956_v41  ;;  %v877_v55 = vsel %vm9747_vm2, %v9401_v37, %v874_v32  ;;  %v1022_v3 = vor.u32 %v1021_v19, %v1020_v25  ;;  %vm1029_vm7 = vcmp.lt.s32.totalorder %v1010_v38, 1 }
  0xfe   : > { %v1028_v4 = vor.u32 %v1027_v36, %v1026_v1  ;;  %7879 = vcosq.f32 %v877_v55  ;;  %vm1031_vm8 = vcmp.lt.s32.totalorder %v1010_v38, 3  ;;  %vm1032_vm10 = vcmp.lt.s32.totalorder %v1010_v38, 4 }
  0xff   : > { %v959_v35 = vsub.s32 0, %v9793_v9  ;;  %7881 = vsinq.f32 %v877_v55  ;;  %vm1030_vm11 = vcmp.lt.s32.totalorder %v1010_v38, 2  ;;  %v1033_v26 = vsel %vm1029_vm7, %v1013_v31, %v1016_v13 }
 0x100   : > { %v1034_v10 = vsel %vm1032_vm10, %v1022_v3, 2102212464  ;;  %v1037_v27 = vsel %vm1029_vm7, %v1016_v13, %v1019_v22  ;;  %v1038_v12 = vsel %vm1032_vm10, %v1025_v17, 920167782  ;;  %v1041_v33 = vsel %vm1029_vm7, %v1019_v22, %v1022_v3 }
 0x101   : > { %v7305_v6 = vmin.u32 %v959_v35, %v9793_v9  ;;  %v1035_v5 = vsel %vm1031_vm8, %v1019_v22, %v1034_v10  ;;  %v1039_v34 = vsel %vm1031_vm8, %v1022_v3, %v1038_v12  ;;  %v1042_v11 = vsel %vm1032_vm10, %v1028_v4, 1326507024 }
 0x102   : > { %v882_v44 = vadd.s32 3, %v878_v16  ;;  %v1036_v18 = vsel %vm1030_vm11, %v1033_v26, %v1035_v5  ;;  %v1040_v61 = vsel %vm1030_vm11, %v1037_v27, %v1039_v34  ;;  %v1043_v53 = vsel %vm1031_vm8, %v1025_v17, %v1042_v11 }
 0x103   : > { %v961_v29 = vclz %v7305_v6  ;;  %v7312_v45 = vadd.s32 4294967169, %v1105_v47  ;;  %v1044_v19 = vsel %vm1030_vm11, %v1041_v33, %v1043_v53  ;;  %v979_v28 = vsub.s32 4, %v9777_v21 }
 0x104   : > { %v9807_v40 = vmul.u32.u64.low %v9786_v8, %v1040_v61  ;;  %v9808_v7 = vmul.u32.u64.high %v9786_v8, %v1040_v61, %v9807_v40  ;;  %v9813_v16 = vmul.u32.u64.low %v9786_v8, %v1044_v19  ;;  %v9814_v41 = vmul.u32.u64.high %v9786_v8, %v1044_v19, %v9813_v16 }
 0x105   : > { %v7306_v25 = vadd.s32 4294967294, %v961_v29  ;;  %v1111_v31 = vadd.s32 1, %v7312_v45  ;;  %vm881_vm9 = vweird.f32 %v9401_v37  ;;  %vm895_vm12 = vcmp.lt.s32.totalorder %v9147_v43, 0 }
 0x106   : > { %v949_v38 = vadd.s32 %v9738_v49, %v9735_v2  ;;  %v1101_v47 = vand.u32 2147483647, %v9155_v30  ;;  %v883_v13 = vand.u32 3, %v882_v44  ;;  %v1052_v36 = vmul.u32 %v9786_v8, %v1036_v18 }
 0x107   : > { %vm7307_vm13 = vcmp.lt.s32.totalorder %v7306_v25, 0  ;;  %vm1112_vm14 = vcmp.gt.s32.totalorder %v1111_v31, 0  ;;  %v1055_v55 = vadd.s32 1, %v9808_v7  ;;  %vm9826_vm15 = vcmp.le.f32.partialorder %v893_v52, 0.7853982 }
 0x108   : > { %v964_v1 = vsel %vm7307_vm13, 0, %v7306_v25  ;;  %v9833_v2 = vsel %vm895_vm12, %v979_v28, %v9777_v21  ;;  %vm1054_vm0 = vc.u32 %v9814_v41, %v9807_v40  ;;  %v1113_v49 = vsel %vm1112_vm14, %v1111_v31, 0 }
 0x109   : > { %v965_v32 = vsub.s32 32, %v964_v1  ;;  %v966_v22 = vshll.u32 %v9793_v9, %v964_v1  ;;  %v969_v17 = vsub.s32 4294967266, %v964_v1  ;;  %v1056_v4 = vsel %vm1054_vm0, %v1055_v55, %v9808_v7 }
 0x10a   : > { %v1108_v35 = vand.u32 8388607, %v1101_v47  ;;  %vm884_vm1 = vcmp.lt.s32.totalorder %v883_v13, 2  ;;  %vm888_vm2 = vcmp.eq.s32.totalorder %v883_v13, 2  ;;  %v1057_v26 = vadd.s32 %v1056_v4, %v1052_v36 }
 0x10b   : > { %v967_v8 = vshrl.u32 %v949_v38, %v965_v32  ;;  %v970_v9 = vadd.s32 127, %v969_v17  ;;  %v7880_v52 = vpop.eup %7879  ;;  %v1115_v10 = vand.u32 31, %v1113_v49  ;;  %vm885_vm3 = vcmp.eq.s32.totalorder %v883_v13, 0 }
 0x10c   : > { %v7882_v6 = vpop.eup %7881  ;;  %v889_v21 = vxor.u32 2147483648, %v7880_v52  ;;  %v982_v34 = vsel %vm9826_vm15, 0, %v9833_v2  ;;  %v1058_v33 = vadd.s32 536870912, %v1057_v26  ;;  %v1109_v61 = vor.u32 8388608, %v1108_v35 }
 0x10d   : > { %v968_v5 = vor.u32 %v967_v8, %v966_v22  ;;  %v971_v27 = vshll.u32 %v970_v9, 23  ;;  %v886_v12 = vxor.u32 2147483648, %v7882_v6  ;;  %v1116_v11 = vsub.s32 32, %v1115_v10 }
 0x10e   : > { %v890_v44 = vsel %vm888_vm2, %v889_v21, %v7882_v6  ;;  %v9843_v45 = vshrl.u32 %v1058_v33, 30  ;;  %v1118_v25 = vshll.u32 %v14417_v24, %v1115_v10  ;;  %v1121_v19 = vshll.u32 %v14411_v14, %v1115_v10 }
 0x10f   : > { %v972_v29 = vor.u32 4788187, %v971_v27  ;;  %v975_v18 = vcvt.s32.f32 %v968_v5  ;;  %v887_v53 = vsel %vm885_vm3, %v7880_v52, %v886_v12  ;;  %v1119_v16 = vshrl.u32 %v14411_v14, %v1116_v11 }
 0x110   : > { %v891_v7 = vsel %vm884_vm1, %v887_v53, %v890_v44  ;;  %v1122_v31 = vshrl.u32 %v14412_v20, %v1116_v11  ;;  %v1060_v1 = vshll.u32 %v9843_v45, 30  ;;  %v1114_v36 = vshrl.u32 %v1113_v49, 5 }
 0x111   : > { %v973_v28 = vand.u32 2147483647, %v972_v29  ;;  %v892_v38 = vsel %vm881_vm9, nan, %v891_v7  ;;  %v1208_v32 = vand.u32 2139095040, %v9159_v57  ;;  %v1124_v17 = vshll.u32 %v14412_v20, %v1115_v10 }
 0x112   : > { %v1125_v55 = vshrl.u32 %v14413_v15, %v1116_v11  ;;  %v1127_v13 = vshll.u32 %v14413_v15, %v1115_v10  ;;  %7136 = vst [vmem:[%s9691_s5 + $0x18] sm:$0xff] %v892_v38  ;;  %v9858_v2 = vsub.s32 %v1057_v26, %v1060_v1  ;;  %v1128_v8 = vshrl.u32 %v14414_v23, %v1116_v11 }
 0x113   : > { %v976_v22 = vmul.f32 %v975_v18, %v973_v28  ;;  %v1130_v37 = vshll.u32 %v14414_v23, %v1115_v10  ;;  %v9862_v9 = vshll.u32 %v1109_v61, 8  ;;  %v1120_v49 = vor.u32 %v1119_v16, %v1118_v25 }
 0x114   : > { %v1123_v35 = vor.u32 %v1122_v31, %v1121_v19  ;;  %v1131_v52 = vshrl.u32 %v14415_v51, %v1116_v11  ;;  %v1063_v6 = vsub.s32 0, %v9858_v2  ;;  %v1117_v21 = vshrl.u32 %v14417_v24, %v1116_v11 }
 0x115   : > { %v977_v4 = vxor.u32 2147483648, %v976_v22  ;;  %v1129_v5 = vor.u32 %v1128_v8, %v1127_v13  ;;  %vm1133_vm4 = vcmp.lt.s32.totalorder %v1114_v36, 1  ;;  %v1126_v27 = vor.u32 %v1125_v55, %v1124_v17 }
 0x116   : > { %vm1134_vm5 = vcmp.lt.s32.totalorder %v1114_v36, 2  ;;  %vm1136_vm6 = vcmp.lt.s32.totalorder %v1114_v36, 4  ;;  %v7309_v12 = vmin.u32 %v1063_v6, %v9858_v2  ;;  %v1132_v33 = vor.u32 %v1131_v52, %v1130_v37 }
 0x117   : > { %v978_v26 = vsel %vm895_vm12, %v977_v4, %v976_v22  ;;  %vm1135_vm7 = vcmp.lt.s32.totalorder %v1114_v36, 3  ;;  %v1138_v44 = vsel %vm1136_vm6, %v1126_v27, 2102212464  ;;  %v1141_v11 = vsel %vm1133_vm4, %v1120_v49, %v1123_v35 }
 0x118   : > { %v981_v10 = vsel %vm9826_vm15, %v9147_v43, %v978_v26  ;;  %v1142_v29 = vsel %vm1136_vm6, %v1129_v5, 920167782  ;;  %v986_v18 = vadd.s32 3, %v982_v34  ;;  %v1065_v61 = vclz %v7309_v12 }
 0x119   : > { %7883 = vcosq.f32 %v981_v10  ;;  %v1209_v53 = vshrl.u32 %v1208_v32, 23  ;;  %v1137_v25 = vsel %vm1133_vm4, %v1117_v21, %v1120_v49  ;;  %v1139_v3 = vsel %vm1135_vm7, %v1123_v35, %v1138_v44 }
 0x11a   : > { %7885 = vsinq.f32 %v981_v10  ;;  %v1143_v19 = vsel %vm1135_vm7, %v1126_v27, %v1142_v29  ;;  %v1145_v7 = vsel %vm1133_vm4, %v1123_v35, %v1126_v27  ;;  %v1053_v28 = vadd.s32 %v9807_v40, %v9814_v41 }
 0x11b   : > { %v7310_v16 = vadd.s32 4294967294, %v1065_v61  ;;  %v1144_v31 = vsel %vm1134_vm5, %v1141_v11, %v1143_v19  ;;  %v1146_v38 = vsel %vm1136_vm6, %v1132_v33, 1326507024  ;;  %v1083_v34 = vsub.s32 4, %v9843_v45 }
 0x11c   : > { %v1147_v1 = vsel %vm1135_vm7, %v1129_v5, %v1146_v38  ;;  %v9887_v32 = vmul.u32.u64.low %v9862_v9, %v1144_v31  ;;  %v9888_v22 = vmul.u32.u64.high %v9862_v9, %v1144_v31, %v9887_v32  ;;  %v1140_v17 = vsel %vm1134_vm5, %v1137_v25, %v1139_v3 }
 0x11d   : > { %vm7311_vm8 = vcmp.lt.s32.totalorder %v7310_v16, 0  ;;  %v1148_v55 = vsel %vm1134_vm5, %v1145_v7, %v1147_v1  ;;  %v7316_v40 = vadd.s32 4294967169, %v1209_v53  ;;  %v1205_v37 = vand.u32 2147483647, %v9159_v57 }
 0x11e   : > { %v1068_v41 = vsel %vm7311_vm8, 0, %v7310_v16  ;;  %v9894_v13 = vmul.u32.u64.low %v9862_v9, %v1148_v55  ;;  %v9895_v8 = vmul.u32.u64.high %v9862_v9, %v1148_v55, %v9894_v13  ;;  %vm999_vm10 = vcmp.lt.s32.totalorder %v9151_v48, 0 }
 0x11f   : > { %v1069_v4 = vsub.s32 32, %v1068_v41  ;;  %v1070_v49 = vshll.u32 %v9858_v2, %v1068_v41  ;;  %v1073_v35 = vsub.s32 4294967266, %v1068_v41  ;;  %v1156_v52 = vmul.u32 %v9862_v9, %v1140_v17 }
 0x120   : > { %v1159_v6 = vadd.s32 1, %v9888_v22  ;;  %v1215_v36 = vadd.s32 1, %v7316_v40  ;;  %v987_v21 = vand.u32 3, %v986_v18  ;;  %v1084_v27 = vsel %vm999_vm10, %v1083_v34, %v9843_v45 }
 0x121   : > { %v1071_v5 = vshrl.u32 %v1053_v28, %v1069_v4  ;;  %v1074_v26 = vadd.s32 127, %v1073_v35  ;;  %vm9907_vm11 = vcmp.le.f32.partialorder %v997_v46, 0.7853982  ;;  %vm1158_vm9 = vc.u32 %v9895_v8, %v9887_v32 }
 0x122   : > { %v9915_v2 = vand.u32 8388607, %v1205_v37  ;;  %vm1216_vm12 = vcmp.gt.s32.totalorder %v1215_v36, 0  ;;  %v1160_v33 = vsel %vm1158_vm9, %v1159_v6, %v9888_v22  ;;  %vm985_vm13 = vweird.f32 %v9147_v43 }
 0x123   : > { %v1072_v9 = vor.u32 %v1071_v5, %v1070_v49  ;;  %v1075_v12 = vshll.u32 %v1074_v26, 23  ;;  %v1217_v44 = vsel %vm1216_vm12, %v1215_v36, 0  ;;  %v1086_v46 = vsel %vm9907_vm11, 0, %v1084_v27 }
 0x124   : > { %v1161_v45 = vadd.s32 %v1160_v33, %v1156_v52  ;;  %v1219_v11 = vand.u32 31, %v1217_v44  ;;  %vm988_vm14 = vcmp.lt.s32.totalorder %v987_v21, 2  ;;  %vm992_vm15 = vcmp.eq.s32.totalorder %v987_v21, 2 }
 0x125   : > { %v1076_v18 = vor.u32 4788187, %v1075_v12  ;;  %v1079_v61 = vcvt.s32.f32 %v1072_v9  ;;  %vm989_vm0 = vcmp.eq.s32.totalorder %v987_v21, 0  ;;  %v1090_v16 = vadd.s32 3, %v1086_v46 }
 0x126   : > { %v7884_v29 = vpop.eup %7883  ;;  %v1162_v3 = vadd.s32 536870912, %v1161_v45  ;;  %v1220_v19 = vsub.s32 32, %v1219_v11  ;;  %v1213_v31 = vor.u32 8388608, %v9915_v2  ;;  %v1222_v1 = vshll.u32 %v14417_v24, %v1219_v11 }
 0x127   : > { %v7886_v53 = vpop.eup %7885  ;;  %v993_v25 = vxor.u32 2147483648, %v7884_v29  ;;  %v1077_v28 = vand.u32 2147483647, %v1076_v18  ;;  %v1225_v22 = vshll.u32 %v14411_v14, %v1219_v11  ;;  %v1228_v41 = vshll.u32 %v14412_v20, %v1219_v11 }
 0x128   : > { %v990_v7 = vxor.u32 2147483648, %v7886_v53  ;;  %v9922_v34 = vshrl.u32 %v1162_v3, 30  ;;  %v1223_v40 = vshrl.u32 %v14411_v14, %v1220_v19  ;;  %v1226_v49 = vshrl.u32 %v14412_v20, %v1220_v19 }
 0x129   : > { %v994_v38 = vsel %vm992_vm15, %v993_v25, %v7886_v53  ;;  %v1080_v55 = vmul.f32 %v1079_v61, %v1077_v28  ;;  %v1229_v35 = vshrl.u32 %v14413_v15, %v1220_v19  ;;  %v1218_v36 = vshrl.u32 %v1217_v44, 5 }
 0x12a   : > { %v991_v17 = vsel %vm989_vm0, %v7884_v29, %v990_v7  ;;  %v1164_v4 = vshll.u32 %v9922_v34, 30  ;;  %v1312_v5 = vand.u32 2139095040, %v9163_v0  ;;  %v1221_v27 = vshrl.u32 %v14417_v24, %v1220_v19 }
 0x12b   : > { %v995_v13 = vsel %vm988_vm14, %v991_v17, %v994_v38  ;;  %v1081_v6 = vxor.u32 2147483648, %v1080_v55  ;;  %v1231_v21 = vshll.u32 %v14413_v15, %v1219_v11  ;;  %v1232_v2 = vshrl.u32 %v14414_v23, %v1220_v19 }
 0x12c   : > { %v996_v52 = vsel %vm985_vm13, nan, %v995_v13  ;;  %v9935_v26 = vsub.s32 %v1161_v45, %v1164_v4  ;;  %v1224_v12 = vor.u32 %v1223_v40, %v1222_v1  ;;  %v1234_v43 = vshll.u32 %v14414_v23, %v1219_v11 }
 0x12d   : > { %7137 = vst [vmem:[%s9691_s5 + $0x20] sm:$0xff] %v996_v52  ;;  %v1082_v9 = vsel %vm999_vm10, %v1081_v6, %v1080_v55  ;;  %v1235_v33 = vshrl.u32 %v14415_v51, %v1220_v19  ;;  %v1227_v45 = vor.u32 %v1226_v49, %v1225_v22  ;;  %v1230_v29 = vor.u32 %v1229_v35, %v1228_v41 }
 0x12e   : > { %v1085_v44 = vsel %vm9907_vm11, %v9151_v48, %v1082_v9  ;;  %v1167_v46 = vsub.s32 0, %v9935_v26  ;;  %v1233_v18 = vor.u32 %v1232_v2, %v1231_v21  ;;  %vm1237_vm1 = vcmp.lt.s32.totalorder %v1218_v36, 1 }
 0x12f   : > { %7887 = vcosq.f32 %v1085_v44  ;;  %v1236_v61 = vor.u32 %v1235_v33, %v1234_v43  ;;  %v9949_v53 = vand.u32 3, %v1090_v16  ;;  %vm1103_vm2 = vcmp.lt.s32.totalorder %v9155_v30, 0 }
 0x130   : > { %7889 = vsinq.f32 %v1085_v44  ;;  %v7313_v11 = vmin.u32 %v1167_v46, %v9935_v26  ;;  %v1309_v25 = vand.u32 2147483647, %v9163_v0  ;;  %vm1239_vm3 = vcmp.lt.s32.totalorder %v1218_v36, 3 }
 0x131   : > { %vm1240_vm4 = vcmp.lt.s32.totalorder %v1218_v36, 4  ;;  %v1253_v10 = vshll.u32 %v1213_v31, 8  ;;  %v1313_v3 = vshrl.u32 %v1312_v5, 23  ;;  %vm1238_vm5 = vcmp.lt.s32.totalorder %v1218_v36, 2 }
 0x132   : > { %v1169_v19 = vclz %v7313_v11  ;;  %v1245_v7 = vsel %vm1237_vm1, %v1224_v12, %v1227_v45  ;;  %v1249_v28 = vsel %vm1237_vm1, %v1227_v45, %v1230_v29  ;;  %v1241_v38 = vsel %vm1237_vm1, %v1221_v27, %v1224_v12 }
 0x133   : > { %v1242_v1 = vsel %vm1240_vm4, %v1230_v29, 2102212464  ;;  %v1246_v22 = vsel %vm1240_vm4, %v1233_v18, 920167782  ;;  %v1250_v17 = vsel %vm1240_vm4, %v1236_v61, 1326507024  ;;  %v1157_v35 = vadd.s32 %v9887_v32, %v9895_v8 }
 0x134   : > { %v7314_v16 = vadd.s32 4294967294, %v1169_v19  ;;  %v1243_v55 = vsel %vm1239_vm3, %v1227_v45, %v1242_v1  ;;  %v1247_v40 = vsel %vm1239_vm3, %v1230_v29, %v1246_v22  ;;  %v1251_v41 = vsel %vm1239_vm3, %v1233_v18, %v1250_v17 }
 0x135   : > { %v1187_v13 = vsub.s32 4, %v9922_v34  ;;  %v1248_v4 = vsel %vm1238_vm5, %v1245_v7, %v1247_v40  ;;  %v1252_v49 = vsel %vm1238_vm5, %v1249_v28, %v1251_v41  ;;  %v7320_v31 = vadd.s32 4294967169, %v1313_v3 }
 0x136   : > { %vm7315_vm6 = vcmp.lt.s32.totalorder %v7314_v16, 0  ;;  %v9959_v52 = vmul.u32.u64.low %v1253_v10, %v1252_v49  ;;  %v9960_v6 = vmul.u32.u64.high %v1253_v10, %v1252_v49, %v9959_v52  ;;  %v1244_v27 = vsel %vm1238_vm5, %v1241_v38, %v1243_v55 }
 0x137   : > { %v1172_v5 = vsel %vm7315_vm6, 0, %v7314_v16  ;;  %v9963_v21 = vmul.u32.u64.low %v1253_v10, %v1248_v4  ;;  %v9964_v2 = vmul.u32.u64.high %v1253_v10, %v1248_v4, %v9963_v21  ;;  %v1319_v33 = vadd.s32 1, %v7320_v31 }
 0x138   : > { %v1173_v9 = vsub.s32 32, %v1172_v5  ;;  %v1174_v12 = vshll.u32 %v9935_v26, %v1172_v5  ;;  %v1177_v43 = vsub.s32 4294967266, %v1172_v5  ;;  %vm1089_vm7 = vweird.f32 %v9151_v48 }
 0x139   : > { %vm1092_vm8 = vcmp.lt.s32.totalorder %v9949_v53, 2  ;;  %vm9972_vm10 = vcmp.le.f32.partialorder %v1101_v47, 0.7853982  ;;  %v9979_v8 = vsel %vm1103_vm2, %v1187_v13, %v9922_v34  ;;  %v1260_v26 = vmul.u32 %v1253_v10, %v1244_v27 }
 0x13a   : > { %v1175_v36 = vshrl.u32 %v1157_v35, %v1173_v9  ;;  %v1178_v44 = vadd.s32 127, %v1177_v43  ;;  %vm1262_vm11 = vc.u32 %v9960_v6, %v9963_v21  ;;  %vm1093_vm9 = vcmp.eq.s32.totalorder %v9949_v53, 0 }
 0x13b   : > { %v1263_v46 = vadd.s32 1, %v9964_v2  ;;  %v1316_v47 = vand.u32 8388607, %v1309_v25  ;;  %vm1320_vm12 = vcmp.gt.s32.totalorder %v1319_v33, 0  ;;  %vm1096_vm13 = vcmp.eq.s32.totalorder %v9949_v53, 2 }
 0x13c   : > { %v7888_v45 = vpop.eup %7887  ;;  %v1176_v29 = vor.u32 %v1175_v36, %v1174_v12  ;;  %v1179_v34 = vshll.u32 %v1178_v44, 23  ;;  %v1321_v18 = vsel %vm1320_vm12, %v1319_v33, 0  ;;  %v1190_v10 = vsel %vm9972_vm10, 0, %v9979_v8 }
 0x13d   : > { %v7890_v61 = vpop.eup %7889  ;;  %v1097_v11 = vxor.u32 2147483648, %v7888_v45  ;;  %v1264_v3 = vsel %vm1262_vm11, %v1263_v46, %v9964_v2  ;;  %v1323_v19 = vand.u32 31, %v1321_v18  ;;  %v1317_v17 = vor.u32 8388608, %v1316_v47 }
 0x13e   : > { %v1094_v7 = vxor.u32 2147483648, %v7890_v61  ;;  %v1180_v28 = vor.u32 4788187, %v1179_v34  ;;  %v1183_v38 = vcvt.s32.f32 %v1176_v29  ;;  %v1265_v1 = vadd.s32 %v1264_v3, %v1260_v26 }
 0x13f   : > { %v1098_v22 = vsel %vm1096_vm13, %v1097_v11, %v7890_v61  ;;  %v1324_v16 = vsub.s32 32, %v1323_v19  ;;  %v1416_v55 = vand.u32 2139095040, %v9167_v60  ;;  %v1322_v4 = vshrl.u32 %v1321_v18, 5 }
 0x140   : > { %v1095_v40 = vsel %vm1093_vm9, %v7888_v45, %v1094_v7  ;;  %v1181_v41 = vand.u32 2147483647, %v1180_v28  ;;  %v1266_v13 = vadd.s32 536870912, %v1265_v1  ;;  %v1326_v31 = vshll.u32 %v14417_v24, %v1323_v19 }
 0x141   : > { %v1099_v49 = vsel %vm1092_vm8, %v1095_v40, %v1098_v22  ;;  %v1327_v35 = vshrl.u32 %v14411_v14, %v1324_v16  ;;  %v1329_v52 = vshll.u32 %v14411_v14, %v1323_v19  ;;  %v1330_v9 = vshrl.u32 %v14412_v20, %v1324_v16 }
 0x142   : > { %v1100_v5 = vsel %vm1089_vm7, nan, %v1099_v49  ;;  %v1184_v27 = vmul.f32 %v1183_v38, %v1181_v41  ;;  %v1267_v2 = vshrl.u32 %v1266_v13, 30  ;;  %v1332_v12 = vshll.u32 %v14412_v20, %v1323_v19 }
 0x143   : > { %v1333_v43 = vshrl.u32 %v14413_v15, %v1324_v16  ;;  %v1335_v53 = vshll.u32 %v14413_v15, %v1323_v19  ;;  %v1336_v33 = vshrl.u32 %v14414_v23, %v1324_v16  ;;  %7138 = vst [vmem:[%s9691_s5 + $0x28] sm:$0xff] %v1100_v5  ;;  %v10008_v44 = vshll.u32 %v1317_v17, 8 }
 0x144   : > { %v1185_v8 = vxor.u32 2147483648, %v1184_v27  ;;  %v1268_v36 = vshll.u32 %v1267_v2, 30  ;;  %v1417_v26 = vshrl.u32 %v1416_v55, 23  ;;  %v1325_v48 = vshrl.u32 %v14417_v24, %v1324_v16 }
 0x145   : > { %v1328_v46 = vor.u32 %v1327_v35, %v1326_v31  ;;  %v1338_v47 = vshll.u32 %v14414_v23, %v1323_v19  ;;  %v1339_v45 = vshrl.u32 %v14415_v51, %v1324_v16  ;;  %v1331_v18 = vor.u32 %v1330_v9, %v1329_v52 }
 0x146   : > { %v1186_v29 = vsel %vm1103_vm2, %v1185_v8, %v1184_v27  ;;  %v10015_v34 = vsub.s32 %v1265_v1, %v1268_v36  ;;  %v1337_v61 = vor.u32 %v1336_v33, %v1335_v53  ;;  %v1334_v3 = vor.u32 %v1333_v43, %v1332_v12 }
 0x147   : > { %v1189_v11 = vsel %vm9972_vm10, %v9155_v30, %v1186_v29  ;;  %v1340_v7 = vor.u32 %v1339_v45, %v1338_v47  ;;  %vm1341_vm14 = vcmp.lt.s32.totalorder %v1322_v4, 1  ;;  %vm1343_vm15 = vcmp.lt.s32.totalorder %v1322_v4, 3 }
 0x148   : > { %7891 = vcosq.f32 %v1189_v11  ;;  %v1271_v28 = vsub.s32 0, %v10015_v34  ;;  %vm1344_vm0 = vcmp.lt.s32.totalorder %v1322_v4, 4  ;;  %vm1342_vm1 = vcmp.lt.s32.totalorder %v1322_v4, 2 }
 0x149   : > { %7893 = vsinq.f32 %v1189_v11  ;;  %v1345_v19 = vsel %vm1341_vm14, %v1325_v48, %v1328_v46  ;;  %v1346_v38 = vsel %vm1344_vm0, %v1334_v3, 2102212464  ;;  %v1349_v17 = vsel %vm1341_vm14, %v1328_v46, %v1331_v18 }
 0x14a   : > { %v7317_v1 = vmin.u32 %v1271_v28, %v10015_v34  ;;  %v1347_v22 = vsel %vm1343_vm15, %v1331_v18, %v1346_v38  ;;  %v1350_v16 = vsel %vm1344_vm0, %v1337_v61, 920167782  ;;  %v1353_v55 = vsel %vm1341_vm14, %v1331_v18, %v1334_v3 }
 0x14b   : > { %v1351_v32 = vsel %vm1343_vm15, %v1334_v3, %v1350_v16  ;;  %v1354_v40 = vsel %vm1344_vm0, %v1340_v7, 1326507024  ;;  %v1194_v41 = vadd.s32 3, %v1190_v10  ;;  %vm1207_vm2 = vcmp.lt.s32.totalorder %v9159_v57, 0 }
 0x14c   : > { %v1273_v13 = vclz %v7317_v1  ;;  %v1291_v49 = vsub.s32 4, %v1267_v2  ;;  %v1348_v31 = vsel %vm1342_vm1, %v1345_v19, %v1347_v22  ;;  %v1352_v35 = vsel %vm1342_vm1, %v1349_v17, %v1351_v32 }
 0x14d   : > { %v1355_v52 = vsel %vm1343_vm15, %v1337_v61, %v1354_v40  ;;  %v7324_v5 = vadd.s32 4294967169, %v1417_v26  ;;  %v10030_v12 = vmul.u32.u64.low %v10008_v44, %v1352_v35  ;;  %v10031_v43 = vmul.u32.u64.high %v10008_v44, %v1352_v35, %v10030_v12 }
 0x14e   : > { %v7318_v27 = vadd.s32 4294967294, %v1273_v13  ;;  %v1356_v9 = vsel %vm1342_vm1, %v1353_v55, %v1355_v52  ;;  %v1413_v33 = vand.u32 2147483647, %v9167_v60  ;;  %vm1193_vm3 = vweird.f32 %v9155_v30 }
 0x14f   : > { %v10035_v10 = vmul.u32.u64.low %v10008_v44, %v1356_v9  ;;  %v10036_v53 = vmul.u32.u64.high %v10008_v44, %v1356_v9, %v10035_v10  ;;  %v1423_v8 = vadd.s32 1, %v7324_v5  ;;  %v1195_v36 = vand.u32 3, %v1194_v41 }
 0x150   : > { %v1261_v26 = vadd.s32 %v9963_v21, %v9960_v6  ;;  %vm7319_vm4 = vcmp.lt.s32.totalorder %v7318_v27, 0  ;;  %v1292_v4 = vsel %vm1207_vm2, %v1291_v49, %v1267_v2  ;;  %vm10046_vm5 = vcmp.le.f32.partialorder %v1205_v37, 0.7853982 }
 0x151   : > { %v1276_v46 = vsel %vm7319_vm4, 0, %v7318_v27  ;;  %v1364_v47 = vmul.u32 %v10008_v44, %v1348_v31  ;;  %vm1424_vm6 = vcmp.gt.s32.totalorder %v1423_v8, 0  ;;  %v1367_v6 = vadd.s32 1, %v10031_v43 }
 0x152   : > { %v1277_v45 = vsub.s32 32, %v1276_v46  ;;  %v1278_v29 = vshll.u32 %v10015_v34, %v1276_v46  ;;  %v1281_v18 = vsub.s32 4294967266, %v1276_v46  ;;  %v1294_v21 = vsel %vm10046_vm5, 0, %v1292_v4 }
 0x153   : > { %vm1366_vm7 = vc.u32 %v10036_v53, %v10030_v12  ;;  %v1420_v37 = vand.u32 8388607, %v1413_v33  ;;  %v1425_v2 = vsel %vm1424_vm6, %v1423_v8, 0  ;;  %vm1196_vm8 = vcmp.lt.s32.totalorder %v1195_v36, 2 }
 0x154   : > { %v1279_v61 = vshrl.u32 %v1261_v26, %v1277_v45  ;;  %v1282_v44 = vadd.s32 127, %v1281_v18  ;;  %v1368_v11 = vsel %vm1366_vm7, %v1367_v6, %v10031_v43  ;;  %vm1197_vm10 = vcmp.eq.s32.totalorder %v1195_v36, 0 }
 0x155   : > { %v7892_v3 = vpop.eup %7891  ;;  %vm1200_vm11 = vcmp.eq.s32.totalorder %v1195_v36, 2  ;;  %v1369_v34 = vadd.s32 %v1368_v11, %v1364_v47  ;;  %v1427_v7 = vand.u32 31, %v1425_v2  ;;  %v10060_v22 = vadd.s32 3, %v1294_v21 }
 0x156   : > { %v7894_v28 = vpop.eup %7893  ;;  %v1201_v19 = vxor.u32 2147483648, %v7892_v3  ;;  %v1280_v38 = vor.u32 %v1279_v61, %v1278_v29  ;;  %v1283_v1 = vshll.u32 %v1282_v44, 23  ;;  %v1421_v32 = vor.u32 8388608, %v1420_v37 }
 0x157   : > { %v1198_v17 = vxor.u32 2147483648, %v7894_v28  ;;  %v1370_v16 = vadd.s32 536870912, %v1369_v34  ;;  %v1428_v55 = vsub.s32 32, %v1427_v7  ;;  %v1517_v49 = vand.u32 2147483647, %v9171_v56 }
 0x158   : > { %v1202_v40 = vsel %vm1200_vm11, %v1201_v19, %v7894_v28  ;;  %v1284_v41 = vor.u32 4788187, %v1283_v1  ;;  %v1287_v13 = vcvt.s32.f32 %v1280_v38  ;;  %v1430_v52 = vshll.u32 %v14417_v24, %v1427_v7 }
 0x159   : > { %v1199_v31 = vsel %vm1197_vm10, %v7892_v3, %v1198_v17  ;;  %v1371_v35 = vshrl.u32 %v1370_v16, 30  ;;  %v1433_v5 = vshll.u32 %v14411_v14, %v1427_v7  ;;  %v1431_v43 = vshrl.u32 %v14411_v14, %v1428_v55 }
 0x15a   : > { %v1203_v27 = vsel %vm1196_vm8, %v1199_v31, %v1202_v40  ;;  %v1285_v9 = vand.u32 2147483647, %v1284_v41  ;;  %v1434_v10 = vshrl.u32 %v14412_v20, %v1428_v55  ;;  %v1426_v4 = vshrl.u32 %v1425_v2, 5 }
 0x15b   : > { %v1204_v8 = vsel %vm1193_vm3, nan, %v1203_v27  ;;  %v1372_v26 = vshll.u32 %v1371_v35, 30  ;;  %v1520_v46 = vand.u32 2139095040, %v9171_v56  ;;  %v1436_v45 = vshll.u32 %v14412_v20, %v1427_v7 }
 0x15c   : > { %v1288_v47 = vmul.f32 %v1287_v13, %v1285_v9  ;;  %v1437_v29 = vshrl.u32 %v14413_v15, %v1428_v55  ;;  %v1439_v36 = vshll.u32 %v14413_v15, %v1427_v7  ;;  %7139 = vst [vmem:[%s9691_s5 + $0x30] sm:$0xff] %v1204_v8  ;;  %v1440_v6 = vshrl.u32 %v14414_v23, %v1428_v55 }
 0x15d   : > { %v10076_v18 = vsub.s32 %v1369_v34, %v1372_v26  ;;  %v1442_v21 = vshll.u32 %v14414_v23, %v1427_v7  ;;  %v10080_v30 = vshll.u32 %v1421_v32, 8  ;;  %v1432_v2 = vor.u32 %v1431_v43, %v1430_v52 }
 0x15e   : > { %v1289_v37 = vxor.u32 2147483648, %v1288_v47  ;;  %v1435_v61 = vor.u32 %v1434_v10, %v1433_v5  ;;  %v1443_v44 = vshrl.u32 %v14415_v51, %v1428_v55  ;;  %vm1311_vm9 = vcmp.lt.s32.totalorder %v9163_v0, 0 }
 0x15f   : > { %v1375_v11 = vsub.s32 0, %v10076_v18  ;;  %v1429_v3 = vshrl.u32 %v14417_v24, %v1428_v55  ;;  %v1441_v28 = vor.u32 %v1440_v6, %v1439_v36  ;;  %vm1445_vm12 = vcmp.lt.s32.totalorder %v1426_v4, 1 }
 0x160   : > { %v1290_v34 = vsel %vm1207_vm2, %v1289_v37, %v1288_v47  ;;  %v1438_v19 = vor.u32 %v1437_v29, %v1436_v45  ;;  %vm1446_vm13 = vcmp.lt.s32.totalorder %v1426_v4, 2  ;;  %vm1448_vm14 = vcmp.lt.s32.totalorder %v1426_v4, 4 }
 0x161   : > { %v1293_v7 = vsel %vm10046_vm5, %v9159_v57, %v1290_v34  ;;  %v7321_v38 = vmin.u32 %v1375_v11, %v10076_v18  ;;  %v1444_v1 = vor.u32 %v1443_v44, %v1442_v21  ;;  %vm1447_vm15 = vcmp.lt.s32.totalorder %v1426_v4, 3 }
 0x162   : > { %7895 = vcosq.f32 %v1293_v7  ;;  %v1450_v17 = vsel %vm1448_vm14, %v1438_v19, 2102212464  ;;  %v1453_v16 = vsel %vm1445_vm12, %v1432_v2, %v1435_v61  ;;  %v1454_v32 = vsel %vm1448_vm14, %v1441_v28, 920167782 }
 0x163   : > { %7897 = vsinq.f32 %v1293_v7  ;;  %v1377_v55 = vclz %v7321_v38  ;;  %v1395_v40 = vsub.s32 4, %v1371_v35  ;;  %v1521_v41 = vshrl.u32 %v1520_v46, 23 }
 0x164   : > { %v1449_v13 = vsel %vm1445_vm12, %v1429_v3, %v1432_v2  ;;  %v1451_v48 = vsel %vm1447_vm15, %v1435_v61, %v1450_v17  ;;  %v1455_v31 = vsel %vm1447_vm15, %v1438_v19, %v1454_v32  ;;  %v1457_v52 = vsel %vm1445_vm12, %v1435_v61, %v1438_v19 }
 0x165   : > { %v1365_v5 = vadd.s32 %v10030_v12, %v10036_v53  ;;  %v7322_v27 = vadd.s32 4294967294, %v1377_v55  ;;  %v1456_v9 = vsel %vm1446_vm13, %v1453_v16, %v1455_v31  ;;  %v1458_v43 = vsel %vm1448_vm14, %v1444_v1, 1326507024 }
 0x166   : > { %v1459_v10 = vsel %vm1447_vm15, %v1441_v28, %v1458_v43  ;;  %v10105_v8 = vmul.u32.u64.low %v10080_v30, %v1456_v9  ;;  %v10106_v26 = vmul.u32.u64.high %v10080_v30, %v1456_v9, %v10105_v8  ;;  %v1524_v46 = vand.u32 8388607, %v1517_v49 }
 0x167   : > { %vm7323_vm0 = vcmp.lt.s32.totalorder %v7322_v27, 0  ;;  %v1452_v47 = vsel %vm1446_vm13, %v1449_v13, %v1451_v48  ;;  %v1460_v12 = vsel %vm1446_vm13, %v1457_v52, %v1459_v10  ;;  %v7328_v53 = vadd.s32 4294967169, %v1521_v41 }
 0x168   : > { %v1380_v45 = vsel %vm7323_vm0, 0, %v7322_v27  ;;  %v1396_v29 = vsel %vm1311_vm9, %v1395_v40, %v1371_v35  ;;  %v10116_v36 = vmul.u32.u64.low %v10080_v30, %v1460_v12  ;;  %v10117_v6 = vmul.u32.u64.high %v10080_v30, %v1460_v12, %v10116_v36 }
 0x169   : > { %v1381_v21 = vsub.s32 32, %v1380_v45  ;;  %v1382_v37 = vshll.u32 %v10076_v18, %v1380_v45  ;;  %v1385_v2 = vsub.s32 4294967266, %v1380_v45  ;;  %v1527_v61 = vadd.s32 1, %v7328_v53 }
 0x16a   : > { %v1299_v44 = vand.u32 3, %v10060_v22  ;;  %v1468_v11 = vmul.u32 %v10080_v30, %v1452_v47  ;;  %v1471_v4 = vadd.s32 1, %v10106_v26  ;;  %vm10125_vm1 = vcmp.le.f32.partialorder %v1309_v25, 0.7853982 }
 0x16b   : > { %v1383_v35 = vshrl.u32 %v1365_v5, %v1381_v21  ;;  %v1386_v28 = vadd.s32 127, %v1385_v2  ;;  %vm1528_vm2 = vcmp.gt.s32.totalorder %v1527_v61, 0  ;;  %v1398_v18 = vsel %vm10125_vm1, 0, %v1396_v29 }
 0x16c   : > { %vm1470_vm3 = vc.u32 %v10117_v6, %v10105_v8  ;;  %v1525_v22 = vor.u32 8388608, %v1524_v46  ;;  %v1529_v34 = vsel %vm1528_vm2, %v1527_v61, 0  ;;  %vm1297_vm4 = vweird.f32 %v9159_v57 }
 0x16d   : > { %v1384_v30 = vor.u32 %v1383_v35, %v1382_v37  ;;  %v1387_v19 = vshll.u32 %v1386_v28, 23  ;;  %v1472_v25 = vsel %vm1470_vm3, %v1471_v4, %v10106_v26  ;;  %vm1300_vm5 = vcmp.lt.s32.totalorder %v1299_v44, 2 }
 0x16e   : > { %vm1301_vm6 = vcmp.eq.s32.totalorder %v1299_v44, 0  ;;  %v1473_v7 = vadd.s32 %v1472_v25, %v1468_v11  ;;  %v1531_v38 = vand.u32 31, %v1529_v34  ;;  %vm1304_vm7 = vcmp.eq.s32.totalorder %v1299_v44, 2 }
 0x16f   : > { %v7896_v1 = vpop.eup %7895  ;;  %v1388_v17 = vor.u32 4788187, %v1387_v19  ;;  %v1391_v16 = vcvt.s32.f32 %v1384_v30  ;;  %v10135_v32 = vadd.s32 3, %v1398_v18  ;;  %v10137_v48 = vshll.u32 %v1525_v22, 8 }
 0x170   : > { %v7898_v55 = vpop.eup %7897  ;;  %v1305_v40 = vxor.u32 2147483648, %v7896_v1  ;;  %v1474_v41 = vadd.s32 536870912, %v1473_v7  ;;  %v1532_v13 = vsub.s32 32, %v1531_v38  ;;  %v1530_v5 = vshrl.u32 %v1529_v34, 5 }
 0x171   : > { %v1302_v31 = vxor.u32 2147483648, %v7898_v55  ;;  %v1389_v52 = vand.u32 2147483647, %v1388_v17  ;;  %v1624_v27 = vand.u32 2139095040, %v9175_v39  ;;  %v1534_v10 = vshll.u32 %v14417_v24, %v1531_v38 }
 0x172   : > { %v1306_v9 = vsel %vm1304_vm7, %v1305_v40, %v7898_v55  ;;  %v10140_v43 = vshrl.u32 %v1474_v41, 30  ;;  %v1535_v26 = vshrl.u32 %v14411_v14, %v1532_v13  ;;  %v1537_v12 = vshll.u32 %v14411_v14, %v1531_v38 }
 0x173   : > { %v1303_v46 = vsel %vm1301_vm6, %v7896_v1, %v1302_v31  ;;  %v1392_v47 = vmul.f32 %v1391_v16, %v1389_v52  ;;  %v1538_v53 = vshrl.u32 %v14412_v20, %v1532_v13  ;;  %v1540_v36 = vshll.u32 %v14412_v20, %v1531_v38 }
 0x174   : > { %v1307_v45 = vsel %vm1300_vm5, %v1303_v46, %v1306_v9  ;;  %v1476_v29 = vshll.u32 %v10140_v43, 30  ;;  %v1541_v21 = vshrl.u32 %v14413_v15, %v1532_v13  ;;  %v1533_v61 = vshrl.u32 %v14417_v24, %v1532_v13 }
 0x175   : > { %v1308_v37 = vsel %vm1297_vm4, nan, %v1307_v45  ;;  %v1393_v2 = vxor.u32 2147483648, %v1392_v47  ;;  %vm1549_vm8 = vcmp.lt.s32.totalorder %v1530_v5, 1  ;;  %v1536_v4 = vor.u32 %v1535_v26, %v1534_v10 }
 0x176   : > { %v10154_v11 = vsub.s32 %v1473_v7, %v1476_v29  ;;  %v1543_v35 = vshll.u32 %v14413_v15, %v1531_v38  ;;  %v1544_v44 = vshrl.u32 %v14414_v23, %v1532_v13  ;;  %7140 = vst [vmem:[%s9691_s5 + $0x38] sm:$0xff] %v1308_v37  ;;  %v1539_v18 = vor.u32 %v1538_v53, %v1537_v12 }
 0x177   : > { %v1394_v28 = vsel %vm1311_vm9, %v1393_v2, %v1392_v47  ;;  %v1546_v22 = vshll.u32 %v14414_v23, %v1531_v38  ;;  %v1547_v57 = vshrl.u32 %v14415_v51, %v1532_v13  ;;  %v1542_v19 = vor.u32 %v1541_v21, %v1540_v36 }
 0x178   : > { %v1397_v34 = vsel %vm10125_vm1, %v9163_v0, %v1394_v28  ;;  %v1479_v30 = vsub.s32 0, %v10154_v11  ;;  %v1545_v25 = vor.u32 %v1544_v44, %v1543_v35  ;;  %vm1552_vm10 = vcmp.lt.s32.totalorder %v1530_v5, 4 }
 0x179   : > { %7899 = vcosq.f32 %v1397_v34  ;;  %v1548_v7 = vor.u32 %v1547_v57, %v1546_v22  ;;  %v1625_v1 = vshrl.u32 %v1624_v27, 23  ;;  %vm1550_vm11 = vcmp.lt.s32.totalorder %v1530_v5, 2 }
 0x17a   : > { %7901 = vsinq.f32 %v1397_v34  ;;  %v7325_v17 = vmin.u32 %v1479_v30, %v10154_v11  ;;  %vm1551_vm9 = vcmp.lt.s32.totalorder %v1530_v5, 3  ;;  %v1553_v38 = vsel %vm1549_vm8, %v1533_v61, %v1536_v4 }
 0x17b   : > { %v1554_v16 = vsel %vm1552_vm10, %v1542_v19, 2102212464  ;;  %v1557_v3 = vsel %vm1549_vm8, %v1536_v4, %v1539_v18  ;;  %v1558_v55 = vsel %vm1552_vm10, %v1545_v25, 920167782  ;;  %v1469_v40 = vadd.s32 %v10105_v8, %v10117_v6 }
 0x17c   : > { %v1481_v41 = vclz %v7325_v17  ;;  %v1561_v13 = vsel %vm1549_vm8, %v1539_v18, %v1542_v19  ;;  %v1621_v31 = vand.u32 2147483647, %v9175_v39  ;;  %v1555_v52 = vsel %vm1551_vm9, %v1539_v18, %v1554_v16 }
 0x17d   : > { %v1559_v27 = vsel %vm1551_vm9, %v1542_v19, %v1558_v55  ;;  %v1562_v9 = vsel %vm1552_vm10, %v1548_v7, 1326507024  ;;  %v7332_v10 = vadd.s32 4294967169, %v1625_v1  ;;  %v1556_v46 = vsel %vm1550_vm11, %v1553_v38, %v1555_v52 }
 0x17e   : > { %v7326_v26 = vadd.s32 4294967294, %v1481_v41  ;;  %v1560_v47 = vsel %vm1550_vm11, %v1557_v3, %v1559_v27  ;;  %v1563_v12 = vsel %vm1551_vm9, %v1545_v25, %v1562_v9  ;;  %v1499_v8 = vsub.s32 4, %v10140_v43 }
 0x17f   : > { %v1564_v6 = vsel %vm1550_vm11, %v1561_v13, %v1563_v12  ;;  %v10185_v53 = vmul.u32.u64.low %v10137_v48, %v1560_v47  ;;  %v10186_v45 = vmul.u32.u64.high %v10137_v48, %v1560_v47, %v10185_v53  ;;  %v1631_v21 = vadd.s32 1, %v7332_v10 }
 0x180   : > { %vm7327_vm12 = vcmp.lt.s32.totalorder %v7326_v26, 0  ;;  %v10190_v29 = vmul.u32.u64.low %v10137_v48, %v1564_v6  ;;  %v10191_v36 = vmul.u32.u64.high %v10137_v48, %v1564_v6, %v10190_v29  ;;  %vm1401_vm13 = vweird.f32 %v9163_v0 }
 0x181   : > { %v1403_v37 = vand.u32 3, %v10135_v32  ;;  %v1484_v2 = vsel %vm7327_vm12, 0, %v7326_v26  ;;  %v1572_v61 = vmul.u32 %v10137_v48, %v1556_v46  ;;  %v1628_v5 = vand.u32 8388607, %v1621_v31 }
 0x182   : > { %v1485_v4 = vsub.s32 32, %v1484_v2  ;;  %v1486_v35 = vshll.u32 %v10154_v11, %v1484_v2  ;;  %v1489_v44 = vsub.s32 4294967266, %v1484_v2  ;;  %vm1632_vm14 = vcmp.gt.s32.totalorder %v1631_v21, 0 }
 0x183   : > { %vm10201_vm15 = vcmp.le.f32.partialorder %v1413_v33, 0.7853982  ;;  %vm1415_vm0 = vcmp.lt.s32.totalorder %v9167_v60, 0  ;;  %v1575_v32 = vadd.s32 1, %v10186_v45  ;;  %v1633_v18 = vsel %vm1632_vm14, %v1631_v21, 0 }
 0x184   : > { %v1487_v48 = vshrl.u32 %v1469_v40, %v1485_v4  ;;  %v1490_v22 = vadd.s32 127, %v1489_v44  ;;  %v10210_v57 = vsel %vm1415_vm0, %v1499_v8, %v10140_v43  ;;  %vm1574_vm1 = vc.u32 %v10191_v36, %v10185_v53 }
 0x185   : > { %vm1404_vm2 = vcmp.lt.s32.totalorder %v1403_v37, 2  ;;  %v1576_v33 = vsel %vm1574_vm1, %v1575_v32, %v10186_v45  ;;  %v1629_v11 = vor.u32 8388608, %v1628_v5  ;;  %v1635_v34 = vand.u32 31, %v1633_v18 }
 0x186   : > { %v7900_v30 = vpop.eup %7899  ;;  %vm1408_vm3 = vcmp.eq.s32.totalorder %v1403_v37, 2  ;;  %v1488_v19 = vor.u32 %v1487_v48, %v1486_v35  ;;  %v1491_v25 = vshll.u32 %v1490_v22, 23  ;;  %v1577_v7 = vadd.s32 %v1576_v33, %v1572_v61 }
 0x187   : > { %v7902_v1 = vpop.eup %7901  ;;  %vm1405_vm4 = vcmp.eq.s32.totalorder %v1403_v37, 0  ;;  %v1409_v17 = vxor.u32 2147483648, %v7900_v30  ;;  %v1502_v43 = vsel %vm10201_vm15, 0, %v10210_v57  ;;  %v1636_v38 = vsub.s32 32, %v1635_v34 }
 0x188   : > { %v1406_v16 = vxor.u32 2147483648, %v7902_v1  ;;  %v1492_v3 = vor.u32 4788187, %v1491_v25  ;;  %v1495_v55 = vcvt.s32.f32 %v1488_v19  ;;  %v1578_v40 = vadd.s32 536870912, %v1577_v7 }
 0x189   : > { %v1410_v41 = vsel %vm1408_vm3, %v1409_v17, %v7902_v1  ;;  %v1638_v13 = vshll.u32 %v14417_v24, %v1635_v34  ;;  %v1641_v52 = vshll.u32 %v14411_v14, %v1635_v34  ;;  %v10220_v27 = vshll.u32 %v1629_v11, 8 }
 0x18a   : > { %v1407_v9 = vsel %vm1405_vm4, %v7900_v30, %v1406_v16  ;;  %v1493_v10 = vand.u32 2147483647, %v1492_v3  ;;  %v1579_v26 = vshrl.u32 %v1578_v40, 30  ;;  %v1639_v46 = vshrl.u32 %v14411_v14, %v1636_v38 }
 0x18b   : > { %v1411_v47 = vsel %vm1404_vm2, %v1407_v9, %v1410_v41  ;;  %v1642_v12 = vshrl.u32 %v14412_v20, %v1636_v38  ;;  %v1644_v8 = vshll.u32 %v14412_v20, %v1635_v34  ;;  %v1645_v6 = vshrl.u32 %v14413_v15, %v1636_v38 }
 0x18c   : > { %v1412_v45 = vsel %vm1401_vm13, nan, %v1411_v47  ;;  %v1496_v29 = vmul.f32 %v1495_v55, %v1493_v10  ;;  %v1580_v21 = vshll.u32 %v1579_v26, 30  ;;  %v1634_v2 = vshrl.u32 %v1633_v18, 5 }
 0x18d   : > { %v1647_v61 = vshll.u32 %v14413_v15, %v1635_v34  ;;  %v1648_v5 = vshrl.u32 %v14414_v23, %v1636_v38  ;;  %v1650_v4 = vshll.u32 %v14414_v23, %v1635_v34  ;;  %v1728_v37 = vand.u32 2139095040, %v9179_v42  ;;  %7141 = vst [vmem:[%s9691_s5 + $0x40] sm:$0xff] %v1412_v45 }
 0x18e   : > { %v1497_v35 = vxor.u32 2147483648, %v1496_v29  ;;  %v10234_v44 = vsub.s32 %v1577_v7, %v1580_v21  ;;  %v1637_v32 = vshrl.u32 %v14417_v24, %v1636_v38  ;;  %v1651_v0 = vshrl.u32 %v14415_v51, %v1636_v38 }
 0x18f   : > { %v1640_v48 = vor.u32 %v1639_v46, %v1638_v13  ;;  %v1643_v22 = vor.u32 %v1642_v12, %v1641_v52  ;;  %v1646_v57 = vor.u32 %v1645_v6, %v1644_v8  ;;  %v1649_v18 = vor.u32 %v1648_v5, %v1647_v61 }
 0x190   : > { %v1498_v33 = vsel %vm1415_vm0, %v1497_v35, %v1496_v29  ;;  %v1583_v11 = vsub.s32 0, %v10234_v44  ;;  %vm1653_vm5 = vcmp.lt.s32.totalorder %v1634_v2, 1  ;;  %vm1654_vm6 = vcmp.lt.s32.totalorder %v1634_v2, 2 }
 0x191   : > { %v1501_v34 = vsel %vm10201_vm15, %v9167_v60, %v1498_v33  ;;  %v1652_v30 = vor.u32 %v1651_v0, %v1650_v4  ;;  %vm1655_vm7 = vcmp.lt.s32.totalorder %v1634_v2, 3  ;;  %vm1656_vm8 = vcmp.lt.s32.totalorder %v1634_v2, 4 }
 0x192   : > { %7903 = vcosq.f32 %v1501_v34  ;;  %v7329_v19 = vmin.u32 %v1583_v11, %v10234_v44  ;;  %v1657_v25 = vsel %vm1653_vm5, %v1637_v32, %v1640_v48  ;;  %v1658_v7 = vsel %vm1656_vm8, %v1646_v57, 2102212464 }
 0x193   : > { %7905 = vsinq.f32 %v1501_v34  ;;  %v1659_v1 = vsel %vm1655_vm7, %v1643_v22, %v1658_v7  ;;  %v1661_v17 = vsel %vm1653_vm5, %v1640_v48, %v1643_v22  ;;  %v1662_v38 = vsel %vm1656_vm8, %v1649_v18, 920167782 }
 0x194   : > { %v1506_v16 = vadd.s32 3, %v1502_v43  ;;  %vm1519_vm10 = vcmp.lt.s32.totalorder %v9171_v56, 0  ;;  %v1585_v28 = vclz %v7329_v19  ;;  %v1725_v3 = vand.u32 2147483647, %v9179_v42 }
 0x195   : > { %v1603_v55 = vsub.s32 4, %v1579_v26  ;;  %v1663_v40 = vsel %vm1655_vm7, %v1646_v57, %v1662_v38  ;;  %v1665_v41 = vsel %vm1653_vm5, %v1643_v22, %v1646_v57  ;;  %v1666_v13 = vsel %vm1656_vm8, %v1652_v30, 1326507024 }
 0x196   : > { %v7330_v52 = vadd.s32 4294967294, %v1585_v28  ;;  %v1660_v9 = vsel %vm1654_vm6, %v1657_v25, %v1659_v1  ;;  %v1664_v10 = vsel %vm1654_vm6, %v1661_v17, %v1663_v40  ;;  %v1667_v46 = vsel %vm1655_vm7, %v1649_v18, %v1666_v13 }
 0x197   : > { %v1668_v43 = vsel %vm1654_vm6, %v1665_v41, %v1667_v46  ;;  %v10260_v47 = vmul.u32.u64.low %v10220_v27, %v1664_v10  ;;  %v10261_v12 = vmul.u32.u64.high %v10220_v27, %v1664_v10, %v10260_v47  ;;  %v1729_v8 = vshrl.u32 %v1728_v37, 23 }
 0x198   : > { %v1573_v6 = vadd.s32 %v10185_v53, %v10191_v36  ;;  %vm7331_vm11 = vcmp.lt.s32.totalorder %v7330_v52, 0  ;;  %v10266_v45 = vmul.u32.u64.low %v10220_v27, %v1668_v43  ;;  %v10267_v29 = vmul.u32.u64.high %v10220_v27, %v1668_v43, %v10266_v45 }
 0x199   : > { %v1588_v21 = vsel %vm7331_vm11, 0, %v7330_v52  ;;  %v1604_v61 = vsel %vm1519_vm10, %v1603_v55, %v1579_v26  ;;  %v7336_v5 = vadd.s32 4294967169, %v1729_v8  ;;  %v1732_v2 = vand.u32 8388607, %v1725_v3 }
 0x19a   : > { %v1589_v4 = vsub.s32 32, %v1588_v21  ;;  %v1590_v35 = vshll.u32 %v10234_v44, %v1588_v21  ;;  %v1593_v37 = vsub.s32 4294967266, %v1588_v21  ;;  %v1676_v32 = vmul.u32 %v10220_v27, %v1660_v9 }
 0x19b   : > { %vm1505_vm9 = vweird.f32 %v9167_v60  ;;  %v1507_v53 = vand.u32 3, %v1506_v16  ;;  %v1679_v36 = vadd.s32 1, %v10261_v12  ;;  %v1735_v0 = vadd.s32 1, %v7336_v5 }
 0x19c   : > { %vm10279_vm12 = vcmp.le.f32.partialorder %v1517_v49, 0.7853982  ;;  %v1591_v48 = vshrl.u32 %v1573_v6, %v1589_v4  ;;  %v1594_v22 = vadd.s32 127, %v1593_v37  ;;  %vm1678_vm13 = vc.u32 %v10267_v29, %v10260_v47 }
 0x19d   : > { %v1606_v44 = vsel %vm10279_vm12, 0, %v1604_v61  ;;  %v1680_v27 = vsel %vm1678_vm13, %v1679_v36, %v10261_v12  ;;  %v1733_v57 = vor.u32 8388608, %v1732_v2  ;;  %vm1736_vm14 = vcmp.gt.s32.totalorder %v1735_v0, 0 }
 0x19e   : > { %v1592_v18 = vor.u32 %v1591_v48, %v1590_v35  ;;  %v1595_v33 = vshll.u32 %v1594_v22, 23  ;;  %v1681_v11 = vadd.s32 %v1680_v27, %v1676_v32  ;;  %v1737_v34 = vsel %vm1736_vm14, %v1735_v0, 0 }
 0x19f   : > { %v7904_v30 = vpop.eup %7903  ;;  %vm1508_vm15 = vcmp.lt.s32.totalorder %v1507_v53, 2  ;;  %vm1509_vm0 = vcmp.eq.s32.totalorder %v1507_v53, 0  ;;  %vm1512_vm1 = vcmp.eq.s32.totalorder %v1507_v53, 2  ;;  %v1739_v49 = vand.u32 31, %v1737_v34 }
 0x1a0   : > { %v7906_v19 = vpop.eup %7905  ;;  %v1513_v25 = vxor.u32 2147483648, %v7904_v30  ;;  %v1596_v7 = vor.u32 4788187, %v1595_v33  ;;  %v1599_v1 = vcvt.s32.f32 %v1592_v18  ;;  %v1682_v17 = vadd.s32 536870912, %v1681_v11 }
 0x1a1   : > { %v1510_v38 = vxor.u32 2147483648, %v7906_v19  ;;  %v10287_v16 = vadd.s32 3, %v1606_v44  ;;  %v1740_v28 = vsub.s32 32, %v1739_v49  ;;  %v1829_v55 = vand.u32 2147483647, %v9183_v54 }
 0x1a2   : > { %v1514_v40 = vsel %vm1512_vm1, %v1513_v25, %v7906_v19  ;;  %v1597_v41 = vand.u32 2147483647, %v1596_v7  ;;  %v10290_v13 = vshrl.u32 %v1682_v17, 30  ;;  %v10292_v52 = vshll.u32 %v1733_v57, 8 }
 0x1a3   : > { %v1511_v9 = vsel %vm1509_vm0, %v7904_v30, %v1510_v38  ;;  %v10296_v10 = vadd.s32 %v10260_v47, %v10267_v29  ;;  %v1742_v46 = vshll.u32 %v14417_v24, %v1739_v49  ;;  %v1745_v43 = vshll.u32 %v14411_v14, %v1739_v49 }
 0x1a4   : > { %v1515_v12 = vsel %vm1508_vm15, %v1511_v9, %v1514_v40  ;;  %v1600_v8 = vmul.f32 %v1599_v1, %v1597_v41  ;;  %v1684_v6 = vshll.u32 %v10290_v13, 30  ;;  %v1743_v45 = vshrl.u32 %v14411_v14, %v1740_v28 }
 0x1a5   : > { %v1516_v21 = vsel %vm1505_vm9, nan, %v1515_v12  ;;  %v1746_v61 = vshrl.u32 %v14412_v20, %v1740_v28  ;;  %v1748_v5 = vshll.u32 %v14412_v20, %v1739_v49  ;;  %v1749_v47 = vshrl.u32 %v14413_v15, %v1740_v28 }
 0x1a6   : > { %v1601_v29 = vxor.u32 2147483648, %v1600_v8  ;;  %v10308_v2 = vsub.s32 %v1681_v11, %v1684_v6  ;;  %v1738_v4 = vshrl.u32 %v1737_v34, 5  ;;  %v1751_v35 = vshll.u32 %v14413_v15, %v1739_v49  ;;  %7142 = vst [vmem:[%s9691_s5 + $0x48] sm:$0xff] %v1516_v21 }
 0x1a7   : > { %v1741_v37 = vshrl.u32 %v14417_v24, %v1740_v28  ;;  %v1752_v32 = vshrl.u32 %v14414_v23, %v1740_v28  ;;  %v1754_v60 = vshll.u32 %v14414_v23, %v1739_v49  ;;  %v1832_v53 = vand.u32 2139095040, %v9183_v54 }
 0x1a8   : > { %v1602_v36 = vsel %vm1519_vm10, %v1601_v29, %v1600_v8  ;;  %v1687_v0 = vsub.s32 0, %v10308_v2  ;;  %v1744_v48 = vor.u32 %v1743_v45, %v1742_v46  ;;  %v1755_v22 = vshrl.u32 %v14415_v51, %v1740_v28 }
 0x1a9   : > { %v1605_v44 = vsel %vm10279_vm12, %v9171_v56, %v1602_v36  ;;  %v1747_v27 = vor.u32 %v1746_v61, %v1745_v43  ;;  %v1750_v57 = vor.u32 %v1749_v47, %v1748_v5  ;;  %v1753_v18 = vor.u32 %v1752_v32, %v1751_v35 }
 0x1aa   : > { %7907 = vcosq.f32 %v1605_v44  ;;  %vm1623_vm2 = vcmp.lt.s32.totalorder %v9175_v39, 0  ;;  %v7333_v33 = vmin.u32 %v1687_v0, %v10308_v2  ;;  %v1756_v11 = vor.u32 %v1755_v22, %v1754_v60 }
 0x1ab   : > { %vm1757_vm3 = vcmp.lt.s32.totalorder %v1738_v4, 1  ;;  %7909 = vsinq.f32 %v1605_v44  ;;  %vm1759_vm4 = vcmp.lt.s32.totalorder %v1738_v4, 3  ;;  %vm1760_vm5 = vcmp.lt.s32.totalorder %v1738_v4, 4 }
 0x1ac   : > { %v1833_v34 = vshrl.u32 %v1832_v53, 23  ;;  %v1689_v30 = vclz %v7333_v33  ;;  %v1707_v49 = vsub.s32 4, %v10290_v13  ;;  %vm1758_vm6 = vcmp.lt.s32.totalorder %v1738_v4, 2 }
 0x1ad   : > { %v1761_v26 = vsel %vm1757_vm3, %v1741_v37, %v1744_v48  ;;  %v1762_v19 = vsel %vm1760_vm5, %v1750_v57, 2102212464  ;;  %v1765_v25 = vsel %vm1757_vm3, %v1744_v48, %v1747_v27  ;;  %v1766_v7 = vsel %vm1760_vm5, %v1753_v18, 920167782 }
 0x1ae   : > { %v1769_v1 = vsel %vm1757_vm3, %v1747_v27, %v1750_v57  ;;  %v7334_v17 = vadd.s32 4294967294, %v1689_v30  ;;  %v1763_v38 = vsel %vm1759_vm4, %v1747_v27, %v1762_v19  ;;  %v1767_v28 = vsel %vm1759_vm4, %v1750_v57, %v1766_v7 }
 0x1af   : > { %v1770_v40 = vsel %vm1760_vm5, %v1756_v11, 1326507024  ;;  %v1764_v41 = vsel %vm1758_vm6, %v1761_v26, %v1763_v38  ;;  %v1768_v9 = vsel %vm1758_vm6, %v1765_v25, %v1767_v28  ;;  %v7340_v43 = vadd.s32 4294967169, %v1833_v34 }
 0x1b0   : > { %v1771_v46 = vsel %vm1759_vm4, %v1753_v18, %v1770_v40  ;;  %vm7335_vm7 = vcmp.lt.s32.totalorder %v7334_v17, 0  ;;  %v10330_v8 = vmul.u32.u64.low %v10292_v52, %v1768_v9  ;;  %v10331_v6 = vmul.u32.u64.high %v10292_v52, %v1768_v9, %v10330_v8 }
 0x1b1   : > { %v1772_v12 = vsel %vm1758_vm6, %v1769_v1, %v1771_v46  ;;  %v1692_v45 = vsel %vm7335_vm7, 0, %v7334_v17  ;;  %v1836_v5 = vand.u32 8388607, %v1829_v55  ;;  %v1839_v35 = vadd.s32 1, %v7340_v43 }
 0x1b2   : > { %v10335_v21 = vmul.u32.u64.low %v10292_v52, %v1772_v12  ;;  %v10336_v61 = vmul.u32.u64.high %v10292_v52, %v1772_v12, %v10335_v21  ;;  %v1693_v47 = vsub.s32 32, %v1692_v45  ;;  %v1694_v29 = vshll.u32 %v10308_v2, %v1692_v45 }
 0x1b3   : > { %v1697_v4 = vsub.s32 4294967266, %v1692_v45  ;;  %vm1609_vm8 = vweird.f32 %v9171_v56  ;;  %v1611_v37 = vand.u32 3, %v10287_v16  ;;  %v1708_v32 = vsel %vm1623_vm2, %v1707_v49, %v10290_v13 }
 0x1b4   : > { %v1780_v60 = vmul.u32 %v10292_v52, %v1764_v41  ;;  %v1695_v53 = vshrl.u32 %v10296_v10, %v1693_v47  ;;  %v1783_v0 = vadd.s32 1, %v10331_v6  ;;  %vm1840_vm10 = vcmp.gt.s32.totalorder %v1839_v35, 0 }
 0x1b5   : > { %v1698_v36 = vadd.s32 127, %v1697_v4  ;;  %vm10351_vm11 = vcmp.le.f32.partialorder %v1621_v31, 0.7853982  ;;  %vm1782_vm9 = vc.u32 %v10336_v61, %v10330_v8  ;;  %v1837_v16 = vor.u32 8388608, %v1836_v5 }
 0x1b6   : > { %v1841_v48 = vsel %vm1840_vm10, %v1839_v35, 0  ;;  %v1696_v13 = vor.u32 %v1695_v53, %v1694_v29  ;;  %v1710_v52 = vsel %vm10351_vm11, 0, %v1708_v32  ;;  %v1784_v10 = vsel %vm1782_vm9, %v1783_v0, %v10331_v6 }
 0x1b7   : > { %v1699_v22 = vshll.u32 %v1698_v36, 23  ;;  %v7908_v44 = vpop.eup %7907  ;;  %vm1612_vm12 = vcmp.lt.s32.totalorder %v1611_v37, 2  ;;  %vm1616_vm13 = vcmp.eq.s32.totalorder %v1611_v37, 2  ;;  %v1785_v27 = vadd.s32 %v1784_v10, %v1780_v60 }
 0x1b8   : > { %v1843_v31 = vand.u32 31, %v1841_v48  ;;  %v7910_v57 = vpop.eup %7909  ;;  %vm1613_vm14 = vcmp.eq.s32.totalorder %v1611_v37, 0  ;;  %v1617_v18 = vxor.u32 2147483648, %v7908_v44  ;;  %v1703_v11 = vcvt.s32.f32 %v1696_v13 }
 0x1b9   : > { %v1700_v33 = vor.u32 4788187, %v1699_v22  ;;  %v1614_v34 = vxor.u32 2147483648, %v7910_v57  ;;  %v1714_v30 = vadd.s32 3, %v1710_v52  ;;  %v1786_v49 = vadd.s32 536870912, %v1785_v27 }
 0x1ba   : > { %v1844_v26 = vsub.s32 32, %v1843_v31  ;;  %v1618_v19 = vsel %vm1616_vm13, %v1617_v18, %v7910_v57  ;;  %v1842_v7 = vshrl.u32 %v1841_v48, 5  ;;  %v10360_v1 = vshll.u32 %v1837_v16, 8 }
 0x1bb   : > { %v1701_v25 = vand.u32 2147483647, %v1700_v33  ;;  %v1615_v17 = vsel %vm1613_vm14, %v7908_v44, %v1614_v34  ;;  %v1787_v38 = vshrl.u32 %v1786_v49, 30  ;;  %v1846_v28 = vshll.u32 %v14417_v24, %v1843_v31 }
 0x1bc   : > { %v1849_v40 = vshll.u32 %v14411_v14, %v1843_v31  ;;  %v1619_v41 = vsel %vm1612_vm12, %v1615_v17, %v1618_v19  ;;  %vm1727_vm15 = vcmp.lt.s32.totalorder %v9179_v42, 0  ;;  %v1847_v46 = vshrl.u32 %v14411_v14, %v1844_v26 }
 0x1bd   : > { %v1704_v9 = vmul.f32 %v1703_v11, %v1701_v25  ;;  %v1850_v43 = vshrl.u32 %v14412_v20, %v1844_v26  ;;  %v1620_v12 = vsel %vm1609_vm8, nan, %v1619_v41  ;;  %v1788_v6 = vshll.u32 %v1787_v38, 30 }
 0x1be   : > { %v1852_v45 = vshll.u32 %v14412_v20, %v1843_v31  ;;  %v1853_v21 = vshrl.u32 %v14413_v15, %v1844_v26  ;;  %v1845_v47 = vshrl.u32 %v14417_v24, %v1844_v26  ;;  %v1855_v29 = vshll.u32 %v14413_v15, %v1843_v31  ;;  %7143 = vst [vmem:[%s9691_s5 + $0x50] sm:$0xff] %v1620_v12 }
 0x1bf   : > { %v1705_v5 = vxor.u32 2147483648, %v1704_v9  ;;  %vm1861_vm0 = vcmp.lt.s32.totalorder %v1842_v7, 1  ;;  %v10375_v4 = vsub.s32 %v1785_v27, %v1788_v6  ;;  %v1811_v35 = vsub.s32 4, %v1787_v38 }
 0x1c0   : > { %v1856_v37 = vshrl.u32 %v14414_v23, %v1844_v26  ;;  %v1858_v56 = vshll.u32 %v14414_v23, %v1843_v31  ;;  %v1848_v60 = vor.u32 %v1847_v46, %v1846_v28  ;;  %v1851_v53 = vor.u32 %v1850_v43, %v1849_v40 }
 0x1c1   : > { %v1706_v32 = vsel %vm1623_vm2, %v1705_v5, %v1704_v9  ;;  %v1859_v36 = vshrl.u32 %v14415_v51, %v1844_v26  ;;  %vm10387_vm1 = vcmp.le.f32.partialorder %v1725_v3, 0.7853982  ;;  %v1791_v48 = vsub.s32 0, %v10375_v4 }
 0x1c2   : > { %v1709_v0 = vsel %vm10351_vm11, %v9175_v39, %v1706_v32  ;;  %v1854_v13 = vor.u32 %v1853_v21, %v1852_v45  ;;  %v1857_v22 = vor.u32 %v1856_v37, %v1855_v29  ;;  %vm1864_vm2 = vcmp.lt.s32.totalorder %v1842_v7, 4 }
 0x1c3   : > { %7911 = vcosq.f32 %v1709_v0  ;;  %v1860_v52 = vor.u32 %v1859_v36, %v1858_v56  ;;  %v1936_v10 = vand.u32 2139095040, %v9187_v50  ;;  %v7337_v44 = vmin.u32 %v1791_v48, %v10375_v4 }
 0x1c4   : > { %7913 = vsinq.f32 %v1709_v0  ;;  %vm1862_vm3 = vcmp.lt.s32.totalorder %v1842_v7, 2  ;;  %vm1863_vm4 = vcmp.lt.s32.totalorder %v1842_v7, 3  ;;  %v1865_v2 = vsel %vm1861_vm0, %v1845_v47, %v1848_v60 }
 0x1c5   : > { %v1866_v3 = vsel %vm1864_vm2, %v1854_v13, 2102212464  ;;  %v1869_v27 = vsel %vm1861_vm0, %v1848_v60, %v1851_v53  ;;  %v1870_v31 = vsel %vm1864_vm2, %v1857_v22, 920167782  ;;  %v1715_v57 = vand.u32 3, %v1714_v30 }
 0x1c6   : > { %v1793_v18 = vclz %v7337_v44  ;;  %v1812_v33 = vsel %vm1727_vm15, %v1811_v35, %v1787_v38  ;;  %v1873_v11 = vsel %vm1861_vm0, %v1851_v53, %v1854_v13  ;;  %v1867_v34 = vsel %vm1863_vm4, %v1851_v53, %v1866_v3 }
 0x1c7   : > { %v1871_v49 = vsel %vm1863_vm4, %v1854_v13, %v1870_v31  ;;  %v1874_v26 = vsel %vm1864_vm2, %v1860_v52, 1326507024  ;;  %v1937_v19 = vshrl.u32 %v1936_v10, 23  ;;  %v1868_v17 = vsel %vm1862_vm3, %v1865_v2, %v1867_v34 }
 0x1c8   : > { %v7338_v25 = vadd.s32 4294967294, %v1793_v18  ;;  %v1872_v28 = vsel %vm1862_vm3, %v1869_v27, %v1871_v49  ;;  %v1875_v30 = vsel %vm1863_vm4, %v1857_v22, %v1874_v26  ;;  %v1781_v40 = vadd.s32 %v10330_v8, %v10336_v61 }
 0x1c9   : > { %v1876_v38 = vsel %vm1862_vm3, %v1873_v11, %v1875_v30  ;;  %v10411_v41 = vmul.u32.u64.low %v10360_v1, %v1872_v28  ;;  %v10412_v9 = vmul.u32.u64.high %v10360_v1, %v1872_v28, %v10411_v41  ;;  %v7344_v12 = vadd.s32 4294967169, %v1937_v19 }
 0x1ca   : > { %vm7339_vm5 = vcmp.lt.s32.totalorder %v7338_v25, 0  ;;  %v10416_v46 = vmul.u32.u64.low %v10360_v1, %v1876_v38  ;;  %v10417_v43 = vmul.u32.u64.high %v10360_v1, %v1876_v38, %v10416_v46  ;;  %v1814_v45 = vsel %vm10387_vm1, 0, %v1812_v33 }
 0x1cb   : > { %v1796_v6 = vsel %vm7339_vm5, 0, %v7338_v25  ;;  %v1884_v21 = vmul.u32 %v10360_v1, %v1868_v17  ;;  %v1933_v8 = vand.u32 2147483647, %v9187_v50  ;;  %v1943_v47 = vadd.s32 1, %v7344_v12 }
 0x1cc   : > { %v1797_v61 = vsub.s32 32, %v1796_v6  ;;  %v1798_v7 = vshll.u32 %v10375_v4, %v1796_v6  ;;  %v1801_v5 = vsub.s32 4294967266, %v1796_v6  ;;  %vm1713_vm6 = vweird.f32 %v9175_v39 }
 0x1cd   : > { %v1887_v29 = vadd.s32 1, %v10412_v9  ;;  %vm1720_vm7 = vcmp.eq.s32.totalorder %v1715_v57, 2  ;;  %vm1886_vm8 = vc.u32 %v10417_v43, %v10411_v41  ;;  %v1818_v56 = vadd.s32 3, %v1814_v45 }
 0x1ce   : > { %v1799_v35 = vshrl.u32 %v1781_v40, %v1797_v61  ;;  %v1802_v37 = vadd.s32 127, %v1801_v5  ;;  %v1940_v32 = vand.u32 8388607, %v1933_v8  ;;  %vm1944_vm10 = vcmp.gt.s32.totalorder %v1943_v47, 0 }
 0x1cf   : > { %v1888_v1 = vsel %vm1886_vm8, %v1887_v29, %v10412_v9  ;;  %v1945_v0 = vsel %vm1944_vm10, %v1943_v47, 0  ;;  %vm1716_vm11 = vcmp.lt.s32.totalorder %v1715_v57, 2  ;;  %vm1717_vm9 = vcmp.eq.s32.totalorder %v1715_v57, 0 }
 0x1d0   : > { %v7912_v4 = vpop.eup %7911  ;;  %v1800_v60 = vor.u32 %v1799_v35, %v1798_v7  ;;  %v1803_v53 = vshll.u32 %v1802_v37, 23  ;;  %v1889_v36 = vadd.s32 %v1888_v1, %v1884_v21  ;;  %v1947_v22 = vand.u32 31, %v1945_v0 }
 0x1d1   : > { %v7914_v48 = vpop.eup %7913  ;;  %v1721_v13 = vxor.u32 2147483648, %v7912_v4  ;;  %v10432_v27 = vand.u32 3, %v1818_v56  ;;  %v1941_v31 = vor.u32 8388608, %v1940_v32  ;;  %v1946_v9 = vshrl.u32 %v1945_v0, 5 }
 0x1d2   : > { %v1718_v52 = vxor.u32 2147483648, %v7914_v48  ;;  %v1804_v10 = vor.u32 4788187, %v1803_v53  ;;  %v1807_v44 = vcvt.s32.f32 %v1800_v60  ;;  %v1890_v2 = vadd.s32 536870912, %v1889_v36 }
 0x1d3   : > { %v1722_v3 = vsel %vm1720_vm7, %v1721_v13, %v7914_v48  ;;  %v1948_v18 = vsub.s32 32, %v1947_v22  ;;  %v1950_v49 = vshll.u32 %v14417_v24, %v1947_v22  ;;  %v1953_v25 = vshll.u32 %v14411_v14, %v1947_v22 }
 0x1d4   : > { %v1719_v33 = vsel %vm1717_vm9, %v7912_v4, %v1718_v52  ;;  %v1805_v11 = vand.u32 2147483647, %v1804_v10  ;;  %v1891_v34 = vshrl.u32 %v1890_v2, 30  ;;  %v1956_v17 = vshll.u32 %v14412_v20, %v1947_v22 }
 0x1d5   : > { %v1723_v26 = vsel %vm1716_vm11, %v1719_v33, %v1722_v3  ;;  %v1951_v19 = vshrl.u32 %v14411_v14, %v1948_v18  ;;  %v1954_v38 = vshrl.u32 %v14412_v20, %v1948_v18  ;;  %v1957_v46 = vshrl.u32 %v14413_v15, %v1948_v18 }
 0x1d6   : > { %v1724_v28 = vsel %vm1713_vm6, nan, %v1723_v26  ;;  %v1808_v30 = vmul.f32 %v1807_v44, %v1805_v11  ;;  %v1892_v40 = vshll.u32 %v1891_v34, 30  ;;  %v1959_v12 = vshll.u32 %v14413_v15, %v1947_v22 }
 0x1d7   : > { %v2037_v57 = vand.u32 2147483647, %v9191_v58  ;;  %7144 = vst [vmem:[%s9691_s5 + $0x58] sm:$0xff] %v1724_v28  ;;  %v1960_v21 = vshrl.u32 %v14414_v23, %v1948_v18  ;;  %v2040_v39 = vand.u32 2139095040, %v9191_v58  ;;  %vm1831_vm12 = vcmp.lt.s32.totalorder %v9183_v54, 0 }
 0x1d8   : > { %v1809_v6 = vxor.u32 2147483648, %v1808_v30  ;;  %v10446_v45 = vsub.s32 %v1889_v36, %v1892_v40  ;;  %v1949_v61 = vshrl.u32 %v14417_v24, %v1948_v18  ;;  %v1952_v7 = vor.u32 %v1951_v19, %v1950_v49 }
 0x1d9   : > { %v1962_v5 = vshll.u32 %v14414_v23, %v1947_v22  ;;  %v1963_v47 = vshrl.u32 %v14415_v51, %v1948_v18  ;;  %v1955_v37 = vor.u32 %v1954_v38, %v1953_v25  ;;  %v1958_v56 = vor.u32 %v1957_v46, %v1956_v17 }
 0x1da   : > { %v1810_v29 = vsel %vm1727_vm15, %v1809_v6, %v1808_v30  ;;  %v1895_v35 = vsub.s32 0, %v10446_v45  ;;  %v1961_v32 = vor.u32 %v1960_v21, %v1959_v12  ;;  %vm1965_vm13 = vcmp.lt.s32.totalorder %v1946_v9, 1 }
 0x1db   : > { %v1813_v1 = vsel %vm10387_vm1, %v9179_v42, %v1810_v29  ;;  %v1964_v4 = vor.u32 %v1963_v47, %v1962_v5  ;;  %vm10462_vm14 = vcmp.le.f32.partialorder %v1829_v55, 0.7853982  ;;  %v1981_v36 = vshll.u32 %v1941_v31, 8 }
 0x1dc   : > { %7915 = vcosq.f32 %v1813_v1  ;;  %v7341_v53 = vmin.u32 %v1895_v35, %v10446_v45  ;;  %v2041_v0 = vshrl.u32 %v2040_v39, 23  ;;  %v1915_v48 = vsub.s32 4, %v1891_v34 }
 0x1dd   : > { %7917 = vsinq.f32 %v1813_v1  ;;  %vm1967_vm15 = vcmp.lt.s32.totalorder %v1946_v9, 3  ;;  %vm1968_vm0 = vcmp.lt.s32.totalorder %v1946_v9, 4  ;;  %vm1966_vm1 = vcmp.lt.s32.totalorder %v1946_v9, 2 }
 0x1de   : > { %v1897_v16 = vclz %v7341_v53  ;;  %v1969_v13 = vsel %vm1965_vm13, %v1949_v61, %v1952_v7  ;;  %v1973_v22 = vsel %vm1965_vm13, %v1952_v7, %v1955_v37  ;;  %v1970_v52 = vsel %vm1968_vm0, %v1958_v56, 2102212464 }
 0x1df   : > { %v1974_v10 = vsel %vm1968_vm0, %v1961_v32, 920167782  ;;  %v1977_v55 = vsel %vm1965_vm13, %v1955_v37, %v1958_v56  ;;  %v1978_v44 = vsel %vm1968_vm0, %v1964_v4, 1326507024  ;;  %v1971_v3 = vsel %vm1967_vm15, %v1955_v37, %v1970_v52 }
 0x1e0   : > { %v7342_v2 = vadd.s32 4294967294, %v1897_v16  ;;  %v1975_v18 = vsel %vm1967_vm15, %v1958_v56, %v1974_v10  ;;  %v1979_v31 = vsel %vm1967_vm15, %v1961_v32, %v1978_v44  ;;  %v1885_v33 = vadd.s32 %v10411_v41, %v10417_v43 }
 0x1e1   : > { %v1976_v11 = vsel %vm1966_vm1, %v1973_v22, %v1975_v18  ;;  %v1980_v49 = vsel %vm1966_vm1, %v1977_v55, %v1979_v31  ;;  %v7348_v26 = vadd.s32 4294967169, %v2041_v0  ;;  %v1916_v19 = vsel %vm1831_vm12, %v1915_v48, %v1891_v34 }
 0x1e2   : > { %vm7343_vm2 = vcmp.lt.s32.totalorder %v7342_v2, 0  ;;  %v10476_v25 = vmul.u32.u64.low %v1981_v36, %v1980_v49  ;;  %v10477_v17 = vmul.u32.u64.high %v1981_v36, %v1980_v49, %v10476_v25  ;;  %v1972_v30 = vsel %vm1966_vm1, %v1969_v13, %v1971_v3 }
 0x1e3   : > { %v1900_v28 = vsel %vm7343_vm2, 0, %v7342_v2  ;;  %v10480_v40 = vmul.u32.u64.low %v1981_v36, %v1976_v11  ;;  %v10481_v38 = vmul.u32.u64.high %v1981_v36, %v1976_v11, %v10480_v40  ;;  %v2047_v12 = vadd.s32 1, %v7348_v26 }
 0x1e4   : > { %v1901_v41 = vsub.s32 32, %v1900_v28  ;;  %v1902_v43 = vshll.u32 %v10446_v45, %v1900_v28  ;;  %v1905_v46 = vsub.s32 4294967266, %v1900_v28  ;;  %vm1817_vm3 = vweird.f32 %v9179_v42 }
 0x1e5   : > { %v1918_v34 = vsel %vm10462_vm14, 0, %v1916_v19  ;;  %v1988_v39 = vmul.u32 %v1981_v36, %v1972_v30  ;;  %vm1990_vm4 = vc.u32 %v10477_v17, %v10480_v40  ;;  %vm1820_vm5 = vcmp.lt.s32.totalorder %v10432_v27, 2 }
 0x1e6   : > { %v1903_v6 = vshrl.u32 %v1885_v33, %v1901_v41  ;;  %v1906_v21 = vadd.s32 127, %v1905_v46  ;;  %v1991_v9 = vadd.s32 1, %v10481_v38  ;;  %v2044_v45 = vand.u32 8388607, %v2037_v57 }
 0x1e7   : > { %vm2048_vm6 = vcmp.gt.s32.totalorder %v2047_v12, 0  ;;  %vm1821_vm7 = vcmp.eq.s32.totalorder %v10432_v27, 0  ;;  %vm1824_vm8 = vcmp.eq.s32.totalorder %v10432_v27, 2  ;;  %v1922_v29 = vadd.s32 3, %v1918_v34 }
 0x1e8   : > { %v1904_v61 = vor.u32 %v1903_v6, %v1902_v43  ;;  %v1907_v7 = vshll.u32 %v1906_v21, 23  ;;  %v2049_v5 = vsel %vm2048_vm6, %v2047_v12, 0  ;;  %v1992_v35 = vsel %vm1990_vm4, %v1991_v9, %v10481_v38 }
 0x1e9   : > { %v7916_v47 = vpop.eup %7915  ;;  %v2051_v37 = vand.u32 31, %v2049_v5  ;;  %v1993_v53 = vadd.s32 %v1992_v35, %v1988_v39  ;;  %v2045_v0 = vor.u32 8388608, %v2044_v45  ;;  %v2050_v26 = vshrl.u32 %v2049_v5, 5 }
 0x1ea   : > { %v7918_v56 = vpop.eup %7917  ;;  %v1825_v1 = vxor.u32 2147483648, %v7916_v47  ;;  %v1908_v32 = vor.u32 4788187, %v1907_v7  ;;  %v1911_v4 = vcvt.s32.f32 %v1904_v61  ;;  %v2144_v41 = vand.u32 2139095040, %v9195_v59 }
 0x1eb   : > { %v1822_v36 = vxor.u32 2147483648, %v7918_v56  ;;  %v2052_v48 = vsub.s32 32, %v2051_v37  ;;  %v2054_v16 = vshll.u32 %v14417_v24, %v2051_v37  ;;  %v1994_v52 = vadd.s32 536870912, %v1993_v53 }
 0x1ec   : > { %v1826_v13 = vsel %vm1824_vm8, %v1825_v1, %v7918_v56  ;;  %v1909_v22 = vand.u32 2147483647, %v1908_v32  ;;  %v2057_v10 = vshll.u32 %v14411_v14, %v2051_v37  ;;  %v2060_v3 = vshll.u32 %v14412_v20, %v2051_v37 }
 0x1ed   : > { %v1823_v55 = vsel %vm1821_vm7, %v7916_v47, %v1822_v36  ;;  %v2055_v44 = vshrl.u32 %v14411_v14, %v2052_v48  ;;  %v2058_v2 = vshrl.u32 %v14412_v20, %v2052_v48  ;;  %v1995_v33 = vshrl.u32 %v1994_v52, 30 }
 0x1ee   : > { %v1827_v18 = vsel %vm1820_vm5, %v1823_v55, %v1826_v13  ;;  %v1912_v31 = vmul.f32 %v1911_v4, %v1909_v22  ;;  %v2061_v11 = vshrl.u32 %v14413_v15, %v2052_v48  ;;  %v2063_v19 = vshll.u32 %v14413_v15, %v2051_v37 }
 0x1ef   : > { %v1828_v49 = vsel %vm1817_vm3, nan, %v1827_v18  ;;  %v10510_v25 = vshll.u32 %v2045_v0, 8  ;;  %v1996_v30 = vshll.u32 %v1995_v33, 30  ;;  %v2053_v38 = vshrl.u32 %v14417_v24, %v2052_v48 }
 0x1f0   : > { %v1913_v28 = vxor.u32 2147483648, %v1912_v31  ;;  %7145 = vst [vmem:[%s9691_s5 + $0x60] sm:$0xff] %v1828_v49  ;;  %v2056_v27 = vor.u32 %v2055_v44, %v2054_v16  ;;  %v2064_v43 = vshrl.u32 %v14414_v23, %v2052_v48  ;;  %v2066_v46 = vshll.u32 %v14414_v23, %v2051_v37 }
 0x1f1   : > { %v2067_v42 = vshrl.u32 %v14415_v51, %v2052_v48  ;;  %v10520_v34 = vsub.s32 %v1993_v53, %v1996_v30  ;;  %v2059_v6 = vor.u32 %v2058_v2, %v2057_v10  ;;  %v2062_v21 = vor.u32 %v2061_v11, %v2060_v3 }
 0x1f2   : > { %v1914_v12 = vsel %vm1831_vm12, %v1913_v28, %v1912_v31  ;;  %v2065_v9 = vor.u32 %v2064_v43, %v2063_v19  ;;  %vm2069_vm10 = vcmp.lt.s32.totalorder %v2050_v26, 1  ;;  %vm2071_vm11 = vcmp.lt.s32.totalorder %v2050_v26, 3 }
 0x1f3   : > { %v1917_v39 = vsel %vm10462_vm14, %v9183_v54, %v1914_v12  ;;  %v2068_v45 = vor.u32 %v2067_v42, %v2066_v46  ;;  %v1999_v61 = vsub.s32 0, %v10520_v34  ;;  %v2145_v7 = vshrl.u32 %v2144_v41, 23 }
 0x1f4   : > { %7919 = vcosq.f32 %v1917_v39  ;;  %vm2070_vm9 = vcmp.lt.s32.totalorder %v2050_v26, 2  ;;  %vm2072_vm13 = vcmp.lt.s32.totalorder %v2050_v26, 4  ;;  %v2073_v5 = vsel %vm2069_vm10, %v2053_v38, %v2056_v27 }
 0x1f5   : > { %7921 = vsinq.f32 %v1917_v39  ;;  %v7345_v47 = vmin.u32 %v1999_v61, %v10520_v34  ;;  %v2074_v35 = vsel %vm2072_vm13, %v2062_v21, 2102212464  ;;  %v2077_v37 = vsel %vm2069_vm10, %v2056_v27, %v2059_v6 }
 0x1f6   : > { %v2078_v56 = vsel %vm2072_vm13, %v2065_v9, 920167782  ;;  %v2075_v60 = vsel %vm2071_vm11, %v2059_v6, %v2074_v35  ;;  %v2081_v32 = vsel %vm2069_vm10, %v2059_v6, %v2062_v21  ;;  %v2082_v4 = vsel %vm2072_vm13, %v2068_v45, 1326507024 }
 0x1f7   : > { %v2079_v1 = vsel %vm2071_vm11, %v2062_v21, %v2078_v56  ;;  %v1923_v53 = vand.u32 3, %v1922_v29  ;;  %v2001_v36 = vclz %v7345_v47  ;;  %v2019_v0 = vsub.s32 4, %v1995_v33 }
 0x1f8   : > { %v2076_v48 = vsel %vm2070_vm9, %v2073_v5, %v2075_v60  ;;  %v2080_v16 = vsel %vm2070_vm9, %v2077_v37, %v2079_v1  ;;  %v2083_v13 = vsel %vm2071_vm11, %v2065_v9, %v2082_v4  ;;  %v7352_v22 = vadd.s32 4294967169, %v2145_v7 }
 0x1f9   : > { %v7346_v52 = vadd.s32 4294967294, %v2001_v36  ;;  %v2084_v10 = vsel %vm2070_vm9, %v2081_v32, %v2083_v13  ;;  %v10534_v55 = vmul.u32.u64.low %v10510_v25, %v2080_v16  ;;  %v10535_v44 = vmul.u32.u64.high %v10510_v25, %v2080_v16, %v10534_v55 }
 0x1fa   : > { %vm1935_vm12 = vcmp.lt.s32.totalorder %v9187_v50, 0  ;;  %v10540_v29 = vmul.u32.u64.low %v10510_v25, %v2084_v10  ;;  %v10541_v2 = vmul.u32.u64.high %v10510_v25, %v2084_v10, %v10540_v29  ;;  %v2141_v3 = vand.u32 2147483647, %v9195_v59 }
 0x1fb   : > { %vm1921_vm14 = vweird.f32 %v9183_v54  ;;  %v1989_v18 = vadd.s32 %v10480_v40, %v10477_v17  ;;  %vm7347_vm15 = vcmp.lt.s32.totalorder %v7346_v52, 0  ;;  %v2020_v31 = vsel %vm1935_vm12, %v2019_v0, %v1995_v33 }
 0x1fc   : > { %v2151_v11 = vadd.s32 1, %v7352_v22  ;;  %vm1924_vm0 = vcmp.lt.s32.totalorder %v1923_v53, 2  ;;  %vm10551_vm1 = vcmp.le.f32.partialorder %v1933_v8, 0.7853982  ;;  %v2004_v26 = vsel %vm7347_vm15, 0, %v7346_v52 }
 0x1fd   : > { %v2092_v19 = vmul.u32 %v10510_v25, %v2076_v48  ;;  %v2005_v28 = vsub.s32 32, %v2004_v26  ;;  %v2006_v30 = vshll.u32 %v10520_v34, %v2004_v26  ;;  %v2009_v38 = vsub.s32 4294967266, %v2004_v26 }
 0x1fe   : > { %v2095_v17 = vadd.s32 1, %v10535_v44  ;;  %v2022_v40 = vsel %vm10551_vm1, 0, %v2020_v31  ;;  %vm2094_vm2 = vc.u32 %v10541_v2, %v10534_v55  ;;  %v2148_v8 = vand.u32 8388607, %v2141_v3 }
 0x1ff   : > { %vm2152_vm3 = vcmp.gt.s32.totalorder %v2151_v11, 0  ;;  %v2007_v33 = vshrl.u32 %v1989_v18, %v2005_v28  ;;  %v2010_v41 = vadd.s32 127, %v2009_v38  ;;  %vm1925_vm4 = vcmp.eq.s32.totalorder %v1923_v53, 0 }
 0x200   : > { %v2096_v25 = vsel %vm2094_vm2, %v2095_v17, %v10535_v44  ;;  %v2153_v27 = vsel %vm2152_vm3, %v2151_v11, 0  ;;  %vm1928_vm5 = vcmp.eq.s32.totalorder %v1923_v53, 2  ;;  %v10565_v39 = vadd.s32 3, %v2022_v40 }
 0x201   : > { %v7920_v43 = vpop.eup %7919  ;;  %v2097_v46 = vadd.s32 %v2096_v25, %v2092_v19  ;;  %v2155_v42 = vand.u32 31, %v2153_v27  ;;  %v2008_v6 = vor.u32 %v2007_v33, %v2006_v30  ;;  %v2011_v21 = vshll.u32 %v2010_v41, 23 }
 0x202   : > { %v7922_v12 = vpop.eup %7921  ;;  %v1929_v34 = vxor.u32 2147483648, %v7920_v43  ;;  %v2149_v61 = vor.u32 8388608, %v2148_v8  ;;  %v2245_v37 = vand.u32 2147483647, %v9199_v62  ;;  %v2154_v1 = vshrl.u32 %v2153_v27, 5 }
 0x203   : > { %v1926_v9 = vxor.u32 2147483648, %v7922_v12  ;;  %v2098_v45 = vadd.s32 536870912, %v2097_v46  ;;  %v2156_v7 = vsub.s32 32, %v2155_v42  ;;  %v2012_v47 = vor.u32 4788187, %v2011_v21 }
 0x204   : > { %v1930_v5 = vsel %vm1928_vm5, %v1929_v34, %v7922_v12  ;;  %v2015_v35 = vcvt.s32.f32 %v2008_v6  ;;  %v2248_v32 = vand.u32 2139095040, %v9199_v62  ;;  %v2158_v0 = vshll.u32 %v14417_v24, %v2155_v42 }
 0x205   : > { %v1927_v56 = vsel %vm1925_vm4, %v7920_v43, %v1926_v9  ;;  %v2099_v60 = vshrl.u32 %v2098_v45, 30  ;;  %v2013_v36 = vand.u32 2147483647, %v2012_v47  ;;  %v2161_v48 = vshll.u32 %v14411_v14, %v2155_v42 }
 0x206   : > { %v1931_v4 = vsel %vm1924_vm0, %v1927_v56, %v1930_v5  ;;  %v2159_v22 = vshrl.u32 %v14411_v14, %v2156_v7  ;;  %v2162_v52 = vshrl.u32 %v14412_v20, %v2156_v7  ;;  %v2164_v44 = vshll.u32 %v14412_v20, %v2155_v42 }
 0x207   : > { %v1932_v16 = vsel %vm1921_vm14, nan, %v1931_v4  ;;  %v2100_v13 = vshll.u32 %v2099_v60, 30  ;;  %v2016_v10 = vmul.f32 %v2015_v35, %v2013_v36  ;;  %v2165_v29 = vshrl.u32 %v14413_v15, %v2156_v7 }
 0x208   : > { %v2167_v53 = vshll.u32 %v14413_v15, %v2155_v42  ;;  %7146 = vst [vmem:[%s9691_s5 + $0x68] sm:$0xff] %v1932_v16  ;;  %v2168_v31 = vshrl.u32 %v14414_v23, %v2156_v7  ;;  %v2170_v54 = vshll.u32 %v14414_v23, %v2155_v42  ;;  %v10585_v11 = vshll.u32 %v2149_v61, 8 }
 0x209   : > { %v10581_v18 = vsub.s32 %v2097_v46, %v2100_v13  ;;  %v2017_v26 = vxor.u32 2147483648, %v2016_v10  ;;  %v2093_v19 = vadd.s32 %v10534_v55, %v10541_v2  ;;  %v2171_v28 = vshrl.u32 %v14415_v51, %v2156_v7 }
 0x20a   : > { %v2249_v30 = vshrl.u32 %v2248_v32, 23  ;;  %vm2039_vm6 = vcmp.lt.s32.totalorder %v9191_v58, 0  ;;  %v2157_v17 = vshrl.u32 %v14417_v24, %v2156_v7  ;;  %v2160_v40 = vor.u32 %v2159_v22, %v2158_v0 }
 0x20b   : > { %v2103_v38 = vsub.s32 0, %v10581_v18  ;;  %v2163_v8 = vor.u32 %v2162_v52, %v2161_v48  ;;  %v2018_v33 = vsel %vm1935_vm12, %v2017_v26, %v2016_v10  ;;  %v2166_v41 = vor.u32 %v2165_v29, %v2164_v44 }
 0x20c   : > { %v2169_v25 = vor.u32 %v2168_v31, %v2167_v53  ;;  %vm2173_vm7 = vcmp.lt.s32.totalorder %v2154_v1, 1  ;;  %v2021_v55 = vsel %vm10551_vm1, %v9187_v50, %v2018_v33  ;;  %v2172_v27 = vor.u32 %v2171_v28, %v2170_v54 }
 0x20d   : > { %v7349_v2 = vmin.u32 %v2103_v38, %v10581_v18  ;;  %vm2176_vm8 = vcmp.lt.s32.totalorder %v2154_v1, 4  ;;  %7923 = vcosq.f32 %v2021_v55  ;;  %vm2174_vm10 = vcmp.lt.s32.totalorder %v2154_v1, 2 }
 0x20e   : > { %vm2175_vm11 = vcmp.lt.s32.totalorder %v2154_v1, 3  ;;  %v2178_v43 = vsel %vm2176_vm8, %v2166_v41, 2102212464  ;;  %7925 = vsinq.f32 %v2021_v55  ;;  %v2177_v42 = vsel %vm2173_vm7, %v2157_v17, %v2160_v40 }
 0x20f   : > { %v2105_v46 = vclz %v7349_v2  ;;  %v2181_v12 = vsel %vm2173_vm7, %v2160_v40, %v2163_v8  ;;  %v2123_v34 = vsub.s32 4, %v2099_v60  ;;  %v2179_v6 = vsel %vm2175_vm11, %v2163_v8, %v2178_v43 }
 0x210   : > { %v2182_v21 = vsel %vm2176_vm8, %v2169_v25, 920167782  ;;  %v2185_v49 = vsel %vm2173_vm7, %v2163_v8, %v2166_v41  ;;  %v2186_v61 = vsel %vm2176_vm8, %v2172_v27, 1326507024  ;;  %v2252_v7 = vand.u32 8388607, %v2245_v37 }
 0x211   : > { %v7350_v9 = vadd.s32 4294967294, %v2105_v46  ;;  %v2183_v45 = vsel %vm2175_vm11, %v2166_v41, %v2182_v21  ;;  %v2180_v5 = vsel %vm2174_vm10, %v2177_v42, %v2179_v6  ;;  %v2187_v35 = vsel %vm2175_vm11, %v2169_v25, %v2186_v61 }
 0x212   : > { %v2184_v47 = vsel %vm2174_vm10, %v2181_v12, %v2183_v45  ;;  %v7356_v56 = vadd.s32 4294967169, %v2249_v30  ;;  %v2188_v32 = vsel %vm2174_vm10, %v2185_v49, %v2187_v35  ;;  %v2124_v48 = vsel %vm2039_vm6, %v2123_v34, %v2099_v60 }
 0x213   : > { %vm7351_vm9 = vcmp.lt.s32.totalorder %v7350_v9, 0  ;;  %v10611_v4 = vmul.u32.u64.low %v10585_v11, %v2184_v47  ;;  %v10612_v36 = vmul.u32.u64.high %v10585_v11, %v2184_v47, %v10611_v4  ;;  %v2027_v1 = vand.u32 3, %v10565_v39 }
 0x214   : > { %v2108_v0 = vsel %vm7351_vm9, 0, %v7350_v9  ;;  %v10618_v16 = vmul.u32.u64.low %v10585_v11, %v2188_v32  ;;  %v10619_v13 = vmul.u32.u64.high %v10585_v11, %v2188_v32, %v10618_v16  ;;  %v2255_v44 = vadd.s32 1, %v7356_v56 }
 0x215   : > { %v2109_v22 = vsub.s32 32, %v2108_v0  ;;  %v2110_v52 = vshll.u32 %v10581_v18, %v2108_v0  ;;  %v2113_v10 = vsub.s32 4294967266, %v2108_v0  ;;  %vm10625_vm13 = vcmp.le.f32.partialorder %v2037_v57, 0.7853982 }
 0x216   : > { %v2196_v53 = vmul.u32 %v10585_v11, %v2180_v5  ;;  %v2199_v54 = vadd.s32 1, %v10612_v36  ;;  %vm2256_vm12 = vcmp.gt.s32.totalorder %v2255_v44, 0  ;;  %v2126_v18 = vsel %vm10625_vm13, 0, %v2124_v48 }
 0x217   : > { %v2111_v60 = vshrl.u32 %v2093_v19, %v2109_v22  ;;  %v2114_v31 = vadd.s32 127, %v2113_v10  ;;  %vm2198_vm14 = vc.u32 %v10619_v13, %v10611_v4  ;;  %v2253_v39 = vor.u32 8388608, %v2252_v7 }
 0x218   : > { %v2257_v26 = vsel %vm2256_vm12, %v2255_v44, 0  ;;  %v2200_v30 = vsel %vm2198_vm14, %v2199_v54, %v10612_v36  ;;  %vm2025_vm15 = vweird.f32 %v9187_v50  ;;  %vm2028_vm0 = vcmp.lt.s32.totalorder %v2027_v1, 2 }
 0x219   : > { %v2112_v28 = vor.u32 %v2111_v60, %v2110_v52  ;;  %v2115_v57 = vshll.u32 %v2114_v31, 23  ;;  %v10636_v38 = vshrl.u32 %v2257_v26, 5  ;;  %v2201_v11 = vadd.s32 %v2200_v30, %v2196_v53 }
 0x21a   : > { %v2259_v19 = vand.u32 31, %v2257_v26  ;;  %v7924_v17 = vpop.eup %7923  ;;  %vm2029_vm1 = vcmp.eq.s32.totalorder %v2027_v1, 0  ;;  %vm2032_vm2 = vcmp.eq.s32.totalorder %v2027_v1, 2  ;;  %v2130_v25 = vadd.s32 3, %v2126_v18 }
 0x21b   : > { %v2116_v40 = vor.u32 4788187, %v2115_v57  ;;  %v2119_v8 = vcvt.s32.f32 %v2112_v28  ;;  %v7926_v33 = vpop.eup %7925  ;;  %v2033_v41 = vxor.u32 2147483648, %v7924_v17  ;;  %v2202_v55 = vadd.s32 536870912, %v2201_v11 }
 0x21c   : > { %v2260_v2 = vsub.s32 32, %v2259_v19  ;;  %v2030_v27 = vxor.u32 2147483648, %v7926_v33  ;;  %vm2277_vm3 = vcmp.lt.s32.totalorder %v10636_v38, 1  ;;  %v10640_v46 = vshll.u32 %v2253_v39, 8 }
 0x21d   : > { %v2117_v43 = vand.u32 2147483647, %v2116_v40  ;;  %v2034_v42 = vsel %vm2032_vm2, %v2033_v41, %v7926_v33  ;;  %v2203_v12 = vshrl.u32 %v2202_v55, 30  ;;  %v2262_v34 = vshll.u32 %v14417_v24, %v2259_v19 }
 0x21e   : > { %v2263_v6 = vshrl.u32 %v14411_v14, %v2260_v2  ;;  %v2031_v21 = vsel %vm2029_vm1, %v7924_v17, %v2030_v27  ;;  %vm2143_vm4 = vcmp.lt.s32.totalorder %v9195_v59, 0  ;;  %v2265_v9 = vshll.u32 %v14411_v14, %v2259_v19 }
 0x21f   : > { %v2120_v49 = vmul.f32 %v2119_v8, %v2117_v43  ;;  %v2266_v45 = vshrl.u32 %v14412_v20, %v2260_v2  ;;  %v2035_v61 = vsel %vm2028_vm0, %v2031_v21, %v2034_v42  ;;  %v2204_v7 = vshll.u32 %v2203_v12, 30 }
 0x220   : > { %v2268_v5 = vshll.u32 %v14412_v20, %v2259_v19  ;;  %v2269_v47 = vshrl.u32 %v14413_v15, %v2260_v2  ;;  %v2036_v35 = vsel %vm2025_vm15, nan, %v2035_v61  ;;  %v2227_v32 = vsub.s32 4, %v2203_v12 }
 0x221   : > { %v2121_v56 = vxor.u32 2147483648, %v2120_v49  ;;  %v2261_v36 = vshrl.u32 %v14417_v24, %v2260_v2  ;;  %v10654_v0 = vsub.s32 %v2201_v11, %v2204_v7  ;;  %v2264_v48 = vor.u32 %v2263_v6, %v2262_v34  ;;  %7147 = vst [vmem:[%s9691_s5 + $0x70] sm:$0xff] %v2036_v35 }
 0x222   : > { %v2271_v16 = vshll.u32 %v14413_v15, %v2259_v19  ;;  %v2272_v22 = vshrl.u32 %v14414_v23, %v2260_v2  ;;  %v2267_v10 = vor.u32 %v2266_v45, %v2265_v9  ;;  %v2274_v44 = vshll.u32 %v14414_v23, %v2259_v19 }
 0x223   : > { %v2122_v52 = vsel %vm2039_vm6, %v2121_v56, %v2120_v49  ;;  %v2275_v50 = vshrl.u32 %v14415_v51, %v2260_v2  ;;  %vm10668_vm5 = vcmp.le.f32.partialorder %v2141_v3, 0.7853982  ;;  %v2207_v60 = vsub.s32 0, %v10654_v0 }
 0x224   : > { %v2125_v1 = vsel %vm10625_vm13, %v9191_v58, %v2122_v52  ;;  %v2270_v31 = vor.u32 %v2269_v47, %v2268_v5  ;;  %v2273_v54 = vor.u32 %v2272_v22, %v2271_v16  ;;  %vm2280_vm6 = vcmp.lt.s32.totalorder %v10636_v38, 4 }
 0x225   : > { %7927 = vcosq.f32 %v2125_v1  ;;  %v2276_v18 = vor.u32 %v2275_v50, %v2274_v44  ;;  %v2352_v39 = vand.u32 2139095040, %v9203_v63  ;;  %v7353_v29 = vmin.u32 %v2207_v60, %v10654_v0 }
 0x226   : > { %7929 = vsinq.f32 %v2125_v1  ;;  %vm2278_vm7 = vcmp.lt.s32.totalorder %v10636_v38, 2  ;;  %vm2279_vm8 = vcmp.lt.s32.totalorder %v10636_v38, 3  ;;  %v2281_v3 = vsel %vm2277_vm3, %v2261_v36, %v2264_v48 }
 0x227   : > { %v2282_v26 = vsel %vm2280_vm6, %v2270_v31, 2102212464  ;;  %v2285_v28 = vsel %vm2277_vm3, %v2264_v48, %v2267_v10  ;;  %v2286_v57 = vsel %vm2280_vm6, %v2273_v54, 920167782  ;;  %v2131_v30 = vand.u32 3, %v2130_v25 }
 0x228   : > { %v2209_v11 = vclz %v7353_v29  ;;  %v2228_v19 = vsel %vm2143_vm4, %v2227_v32, %v2203_v12  ;;  %v2289_v17 = vsel %vm2277_vm3, %v2267_v10, %v2270_v31  ;;  %v2283_v40 = vsel %vm2279_vm8, %v2267_v10, %v2282_v26 }
 0x229   : > { %v2287_v8 = vsel %vm2279_vm8, %v2270_v31, %v2286_v57  ;;  %v2290_v33 = vsel %vm2280_vm6, %v2276_v18, 1326507024  ;;  %v2353_v41 = vshrl.u32 %v2352_v39, 23  ;;  %v2284_v25 = vsel %vm2278_vm7, %v2281_v3, %v2283_v40 }
 0x22a   : > { %v7354_v55 = vadd.s32 4294967294, %v2209_v11  ;;  %v2288_v2 = vsel %vm2278_vm7, %v2285_v28, %v2287_v8  ;;  %v2291_v27 = vsel %vm2279_vm8, %v2273_v54, %v2290_v33  ;;  %v2197_v43 = vadd.s32 %v10611_v4, %v10619_v13 }
 0x22b   : > { %v2292_v42 = vsel %vm2278_vm7, %v2289_v17, %v2291_v27  ;;  %v10707_v12 = vmul.u32.u64.low %v10640_v46, %v2288_v2  ;;  %v10708_v34 = vmul.u32.u64.high %v10640_v46, %v2288_v2, %v10707_v12  ;;  %v7360_v49 = vadd.s32 4294967169, %v2353_v41 }
 0x22c   : > { %vm7355_vm10 = vcmp.lt.s32.totalorder %v7354_v55, 0  ;;  %v10712_v6 = vmul.u32.u64.low %v10640_v46, %v2292_v42  ;;  %v10713_v21 = vmul.u32.u64.high %v10640_v46, %v2292_v42, %v10712_v6  ;;  %v2230_v45 = vsel %vm10668_vm5, 0, %v2228_v19 }
 0x22d   : > { %v2212_v9 = vsel %vm7355_vm10, 0, %v7354_v55  ;;  %v2300_v4 = vmul.u32 %v10640_v46, %v2284_v25  ;;  %v2349_v13 = vand.u32 2147483647, %v9203_v63  ;;  %v2359_v5 = vadd.s32 1, %v7360_v49 }
 0x22e   : > { %v2213_v38 = vsub.s32 32, %v2212_v9  ;;  %v2214_v61 = vshll.u32 %v10654_v0, %v2212_v9  ;;  %v2217_v7 = vsub.s32 4294967266, %v2212_v9  ;;  %vm2129_vm11 = vweird.f32 %v9191_v58 }
 0x22f   : > { %v2303_v47 = vadd.s32 1, %v10708_v34  ;;  %vm2136_vm9 = vcmp.eq.s32.totalorder %v2131_v30, 2  ;;  %vm2302_vm13 = vc.u32 %v10713_v21, %v10707_v12  ;;  %v2234_v32 = vadd.s32 3, %v2230_v45 }
 0x230   : > { %v2215_v35 = vshrl.u32 %v2197_v43, %v2213_v38  ;;  %v2218_v56 = vadd.s32 127, %v2217_v7  ;;  %v2356_v36 = vand.u32 8388607, %v2349_v13  ;;  %vm2360_vm12 = vcmp.gt.s32.totalorder %v2359_v5, 0 }
 0x231   : > { %v2304_v46 = vsel %vm2302_vm13, %v2303_v47, %v10708_v34  ;;  %v2361_v52 = vsel %vm2360_vm12, %v2359_v5, 0  ;;  %vm2132_vm14 = vcmp.lt.s32.totalorder %v2131_v30, 2  ;;  %vm2133_vm15 = vcmp.eq.s32.totalorder %v2131_v30, 0  ;;  %v14456_v30 = vld [vmem:[#allocation20_spill] sm:$0xff] }
 0x232   : > { %v7928_v0 = vpop.eup %7927  ;;  %v2216_v48 = vor.u32 %v2215_v35, %v2214_v61  ;;  %v2219_v16 = vshll.u32 %v2218_v56, 23  ;;  %v2305_v22 = vadd.s32 %v2304_v46, %v2300_v4  ;;  %v2363_v50 = vand.u32 31, %v2361_v52 }
 0x233   : > { %v7930_v10 = vpop.eup %7929  ;;  %v2137_v44 = vxor.u32 2147483648, %v7928_v0  ;;  %v10728_v39 = vand.u32 3, %v2234_v32  ;;  %v2357_v29 = vor.u32 8388608, %v2356_v36  ;;  %v2362_v2 = vshrl.u32 %v2361_v52, 5 }
 0x234   : > { %v2134_v1 = vxor.u32 2147483648, %v7930_v10  ;;  %v2220_v60 = vor.u32 4788187, %v2219_v16  ;;  %v2223_v31 = vcvt.s32.f32 %v2216_v48  ;;  %v2306_v54 = vadd.s32 536870912, %v2305_v22 }
 0x235   : > { %v2138_v18 = vsel %vm2136_vm9, %v2137_v44, %v7930_v10  ;;  %v2364_v3 = vsub.s32 32, %v2363_v50  ;;  %v2366_v11 = vshll.u32 %v14417_v24, %v2363_v50  ;;  %v2369_v40 = vshll.u32 %v14411_v14, %v2363_v50 }
 0x236   : > { %v2135_v26 = vsel %vm2133_vm15, %v7928_v0, %v2134_v1  ;;  %v2221_v28 = vand.u32 2147483647, %v2220_v60  ;;  %v2307_v57 = vshrl.u32 %v2306_v54, 30  ;;  %v2372_v8 = vshll.u32 %v14412_v20, %v2363_v50 }
 0x237   : > { %v2139_v19 = vsel %vm2132_vm14, %v2135_v26, %v2138_v18  ;;  %v2367_v17 = vshrl.u32 %v14411_v14, %v2364_v3  ;;  %v2370_v25 = vshrl.u32 %v14412_v20, %v2364_v3  ;;  %v2373_v27 = vshrl.u32 %v14413_v15, %v2364_v3 }
 0x238   : > { %v2140_v33 = vsel %vm2129_vm11, nan, %v2139_v19  ;;  %v2224_v41 = vmul.f32 %v2223_v31, %v2221_v28  ;;  %v2308_v55 = vshll.u32 %v2307_v57, 30  ;;  %v2375_v43 = vshll.u32 %v14413_v15, %v2363_v50 }
 0x239   : > { %v2453_v42 = vand.u32 2147483647, %v14456_v30  ;;  %7148 = vst [vmem:[%s9691_s5 + $0x78] sm:$0xff] %v2140_v33  ;;  %v2376_v49 = vshrl.u32 %v14414_v23, %v2364_v3  ;;  %v2456_v58 = vand.u32 2139095040, %v14456_v30  ;;  %vm2247_vm0 = vcmp.lt.s32.totalorder %v9199_v62, 0 }
 0x23a   : > { %v2225_v34 = vxor.u32 2147483648, %v2224_v41  ;;  %v10742_v6 = vsub.s32 %v2305_v22, %v2308_v55  ;;  %v2365_v9 = vshrl.u32 %v14417_v24, %v2364_v3  ;;  %v2368_v45 = vor.u32 %v2367_v17, %v2366_v11 }
 0x23b   : > { %v2378_v4 = vshll.u32 %v14414_v23, %v2363_v50  ;;  %v2379_v38 = vshrl.u32 %v14415_v51, %v2364_v3  ;;  %v2371_v5 = vor.u32 %v2370_v25, %v2369_v40  ;;  %v2374_v47 = vor.u32 %v2373_v27, %v2372_v8 }
 0x23c   : > { %v2226_v61 = vsel %vm2143_vm4, %v2225_v34, %v2224_v41  ;;  %v2311_v7 = vsub.s32 0, %v10742_v6  ;;  %v2377_v56 = vor.u32 %v2376_v49, %v2375_v43  ;;  %vm2381_vm1 = vcmp.lt.s32.totalorder %v2362_v2, 1 }
 0x23d   : > { %v2229_v35 = vsel %vm10668_vm5, %v9195_v59, %v2226_v61  ;;  %v2380_v32 = vor.u32 %v2379_v38, %v2378_v4  ;;  %vm10758_vm2 = vcmp.le.f32.partialorder %v2245_v37, 0.7853982  ;;  %v2397_v0 = vshll.u32 %v2357_v29, 8 }
 0x23e   : > { %7931 = vcosq.f32 %v2229_v35  ;;  %v7357_v36 = vmin.u32 %v2311_v7, %v10742_v6  ;;  %v2457_v48 = vshrl.u32 %v2456_v58, 23  ;;  %v2331_v16 = vsub.s32 4, %v2307_v57 }
 0x23f   : > { %7933 = vsinq.f32 %v2229_v35  ;;  %vm2383_vm3 = vcmp.lt.s32.totalorder %v2362_v2, 3  ;;  %vm2384_vm4 = vcmp.lt.s32.totalorder %v2362_v2, 4  ;;  %vm2382_vm5 = vcmp.lt.s32.totalorder %v2362_v2, 2 }
 0x240   : > { %v2313_v53 = vclz %v7357_v36  ;;  %v2385_v22 = vsel %vm2381_vm1, %v2365_v9, %v2368_v45  ;;  %v2389_v52 = vsel %vm2381_vm1, %v2368_v45, %v2371_v5  ;;  %v2386_v10 = vsel %vm2384_vm4, %v2374_v47, 2102212464 }
 0x241   : > { %v2390_v44 = vsel %vm2384_vm4, %v2377_v56, 920167782  ;;  %v2393_v37 = vsel %vm2381_vm1, %v2371_v5, %v2374_v47  ;;  %v2394_v50 = vsel %vm2384_vm4, %v2380_v32, 1326507024  ;;  %v2387_v60 = vsel %vm2383_vm3, %v2371_v5, %v2386_v10 }
 0x242   : > { %v7358_v1 = vadd.s32 4294967294, %v2313_v53  ;;  %v2391_v31 = vsel %vm2383_vm3, %v2374_v47, %v2390_v44  ;;  %v2395_v54 = vsel %vm2383_vm3, %v2377_v56, %v2394_v50  ;;  %v2301_v18 = vadd.s32 %v10707_v12, %v10713_v21 }
 0x243   : > { %v2392_v29 = vsel %vm2382_vm5, %v2389_v52, %v2391_v31  ;;  %v2396_v3 = vsel %vm2382_vm5, %v2393_v37, %v2395_v54  ;;  %v7364_v26 = vadd.s32 4294967169, %v2457_v48  ;;  %v2332_v28 = vsel %vm2247_vm0, %v2331_v16, %v2307_v57 }
 0x244   : > { %vm7359_vm6 = vcmp.lt.s32.totalorder %v7358_v1, 0  ;;  %v10772_v11 = vmul.u32.u64.low %v2397_v0, %v2396_v3  ;;  %v10773_v19 = vmul.u32.u64.high %v2397_v0, %v2396_v3, %v10772_v11  ;;  %v2388_v40 = vsel %vm2382_vm5, %v2385_v22, %v2387_v60 }
 0x245   : > { %v2316_v17 = vsel %vm7359_vm6, 0, %v7358_v1  ;;  %v10776_v8 = vmul.u32.u64.low %v2397_v0, %v2392_v29  ;;  %v10777_v33 = vmul.u32.u64.high %v2397_v0, %v2392_v29, %v10776_v8  ;;  %v2463_v55 = vadd.s32 1, %v7364_v26 }
 0x246   : > { %v2317_v12 = vsub.s32 32, %v2316_v17  ;;  %v2318_v21 = vshll.u32 %v10742_v6, %v2316_v17  ;;  %v2321_v41 = vsub.s32 4294967266, %v2316_v17  ;;  %vm2233_vm7 = vweird.f32 %v9195_v59  ;;  %v14459_v17 = vld [vmem:[#allocation21_spill] sm:$0xff] }
 0x247   : > { %v2334_v57 = vsel %vm10758_vm2, 0, %v2332_v28  ;;  %v2404_v43 = vmul.u32 %v2397_v0, %v2388_v40  ;;  %vm2406_vm8 = vc.u32 %v10773_v19, %v10776_v8  ;;  %vm2236_vm10 = vcmp.lt.s32.totalorder %v10728_v39, 2 }
 0x248   : > { %v2319_v25 = vshrl.u32 %v2301_v18, %v2317_v12  ;;  %v2322_v27 = vadd.s32 127, %v2321_v41  ;;  %v2407_v2 = vadd.s32 1, %v10777_v33  ;;  %v2460_v34 = vand.u32 8388607, %v2453_v42 }
 0x249   : > { %vm2464_vm11 = vcmp.gt.s32.totalorder %v2463_v55, 0  ;;  %vm2237_vm9 = vcmp.eq.s32.totalorder %v10728_v39, 0  ;;  %vm2240_vm13 = vcmp.eq.s32.totalorder %v10728_v39, 2  ;;  %v2338_v45 = vadd.s32 3, %v2334_v57 }
 0x24a   : > { %v2320_v6 = vor.u32 %v2319_v25, %v2318_v21  ;;  %v2323_v49 = vshll.u32 %v2322_v27, 23  ;;  %v2465_v58 = vsel %vm2464_vm11, %v2463_v55, 0  ;;  %v2408_v4 = vsel %vm2406_vm8, %v2407_v2, %v10777_v33 }
 0x24b   : > { %v7932_v9 = vpop.eup %7931  ;;  %v2467_v38 = vand.u32 31, %v2465_v58  ;;  %v2409_v35 = vadd.s32 %v2408_v4, %v2404_v43  ;;  %v2461_v32 = vor.u32 8388608, %v2460_v34  ;;  %v2466_v18 = vshrl.u32 %v2465_v58, 5 }
 0x24c   : > { %v7934_v61 = vpop.eup %7933  ;;  %v2241_v7 = vxor.u32 2147483648, %v7932_v9  ;;  %v2324_v5 = vor.u32 4788187, %v2323_v49  ;;  %v2327_v47 = vcvt.s32.f32 %v2320_v6  ;;  %v2560_v40 = vand.u32 2139095040, %v14459_v17 }
 0x24d   : > { %v2238_v56 = vxor.u32 2147483648, %v7934_v61  ;;  %v2468_v36 = vsub.s32 32, %v2467_v38  ;;  %v2470_v0 = vshll.u32 %v14417_v24, %v2467_v38  ;;  %v2410_v53 = vadd.s32 536870912, %v2409_v35 }
 0x24e   : > { %v2242_v48 = vsel %vm2240_vm13, %v2241_v7, %v7934_v61  ;;  %v2325_v16 = vand.u32 2147483647, %v2324_v5  ;;  %v2473_v22 = vshll.u32 %v14411_v14, %v2467_v38  ;;  %v2476_v37 = vshll.u32 %v14412_v20, %v2467_v38 }
 0x24f   : > { %v2239_v52 = vsel %vm2237_vm9, %v7932_v9, %v2238_v56  ;;  %v2471_v10 = vshrl.u32 %v14411_v14, %v2468_v36  ;;  %v2474_v44 = vshrl.u32 %v14412_v20, %v2468_v36  ;;  %v2411_v60 = vshrl.u32 %v2410_v53, 30 }
 0x250   : > { %v2243_v50 = vsel %vm2236_vm10, %v2239_v52, %v2242_v48  ;;  %v2328_v1 = vmul.f32 %v2327_v47, %v2325_v16  ;;  %v2477_v31 = vshrl.u32 %v14413_v15, %v2468_v36  ;;  %v2479_v29 = vshll.u32 %v14413_v15, %v2467_v38 }
 0x251   : > { %v2244_v54 = vsel %vm2233_vm7, nan, %v2243_v50  ;;  %v10806_v3 = vshll.u32 %v2461_v32, 8  ;;  %v2412_v28 = vshll.u32 %v2411_v60, 30  ;;  %v2469_v11 = vshrl.u32 %v14417_v24, %v2468_v36 }
 0x252   : > { %v2329_v26 = vxor.u32 2147483648, %v2328_v1  ;;  %7149 = vst [vmem:[%s9691_s5 + $0x80] sm:$0xff] %v2244_v54  ;;  %v2472_v39 = vor.u32 %v2471_v10, %v2470_v0  ;;  %v2480_v33 = vshrl.u32 %v14414_v23, %v2468_v36  ;;  %v2482_v12 = vshll.u32 %v14414_v23, %v2467_v38 }
 0x253   : > { %v2483_v59 = vshrl.u32 %v14415_v51, %v2468_v36  ;;  %v10816_v41 = vsub.s32 %v2409_v35, %v2412_v28  ;;  %v2475_v55 = vor.u32 %v2474_v44, %v2473_v22  ;;  %v2478_v57 = vor.u32 %v2477_v31, %v2476_v37 }
 0x254   : > { %v2330_v21 = vsel %vm2247_vm0, %v2329_v26, %v2328_v1  ;;  %v2481_v27 = vor.u32 %v2480_v33, %v2479_v29  ;;  %vm2485_vm12 = vcmp.lt.s32.totalorder %v2466_v18, 1  ;;  %vm2487_vm14 = vcmp.lt.s32.totalorder %v2466_v18, 3 }
 0x255   : > { %v2333_v25 = vsel %vm10758_vm2, %v9199_v62, %v2330_v21  ;;  %v2484_v43 = vor.u32 %v2483_v59, %v2482_v12  ;;  %v2415_v2 = vsub.s32 0, %v10816_v41  ;;  %v2561_v34 = vshrl.u32 %v2560_v40, 23 }
 0x256   : > { %7935 = vcosq.f32 %v2333_v25  ;;  %vm2486_vm15 = vcmp.lt.s32.totalorder %v2466_v18, 2  ;;  %vm2488_vm1 = vcmp.lt.s32.totalorder %v2466_v18, 4  ;;  %v2489_v6 = vsel %vm2485_vm12, %v2469_v11, %v2472_v39 }
 0x257   : > { %7937 = vsinq.f32 %v2333_v25  ;;  %v7361_v49 = vmin.u32 %v2415_v2, %v10816_v41  ;;  %v2490_v58 = vsel %vm2488_vm1, %v2478_v57, 2102212464  ;;  %v2493_v9 = vsel %vm2485_vm12, %v2472_v39, %v2475_v55 }
 0x258   : > { %v2494_v4 = vsel %vm2488_vm1, %v2481_v27, 920167782  ;;  %v2491_v46 = vsel %vm2487_vm14, %v2475_v55, %v2490_v58  ;;  %v2497_v61 = vsel %vm2485_vm12, %v2475_v55, %v2478_v57  ;;  %v2498_v7 = vsel %vm2488_vm1, %v2484_v43, 1326507024 }
 0x259   : > { %v2495_v38 = vsel %vm2487_vm14, %v2478_v57, %v2494_v4  ;;  %v2339_v5 = vand.u32 3, %v2338_v45  ;;  %v2417_v47 = vclz %v7361_v49  ;;  %v2435_v35 = vsub.s32 4, %v2411_v60  ;;  %v14462_v49 = vld [vmem:[#allocation22_spill] sm:$0xff] }
 0x25a   : > { %v2492_v56 = vsel %vm2486_vm15, %v2489_v6, %v2491_v46  ;;  %v2496_v32 = vsel %vm2486_vm15, %v2493_v9, %v2495_v38  ;;  %v2499_v36 = vsel %vm2487_vm14, %v2481_v27, %v2498_v7  ;;  %v7368_v0 = vadd.s32 4294967169, %v2561_v34 }
 0x25b   : > { %v7362_v48 = vadd.s32 4294967294, %v2417_v47  ;;  %v2500_v16 = vsel %vm2486_vm15, %v2497_v61, %v2499_v36  ;;  %v10830_v53 = vmul.u32.u64.low %v10806_v3, %v2496_v32  ;;  %v10831_v22 = vmul.u32.u64.high %v10806_v3, %v2496_v32, %v10830_v53 }
 0x25c   : > { %vm2351_vm0 = vcmp.lt.s32.totalorder %v9203_v63, 0  ;;  %v10836_v45 = vmul.u32.u64.low %v10806_v3, %v2500_v16  ;;  %v10837_v52 = vmul.u32.u64.high %v10806_v3, %v2500_v16, %v10836_v45  ;;  %v2557_v10 = vand.u32 2147483647, %v14459_v17 }
 0x25d   : > { %vm2337_vm2 = vweird.f32 %v9199_v62  ;;  %v2405_v44 = vadd.s32 %v10776_v8, %v10773_v19  ;;  %vm7363_vm3 = vcmp.lt.s32.totalorder %v7362_v48, 0  ;;  %v2436_v37 = vsel %vm2351_vm0, %v2435_v35, %v2411_v60 }
 0x25e   : > { %v2567_v50 = vadd.s32 1, %v7368_v0  ;;  %vm2340_vm4 = vcmp.lt.s32.totalorder %v2339_v5, 2  ;;  %vm10847_vm5 = vcmp.le.f32.partialorder %v2349_v13, 0.7853982  ;;  %v2420_v31 = vsel %vm7363_vm3, 0, %v7362_v48 }
 0x25f   : > { %v2508_v54 = vmul.u32 %v10806_v3, %v2492_v56  ;;  %v2421_v18 = vsub.s32 32, %v2420_v31  ;;  %v2422_v29 = vshll.u32 %v10816_v41, %v2420_v31  ;;  %v2425_v26 = vsub.s32 4294967266, %v2420_v31 }
 0x260   : > { %v2511_v19 = vadd.s32 1, %v10831_v22  ;;  %v2438_v8 = vsel %vm10847_vm5, 0, %v2436_v37  ;;  %vm2510_vm6 = vc.u32 %v10837_v52, %v10830_v53  ;;  %v2564_v13 = vand.u32 8388607, %v2557_v10 }
 0x261   : > { %vm2568_vm7 = vcmp.gt.s32.totalorder %v2567_v50, 0  ;;  %v2423_v60 = vshrl.u32 %v2405_v44, %v2421_v18  ;;  %v2426_v28 = vadd.s32 127, %v2425_v26  ;;  %vm2341_vm8 = vcmp.eq.s32.totalorder %v2339_v5, 0 }
 0x262   : > { %v2512_v3 = vsel %vm2510_vm6, %v2511_v19, %v10831_v22  ;;  %v2569_v11 = vsel %vm2568_vm7, %v2567_v50, 0  ;;  %vm2344_vm10 = vcmp.eq.s32.totalorder %v2339_v5, 2  ;;  %v10861_v55 = vadd.s32 3, %v2438_v8 }
 0x263   : > { %v7936_v40 = vpop.eup %7935  ;;  %v2513_v39 = vadd.s32 %v2512_v3, %v2508_v54  ;;  %v2571_v33 = vand.u32 31, %v2569_v11  ;;  %v2424_v21 = vor.u32 %v2423_v60, %v2422_v29  ;;  %v2427_v41 = vshll.u32 %v2426_v28, 23 }
 0x264   : > { %v7938_v12 = vpop.eup %7937  ;;  %v2345_v59 = vxor.u32 2147483648, %v7936_v40  ;;  %v2565_v27 = vor.u32 8388608, %v2564_v13  ;;  %v2661_v58 = vand.u32 2147483647, %v14462_v49  ;;  %v2570_v46 = vshrl.u32 %v2569_v11, 5 }
 0x265   : > { %v2342_v57 = vxor.u32 2147483648, %v7938_v12  ;;  %v2514_v25 = vadd.s32 536870912, %v2513_v39  ;;  %v2572_v43 = vsub.s32 32, %v2571_v33  ;;  %v2428_v34 = vor.u32 4788187, %v2427_v41 }
 0x266   : > { %v2346_v2 = vsel %vm2344_vm10, %v2345_v59, %v7938_v12  ;;  %v2431_v6 = vcvt.s32.f32 %v2424_v21  ;;  %v2664_v38 = vand.u32 2139095040, %v14462_v49  ;;  %v2574_v47 = vshll.u32 %v14417_v24, %v2571_v33 }
 0x267   : > { %v2343_v9 = vsel %vm2341_vm8, %v7936_v40, %v2342_v57  ;;  %v2515_v4 = vshrl.u32 %v2514_v25, 30  ;;  %v2429_v7 = vand.u32 2147483647, %v2428_v34  ;;  %v2577_v35 = vshll.u32 %v14411_v14, %v2571_v33 }
 0x268   : > { %v2347_v61 = vsel %vm2340_vm4, %v2343_v9, %v2346_v2  ;;  %v2575_v36 = vshrl.u32 %v14411_v14, %v2572_v43  ;;  %v2578_v0 = vshrl.u32 %v14412_v20, %v2572_v43  ;;  %v2580_v16 = vshll.u32 %v14412_v20, %v2571_v33 }
 0x269   : > { %v2348_v56 = vsel %vm2337_vm2, nan, %v2347_v61  ;;  %v2516_v32 = vshll.u32 %v2515_v4, 30  ;;  %v2432_v48 = vmul.f32 %v2431_v6, %v2429_v7  ;;  %v2581_v22 = vshrl.u32 %v14413_v15, %v2572_v43 }
 0x26a   : > { %v2583_v5 = vshll.u32 %v14413_v15, %v2571_v33  ;;  %7150 = vst [vmem:[%s9691_s5 + $0x88] sm:$0xff] %v2348_v56  ;;  %v2584_v44 = vshrl.u32 %v14414_v23, %v2572_v43  ;;  %v2586_v62 = vshll.u32 %v14414_v23, %v2571_v33  ;;  %v10881_v37 = vshll.u32 %v2565_v27, 8 }
 0x26b   : > { %v10877_v45 = vsub.s32 %v2513_v39, %v2516_v32  ;;  %v2433_v50 = vxor.u32 2147483648, %v2432_v48  ;;  %v2509_v31 = vadd.s32 %v10830_v53, %v10837_v52  ;;  %v2587_v54 = vshrl.u32 %v14415_v51, %v2572_v43 }
 0x26c   : > { %v2665_v18 = vshrl.u32 %v2664_v38, 23  ;;  %vm2455_vm11 = vcmp.lt.s32.totalorder %v14456_v30, 0  ;;  %v2573_v26 = vshrl.u32 %v14417_v24, %v2572_v43  ;;  %v2576_v19 = vor.u32 %v2575_v36, %v2574_v47 }
 0x26d   : > { %v2519_v29 = vsub.s32 0, %v10877_v45  ;;  %v2579_v8 = vor.u32 %v2578_v0, %v2577_v35  ;;  %v2434_v13 = vsel %vm2351_vm0, %v2433_v50, %v2432_v48  ;;  %v2582_v60 = vor.u32 %v2581_v22, %v2580_v16 }
 0x26e   : > { %v2585_v28 = vor.u32 %v2584_v44, %v2583_v5  ;;  %vm2589_vm9 = vcmp.lt.s32.totalorder %v2570_v46, 1  ;;  %v2437_v53 = vsel %vm10847_vm5, %v9203_v63, %v2434_v13  ;;  %v2588_v3 = vor.u32 %v2587_v54, %v2586_v62 }
 0x26f   : > { %v7365_v52 = vmin.u32 %v2519_v29, %v10877_v45  ;;  %vm2592_vm13 = vcmp.lt.s32.totalorder %v2570_v46, 4  ;;  %7939 = vcosq.f32 %v2437_v53  ;;  %vm2590_vm12 = vcmp.lt.s32.totalorder %v2570_v46, 2 }
 0x270   : > { %vm2591_vm14 = vcmp.lt.s32.totalorder %v2570_v46, 3  ;;  %v2594_v11 = vsel %vm2592_vm13, %v2582_v60, 2102212464  ;;  %7941 = vsinq.f32 %v2437_v53  ;;  %v2593_v39 = vsel %vm2589_vm9, %v2573_v26, %v2576_v19 }
 0x271   : > { %v2521_v40 = vclz %v7365_v52  ;;  %v2597_v33 = vsel %vm2589_vm9, %v2576_v19, %v2579_v8  ;;  %v2539_v12 = vsub.s32 4, %v2515_v4  ;;  %v2595_v59 = vsel %vm2591_vm14, %v2579_v8, %v2594_v11 }
 0x272   : > { %v2598_v21 = vsel %vm2592_vm13, %v2585_v28, 920167782  ;;  %v2601_v1 = vsel %vm2589_vm9, %v2579_v8, %v2582_v60  ;;  %v2602_v25 = vsel %vm2592_vm13, %v2588_v3, 1326507024  ;;  %v2668_v27 = vand.u32 8388607, %v2661_v58 }
 0x273   : > { %v7366_v41 = vadd.s32 4294967294, %v2521_v40  ;;  %v2599_v57 = vsel %vm2591_vm14, %v2582_v60, %v2598_v21  ;;  %v2596_v43 = vsel %vm2590_vm12, %v2593_v39, %v2595_v59  ;;  %v2603_v34 = vsel %vm2591_vm14, %v2585_v28, %v2602_v25 }
 0x274   : > { %v2600_v2 = vsel %vm2590_vm12, %v2597_v33, %v2599_v57  ;;  %v7372_v6 = vadd.s32 4294967169, %v2665_v18  ;;  %v2604_v9 = vsel %vm2590_vm12, %v2601_v1, %v2603_v34  ;;  %v2540_v47 = vsel %vm2455_vm11, %v2539_v12, %v2515_v4 }
 0x275   : > { %vm7367_vm15 = vcmp.lt.s32.totalorder %v7366_v41, 0  ;;  %v10907_v38 = vmul.u32.u64.low %v10881_v37, %v2600_v2  ;;  %v10908_v61 = vmul.u32.u64.high %v10881_v37, %v2600_v2, %v10907_v38  ;;  %v2443_v46 = vand.u32 3, %v10861_v55 }
 0x276   : > { %v2524_v7 = vsel %vm7367_vm15, 0, %v7366_v41  ;;  %v10914_v35 = vmul.u32.u64.low %v10881_v37, %v2604_v9  ;;  %v10915_v56 = vmul.u32.u64.high %v10881_v37, %v2604_v9, %v10914_v35  ;;  %v2671_v48 = vadd.s32 1, %v7372_v6 }
 0x277   : > { %v2525_v32 = vsub.s32 32, %v2524_v7  ;;  %v2526_v36 = vshll.u32 %v10877_v45, %v2524_v7  ;;  %v2529_v0 = vsub.s32 4294967266, %v2524_v7  ;;  %vm10921_vm1 = vcmp.le.f32.partialorder %v2453_v42, 0.7853982 }
 0x278   : > { %v2612_v22 = vmul.u32 %v10881_v37, %v2596_v43  ;;  %v2615_v44 = vadd.s32 1, %v10908_v61  ;;  %vm2672_vm0 = vcmp.gt.s32.totalorder %v2671_v48, 0  ;;  %v2542_v45 = vsel %vm10921_vm1, 0, %v2540_v47 }
 0x279   : > { %v2527_v4 = vshrl.u32 %v2509_v31, %v2525_v32  ;;  %v2530_v5 = vadd.s32 127, %v2529_v0  ;;  %vm2614_vm2 = vc.u32 %v10915_v56, %v10907_v38  ;;  %v2669_v55 = vor.u32 8388608, %v2668_v27 }
 0x27a   : > { %v2673_v62 = vsel %vm2672_vm0, %v2671_v48, 0  ;;  %v2616_v54 = vsel %vm2614_vm2, %v2615_v44, %v10908_v61  ;;  %vm2441_vm3 = vweird.f32 %v9203_v63  ;;  %vm2444_vm4 = vcmp.lt.s32.totalorder %v2443_v46, 2 }
 0x27b   : > { %v2528_v50 = vor.u32 %v2527_v4, %v2526_v36  ;;  %v2531_v42 = vshll.u32 %v2530_v5, 23  ;;  %v10932_v18 = vshrl.u32 %v2673_v62, 5  ;;  %v2617_v37 = vadd.s32 %v2616_v54, %v2612_v22 }
 0x27c   : > { %v2675_v31 = vand.u32 31, %v2673_v62  ;;  %v7940_v29 = vpop.eup %7939  ;;  %vm2445_vm5 = vcmp.eq.s32.totalorder %v2443_v46, 0  ;;  %vm2448_vm6 = vcmp.eq.s32.totalorder %v2443_v46, 2  ;;  %v2546_v60 = vadd.s32 3, %v2542_v45  ;;  %v14467_v45 = vld [vmem:[#allocation23_spill] sm:$0xff] }
 0x27d   : > { %v2532_v26 = vor.u32 4788187, %v2531_v42  ;;  %v2535_v19 = vcvt.s32.f32 %v2528_v50  ;;  %v7942_v8 = vpop.eup %7941  ;;  %v2449_v13 = vxor.u32 2147483648, %v7940_v29  ;;  %v2618_v28 = vadd.s32 536870912, %v2617_v37 }
 0x27e   : > { %v2676_v53 = vsub.s32 32, %v2675_v31  ;;  %v2446_v52 = vxor.u32 2147483648, %v7942_v8  ;;  %vm2693_vm7 = vcmp.lt.s32.totalorder %v10932_v18, 1  ;;  %v10936_v11 = vshll.u32 %v2669_v55, 8 }
 0x27f   : > { %v2533_v3 = vand.u32 2147483647, %v2532_v26  ;;  %v2450_v40 = vsel %vm2448_vm6, %v2449_v13, %v7942_v8  ;;  %v2619_v39 = vshrl.u32 %v2618_v28, 30  ;;  %v2678_v33 = vshll.u32 %v14417_v24, %v2675_v31 }
 0x280   : > { %v2679_v12 = vshrl.u32 %v14411_v14, %v2676_v53  ;;  %v2447_v59 = vsel %vm2445_vm5, %v7940_v29, %v2446_v52  ;;  %vm2559_vm8 = vcmp.lt.s32.totalorder %v14459_v17, 0  ;;  %v2681_v1 = vshll.u32 %v14411_v14, %v2675_v31 }
 0x281   : > { %v2536_v21 = vmul.f32 %v2535_v19, %v2533_v3  ;;  %v2682_v41 = vshrl.u32 %v14412_v20, %v2676_v53  ;;  %v2451_v57 = vsel %vm2444_vm4, %v2447_v59, %v2450_v40  ;;  %v2620_v25 = vshll.u32 %v2619_v39, 30 }
 0x282   : > { %v2684_v27 = vshll.u32 %v14412_v20, %v2675_v31  ;;  %v2685_v43 = vshrl.u32 %v14413_v15, %v2676_v53  ;;  %v2452_v2 = vsel %vm2441_vm3, nan, %v2451_v57  ;;  %v2643_v6 = vsub.s32 4, %v2619_v39 }
 0x283   : > { %v2537_v34 = vxor.u32 2147483648, %v2536_v21  ;;  %v2677_v9 = vshrl.u32 %v14417_v24, %v2676_v53  ;;  %v10950_v61 = vsub.s32 %v2617_v37, %v2620_v25  ;;  %v2680_v7 = vor.u32 %v2679_v12, %v2678_v33  ;;  %7151 = vst [vmem:[%s9691_s5 + $0x90] sm:$0xff] %v2452_v2 }
 0x284   : > { %v2687_v47 = vshll.u32 %v14413_v15, %v2675_v31  ;;  %v2688_v35 = vshrl.u32 %v14414_v23, %v2676_v53  ;;  %v2683_v36 = vor.u32 %v2682_v41, %v2681_v1  ;;  %v2690_v0 = vshll.u32 %v14414_v23, %v2675_v31 }
 0x285   : > { %v2538_v32 = vsel %vm2455_vm11, %v2537_v34, %v2536_v21  ;;  %v2691_v63 = vshrl.u32 %v14415_v51, %v2676_v53  ;;  %vm10964_vm10 = vcmp.le.f32.partialorder %v2557_v10, 0.7853982  ;;  %v2623_v22 = vsub.s32 0, %v10950_v61 }
 0x286   : > { %v2541_v48 = vsel %vm10921_vm1, %v14456_v30, %v2538_v32  ;;  %v2686_v4 = vor.u32 %v2685_v43, %v2684_v27  ;;  %v2689_v5 = vor.u32 %v2688_v35, %v2687_v47  ;;  %vm2696_vm11 = vcmp.lt.s32.totalorder %v10932_v18, 4 }
 0x287   : > { %7943 = vcosq.f32 %v2541_v48  ;;  %v2692_v44 = vor.u32 %v2691_v63, %v2690_v0  ;;  %v2768_v55 = vand.u32 2139095040, %v14467_v45  ;;  %v7369_v16 = vmin.u32 %v2623_v22, %v10950_v61 }
 0x288   : > { %7945 = vsinq.f32 %v2541_v48  ;;  %vm2694_vm9 = vcmp.lt.s32.totalorder %v10932_v18, 2  ;;  %vm2695_vm13 = vcmp.lt.s32.totalorder %v10932_v18, 3  ;;  %v2697_v10 = vsel %vm2693_vm7, %v2677_v9, %v2680_v7 }
 0x289   : > { %v2698_v62 = vsel %vm2696_vm11, %v2686_v4, 2102212464  ;;  %v2701_v50 = vsel %vm2693_vm7, %v2680_v7, %v2683_v36  ;;  %v2702_v42 = vsel %vm2696_vm11, %v2689_v5, 920167782  ;;  %v2547_v54 = vand.u32 3, %v2546_v60 }
 0x28a   : > { %v2625_v37 = vclz %v7369_v16  ;;  %v2644_v31 = vsel %vm2559_vm8, %v2643_v6, %v2619_v39  ;;  %v2705_v29 = vsel %vm2693_vm7, %v2683_v36, %v2686_v4  ;;  %v2699_v26 = vsel %vm2695_vm13, %v2683_v36, %v2698_v62 }
 0x28b   : > { %v2703_v19 = vsel %vm2695_vm13, %v2686_v4, %v2702_v42  ;;  %v2706_v8 = vsel %vm2696_vm11, %v2692_v44, 1326507024  ;;  %v2769_v13 = vshrl.u32 %v2768_v55, 23  ;;  %v2700_v60 = vsel %vm2694_vm9, %v2697_v10, %v2699_v26 }
 0x28c   : > { %v7370_v28 = vadd.s32 4294967294, %v2625_v37  ;;  %v2704_v53 = vsel %vm2694_vm9, %v2701_v50, %v2703_v19  ;;  %v2707_v52 = vsel %vm2695_vm13, %v2689_v5, %v2706_v8  ;;  %v2613_v3 = vadd.s32 %v10907_v38, %v10915_v56 }
 0x28d   : > { %v2708_v40 = vsel %vm2694_vm9, %v2705_v29, %v2707_v52  ;;  %v11003_v39 = vmul.u32.u64.low %v10936_v11, %v2704_v53  ;;  %v11004_v33 = vmul.u32.u64.high %v10936_v11, %v2704_v53, %v11003_v39  ;;  %v7376_v21 = vadd.s32 4294967169, %v2769_v13 }
 0x28e   : > { %vm7371_vm12 = vcmp.lt.s32.totalorder %v7370_v28, 0  ;;  %v11008_v12 = vmul.u32.u64.low %v10936_v11, %v2708_v40  ;;  %v11009_v59 = vmul.u32.u64.high %v10936_v11, %v2708_v40, %v11008_v12  ;;  %v2646_v41 = vsel %vm10964_vm10, 0, %v2644_v31 }
 0x28f   : > { %v2628_v1 = vsel %vm7371_vm12, 0, %v7370_v28  ;;  %v2716_v38 = vmul.u32 %v10936_v11, %v2700_v60  ;;  %v2765_v56 = vand.u32 2147483647, %v14467_v45  ;;  %v2775_v27 = vadd.s32 1, %v7376_v21 }
 0x290   : > { %v2629_v18 = vsub.s32 32, %v2628_v1  ;;  %v2630_v57 = vshll.u32 %v10950_v61, %v2628_v1  ;;  %v2633_v25 = vsub.s32 4294967266, %v2628_v1  ;;  %vm2545_vm14 = vweird.f32 %v14456_v30 }
 0x291   : > { %v2719_v43 = vadd.s32 1, %v11004_v33  ;;  %vm2552_vm15 = vcmp.eq.s32.totalorder %v2547_v54, 2  ;;  %vm2718_vm1 = vc.u32 %v11009_v59, %v11003_v39  ;;  %v2650_v6 = vadd.s32 3, %v2646_v41 }
 0x292   : > { %v2631_v2 = vshrl.u32 %v2613_v3, %v2629_v18  ;;  %v2634_v34 = vadd.s32 127, %v2633_v25  ;;  %v2772_v9 = vand.u32 8388607, %v2765_v56  ;;  %vm2776_vm0 = vcmp.gt.s32.totalorder %v2775_v27, 0 }
 0x293   : > { %v2720_v11 = vsel %vm2718_vm1, %v2719_v43, %v11004_v33  ;;  %v2777_v32 = vsel %vm2776_vm0, %v2775_v27, 0  ;;  %vm2548_vm2 = vcmp.lt.s32.totalorder %v2547_v54, 2  ;;  %vm2549_vm3 = vcmp.eq.s32.totalorder %v2547_v54, 0  ;;  %v14468_v54 = vld [vmem:[#allocation24_spill] sm:$0xff] }
 0x294   : > { %v7944_v61 = vpop.eup %7943  ;;  %v2632_v7 = vor.u32 %v2631_v2, %v2630_v57  ;;  %v2635_v47 = vshll.u32 %v2634_v34, 23  ;;  %v2721_v35 = vadd.s32 %v2720_v11, %v2716_v38  ;;  %v2779_v63 = vand.u32 31, %v2777_v32 }
 0x295   : > { %v7946_v36 = vpop.eup %7945  ;;  %v2553_v0 = vxor.u32 2147483648, %v7944_v61  ;;  %v11024_v55 = vand.u32 3, %v2650_v6  ;;  %v2773_v16 = vor.u32 8388608, %v2772_v9  ;;  %v2778_v53 = vshrl.u32 %v2777_v32, 5 }
 0x296   : > { %v2550_v48 = vxor.u32 2147483648, %v7946_v36  ;;  %v2636_v22 = vor.u32 4788187, %v2635_v47  ;;  %v2639_v4 = vcvt.s32.f32 %v2632_v7  ;;  %v2722_v5 = vadd.s32 536870912, %v2721_v35 }
 0x297   : > { %v2554_v44 = vsel %vm2552_vm15, %v2553_v0, %v7946_v36  ;;  %v2780_v10 = vsub.s32 32, %v2779_v63  ;;  %v2782_v37 = vshll.u32 %v14417_v24, %v2779_v63  ;;  %v2785_v26 = vshll.u32 %v14411_v14, %v2779_v63 }
 0x298   : > { %v2551_v62 = vsel %vm2549_vm3, %v7944_v61, %v2550_v48  ;;  %v2637_v50 = vand.u32 2147483647, %v2636_v22  ;;  %v2723_v42 = vshrl.u32 %v2722_v5, 30  ;;  %v2788_v19 = vshll.u32 %v14412_v20, %v2779_v63 }
 0x299   : > { %v2555_v31 = vsel %vm2548_vm2, %v2551_v62, %v2554_v44  ;;  %v2783_v29 = vshrl.u32 %v14411_v14, %v2780_v10  ;;  %v2786_v60 = vshrl.u32 %v14412_v20, %v2780_v10  ;;  %v2789_v52 = vshrl.u32 %v14413_v15, %v2780_v10 }
 0x29a   : > { %v2556_v8 = vsel %vm2545_vm14, nan, %v2555_v31  ;;  %v2640_v13 = vmul.f32 %v2639_v4, %v2637_v50  ;;  %v2724_v28 = vshll.u32 %v2723_v42, 30  ;;  %v2791_v3 = vshll.u32 %v14413_v15, %v2779_v63 }
 0x29b   : > { %v2869_v40 = vand.u32 2147483647, %v14468_v54  ;;  %7152 = vst [vmem:[%s9691_s5 + $0x98] sm:$0xff] %v2556_v8  ;;  %v2792_v21 = vshrl.u32 %v14414_v23, %v2780_v10  ;;  %v2872_v30 = vand.u32 2139095040, %v14468_v54  ;;  %vm2663_vm4 = vcmp.lt.s32.totalorder %v14462_v49, 0 }
 0x29c   : > { %v2641_v33 = vxor.u32 2147483648, %v2640_v13  ;;  %v11038_v12 = vsub.s32 %v2721_v35, %v2724_v28  ;;  %v2781_v1 = vshrl.u32 %v14417_v24, %v2780_v10  ;;  %v2784_v41 = vor.u32 %v2783_v29, %v2782_v37 }
 0x29d   : > { %v2794_v38 = vshll.u32 %v14414_v23, %v2779_v63  ;;  %v2795_v18 = vshrl.u32 %v14415_v51, %v2780_v10  ;;  %v2787_v27 = vor.u32 %v2786_v60, %v2785_v26  ;;  %v2790_v43 = vor.u32 %v2789_v52, %v2788_v19 }
 0x29e   : > { %v2642_v57 = vsel %vm2559_vm8, %v2641_v33, %v2640_v13  ;;  %v2727_v25 = vsub.s32 0, %v11038_v12  ;;  %v2793_v34 = vor.u32 %v2792_v21, %v2791_v3  ;;  %vm2797_vm5 = vcmp.lt.s32.totalorder %v2778_v53, 1 }
 0x29f   : > { %v2645_v2 = vsel %vm10964_vm10, %v14459_v17, %v2642_v57  ;;  %v2796_v6 = vor.u32 %v2795_v18, %v2794_v38  ;;  %vm11054_vm6 = vcmp.le.f32.partialorder %v2661_v58, 0.7853982  ;;  %v2813_v61 = vshll.u32 %v2773_v16, 8 }
 0x2a0   : > { %7947 = vcosq.f32 %v2645_v2  ;;  %v7373_v9 = vmin.u32 %v2727_v25, %v11038_v12  ;;  %v2873_v7 = vshrl.u32 %v2872_v30, 23  ;;  %v2747_v47 = vsub.s32 4, %v2723_v42 }
 0x2a1   : > { %7949 = vsinq.f32 %v2645_v2  ;;  %vm2799_vm7 = vcmp.lt.s32.totalorder %v2778_v53, 3  ;;  %vm2800_vm8 = vcmp.lt.s32.totalorder %v2778_v53, 4  ;;  %vm2798_vm10 = vcmp.lt.s32.totalorder %v2778_v53, 2 }
 0x2a2   : > { %v2729_v46 = vclz %v7373_v9  ;;  %v2801_v35 = vsel %vm2797_vm5, %v2781_v1, %v2784_v41  ;;  %v2805_v32 = vsel %vm2797_vm5, %v2784_v41, %v2787_v27  ;;  %v2802_v36 = vsel %vm2800_vm8, %v2790_v43, 2102212464 }
 0x2a3   : > { %v2806_v0 = vsel %vm2800_vm8, %v2793_v34, 920167782  ;;  %v2809_v58 = vsel %vm2797_vm5, %v2787_v27, %v2790_v43  ;;  %v2810_v63 = vsel %vm2800_vm8, %v2796_v6, 1326507024  ;;  %v2803_v22 = vsel %vm2799_vm7, %v2787_v27, %v2802_v36 }
 0x2a4   : > { %v7374_v48 = vadd.s32 4294967294, %v2729_v46  ;;  %v2807_v4 = vsel %vm2799_vm7, %v2790_v43, %v2806_v0  ;;  %v2811_v5 = vsel %vm2799_vm7, %v2793_v34, %v2810_v63  ;;  %v2717_v44 = vadd.s32 %v11003_v39, %v11009_v59 }
 0x2a5   : > { %v2808_v16 = vsel %vm2798_vm10, %v2805_v32, %v2807_v4  ;;  %v2812_v10 = vsel %vm2798_vm10, %v2809_v58, %v2811_v5  ;;  %v7380_v62 = vadd.s32 4294967169, %v2873_v7  ;;  %v2748_v50 = vsel %vm2663_vm4, %v2747_v47, %v2723_v42 }
 0x2a6   : > { %vm7375_vm11 = vcmp.lt.s32.totalorder %v7374_v48, 0  ;;  %v11068_v37 = vmul.u32.u64.low %v2813_v61, %v2812_v10  ;;  %v11069_v31 = vmul.u32.u64.high %v2813_v61, %v2812_v10, %v11068_v37  ;;  %v2804_v26 = vsel %vm2798_vm10, %v2801_v35, %v2803_v22 }
 0x2a7   : > { %v2732_v29 = vsel %vm7375_vm11, 0, %v7374_v48  ;;  %v11072_v19 = vmul.u32.u64.low %v2813_v61, %v2808_v16  ;;  %v11073_v8 = vmul.u32.u64.high %v2813_v61, %v2808_v16, %v11072_v19  ;;  %v2879_v28 = vadd.s32 1, %v7380_v62 }
 0x2a8   : > { %v2733_v39 = vsub.s32 32, %v2732_v29  ;;  %v2734_v59 = vshll.u32 %v11038_v12, %v2732_v29  ;;  %v2737_v13 = vsub.s32 4294967266, %v2732_v29  ;;  %vm2649_vm9 = vweird.f32 %v14459_v17  ;;  %v14471_v29 = vld [vmem:[#allocation8_spill] sm:$0xff] }
 0x2a9   : > { %v2750_v42 = vsel %vm11054_vm6, 0, %v2748_v50  ;;  %v2820_v3 = vmul.u32 %v2813_v61, %v2804_v26  ;;  %vm2822_vm13 = vc.u32 %v11069_v31, %v11072_v19  ;;  %vm2652_vm12 = vcmp.lt.s32.totalorder %v11024_v55, 2 }
 0x2aa   : > { %v2735_v60 = vshrl.u32 %v2717_v44, %v2733_v39  ;;  %v2738_v52 = vadd.s32 127, %v2737_v13  ;;  %v2823_v53 = vadd.s32 1, %v11073_v8  ;;  %v2876_v33 = vand.u32 8388607, %v2869_v40 }
 0x2ab   : > { %vm2880_vm14 = vcmp.gt.s32.totalorder %v2879_v28, 0  ;;  %vm2653_vm15 = vcmp.eq.s32.totalorder %v11024_v55, 0  ;;  %vm2656_vm1 = vcmp.eq.s32.totalorder %v11024_v55, 2  ;;  %v2754_v41 = vadd.s32 3, %v2750_v42 }
 0x2ac   : > { %v2736_v12 = vor.u32 %v2735_v60, %v2734_v59  ;;  %v2739_v21 = vshll.u32 %v2738_v52, 23  ;;  %v2881_v30 = vsel %vm2880_vm14, %v2879_v28, 0  ;;  %v2824_v38 = vsel %vm2822_vm13, %v2823_v53, %v11073_v8 }
 0x2ad   : > { %v7948_v1 = vpop.eup %7947  ;;  %v2883_v18 = vand.u32 31, %v2881_v30  ;;  %v2825_v2 = vadd.s32 %v2824_v38, %v2820_v3  ;;  %v2877_v6 = vor.u32 8388608, %v2876_v33  ;;  %v2882_v44 = vshrl.u32 %v2881_v30, 5 }
 0x2ae   : > { %v7950_v57 = vpop.eup %7949  ;;  %v2657_v25 = vxor.u32 2147483648, %v7948_v1  ;;  %v2740_v27 = vor.u32 4788187, %v2739_v21  ;;  %v2743_v43 = vcvt.s32.f32 %v2736_v12  ;;  %v2976_v26 = vand.u32 2139095040, %v14471_v29 }
 0x2af   : > { %v2654_v34 = vxor.u32 2147483648, %v7950_v57  ;;  %v2884_v9 = vsub.s32 32, %v2883_v18  ;;  %v2886_v61 = vshll.u32 %v14417_v24, %v2883_v18  ;;  %v2826_v46 = vadd.s32 536870912, %v2825_v2 }
 0x2b0   : > { %v2658_v7 = vsel %vm2656_vm1, %v2657_v25, %v7950_v57  ;;  %v2741_v47 = vand.u32 2147483647, %v2740_v27  ;;  %v2889_v35 = vshll.u32 %v14411_v14, %v2883_v18  ;;  %v2892_v58 = vshll.u32 %v14412_v20, %v2883_v18 }
 0x2b1   : > { %v2655_v32 = vsel %vm2653_vm15, %v7948_v1, %v2654_v34  ;;  %v2887_v36 = vshrl.u32 %v14411_v14, %v2884_v9  ;;  %v2890_v0 = vshrl.u32 %v14412_v20, %v2884_v9  ;;  %v2827_v22 = vshrl.u32 %v2826_v46, 30 }
 0x2b2   : > { %v2659_v63 = vsel %vm2652_vm12, %v2655_v32, %v2658_v7  ;;  %v2744_v48 = vmul.f32 %v2743_v43, %v2741_v47  ;;  %v2893_v4 = vshrl.u32 %v14413_v15, %v2884_v9  ;;  %v2895_v16 = vshll.u32 %v14413_v15, %v2883_v18 }
 0x2b3   : > { %v2660_v5 = vsel %vm2649_vm9, nan, %v2659_v63  ;;  %v11102_v10 = vshll.u32 %v2877_v6, 8  ;;  %v2828_v50 = vshll.u32 %v2827_v22, 30  ;;  %v2885_v37 = vshrl.u32 %v14417_v24, %v2884_v9 }
 0x2b4   : > { %v2745_v62 = vxor.u32 2147483648, %v2744_v48  ;;  %7153 = vst [vmem:[%s9691_s5 + $0xa0] sm:$0xff] %v2660_v5  ;;  %v2888_v55 = vor.u32 %v2887_v36, %v2886_v61  ;;  %v2896_v8 = vshrl.u32 %v14414_v23, %v2884_v9  ;;  %v2898_v39 = vshll.u32 %v14414_v23, %v2883_v18 }
 0x2b5   : > { %v2899_v17 = vshrl.u32 %v14415_v51, %v2884_v9  ;;  %v11112_v13 = vsub.s32 %v2825_v2, %v2828_v50  ;;  %v2891_v28 = vor.u32 %v2890_v0, %v2889_v35  ;;  %v2894_v42 = vor.u32 %v2893_v4, %v2892_v58 }
 0x2b6   : > { %v2746_v59 = vsel %vm2663_vm4, %v2745_v62, %v2744_v48  ;;  %v2897_v52 = vor.u32 %v2896_v8, %v2895_v16  ;;  %vm2901_vm0 = vcmp.lt.s32.totalorder %v2882_v44, 1  ;;  %vm2903_vm2 = vcmp.lt.s32.totalorder %v2882_v44, 3 }
 0x2b7   : > { %v2749_v60 = vsel %vm11054_vm6, %v14462_v49, %v2746_v59  ;;  %v2900_v3 = vor.u32 %v2899_v17, %v2898_v39  ;;  %v2831_v53 = vsub.s32 0, %v11112_v13  ;;  %v2977_v33 = vshrl.u32 %v2976_v26, 23 }
 0x2b8   : > { %7951 = vcosq.f32 %v2749_v60  ;;  %vm2902_vm3 = vcmp.lt.s32.totalorder %v2882_v44, 2  ;;  %vm2904_vm5 = vcmp.lt.s32.totalorder %v2882_v44, 4  ;;  %v2905_v12 = vsel %vm2901_vm0, %v2885_v37, %v2888_v55 }
 0x2b9   : > { %7953 = vsinq.f32 %v2749_v60  ;;  %v7377_v21 = vmin.u32 %v2831_v53, %v11112_v13  ;;  %v2906_v30 = vsel %vm2904_vm5, %v2894_v42, 2102212464  ;;  %v2909_v1 = vsel %vm2901_vm0, %v2888_v55, %v2891_v28 }
 0x2ba   : > { %v2910_v38 = vsel %vm2904_vm5, %v2897_v52, 920167782  ;;  %v2907_v11 = vsel %vm2903_vm2, %v2891_v28, %v2906_v30  ;;  %v2913_v57 = vsel %vm2901_vm0, %v2891_v28, %v2894_v42  ;;  %v2914_v25 = vsel %vm2904_vm5, %v2900_v3, 1326507024 }
 0x2bb   : > { %v2911_v18 = vsel %vm2903_vm2, %v2894_v42, %v2910_v38  ;;  %v2755_v27 = vand.u32 3, %v2754_v41  ;;  %v2833_v43 = vclz %v7377_v21  ;;  %v2851_v2 = vsub.s32 4, %v2827_v22  ;;  %v14474_v21 = vld [vmem:[#allocation9_spill] sm:$0xff] }
 0x2bc   : > { %v2908_v34 = vsel %vm2902_vm3, %v2905_v12, %v2907_v11  ;;  %v2912_v6 = vsel %vm2902_vm3, %v2909_v1, %v2911_v18  ;;  %v2915_v9 = vsel %vm2903_vm2, %v2897_v52, %v2914_v25  ;;  %v7384_v61 = vadd.s32 4294967169, %v2977_v33 }
 0x2bd   : > { %v7378_v7 = vadd.s32 4294967294, %v2833_v43  ;;  %v2916_v47 = vsel %vm2902_vm3, %v2913_v57, %v2915_v9  ;;  %v11126_v46 = vmul.u32.u64.low %v11102_v10, %v2912_v6  ;;  %v11127_v35 = vmul.u32.u64.high %v11102_v10, %v2912_v6, %v11126_v46 }
 0x2be   : > { %vm2767_vm4 = vcmp.lt.s32.totalorder %v14467_v45, 0  ;;  %v11132_v41 = vmul.u32.u64.low %v11102_v10, %v2916_v47  ;;  %v11133_v32 = vmul.u32.u64.high %v11102_v10, %v2916_v47, %v11132_v41  ;;  %v2973_v36 = vand.u32 2147483647, %v14471_v29 }
 0x2bf   : > { %vm2753_vm6 = vweird.f32 %v14462_v49  ;;  %v2821_v0 = vadd.s32 %v11072_v19, %v11069_v31  ;;  %vm7379_vm7 = vcmp.lt.s32.totalorder %v7378_v7, 0  ;;  %v2852_v58 = vsel %vm2767_vm4, %v2851_v2, %v2827_v22 }
 0x2c0   : > { %v2983_v63 = vadd.s32 1, %v7384_v61  ;;  %vm2756_vm8 = vcmp.lt.s32.totalorder %v2755_v27, 2  ;;  %vm11143_vm10 = vcmp.le.f32.partialorder %v2765_v56, 0.7853982  ;;  %v2836_v4 = vsel %vm7379_vm7, 0, %v7378_v7 }
 0x2c1   : > { %v2924_v5 = vmul.u32 %v11102_v10, %v2908_v34  ;;  %v2837_v44 = vsub.s32 32, %v2836_v4  ;;  %v2838_v16 = vshll.u32 %v11112_v13, %v2836_v4  ;;  %v2841_v62 = vsub.s32 4294967266, %v2836_v4 }
 0x2c2   : > { %v2927_v31 = vadd.s32 1, %v11127_v35  ;;  %v2854_v19 = vsel %vm11143_vm10, 0, %v2852_v58  ;;  %vm2926_vm11 = vc.u32 %v11133_v32, %v11126_v46  ;;  %v2980_v56 = vand.u32 8388607, %v2973_v36 }
 0x2c3   : > { %vm2984_vm9 = vcmp.gt.s32.totalorder %v2983_v63, 0  ;;  %v2839_v22 = vshrl.u32 %v2821_v0, %v2837_v44  ;;  %v2842_v50 = vadd.s32 127, %v2841_v62  ;;  %vm2757_vm13 = vcmp.eq.s32.totalorder %v2755_v27, 0 }
 0x2c4   : > { %v2928_v10 = vsel %vm2926_vm11, %v2927_v31, %v11127_v35  ;;  %v2985_v37 = vsel %vm2984_vm9, %v2983_v63, 0  ;;  %vm2760_vm12 = vcmp.eq.s32.totalorder %v2755_v27, 2  ;;  %v11157_v28 = vadd.s32 3, %v2854_v19 }
 0x2c5   : > { %v7952_v26 = vpop.eup %7951  ;;  %v2929_v55 = vadd.s32 %v2928_v10, %v2924_v5  ;;  %v2987_v8 = vand.u32 31, %v2985_v37  ;;  %v2840_v59 = vor.u32 %v2839_v22, %v2838_v16  ;;  %v2843_v13 = vshll.u32 %v2842_v50, 23 }
 0x2c6   : > { %v7954_v39 = vpop.eup %7953  ;;  %v2761_v17 = vxor.u32 2147483648, %v7952_v26  ;;  %v2981_v52 = vor.u32 8388608, %v2980_v56  ;;  %v3077_v30 = vand.u32 2147483647, %v14474_v21  ;;  %v2986_v11 = vshrl.u32 %v2985_v37, 5 }
 0x2c7   : > { %v2758_v42 = vxor.u32 2147483648, %v7954_v39  ;;  %v2930_v60 = vadd.s32 536870912, %v2929_v55  ;;  %v2988_v3 = vsub.s32 32, %v2987_v8  ;;  %v2844_v33 = vor.u32 4788187, %v2843_v13 }
 0x2c8   : > { %v2762_v53 = vsel %vm2760_vm12, %v2761_v17, %v7954_v39  ;;  %v2847_v12 = vcvt.s32.f32 %v2840_v59  ;;  %v3080_v18 = vand.u32 2139095040, %v14474_v21  ;;  %v2990_v43 = vshll.u32 %v14417_v24, %v2987_v8 }
 0x2c9   : > { %v2759_v1 = vsel %vm2757_vm13, %v7952_v26, %v2758_v42  ;;  %v2931_v38 = vshrl.u32 %v2930_v60, 30  ;;  %v2845_v25 = vand.u32 2147483647, %v2844_v33  ;;  %v2993_v2 = vshll.u32 %v14411_v14, %v2987_v8 }
 0x2ca   : > { %v2763_v57 = vsel %vm2756_vm8, %v2759_v1, %v2762_v53  ;;  %v2991_v9 = vshrl.u32 %v14411_v14, %v2988_v3  ;;  %v2994_v61 = vshrl.u32 %v14412_v20, %v2988_v3  ;;  %v2996_v47 = vshll.u32 %v14412_v20, %v2987_v8 }
 0x2cb   : > { %v2764_v34 = vsel %vm2753_vm6, nan, %v2763_v57  ;;  %v2932_v6 = vshll.u32 %v2931_v38, 30  ;;  %v2848_v7 = vmul.f32 %v2847_v12, %v2845_v25  ;;  %v2997_v35 = vshrl.u32 %v14413_v15, %v2988_v3 }
 0x2cc   : > { %v2999_v27 = vshll.u32 %v14413_v15, %v2987_v8  ;;  %7154 = vst [vmem:[%s9691_s5 + $0xa8] sm:$0xff] %v2764_v34  ;;  %v3000_v0 = vshrl.u32 %v14414_v23, %v2988_v3  ;;  %v3002_v49 = vshll.u32 %v14414_v23, %v2987_v8  ;;  %v11177_v58 = vshll.u32 %v2981_v52, 8 }
 0x2cd   : > { %v11173_v41 = vsub.s32 %v2929_v55, %v2932_v6  ;;  %v2849_v63 = vxor.u32 2147483648, %v2848_v7  ;;  %v2925_v4 = vadd.s32 %v11126_v46, %v11133_v32  ;;  %v3003_v5 = vshrl.u32 %v14415_v51, %v2988_v3 }
 0x2ce   : > { %v3081_v44 = vshrl.u32 %v3080_v18, 23  ;;  %vm2871_vm14 = vcmp.lt.s32.totalorder %v14468_v54, 0  ;;  %v2989_v62 = vshrl.u32 %v14417_v24, %v2988_v3  ;;  %v2992_v31 = vor.u32 %v2991_v9, %v2990_v43 }
 0x2cf   : > { %v2935_v16 = vsub.s32 0, %v11173_v41  ;;  %v2995_v19 = vor.u32 %v2994_v61, %v2993_v2  ;;  %v2850_v56 = vsel %vm2767_vm4, %v2849_v63, %v2848_v7  ;;  %v2998_v22 = vor.u32 %v2997_v35, %v2996_v47 }
 0x2d0   : > { %v3001_v50 = vor.u32 %v3000_v0, %v2999_v27  ;;  %vm3005_vm15 = vcmp.lt.s32.totalorder %v2986_v11, 1  ;;  %v2853_v46 = vsel %vm11143_vm10, %v14467_v45, %v2850_v56  ;;  %v3004_v10 = vor.u32 %v3003_v5, %v3002_v49 }
 0x2d1   : > { %v7381_v32 = vmin.u32 %v2935_v16, %v11173_v41  ;;  %vm3008_vm1 = vcmp.lt.s32.totalorder %v2986_v11, 4  ;;  %7955 = vcosq.f32 %v2853_v46  ;;  %vm3006_vm0 = vcmp.lt.s32.totalorder %v2986_v11, 2 }
 0x2d2   : > { %vm3007_vm2 = vcmp.lt.s32.totalorder %v2986_v11, 3  ;;  %v3010_v37 = vsel %vm3008_vm1, %v2998_v22, 2102212464  ;;  %7957 = vsinq.f32 %v2853_v46  ;;  %v3009_v55 = vsel %vm3005_vm15, %v2989_v62, %v2992_v31 }
 0x2d3   : > { %v2937_v26 = vclz %v7381_v32  ;;  %v3013_v8 = vsel %vm3005_vm15, %v2992_v31, %v2995_v19  ;;  %v2955_v39 = vsub.s32 4, %v2931_v38  ;;  %v3011_v17 = vsel %vm3007_vm2, %v2995_v19, %v3010_v37 }
 0x2d4   : > { %v3014_v59 = vsel %vm3008_vm1, %v3001_v50, 920167782  ;;  %v3017_v48 = vsel %vm3005_vm15, %v2995_v19, %v2998_v22  ;;  %v3018_v60 = vsel %vm3008_vm1, %v3004_v10, 1326507024  ;;  %v3084_v52 = vand.u32 8388607, %v3077_v30 }
 0x2d5   : > { %v7382_v13 = vadd.s32 4294967294, %v2937_v26  ;;  %v3015_v42 = vsel %vm3007_vm2, %v2998_v22, %v3014_v59  ;;  %v3012_v3 = vsel %vm3006_vm0, %v3009_v55, %v3011_v17  ;;  %v3019_v33 = vsel %vm3007_vm2, %v3001_v50, %v3018_v60 }
 0x2d6   : > { %v3016_v53 = vsel %vm3006_vm0, %v3013_v8, %v3015_v42  ;;  %v7388_v12 = vadd.s32 4294967169, %v3081_v44  ;;  %v3020_v1 = vsel %vm3006_vm0, %v3017_v48, %v3019_v33  ;;  %v2956_v43 = vsel %vm2871_vm14, %v2955_v39, %v2931_v38 }
 0x2d7   : > { %vm7383_vm3 = vcmp.lt.s32.totalorder %v7382_v13, 0  ;;  %v11203_v18 = vmul.u32.u64.low %v11177_v58, %v3016_v53  ;;  %v11204_v57 = vmul.u32.u64.high %v11177_v58, %v3016_v53, %v11203_v18  ;;  %v2859_v11 = vand.u32 3, %v11157_v28 }
 0x2d8   : > { %v2940_v25 = vsel %vm7383_vm3, 0, %v7382_v13  ;;  %v11210_v2 = vmul.u32.u64.low %v11177_v58, %v3020_v1  ;;  %v11211_v34 = vmul.u32.u64.high %v11177_v58, %v3020_v1, %v11210_v2  ;;  %v3087_v7 = vadd.s32 1, %v7388_v12 }
 0x2d9   : > { %v2941_v6 = vsub.s32 32, %v2940_v25  ;;  %v2942_v9 = vshll.u32 %v11173_v41, %v2940_v25  ;;  %v2945_v61 = vsub.s32 4294967266, %v2940_v25  ;;  %vm11217_vm5 = vcmp.le.f32.partialorder %v2869_v40, 0.7853982 }
 0x2da   : > { %v3028_v35 = vmul.u32 %v11177_v58, %v3012_v3  ;;  %v3031_v0 = vadd.s32 1, %v11204_v57  ;;  %vm3088_vm4 = vcmp.gt.s32.totalorder %v3087_v7, 0  ;;  %v2958_v41 = vsel %vm11217_vm5, 0, %v2956_v43 }
 0x2db   : > { %v2943_v38 = vshrl.u32 %v2925_v4, %v2941_v6  ;;  %v2946_v27 = vadd.s32 127, %v2945_v61  ;;  %vm3030_vm6 = vc.u32 %v11211_v34, %v11203_v18  ;;  %v3085_v28 = vor.u32 8388608, %v3084_v52 }
 0x2dc   : > { %v3089_v49 = vsel %vm3088_vm4, %v3087_v7, 0  ;;  %v3032_v5 = vsel %vm3030_vm6, %v3031_v0, %v11204_v57  ;;  %vm2857_vm7 = vweird.f32 %v14467_v45  ;;  %vm2860_vm8 = vcmp.lt.s32.totalorder %v2859_v11, 2 }
 0x2dd   : > { %v2944_v63 = vor.u32 %v2943_v38, %v2942_v9  ;;  %v2947_v40 = vshll.u32 %v2946_v27, 23  ;;  %v11228_v44 = vshrl.u32 %v3089_v49, 5  ;;  %v3033_v58 = vadd.s32 %v3032_v5, %v3028_v35 }
 0x2de   : > { %v3091_v4 = vand.u32 31, %v3089_v49  ;;  %v7956_v16 = vpop.eup %7955  ;;  %vm2861_vm10 = vcmp.eq.s32.totalorder %v2859_v11, 0  ;;  %vm2864_vm11 = vcmp.eq.s32.totalorder %v2859_v11, 2  ;;  %v2962_v22 = vadd.s32 3, %v2958_v41  ;;  %v14479_v41 = vld [vmem:[#allocation15_spill] sm:$0xff] }
 0x2df   : > { %v2948_v62 = vor.u32 4788187, %v2947_v40  ;;  %v2951_v31 = vcvt.s32.f32 %v2944_v63  ;;  %v7958_v19 = vpop.eup %7957  ;;  %v2865_v56 = vxor.u32 2147483648, %v7956_v16  ;;  %v3034_v50 = vadd.s32 536870912, %v3033_v58 }
 0x2e0   : > { %v3092_v46 = vsub.s32 32, %v3091_v4  ;;  %v2862_v32 = vxor.u32 2147483648, %v7958_v19  ;;  %vm3109_vm9 = vcmp.lt.s32.totalorder %v11228_v44, 1  ;;  %v11232_v37 = vshll.u32 %v3085_v28, 8 }
 0x2e1   : > { %v2949_v10 = vand.u32 2147483647, %v2948_v62  ;;  %v2866_v26 = vsel %vm2864_vm11, %v2865_v56, %v7958_v19  ;;  %v3035_v55 = vshrl.u32 %v3034_v50, 30  ;;  %v3094_v8 = vshll.u32 %v14417_v24, %v3091_v4 }
 0x2e2   : > { %v3095_v39 = vshrl.u32 %v14411_v14, %v3092_v46  ;;  %v2863_v17 = vsel %vm2861_vm10, %v7956_v16, %v2862_v32  ;;  %vm2975_vm13 = vcmp.lt.s32.totalorder %v14471_v29, 0  ;;  %v3097_v48 = vshll.u32 %v14411_v14, %v3091_v4 }
 0x2e3   : > { %v2952_v59 = vmul.f32 %v2951_v31, %v2949_v10  ;;  %v3098_v13 = vshrl.u32 %v14412_v20, %v3092_v46  ;;  %v2867_v42 = vsel %vm2860_vm8, %v2863_v17, %v2866_v26  ;;  %v3036_v60 = vshll.u32 %v3035_v55, 30 }
 0x2e4   : > { %v3100_v52 = vshll.u32 %v14412_v20, %v3091_v4  ;;  %v3101_v3 = vshrl.u32 %v14413_v15, %v3092_v46  ;;  %v2868_v53 = vsel %vm2857_vm7, nan, %v2867_v42  ;;  %v3059_v12 = vsub.s32 4, %v3035_v55 }
 0x2e5   : > { %v2953_v33 = vxor.u32 2147483648, %v2952_v59  ;;  %v3093_v1 = vshrl.u32 %v14417_v24, %v3092_v46  ;;  %v11246_v57 = vsub.s32 %v3033_v58, %v3036_v60  ;;  %v3096_v25 = vor.u32 %v3095_v39, %v3094_v8  ;;  %7155 = vst [vmem:[%s9691_s5 + $0xb0] sm:$0xff] %v2868_v53 }
 0x2e6   : > { %v3103_v43 = vshll.u32 %v14413_v15, %v3091_v4  ;;  %v3104_v2 = vshrl.u32 %v14414_v23, %v3092_v46  ;;  %v3099_v9 = vor.u32 %v3098_v13, %v3097_v48  ;;  %v3106_v61 = vshll.u32 %v14414_v23, %v3091_v4 }
 0x2e7   : > { %v2954_v6 = vsel %vm2871_vm14, %v2953_v33, %v2952_v59  ;;  %v3107_v45 = vshrl.u32 %v14415_v51, %v3092_v46  ;;  %vm11260_vm12 = vcmp.le.f32.partialorder %v2973_v36, 0.7853982  ;;  %v3039_v35 = vsub.s32 0, %v11246_v57 }
 0x2e8   : > { %v2957_v7 = vsel %vm11217_vm5, %v14468_v54, %v2954_v6  ;;  %v3102_v38 = vor.u32 %v3101_v3, %v3100_v52  ;;  %v3105_v27 = vor.u32 %v3104_v2, %v3103_v43  ;;  %vm3112_vm14 = vcmp.lt.s32.totalorder %v11228_v44, 4 }
 0x2e9   : > { %7959 = vcosq.f32 %v2957_v7  ;;  %v3108_v0 = vor.u32 %v3107_v45, %v3106_v61  ;;  %v3184_v28 = vand.u32 2139095040, %v14479_v41  ;;  %v7385_v47 = vmin.u32 %v3039_v35, %v11246_v57 }
 0x2ea   : > { %7961 = vsinq.f32 %v2957_v7  ;;  %vm3110_vm15 = vcmp.lt.s32.totalorder %v11228_v44, 2  ;;  %vm3111_vm1 = vcmp.lt.s32.totalorder %v11228_v44, 3  ;;  %v3113_v36 = vsel %vm3109_vm9, %v3093_v1, %v3096_v25 }
 0x2eb   : > { %v3114_v49 = vsel %vm3112_vm14, %v3102_v38, 2102212464  ;;  %v3117_v63 = vsel %vm3109_vm9, %v3096_v25, %v3099_v9  ;;  %v3118_v40 = vsel %vm3112_vm14, %v3105_v27, 920167782  ;;  %v2963_v5 = vand.u32 3, %v2962_v22 }
 0x2ec   : > { %v3041_v58 = vclz %v7385_v47  ;;  %v3060_v4 = vsel %vm2975_vm13, %v3059_v12, %v3035_v55  ;;  %v3121_v16 = vsel %vm3109_vm9, %v3099_v9, %v3102_v38  ;;  %v3115_v62 = vsel %vm3111_vm1, %v3099_v9, %v3114_v49 }
 0x2ed   : > { %v3119_v31 = vsel %vm3111_vm1, %v3102_v38, %v3118_v40  ;;  %v3122_v19 = vsel %vm3112_vm14, %v3108_v0, 1326507024  ;;  %v3185_v56 = vshrl.u32 %v3184_v28, 23  ;;  %v3116_v22 = vsel %vm3110_vm15, %v3113_v36, %v3115_v62 }
 0x2ee   : > { %v7386_v50 = vadd.s32 4294967294, %v3041_v58  ;;  %v3120_v46 = vsel %vm3110_vm15, %v3117_v63, %v3119_v31  ;;  %v3123_v32 = vsel %vm3111_vm1, %v3105_v27, %v3122_v19  ;;  %v3029_v10 = vadd.s32 %v11203_v18, %v11211_v34 }
 0x2ef   : > { %v3124_v26 = vsel %vm3110_vm15, %v3121_v16, %v3123_v32  ;;  %v11299_v55 = vmul.u32.u64.low %v11232_v37, %v3120_v46  ;;  %v11300_v8 = vmul.u32.u64.high %v11232_v37, %v3120_v46, %v11299_v55  ;;  %v7392_v59 = vadd.s32 4294967169, %v3185_v56 }
 0x2f0   : > { %vm7387_vm0 = vcmp.lt.s32.totalorder %v7386_v50, 0  ;;  %v11304_v39 = vmul.u32.u64.low %v11232_v37, %v3124_v26  ;;  %v11305_v17 = vmul.u32.u64.high %v11232_v37, %v3124_v26, %v11304_v39  ;;  %v3062_v13 = vsel %vm11260_vm12, 0, %v3060_v4 }
 0x2f1   : > { %v3044_v48 = vsel %vm7387_vm0, 0, %v7386_v50  ;;  %v3132_v18 = vmul.u32 %v11232_v37, %v3116_v22  ;;  %v3181_v34 = vand.u32 2147483647, %v14479_v41  ;;  %v3191_v52 = vadd.s32 1, %v7392_v59 }
 0x2f2   : > { %v3045_v44 = vsub.s32 32, %v3044_v48  ;;  %v3046_v42 = vshll.u32 %v11246_v57, %v3044_v48  ;;  %v3049_v60 = vsub.s32 4294967266, %v3044_v48  ;;  %vm2961_vm2 = vweird.f32 %v14468_v54 }
 0x2f3   : > { %v3135_v3 = vadd.s32 1, %v11300_v8  ;;  %vm2968_vm3 = vcmp.eq.s32.totalorder %v2963_v5, 2  ;;  %vm3134_vm5 = vc.u32 %v11305_v17, %v11299_v55  ;;  %v3066_v12 = vadd.s32 3, %v3062_v13 }
 0x2f4   : > { %v3047_v53 = vshrl.u32 %v3029_v10, %v3045_v44  ;;  %v3050_v33 = vadd.s32 127, %v3049_v60  ;;  %v3188_v1 = vand.u32 8388607, %v3181_v34  ;;  %vm3192_vm4 = vcmp.gt.s32.totalorder %v3191_v52, 0 }
 0x2f5   : > { %v3136_v37 = vsel %vm3134_vm5, %v3135_v3, %v11300_v8  ;;  %v3193_v6 = vsel %vm3192_vm4, %v3191_v52, 0  ;;  %vm2964_vm6 = vcmp.lt.s32.totalorder %v2963_v5, 2  ;;  %vm2965_vm7 = vcmp.eq.s32.totalorder %v2963_v5, 0  ;;  %v14480_v5 = vld [vmem:[#allocation27_spill] sm:$0xff] }
 0x2f6   : > { %v7960_v57 = vpop.eup %7959  ;;  %v3048_v25 = vor.u32 %v3047_v53, %v3046_v42  ;;  %v3051_v43 = vshll.u32 %v3050_v33, 23  ;;  %v3137_v2 = vadd.s32 %v3136_v37, %v3132_v18  ;;  %v3195_v45 = vand.u32 31, %v3193_v6 }
 0x2f7   : > { %v7962_v9 = vpop.eup %7961  ;;  %v2969_v61 = vxor.u32 2147483648, %v7960_v57  ;;  %v11320_v28 = vand.u32 3, %v3066_v12  ;;  %v3189_v47 = vor.u32 8388608, %v3188_v1  ;;  %v3194_v46 = vshrl.u32 %v3193_v6, 5 }
 0x2f8   : > { %v2966_v7 = vxor.u32 2147483648, %v7962_v9  ;;  %v3052_v35 = vor.u32 4788187, %v3051_v43  ;;  %v3055_v38 = vcvt.s32.f32 %v3048_v25  ;;  %v3138_v27 = vadd.s32 536870912, %v3137_v2 }
 0x2f9   : > { %v2970_v0 = vsel %vm2968_vm3, %v2969_v61, %v7962_v9  ;;  %v3196_v36 = vsub.s32 32, %v3195_v45  ;;  %v3198_v58 = vshll.u32 %v14417_v24, %v3195_v45  ;;  %v3201_v62 = vshll.u32 %v14411_v14, %v3195_v45 }
 0x2fa   : > { %v2967_v49 = vsel %vm2965_vm7, %v7960_v57, %v2966_v7  ;;  %v3053_v63 = vand.u32 2147483647, %v3052_v35  ;;  %v3139_v40 = vshrl.u32 %v3138_v27, 30  ;;  %v3204_v31 = vshll.u32 %v14412_v20, %v3195_v45 }
 0x2fb   : > { %v2971_v4 = vsel %vm2964_vm6, %v2967_v49, %v2970_v0  ;;  %v3199_v16 = vshrl.u32 %v14411_v14, %v3196_v36  ;;  %v3202_v22 = vshrl.u32 %v14412_v20, %v3196_v36  ;;  %v3205_v32 = vshrl.u32 %v14413_v15, %v3196_v36 }
 0x2fc   : > { %v2972_v19 = vsel %vm2961_vm2, nan, %v2971_v4  ;;  %v3056_v56 = vmul.f32 %v3055_v38, %v3053_v63  ;;  %v3140_v50 = vshll.u32 %v3139_v40, 30  ;;  %v3207_v10 = vshll.u32 %v14413_v15, %v3195_v45 }
 0x2fd   : > { %v3285_v26 = vand.u32 2147483647, %v14480_v5  ;;  %7156 = vst [vmem:[%s9691_s5 + $0xb8] sm:$0xff] %v2972_v19  ;;  %v3208_v59 = vshrl.u32 %v14414_v23, %v3196_v36  ;;  %v3288_v54 = vand.u32 2139095040, %v14480_v5  ;;  %vm3079_vm8 = vcmp.lt.s32.totalorder %v14474_v21, 0 }
 0x2fe   : > { %v3057_v8 = vxor.u32 2147483648, %v3056_v56  ;;  %v11334_v39 = vsub.s32 %v3137_v2, %v3140_v50  ;;  %v3197_v48 = vshrl.u32 %v14417_v24, %v3196_v36  ;;  %v3200_v13 = vor.u32 %v3199_v16, %v3198_v58 }
 0x2ff   : > { %v3210_v18 = vshll.u32 %v14414_v23, %v3195_v45  ;;  %v3211_v44 = vshrl.u32 %v14415_v51, %v3196_v36  ;;  %v3203_v52 = vor.u32 %v3202_v22, %v3201_v62  ;;  %v3206_v3 = vor.u32 %v3205_v32, %v3204_v31 }
 0x300   : > { %v3058_v42 = vsel %vm2975_vm13, %v3057_v8, %v3056_v56  ;;  %v3143_v60 = vsub.s32 0, %v11334_v39  ;;  %v3209_v33 = vor.u32 %v3208_v59, %v3207_v10  ;;  %vm3213_vm10 = vcmp.lt.s32.totalorder %v3194_v46, 1 }
 0x301   : > { %v3061_v53 = vsel %vm11260_vm12, %v14471_v29, %v3058_v42  ;;  %v3212_v12 = vor.u32 %v3211_v44, %v3210_v18  ;;  %vm11350_vm11 = vcmp.le.f32.partialorder %v3077_v30, 0.7853982  ;;  %v3229_v57 = vshll.u32 %v3189_v47, 8 }
 0x302   : > { %7963 = vcosq.f32 %v3061_v53  ;;  %v7389_v1 = vmin.u32 %v3143_v60, %v11334_v39  ;;  %v3289_v25 = vshrl.u32 %v3288_v54, 23  ;;  %v3163_v43 = vsub.s32 4, %v3139_v40 }
 0x303   : > { %7965 = vsinq.f32 %v3061_v53  ;;  %vm3215_vm9 = vcmp.lt.s32.totalorder %v3194_v46, 3  ;;  %vm3216_vm13 = vcmp.lt.s32.totalorder %v3194_v46, 4  ;;  %vm3214_vm12 = vcmp.lt.s32.totalorder %v3194_v46, 2 }
 0x304   : > { %v3145_v11 = vclz %v7389_v1  ;;  %v3217_v2 = vsel %vm3213_vm10, %v3197_v48, %v3200_v13  ;;  %v3221_v6 = vsel %vm3213_vm10, %v3200_v13, %v3203_v52  ;;  %v3218_v9 = vsel %vm3216_vm13, %v3206_v3, 2102212464 }
 0x305   : > { %v3222_v61 = vsel %vm3216_vm13, %v3209_v33, 920167782  ;;  %v3225_v30 = vsel %vm3213_vm10, %v3203_v52, %v3206_v3  ;;  %v3226_v45 = vsel %vm3216_vm13, %v3212_v12, 1326507024  ;;  %v3219_v35 = vsel %vm3215_vm9, %v3203_v52, %v3218_v9 }
 0x306   : > { %v7390_v7 = vadd.s32 4294967294, %v3145_v11  ;;  %v3223_v38 = vsel %vm3215_vm9, %v3206_v3, %v3222_v61  ;;  %v3227_v27 = vsel %vm3215_vm9, %v3209_v33, %v3226_v45  ;;  %v3133_v0 = vadd.s32 %v11299_v55, %v11305_v17 }
 0x307   : > { %v3224_v47 = vsel %vm3214_vm12, %v3221_v6, %v3223_v38  ;;  %v3228_v36 = vsel %vm3214_vm12, %v3225_v30, %v3227_v27  ;;  %v7396_v49 = vadd.s32 4294967169, %v3289_v25  ;;  %v3164_v63 = vsel %vm3079_vm8, %v3163_v43, %v3139_v40 }
 0x308   : > { %vm7391_vm14 = vcmp.lt.s32.totalorder %v7390_v7, 0  ;;  %v11364_v58 = vmul.u32.u64.low %v3229_v57, %v3228_v36  ;;  %v11365_v4 = vmul.u32.u64.high %v3229_v57, %v3228_v36, %v11364_v58  ;;  %v3220_v62 = vsel %vm3214_vm12, %v3217_v2, %v3219_v35 }
 0x309   : > { %v3148_v16 = vsel %vm7391_vm14, 0, %v7390_v7  ;;  %v11368_v31 = vmul.u32.u64.low %v3229_v57, %v3224_v47  ;;  %v11369_v19 = vmul.u32.u64.high %v3229_v57, %v3224_v47, %v11368_v31  ;;  %v3295_v50 = vadd.s32 1, %v7396_v49 }
 0x30a   : > { %v3149_v55 = vsub.s32 32, %v3148_v16  ;;  %v3150_v17 = vshll.u32 %v11334_v39, %v3148_v16  ;;  %v3153_v56 = vsub.s32 4294967266, %v3148_v16  ;;  %vm3065_vm15 = vweird.f32 %v14471_v29  ;;  %v14483_v16 = vld [vmem:[#allocation28_spill] sm:$0xff] }
 0x30b   : > { %v3166_v40 = vsel %vm11350_vm11, 0, %v3164_v63  ;;  %v3236_v10 = vmul.u32 %v3229_v57, %v3220_v62  ;;  %vm3238_vm1 = vc.u32 %v11365_v4, %v11368_v31  ;;  %vm3068_vm0 = vcmp.lt.s32.totalorder %v11320_v28, 2 }
 0x30c   : > { %v3151_v22 = vshrl.u32 %v3133_v0, %v3149_v55  ;;  %v3154_v32 = vadd.s32 127, %v3153_v56  ;;  %v3239_v46 = vadd.s32 1, %v11369_v19  ;;  %v3292_v8 = vand.u32 8388607, %v3285_v26 }
 0x30d   : > { %vm3296_vm2 = vcmp.gt.s32.totalorder %v3295_v50, 0  ;;  %vm3069_vm3 = vcmp.eq.s32.totalorder %v11320_v28, 0  ;;  %vm3072_vm5 = vcmp.eq.s32.totalorder %v11320_v28, 2  ;;  %v3170_v13 = vadd.s32 3, %v3166_v40 }
 0x30e   : > { %v3152_v39 = vor.u32 %v3151_v22, %v3150_v17  ;;  %v3155_v59 = vshll.u32 %v3154_v32, 23  ;;  %v3297_v54 = vsel %vm3296_vm2, %v3295_v50, 0  ;;  %v3240_v18 = vsel %vm3238_vm1, %v3239_v46, %v11369_v19 }
 0x30f   : > { %v7964_v48 = vpop.eup %7963  ;;  %v3299_v44 = vand.u32 31, %v3297_v54  ;;  %v3241_v53 = vadd.s32 %v3240_v18, %v3236_v10  ;;  %v3293_v12 = vor.u32 8388608, %v3292_v8  ;;  %v3298_v0 = vshrl.u32 %v3297_v54, 5 }
 0x310   : > { %v7966_v42 = vpop.eup %7965  ;;  %v3073_v60 = vxor.u32 2147483648, %v7964_v48  ;;  %v3156_v52 = vor.u32 4788187, %v3155_v59  ;;  %v3159_v3 = vcvt.s32.f32 %v3152_v39  ;;  %v3392_v62 = vand.u32 2139095040, %v14483_v16 }
 0x311   : > { %v3070_v33 = vxor.u32 2147483648, %v7966_v42  ;;  %v3300_v1 = vsub.s32 32, %v3299_v44  ;;  %v3302_v57 = vshll.u32 %v14417_v24, %v3299_v44  ;;  %v3242_v11 = vadd.s32 536870912, %v3241_v53 }
 0x312   : > { %v3074_v25 = vsel %vm3072_vm5, %v3073_v60, %v7966_v42  ;;  %v3157_v43 = vand.u32 2147483647, %v3156_v52  ;;  %v3305_v2 = vshll.u32 %v14411_v14, %v3299_v44  ;;  %v3308_v30 = vshll.u32 %v14412_v20, %v3299_v44 }
 0x313   : > { %v3071_v6 = vsel %vm3069_vm3, %v7964_v48, %v3070_v33  ;;  %v3303_v9 = vshrl.u32 %v14411_v14, %v3300_v1  ;;  %v3306_v61 = vshrl.u32 %v14412_v20, %v3300_v1  ;;  %v3243_v35 = vshrl.u32 %v3242_v11, 30 }
 0x314   : > { %v3075_v45 = vsel %vm3068_vm0, %v3071_v6, %v3074_v25  ;;  %v3160_v7 = vmul.f32 %v3159_v3, %v3157_v43  ;;  %v3309_v38 = vshrl.u32 %v14413_v15, %v3300_v1  ;;  %v3311_v47 = vshll.u32 %v14413_v15, %v3299_v44 }
 0x315   : > { %v3076_v27 = vsel %vm3065_vm15, nan, %v3075_v45  ;;  %v11398_v36 = vshll.u32 %v3293_v12, 8  ;;  %v3244_v63 = vshll.u32 %v3243_v35, 30  ;;  %v3301_v58 = vshrl.u32 %v14417_v24, %v3300_v1 }
 0x316   : > { %v3161_v49 = vxor.u32 2147483648, %v3160_v7  ;;  %7157 = vst [vmem:[%s9691_s5 + $0xc0] sm:$0xff] %v3076_v27  ;;  %v3304_v28 = vor.u32 %v3303_v9, %v3302_v57  ;;  %v3312_v19 = vshrl.u32 %v14414_v23, %v3300_v1  ;;  %v3314_v55 = vshll.u32 %v14414_v23, %v3299_v44 }
 0x317   : > { %v3315_v29 = vshrl.u32 %v14415_v51, %v3300_v1  ;;  %v11408_v56 = vsub.s32 %v3241_v53, %v3244_v63  ;;  %v3307_v50 = vor.u32 %v3306_v61, %v3305_v2  ;;  %v3310_v40 = vor.u32 %v3309_v38, %v3308_v30 }
 0x318   : > { %v3162_v17 = vsel %vm3079_vm8, %v3161_v49, %v3160_v7  ;;  %v3313_v32 = vor.u32 %v3312_v19, %v3311_v47  ;;  %vm3317_vm4 = vcmp.lt.s32.totalorder %v3298_v0, 1  ;;  %vm3319_vm6 = vcmp.lt.s32.totalorder %v3298_v0, 3 }
 0x319   : > { %v3165_v22 = vsel %vm11350_vm11, %v14474_v21, %v3162_v17  ;;  %v3316_v10 = vor.u32 %v3315_v29, %v3314_v55  ;;  %v3247_v46 = vsub.s32 0, %v11408_v56  ;;  %v3393_v8 = vshrl.u32 %v3392_v62, 23 }
 0x31a   : > { %7967 = vcosq.f32 %v3165_v22  ;;  %vm3318_vm7 = vcmp.lt.s32.totalorder %v3298_v0, 2  ;;  %vm3320_vm10 = vcmp.lt.s32.totalorder %v3298_v0, 4  ;;  %v3321_v39 = vsel %vm3317_vm4, %v3301_v58, %v3304_v28 }
 0x31b   : > { %7969 = vsinq.f32 %v3165_v22  ;;  %v7393_v59 = vmin.u32 %v3247_v46, %v11408_v56  ;;  %v3322_v54 = vsel %vm3320_vm10, %v3310_v40, 2102212464  ;;  %v3325_v48 = vsel %vm3317_vm4, %v3304_v28, %v3307_v50 }
 0x31c   : > { %v3326_v18 = vsel %vm3320_vm10, %v3313_v32, 920167782  ;;  %v3323_v37 = vsel %vm3319_vm6, %v3307_v50, %v3322_v54  ;;  %v3329_v42 = vsel %vm3317_vm4, %v3307_v50, %v3310_v40  ;;  %v3330_v60 = vsel %vm3320_vm10, %v3316_v10, 1326507024 }
 0x31d   : > { %v3327_v44 = vsel %vm3319_vm6, %v3310_v40, %v3326_v18  ;;  %v3171_v52 = vand.u32 3, %v3170_v13  ;;  %v3249_v3 = vclz %v7393_v59  ;;  %v3267_v53 = vsub.s32 4, %v3243_v35  ;;  %v14486_v59 = vld [vmem:[#allocation29_spill] sm:$0xff] }
 0x31e   : > { %v3324_v33 = vsel %vm3318_vm7, %v3321_v39, %v3323_v37  ;;  %v3328_v12 = vsel %vm3318_vm7, %v3325_v48, %v3327_v44  ;;  %v3331_v1 = vsel %vm3319_vm6, %v3313_v32, %v3330_v60  ;;  %v7400_v57 = vadd.s32 4294967169, %v3393_v8 }
 0x31f   : > { %v7394_v25 = vadd.s32 4294967294, %v3249_v3  ;;  %v3332_v43 = vsel %vm3318_vm7, %v3329_v42, %v3331_v1  ;;  %v11422_v11 = vmul.u32.u64.low %v11398_v36, %v3328_v12  ;;  %v11423_v2 = vmul.u32.u64.high %v11398_v36, %v3328_v12, %v11422_v11 }
 0x320   : > { %vm3183_vm8 = vcmp.lt.s32.totalorder %v14479_v41, 0  ;;  %v11428_v13 = vmul.u32.u64.low %v11398_v36, %v3332_v43  ;;  %v11429_v6 = vmul.u32.u64.high %v11398_v36, %v3332_v43, %v11428_v13  ;;  %v3389_v9 = vand.u32 2147483647, %v14483_v16 }
 0x321   : > { %vm3169_vm11 = vweird.f32 %v14474_v21  ;;  %v3237_v61 = vadd.s32 %v11368_v31, %v11365_v4  ;;  %vm7395_vm9 = vcmp.lt.s32.totalorder %v7394_v25, 0  ;;  %v3268_v30 = vsel %vm3183_vm8, %v3267_v53, %v3243_v35 }
 0x322   : > { %v3399_v45 = vadd.s32 1, %v7400_v57  ;;  %vm3172_vm13 = vcmp.lt.s32.totalorder %v3171_v52, 2  ;;  %vm11439_vm12 = vcmp.le.f32.partialorder %v3181_v34, 0.7853982  ;;  %v3252_v38 = vsel %vm7395_vm9, 0, %v7394_v25 }
 0x323   : > { %v3340_v27 = vmul.u32 %v11398_v36, %v3324_v33  ;;  %v3253_v0 = vsub.s32 32, %v3252_v38  ;;  %v3254_v47 = vshll.u32 %v11408_v56, %v3252_v38  ;;  %v3257_v49 = vsub.s32 4294967266, %v3252_v38 }
 0x324   : > { %v3343_v4 = vadd.s32 1, %v11423_v2  ;;  %v3270_v31 = vsel %vm11439_vm12, 0, %v3268_v30  ;;  %vm3342_vm14 = vc.u32 %v11429_v6, %v11422_v11  ;;  %v3396_v34 = vand.u32 8388607, %v3389_v9 }
 0x325   : > { %vm3400_vm15 = vcmp.gt.s32.totalorder %v3399_v45, 0  ;;  %v3255_v35 = vshrl.u32 %v3237_v61, %v3253_v0  ;;  %v3258_v63 = vadd.s32 127, %v3257_v49  ;;  %vm3173_vm1 = vcmp.eq.s32.totalorder %v3171_v52, 0 }
 0x326   : > { %v3344_v36 = vsel %vm3342_vm14, %v3343_v4, %v11423_v2  ;;  %v3401_v58 = vsel %vm3400_vm15, %v3399_v45, 0  ;;  %vm3176_vm0 = vcmp.eq.s32.totalorder %v3171_v52, 2  ;;  %v11453_v50 = vadd.s32 3, %v3270_v31 }
 0x327   : > { %v7968_v62 = vpop.eup %7967  ;;  %v3345_v28 = vadd.s32 %v3344_v36, %v3340_v27  ;;  %v3403_v19 = vand.u32 31, %v3401_v58  ;;  %v3256_v17 = vor.u32 %v3255_v35, %v3254_v47  ;;  %v3259_v56 = vshll.u32 %v3258_v63, 23 }
 0x328   : > { %v7970_v55 = vpop.eup %7969  ;;  %v3177_v29 = vxor.u32 2147483648, %v7968_v62  ;;  %v3397_v32 = vor.u32 8388608, %v3396_v34  ;;  %v3493_v54 = vand.u32 2147483647, %v14486_v59  ;;  %v3402_v37 = vshrl.u32 %v3401_v58, 5 }
 0x329   : > { %v3174_v40 = vxor.u32 2147483648, %v7970_v55  ;;  %v3346_v22 = vadd.s32 536870912, %v3345_v28  ;;  %v3404_v10 = vsub.s32 32, %v3403_v19  ;;  %v3260_v8 = vor.u32 4788187, %v3259_v56 }
 0x32a   : > { %v3178_v46 = vsel %vm3176_vm0, %v3177_v29, %v7970_v55  ;;  %v3263_v39 = vcvt.s32.f32 %v3256_v17  ;;  %v3496_v44 = vand.u32 2139095040, %v14486_v59  ;;  %v3406_v3 = vshll.u32 %v14417_v24, %v3403_v19 }
 0x32b   : > { %v3175_v48 = vsel %vm3173_vm1, %v7968_v62, %v3174_v40  ;;  %v3347_v18 = vshrl.u32 %v3346_v22, 30  ;;  %v3261_v60 = vand.u32 2147483647, %v3260_v8  ;;  %v3409_v53 = vshll.u32 %v14411_v14, %v3403_v19 }
 0x32c   : > { %v3179_v42 = vsel %vm3172_vm13, %v3175_v48, %v3178_v46  ;;  %v3407_v1 = vshrl.u32 %v14411_v14, %v3404_v10  ;;  %v3410_v57 = vshrl.u32 %v14412_v20, %v3404_v10  ;;  %v3412_v43 = vshll.u32 %v14412_v20, %v3403_v19 }
 0x32d   : > { %v3180_v33 = vsel %vm3169_vm11, nan, %v3179_v42  ;;  %v3348_v12 = vshll.u32 %v3347_v18, 30  ;;  %v3264_v25 = vmul.f32 %v3263_v39, %v3261_v60  ;;  %v3413_v2 = vshrl.u32 %v14413_v15, %v3404_v10 }
 0x32e   : > { %v3415_v52 = vshll.u32 %v14413_v15, %v3403_v19  ;;  %7158 = vst [vmem:[%s9691_s5 + $0xc8] sm:$0xff] %v3180_v33  ;;  %v3416_v61 = vshrl.u32 %v14414_v23, %v3404_v10  ;;  %v3418_v21 = vshll.u32 %v14414_v23, %v3403_v19  ;;  %v11473_v30 = vshll.u32 %v3397_v32, 8 }
 0x32f   : > { %v11469_v13 = vsub.s32 %v3345_v28, %v3348_v12  ;;  %v3265_v45 = vxor.u32 2147483648, %v3264_v25  ;;  %v3341_v38 = vadd.s32 %v11422_v11, %v11429_v6  ;;  %v3419_v27 = vshrl.u32 %v14415_v51, %v3404_v10 }
 0x330   : > { %v3497_v0 = vshrl.u32 %v3496_v44, 23  ;;  %vm3287_vm2 = vcmp.lt.s32.totalorder %v14480_v5, 0  ;;  %v3405_v49 = vshrl.u32 %v14417_v24, %v3404_v10  ;;  %v3408_v4 = vor.u32 %v3407_v1, %v3406_v3 }
 0x331   : > { %v3351_v47 = vsub.s32 0, %v11469_v13  ;;  %v3411_v31 = vor.u32 %v3410_v57, %v3409_v53  ;;  %v3266_v34 = vsel %vm3183_vm8, %v3265_v45, %v3264_v25  ;;  %v3414_v35 = vor.u32 %v3413_v2, %v3412_v43 }
 0x332   : > { %v3417_v63 = vor.u32 %v3416_v61, %v3415_v52  ;;  %vm3421_vm3 = vcmp.lt.s32.totalorder %v3402_v37, 1  ;;  %v3269_v11 = vsel %vm11439_vm12, %v14479_v41, %v3266_v34  ;;  %v3420_v36 = vor.u32 %v3419_v27, %v3418_v21 }
 0x333   : > { %v7397_v6 = vmin.u32 %v3351_v47, %v11469_v13  ;;  %vm3424_vm5 = vcmp.lt.s32.totalorder %v3402_v37, 4  ;;  %7971 = vcosq.f32 %v3269_v11  ;;  %vm3422_vm4 = vcmp.lt.s32.totalorder %v3402_v37, 2 }
 0x334   : > { %vm3423_vm6 = vcmp.lt.s32.totalorder %v3402_v37, 3  ;;  %v3426_v58 = vsel %vm3424_vm5, %v3414_v35, 2102212464  ;;  %7973 = vsinq.f32 %v3269_v11  ;;  %v3425_v28 = vsel %vm3421_vm3, %v3405_v49, %v3408_v4 }
 0x335   : > { %v3353_v62 = vclz %v7397_v6  ;;  %v3429_v19 = vsel %vm3421_vm3, %v3408_v4, %v3411_v31  ;;  %v3371_v55 = vsub.s32 4, %v3347_v18  ;;  %v3427_v29 = vsel %vm3423_vm6, %v3411_v31, %v3426_v58 }
 0x336   : > { %v3430_v17 = vsel %vm3424_vm5, %v3417_v63, 920167782  ;;  %v3433_v7 = vsel %vm3421_vm3, %v3411_v31, %v3414_v35  ;;  %v3434_v22 = vsel %vm3424_vm5, %v3420_v36, 1326507024  ;;  %v3500_v32 = vand.u32 8388607, %v3493_v54 }
 0x337   : > { %v7398_v56 = vadd.s32 4294967294, %v3353_v62  ;;  %v3431_v40 = vsel %vm3423_vm6, %v3414_v35, %v3430_v17  ;;  %v3428_v10 = vsel %vm3422_vm4, %v3425_v28, %v3427_v29  ;;  %v3435_v8 = vsel %vm3423_vm6, %v3417_v63, %v3434_v22 }
 0x338   : > { %v3432_v46 = vsel %vm3422_vm4, %v3429_v19, %v3431_v40  ;;  %v7404_v39 = vadd.s32 4294967169, %v3497_v0  ;;  %v3436_v48 = vsel %vm3422_vm4, %v3433_v7, %v3435_v8  ;;  %v3372_v3 = vsel %vm3287_vm2, %v3371_v55, %v3347_v18 }
 0x339   : > { %vm7399_vm7 = vcmp.lt.s32.totalorder %v7398_v56, 0  ;;  %v11499_v44 = vmul.u32.u64.low %v11473_v30, %v3432_v46  ;;  %v11500_v42 = vmul.u32.u64.high %v11473_v30, %v3432_v46, %v11499_v44  ;;  %v3275_v37 = vand.u32 3, %v11453_v50 }
 0x33a   : > { %v3356_v60 = vsel %vm7399_vm7, 0, %v7398_v56  ;;  %v11506_v53 = vmul.u32.u64.low %v11473_v30, %v3436_v48  ;;  %v11507_v33 = vmul.u32.u64.high %v11473_v30, %v3436_v48, %v11506_v53  ;;  %v3503_v25 = vadd.s32 1, %v7404_v39 }
 0x33b   : > { %v3357_v12 = vsub.s32 32, %v3356_v60  ;;  %v3358_v1 = vshll.u32 %v11469_v13, %v3356_v60  ;;  %v3361_v57 = vsub.s32 4294967266, %v3356_v60  ;;  %vm11513_vm10 = vcmp.le.f32.partialorder %v3285_v26, 0.7853982 }
 0x33c   : > { %v3444_v2 = vmul.u32 %v11473_v30, %v3428_v10  ;;  %v3447_v61 = vadd.s32 1, %v11500_v42  ;;  %vm3504_vm8 = vcmp.gt.s32.totalorder %v3503_v25, 0  ;;  %v3374_v13 = vsel %vm11513_vm10, 0, %v3372_v3 }
 0x33d   : > { %v3359_v18 = vshrl.u32 %v3341_v38, %v3357_v12  ;;  %v3362_v52 = vadd.s32 127, %v3361_v57  ;;  %vm3446_vm11 = vc.u32 %v11507_v33, %v11499_v44  ;;  %v3501_v50 = vor.u32 8388608, %v3500_v32 }
 0x33e   : > { %v3505_v21 = vsel %vm3504_vm8, %v3503_v25, 0  ;;  %v3448_v27 = vsel %vm3446_vm11, %v3447_v61, %v11500_v42  ;;  %vm3273_vm9 = vweird.f32 %v14479_v41  ;;  %vm3276_vm13 = vcmp.lt.s32.totalorder %v3275_v37, 2 }
 0x33f   : > { %v3360_v45 = vor.u32 %v3359_v18, %v3358_v1  ;;  %v3363_v26 = vshll.u32 %v3362_v52, 23  ;;  %v11524_v0 = vshrl.u32 %v3505_v21, 5  ;;  %v3449_v30 = vadd.s32 %v3448_v27, %v3444_v2 }
 0x340   : > { %v3507_v38 = vand.u32 31, %v3505_v21  ;;  %v7972_v47 = vpop.eup %7971  ;;  %vm3277_vm12 = vcmp.eq.s32.totalorder %v3275_v37, 0  ;;  %vm3280_vm14 = vcmp.eq.s32.totalorder %v3275_v37, 2  ;;  %v3378_v35 = vadd.s32 3, %v3374_v13  ;;  %v14491_v13 = vld [vmem:[#allocation30_spill] sm:$0xff] }
 0x341   : > { %v3364_v49 = vor.u32 4788187, %v3363_v26  ;;  %v3367_v4 = vcvt.s32.f32 %v3360_v45  ;;  %v7974_v31 = vpop.eup %7973  ;;  %v3281_v34 = vxor.u32 2147483648, %v7972_v47  ;;  %v3450_v63 = vadd.s32 536870912, %v3449_v30 }
 0x342   : > { %v3508_v11 = vsub.s32 32, %v3507_v38  ;;  %v3278_v6 = vxor.u32 2147483648, %v7974_v31  ;;  %vm3525_vm15 = vcmp.lt.s32.totalorder %v11524_v0, 1  ;;  %v11528_v58 = vshll.u32 %v3501_v50, 8 }
 0x343   : > { %v3365_v36 = vand.u32 2147483647, %v3364_v49  ;;  %v3282_v62 = vsel %vm3280_vm14, %v3281_v34, %v7974_v31  ;;  %v3451_v28 = vshrl.u32 %v3450_v63, 30  ;;  %v3510_v19 = vshll.u32 %v14417_v24, %v3507_v38 }
 0x344   : > { %v3511_v55 = vshrl.u32 %v14411_v14, %v3508_v11  ;;  %v3279_v29 = vsel %vm3277_vm12, %v7972_v47, %v3278_v6  ;;  %vm3391_vm1 = vcmp.lt.s32.totalorder %v14483_v16, 0  ;;  %v3513_v7 = vshll.u32 %v14411_v14, %v3507_v38 }
 0x345   : > { %v3368_v17 = vmul.f32 %v3367_v4, %v3365_v36  ;;  %v3514_v56 = vshrl.u32 %v14412_v20, %v3508_v11  ;;  %v3283_v40 = vsel %vm3276_vm13, %v3279_v29, %v3282_v62  ;;  %v3452_v22 = vshll.u32 %v3451_v28, 30 }
 0x346   : > { %v3516_v32 = vshll.u32 %v14412_v20, %v3507_v38  ;;  %v3517_v10 = vshrl.u32 %v14413_v15, %v3508_v11  ;;  %v3284_v46 = vsel %vm3273_vm9, nan, %v3283_v40  ;;  %v3475_v39 = vsub.s32 4, %v3451_v28 }
 0x347   : > { %v3369_v8 = vxor.u32 2147483648, %v3368_v17  ;;  %v3509_v48 = vshrl.u32 %v14417_v24, %v3508_v11  ;;  %v11542_v42 = vsub.s32 %v3449_v30, %v3452_v22  ;;  %v3512_v60 = vor.u32 %v3511_v55, %v3510_v19  ;;  %7159 = vst [vmem:[%s9691_s5 + $0xd0] sm:$0xff] %v3284_v46 }
 0x348   : > { %v3519_v3 = vshll.u32 %v14413_v15, %v3507_v38  ;;  %v3520_v53 = vshrl.u32 %v14414_v23, %v3508_v11  ;;  %v3515_v1 = vor.u32 %v3514_v56, %v3513_v7  ;;  %v3522_v57 = vshll.u32 %v14414_v23, %v3507_v38 }
 0x349   : > { %v3370_v12 = vsel %vm3287_vm2, %v3369_v8, %v3368_v17  ;;  %v3523_v41 = vshrl.u32 %v14415_v51, %v3508_v11  ;;  %vm11556_vm0 = vcmp.le.f32.partialorder %v3389_v9, 0.7853982  ;;  %v3455_v2 = vsub.s32 0, %v11542_v42 }
 0x34a   : > { %v3373_v25 = vsel %vm11513_vm10, %v14480_v5, %v3370_v12  ;;  %v3518_v18 = vor.u32 %v3517_v10, %v3516_v32  ;;  %v3521_v52 = vor.u32 %v3520_v53, %v3519_v3  ;;  %vm3528_vm2 = vcmp.lt.s32.totalorder %v11524_v0, 4 }
 0x34b   : > { %7975 = vcosq.f32 %v3373_v25  ;;  %v3524_v61 = vor.u32 %v3523_v41, %v3522_v57  ;;  %v3600_v50 = vand.u32 2139095040, %v14491_v13  ;;  %v7401_v43 = vmin.u32 %v3455_v2, %v11542_v42 }
 0x34c   : > { %7977 = vsinq.f32 %v3373_v25  ;;  %vm3526_vm3 = vcmp.lt.s32.totalorder %v11524_v0, 2  ;;  %vm3527_vm5 = vcmp.lt.s32.totalorder %v11524_v0, 3  ;;  %v3529_v9 = vsel %vm3525_vm15, %v3509_v48, %v3512_v60 }
 0x34d   : > { %v3530_v21 = vsel %vm3528_vm2, %v3518_v18, 2102212464  ;;  %v3533_v45 = vsel %vm3525_vm15, %v3512_v60, %v3515_v1  ;;  %v3534_v26 = vsel %vm3528_vm2, %v3521_v52, 920167782  ;;  %v3379_v27 = vand.u32 3, %v3378_v35 }
 0x34e   : > { %v3457_v30 = vclz %v7401_v43  ;;  %v3476_v38 = vsel %vm3391_vm1, %v3475_v39, %v3451_v28  ;;  %v3537_v47 = vsel %vm3525_vm15, %v3515_v1, %v3518_v18  ;;  %v3531_v49 = vsel %vm3527_vm5, %v3515_v1, %v3530_v21 }
 0x34f   : > { %v3535_v4 = vsel %vm3527_vm5, %v3518_v18, %v3534_v26  ;;  %v3538_v31 = vsel %vm3528_vm2, %v3524_v61, 1326507024  ;;  %v3601_v34 = vshrl.u32 %v3600_v50, 23  ;;  %v3532_v35 = vsel %vm3526_vm3, %v3529_v9, %v3531_v49 }
 0x350   : > { %v7402_v63 = vadd.s32 4294967294, %v3457_v30  ;;  %v3536_v11 = vsel %vm3526_vm3, %v3533_v45, %v3535_v4  ;;  %v3539_v6 = vsel %vm3527_vm5, %v3521_v52, %v3538_v31  ;;  %v3445_v36 = vadd.s32 %v11499_v44, %v11507_v33 }
 0x351   : > { %v3540_v62 = vsel %vm3526_vm3, %v3537_v47, %v3539_v6  ;;  %v11595_v28 = vmul.u32.u64.low %v11528_v58, %v3536_v11  ;;  %v11596_v19 = vmul.u32.u64.high %v11528_v58, %v3536_v11, %v11595_v28  ;;  %v7408_v17 = vadd.s32 4294967169, %v3601_v34 }
 0x352   : > { %vm7403_vm4 = vcmp.lt.s32.totalorder %v7402_v63, 0  ;;  %v11600_v55 = vmul.u32.u64.low %v11528_v58, %v3540_v62  ;;  %v11601_v29 = vmul.u32.u64.high %v11528_v58, %v3540_v62, %v11600_v55  ;;  %v3478_v56 = vsel %vm11556_vm0, 0, %v3476_v38 }
 0x353   : > { %v3460_v7 = vsel %vm7403_vm4, 0, %v7402_v63  ;;  %v3548_v44 = vmul.u32 %v11528_v58, %v3532_v35  ;;  %v3597_v33 = vand.u32 2147483647, %v14491_v13  ;;  %v3607_v32 = vadd.s32 1, %v7408_v17 }
 0x354   : > { %v3461_v0 = vsub.s32 32, %v3460_v7  ;;  %v3462_v40 = vshll.u32 %v11542_v42, %v3460_v7  ;;  %v3465_v22 = vsub.s32 4294967266, %v3460_v7  ;;  %vm3377_vm6 = vweird.f32 %v14480_v5 }
 0x355   : > { %v3551_v10 = vadd.s32 1, %v11596_v19  ;;  %vm3384_vm7 = vcmp.eq.s32.totalorder %v3379_v27, 2  ;;  %vm3550_vm10 = vc.u32 %v11601_v29, %v11595_v28  ;;  %v3482_v39 = vadd.s32 3, %v3478_v56 }
 0x356   : > { %v3463_v46 = vshrl.u32 %v3445_v36, %v3461_v0  ;;  %v3466_v8 = vadd.s32 127, %v3465_v22  ;;  %v3604_v48 = vand.u32 8388607, %v3597_v33  ;;  %vm3608_vm8 = vcmp.gt.s32.totalorder %v3607_v32, 0 }
 0x357   : > { %v3552_v58 = vsel %vm3550_vm10, %v3551_v10, %v11596_v19  ;;  %v3609_v12 = vsel %vm3608_vm8, %v3607_v32, 0  ;;  %vm3380_vm11 = vcmp.lt.s32.totalorder %v3379_v27, 2  ;;  %vm3381_vm9 = vcmp.eq.s32.totalorder %v3379_v27, 0  ;;  %v14492_v27 = vld [vmem:[#allocation31_spill] sm:$0xff] }
 0x358   : > { %v7976_v42 = vpop.eup %7975  ;;  %v3464_v60 = vor.u32 %v3463_v46, %v3462_v40  ;;  %v3467_v3 = vshll.u32 %v3466_v8, 23  ;;  %v3553_v53 = vadd.s32 %v3552_v58, %v3548_v44  ;;  %v3611_v41 = vand.u32 31, %v3609_v12 }
 0x359   : > { %v7978_v1 = vpop.eup %7977  ;;  %v3385_v57 = vxor.u32 2147483648, %v7976_v42  ;;  %v11616_v50 = vand.u32 3, %v3482_v39  ;;  %v3605_v43 = vor.u32 8388608, %v3604_v48  ;;  %v3610_v11 = vshrl.u32 %v3609_v12, 5 }
 0x35a   : > { %v3382_v25 = vxor.u32 2147483648, %v7978_v1  ;;  %v3468_v2 = vor.u32 4788187, %v3467_v3  ;;  %v3471_v18 = vcvt.s32.f32 %v3464_v60  ;;  %v3554_v52 = vadd.s32 536870912, %v3553_v53 }
 0x35b   : > { %v3386_v61 = vsel %vm3384_vm7, %v3385_v57, %v7978_v1  ;;  %v3612_v9 = vsub.s32 32, %v3611_v41  ;;  %v3614_v30 = vshll.u32 %v14417_v24, %v3611_v41  ;;  %v3617_v49 = vshll.u32 %v14411_v14, %v3611_v41 }
 0x35c   : > { %v3383_v21 = vsel %vm3381_vm9, %v7976_v42, %v3382_v25  ;;  %v3469_v45 = vand.u32 2147483647, %v3468_v2  ;;  %v3555_v26 = vshrl.u32 %v3554_v52, 30  ;;  %v3620_v4 = vshll.u32 %v14412_v20, %v3611_v41 }
 0x35d   : > { %v3387_v38 = vsel %vm3380_vm11, %v3383_v21, %v3386_v61  ;;  %v3615_v47 = vshrl.u32 %v14411_v14, %v3612_v9  ;;  %v3618_v35 = vshrl.u32 %v14412_v20, %v3612_v9  ;;  %v3621_v6 = vshrl.u32 %v14413_v15, %v3612_v9 }
 0x35e   : > { %v3388_v31 = vsel %vm3377_vm6, nan, %v3387_v38  ;;  %v3472_v34 = vmul.f32 %v3471_v18, %v3469_v45  ;;  %v3556_v63 = vshll.u32 %v3555_v26, 30  ;;  %v3623_v36 = vshll.u32 %v14413_v15, %v3611_v41 }
 0x35f   : > { %v3701_v62 = vand.u32 2147483647, %v14492_v27  ;;  %7160 = vst [vmem:[%s9691_s5 + $0xd8] sm:$0xff] %v3388_v31  ;;  %v3624_v17 = vshrl.u32 %v14414_v23, %v3612_v9  ;;  %v3704_v5 = vand.u32 2139095040, %v14492_v27  ;;  %vm3495_vm13 = vcmp.lt.s32.totalorder %v14486_v59, 0 }
 0x360   : > { %v3473_v19 = vxor.u32 2147483648, %v3472_v34  ;;  %v11630_v55 = vsub.s32 %v3553_v53, %v3556_v63  ;;  %v3613_v7 = vshrl.u32 %v14417_v24, %v3612_v9  ;;  %v3616_v56 = vor.u32 %v3615_v47, %v3614_v30 }
 0x361   : > { %v3626_v44 = vshll.u32 %v14414_v23, %v3611_v41  ;;  %v3627_v0 = vshrl.u32 %v14415_v51, %v3612_v9  ;;  %v3619_v32 = vor.u32 %v3618_v35, %v3617_v49  ;;  %v3622_v10 = vor.u32 %v3621_v6, %v3620_v4 }
 0x362   : > { %v3474_v40 = vsel %vm3391_vm1, %v3473_v19, %v3472_v34  ;;  %v3559_v22 = vsub.s32 0, %v11630_v55  ;;  %v3625_v8 = vor.u32 %v3624_v17, %v3623_v36  ;;  %vm3629_vm12 = vcmp.lt.s32.totalorder %v3610_v11, 1 }
 0x363   : > { %v3477_v46 = vsel %vm11556_vm0, %v14483_v16, %v3474_v40  ;;  %v3628_v39 = vor.u32 %v3627_v0, %v3626_v44  ;;  %vm11646_vm14 = vcmp.le.f32.partialorder %v3493_v54, 0.7853982  ;;  %v3645_v42 = vshll.u32 %v3605_v43, 8 }
 0x364   : > { %7979 = vcosq.f32 %v3477_v46  ;;  %v7405_v48 = vmin.u32 %v3559_v22, %v11630_v55  ;;  %v3705_v60 = vshrl.u32 %v3704_v5, 23  ;;  %v3579_v3 = vsub.s32 4, %v3555_v26 }
 0x365   : > { %7981 = vsinq.f32 %v3477_v46  ;;  %vm3631_vm15 = vcmp.lt.s32.totalorder %v3610_v11, 3  ;;  %vm3632_vm1 = vcmp.lt.s32.totalorder %v3610_v11, 4  ;;  %vm3630_vm0 = vcmp.lt.s32.totalorder %v3610_v11, 2 }
 0x366   : > { %v3561_v37 = vclz %v7405_v48  ;;  %v3633_v53 = vsel %vm3629_vm12, %v3613_v7, %v3616_v56  ;;  %v3637_v12 = vsel %vm3629_vm12, %v3616_v56, %v3619_v32  ;;  %v3634_v1 = vsel %vm3632_vm1, %v3622_v10, 2102212464 }
 0x367   : > { %v3638_v57 = vsel %vm3632_vm1, %v3625_v8, 920167782  ;;  %v3641_v54 = vsel %vm3629_vm12, %v3619_v32, %v3622_v10  ;;  %v3642_v41 = vsel %vm3632_vm1, %v3628_v39, 1326507024  ;;  %v3635_v2 = vsel %vm3631_vm15, %v3619_v32, %v3634_v1 }
 0x368   : > { %v7406_v25 = vadd.s32 4294967294, %v3561_v37  ;;  %v3639_v18 = vsel %vm3631_vm15, %v3622_v10, %v3638_v57  ;;  %v3643_v52 = vsel %vm3631_vm15, %v3625_v8, %v3642_v41  ;;  %v3549_v61 = vadd.s32 %v11595_v28, %v11601_v29 }
 0x369   : > { %v3640_v43 = vsel %vm3630_vm0, %v3637_v12, %v3639_v18  ;;  %v3644_v9 = vsel %vm3630_vm0, %v3641_v54, %v3643_v52  ;;  %v7412_v21 = vadd.s32 4294967169, %v3705_v60  ;;  %v3580_v45 = vsel %vm3495_vm13, %v3579_v3, %v3555_v26 }
 0x36a   : > { %vm7407_vm2 = vcmp.lt.s32.totalorder %v7406_v25, 0  ;;  %v11660_v30 = vmul.u32.u64.low %v3645_v42, %v3644_v9  ;;  %v11661_v38 = vmul.u32.u64.high %v3645_v42, %v3644_v9, %v11660_v30  ;;  %v3636_v49 = vsel %vm3630_vm0, %v3633_v53, %v3635_v2 }
 0x36b   : > { %v3564_v47 = vsel %vm7407_vm2, 0, %v7406_v25  ;;  %v11664_v4 = vmul.u32.u64.low %v3645_v42, %v3640_v43  ;;  %v11665_v31 = vmul.u32.u64.high %v3645_v42, %v3640_v43, %v11664_v4  ;;  %v3711_v63 = vadd.s32 1, %v7412_v21 }
 0x36c   : > { %v3565_v28 = vsub.s32 32, %v3564_v47  ;;  %v3566_v29 = vshll.u32 %v11630_v55, %v3564_v47  ;;  %v3569_v34 = vsub.s32 4294967266, %v3564_v47  ;;  %vm3481_vm3 = vweird.f32 %v14483_v16  ;;  %v14495_v47 = vld [vmem:[#allocation32_spill] sm:$0xff] }
 0x36d   : > { %v3582_v26 = vsel %vm11646_vm14, 0, %v3580_v45  ;;  %v3652_v36 = vmul.u32 %v3645_v42, %v3636_v49  ;;  %vm3654_vm5 = vc.u32 %v11661_v38, %v11664_v4  ;;  %vm3484_vm4 = vcmp.lt.s32.totalorder %v11616_v50, 2 }
 0x36e   : > { %v3567_v35 = vshrl.u32 %v3549_v61, %v3565_v28  ;;  %v3570_v6 = vadd.s32 127, %v3569_v34  ;;  %v3655_v11 = vadd.s32 1, %v11665_v31  ;;  %v3708_v19 = vand.u32 8388607, %v3701_v62 }
 0x36f   : > { %vm3712_vm6 = vcmp.gt.s32.totalorder %v3711_v63, 0  ;;  %vm3485_vm7 = vcmp.eq.s32.totalorder %v11616_v50, 0  ;;  %vm3488_vm10 = vcmp.eq.s32.totalorder %v11616_v50, 2  ;;  %v3586_v56 = vadd.s32 3, %v3582_v26 }
 0x370   : > { %v3568_v55 = vor.u32 %v3567_v35, %v3566_v29  ;;  %v3571_v17 = vshll.u32 %v3570_v6, 23  ;;  %v3713_v5 = vsel %vm3712_vm6, %v3711_v63, 0  ;;  %v3656_v44 = vsel %vm3654_vm5, %v3655_v11, %v11665_v31 }
 0x371   : > { %v7980_v7 = vpop.eup %7979  ;;  %v3715_v0 = vand.u32 31, %v3713_v5  ;;  %v3657_v46 = vadd.s32 %v3656_v44, %v3652_v36  ;;  %v3709_v39 = vor.u32 8388608, %v3708_v19  ;;  %v3714_v61 = vshrl.u32 %v3713_v5, 5 }
 0x372   : > { %v7982_v40 = vpop.eup %7981  ;;  %v3489_v22 = vxor.u32 2147483648, %v7980_v7  ;;  %v3572_v32 = vor.u32 4788187, %v3571_v17  ;;  %v3575_v10 = vcvt.s32.f32 %v3568_v55  ;;  %v3808_v49 = vand.u32 2139095040, %v14495_v47 }
 0x373   : > { %v3486_v8 = vxor.u32 2147483648, %v7982_v40  ;;  %v3716_v48 = vsub.s32 32, %v3715_v0  ;;  %v3718_v42 = vshll.u32 %v14417_v24, %v3715_v0  ;;  %v3658_v37 = vadd.s32 536870912, %v3657_v46 }
 0x374   : > { %v3490_v60 = vsel %vm3488_vm10, %v3489_v22, %v7982_v40  ;;  %v3573_v3 = vand.u32 2147483647, %v3572_v32  ;;  %v3721_v53 = vshll.u32 %v14411_v14, %v3715_v0  ;;  %v3724_v54 = vshll.u32 %v14412_v20, %v3715_v0 }
 0x375   : > { %v3487_v12 = vsel %vm3485_vm7, %v7980_v7, %v3486_v8  ;;  %v3719_v1 = vshrl.u32 %v14411_v14, %v3716_v48  ;;  %v3722_v57 = vshrl.u32 %v14412_v20, %v3716_v48  ;;  %v3659_v2 = vshrl.u32 %v3658_v37, 30 }
 0x376   : > { %v3491_v41 = vsel %vm3484_vm4, %v3487_v12, %v3490_v60  ;;  %v3576_v25 = vmul.f32 %v3575_v10, %v3573_v3  ;;  %v3725_v18 = vshrl.u32 %v14413_v15, %v3716_v48  ;;  %v3727_v43 = vshll.u32 %v14413_v15, %v3715_v0 }
 0x377   : > { %v3492_v52 = vsel %vm3481_vm3, nan, %v3491_v41  ;;  %v11694_v9 = vshll.u32 %v3709_v39, 8  ;;  %v3660_v45 = vshll.u32 %v3659_v2, 30  ;;  %v3717_v30 = vshrl.u32 %v14417_v24, %v3716_v48 }
 0x378   : > { %v3577_v21 = vxor.u32 2147483648, %v3576_v25  ;;  %7161 = vst [vmem:[%s9691_s5 + $0xe0] sm:$0xff] %v3492_v52  ;;  %v3720_v50 = vor.u32 %v3719_v1, %v3718_v42  ;;  %v3728_v31 = vshrl.u32 %v14414_v23, %v3716_v48  ;;  %v3730_v28 = vshll.u32 %v14414_v23, %v3715_v0 }
 0x379   : > { %v3731_v16 = vshrl.u32 %v14415_v51, %v3716_v48  ;;  %v11704_v34 = vsub.s32 %v3657_v46, %v3660_v45  ;;  %v3723_v63 = vor.u32 %v3722_v57, %v3721_v53  ;;  %v3726_v26 = vor.u32 %v3725_v18, %v3724_v54 }
 0x37a   : > { %v3578_v29 = vsel %vm3495_vm13, %v3577_v21, %v3576_v25  ;;  %v3729_v6 = vor.u32 %v3728_v31, %v3727_v43  ;;  %vm3733_vm8 = vcmp.lt.s32.totalorder %v3714_v61, 1  ;;  %vm3735_vm11 = vcmp.lt.s32.totalorder %v3714_v61, 3 }
 0x37b   : > { %v3581_v35 = vsel %vm11646_vm14, %v14486_v59, %v3578_v29  ;;  %v3732_v36 = vor.u32 %v3731_v16, %v3730_v28  ;;  %v3663_v11 = vsub.s32 0, %v11704_v34  ;;  %v3809_v19 = vshrl.u32 %v3808_v49, 23 }
 0x37c   : > { %7983 = vcosq.f32 %v3581_v35  ;;  %vm3734_vm9 = vcmp.lt.s32.totalorder %v3714_v61, 2  ;;  %vm3736_vm12 = vcmp.lt.s32.totalorder %v3714_v61, 4  ;;  %v3737_v55 = vsel %vm3733_vm8, %v3717_v30, %v3720_v50 }
 0x37d   : > { %7985 = vsinq.f32 %v3581_v35  ;;  %v7409_v17 = vmin.u32 %v3663_v11, %v11704_v34  ;;  %v3738_v5 = vsel %vm3736_vm12, %v3726_v26, 2102212464  ;;  %v3741_v7 = vsel %vm3733_vm8, %v3720_v50, %v3723_v63 }
 0x37e   : > { %v3742_v44 = vsel %vm3736_vm12, %v3729_v6, 920167782  ;;  %v3739_v58 = vsel %vm3735_vm11, %v3723_v63, %v3738_v5  ;;  %v3745_v40 = vsel %vm3733_vm8, %v3723_v63, %v3726_v26  ;;  %v3746_v22 = vsel %vm3736_vm12, %v3732_v36, 1326507024 }
 0x37f   : > { %v3743_v0 = vsel %vm3735_vm11, %v3726_v26, %v3742_v44  ;;  %v3587_v32 = vand.u32 3, %v3586_v56  ;;  %v3665_v10 = vclz %v7409_v17  ;;  %v3683_v46 = vsub.s32 4, %v3659_v2  ;;  %v14498_v17 = vld [vmem:[#allocation33_spill] sm:$0xff] }
 0x380   : > { %v3740_v8 = vsel %vm3734_vm9, %v3737_v55, %v3739_v58  ;;  %v3744_v39 = vsel %vm3734_vm9, %v3741_v7, %v3743_v0  ;;  %v3747_v48 = vsel %vm3735_vm11, %v3729_v6, %v3746_v22  ;;  %v7416_v42 = vadd.s32 4294967169, %v3809_v19 }
 0x381   : > { %v7410_v60 = vadd.s32 4294967294, %v3665_v10  ;;  %v3748_v3 = vsel %vm3734_vm9, %v3745_v40, %v3747_v48  ;;  %v11718_v37 = vmul.u32.u64.low %v11694_v9, %v3744_v39  ;;  %v11719_v53 = vmul.u32.u64.high %v11694_v9, %v3744_v39, %v11718_v37 }
 0x382   : > { %vm3599_vm13 = vcmp.lt.s32.totalorder %v14491_v13, 0  ;;  %v11724_v56 = vmul.u32.u64.low %v11694_v9, %v3748_v3  ;;  %v11725_v12 = vmul.u32.u64.high %v11694_v9, %v3748_v3, %v11724_v56  ;;  %v3805_v1 = vand.u32 2147483647, %v14495_v47 }
 0x383   : > { %vm3585_vm14 = vweird.f32 %v14486_v59  ;;  %v3653_v57 = vadd.s32 %v11664_v4, %v11661_v38  ;;  %vm7411_vm15 = vcmp.lt.s32.totalorder %v7410_v60, 0  ;;  %v3684_v54 = vsel %vm3599_vm13, %v3683_v46, %v3659_v2 }
 0x384   : > { %v3815_v41 = vadd.s32 1, %v7416_v42  ;;  %vm3588_vm1 = vcmp.lt.s32.totalorder %v3587_v32, 2  ;;  %vm11735_vm0 = vcmp.le.f32.partialorder %v3597_v33, 0.7853982  ;;  %v3668_v18 = vsel %vm7411_vm15, 0, %v7410_v60 }
 0x385   : > { %v3756_v52 = vmul.u32 %v11694_v9, %v3740_v8  ;;  %v3669_v61 = vsub.s32 32, %v3668_v18  ;;  %v3670_v43 = vshll.u32 %v11704_v34, %v3668_v18  ;;  %v3673_v21 = vsub.s32 4294967266, %v3668_v18 }
 0x386   : > { %v3759_v38 = vadd.s32 1, %v11719_v53  ;;  %v3686_v4 = vsel %vm11735_vm0, 0, %v3684_v54  ;;  %vm3758_vm2 = vc.u32 %v11725_v12, %v11718_v37  ;;  %v3812_v33 = vand.u32 8388607, %v3805_v1 }
 0x387   : > { %vm3816_vm3 = vcmp.gt.s32.totalorder %v3815_v41, 0  ;;  %v3671_v2 = vshrl.u32 %v3653_v57, %v3669_v61  ;;  %v3674_v45 = vadd.s32 127, %v3673_v21  ;;  %vm3589_vm5 = vcmp.eq.s32.totalorder %v3587_v32, 0 }
 0x388   : > { %v3760_v9 = vsel %vm3758_vm2, %v3759_v38, %v11719_v53  ;;  %v3817_v30 = vsel %vm3816_vm3, %v3815_v41, 0  ;;  %vm3592_vm4 = vcmp.eq.s32.totalorder %v3587_v32, 2  ;;  %v11749_v63 = vadd.s32 3, %v3686_v4 }
 0x389   : > { %v7984_v49 = vpop.eup %7983  ;;  %v3761_v50 = vadd.s32 %v3760_v9, %v3756_v52  ;;  %v3819_v31 = vand.u32 31, %v3817_v30  ;;  %v3672_v29 = vor.u32 %v3671_v2, %v3670_v43  ;;  %v3675_v34 = vshll.u32 %v3674_v45, 23 }
 0x38a   : > { %v7986_v28 = vpop.eup %7985  ;;  %v3593_v16 = vxor.u32 2147483648, %v7984_v49  ;;  %v3813_v6 = vor.u32 8388608, %v3812_v33  ;;  %v3909_v5 = vand.u32 2147483647, %v14498_v17  ;;  %v3818_v58 = vshrl.u32 %v3817_v30, 5 }
 0x38b   : > { %v3590_v26 = vxor.u32 2147483648, %v7986_v28  ;;  %v3762_v35 = vadd.s32 536870912, %v3761_v50  ;;  %v3820_v36 = vsub.s32 32, %v3819_v31  ;;  %v3676_v19 = vor.u32 4788187, %v3675_v34 }
 0x38c   : > { %v3594_v11 = vsel %vm3592_vm4, %v3593_v16, %v7986_v28  ;;  %v3679_v55 = vcvt.s32.f32 %v3672_v29  ;;  %v3912_v0 = vand.u32 2139095040, %v14498_v17  ;;  %v3822_v10 = vshll.u32 %v14417_v24, %v3819_v31 }
 0x38d   : > { %v3591_v7 = vsel %vm3589_vm5, %v7984_v49, %v3590_v26  ;;  %v3763_v44 = vshrl.u32 %v3762_v35, 30  ;;  %v3677_v22 = vand.u32 2147483647, %v3676_v19  ;;  %v3825_v46 = vshll.u32 %v14411_v14, %v3819_v31 }
 0x38e   : > { %v3595_v40 = vsel %vm3588_vm1, %v3591_v7, %v3594_v11  ;;  %v3823_v48 = vshrl.u32 %v14411_v14, %v3820_v36  ;;  %v3826_v42 = vshrl.u32 %v14412_v20, %v3820_v36  ;;  %v3828_v3 = vshll.u32 %v14412_v20, %v3819_v31 }
 0x38f   : > { %v3596_v8 = vsel %vm3585_vm14, nan, %v3595_v40  ;;  %v3764_v39 = vshll.u32 %v3763_v44, 30  ;;  %v3680_v60 = vmul.f32 %v3679_v55, %v3677_v22  ;;  %v3829_v53 = vshrl.u32 %v14413_v15, %v3820_v36 }
 0x390   : > { %v3831_v32 = vshll.u32 %v14413_v15, %v3819_v31  ;;  %7162 = vst [vmem:[%s9691_s5 + $0xe8] sm:$0xff] %v3596_v8  ;;  %v3832_v57 = vshrl.u32 %v14414_v23, %v3820_v36  ;;  %v3834_v59 = vshll.u32 %v14414_v23, %v3819_v31  ;;  %v11769_v54 = vshll.u32 %v3813_v6, 8 }
 0x391   : > { %v11765_v56 = vsub.s32 %v3761_v50, %v3764_v39  ;;  %v3681_v41 = vxor.u32 2147483648, %v3680_v60  ;;  %v3757_v18 = vadd.s32 %v11718_v37, %v11725_v12  ;;  %v3835_v52 = vshrl.u32 %v14415_v51, %v3820_v36 }
 0x392   : > { %v3913_v61 = vshrl.u32 %v3912_v0, 23  ;;  %vm3703_vm6 = vcmp.lt.s32.totalorder %v14492_v27, 0  ;;  %v3821_v21 = vshrl.u32 %v14417_v24, %v3820_v36  ;;  %v3824_v38 = vor.u32 %v3823_v48, %v3822_v10 }
 0x393   : > { %v3767_v43 = vsub.s32 0, %v11765_v56  ;;  %v3827_v4 = vor.u32 %v3826_v42, %v3825_v46  ;;  %v3682_v33 = vsel %vm3599_vm13, %v3681_v41, %v3680_v60  ;;  %v3830_v2 = vor.u32 %v3829_v53, %v3828_v3 }
 0x394   : > { %v3833_v45 = vor.u32 %v3832_v57, %v3831_v32  ;;  %vm3837_vm7 = vcmp.lt.s32.totalorder %v3818_v58, 1  ;;  %v3685_v37 = vsel %vm11735_vm0, %v14491_v13, %v3682_v33  ;;  %v3836_v9 = vor.u32 %v3835_v52, %v3834_v59 }
 0x395   : > { %v7413_v12 = vmin.u32 %v3767_v43, %v11765_v56  ;;  %vm3840_vm10 = vcmp.lt.s32.totalorder %v3818_v58, 4  ;;  %7987 = vcosq.f32 %v3685_v37  ;;  %vm3838_vm8 = vcmp.lt.s32.totalorder %v3818_v58, 2 }
 0x396   : > { %vm3839_vm11 = vcmp.lt.s32.totalorder %v3818_v58, 3  ;;  %v3842_v30 = vsel %vm3840_vm10, %v3830_v2, 2102212464  ;;  %7989 = vsinq.f32 %v3685_v37  ;;  %v3841_v50 = vsel %vm3837_vm7, %v3821_v21, %v3824_v38 }
 0x397   : > { %v3769_v49 = vclz %v7413_v12  ;;  %v3845_v31 = vsel %vm3837_vm7, %v3824_v38, %v3827_v4  ;;  %v3787_v28 = vsub.s32 4, %v3763_v44  ;;  %v3843_v16 = vsel %vm3839_vm11, %v3827_v4, %v3842_v30 }
 0x398   : > { %v3846_v29 = vsel %vm3840_vm10, %v3833_v45, 920167782  ;;  %v3849_v25 = vsel %vm3837_vm7, %v3827_v4, %v3830_v2  ;;  %v3850_v35 = vsel %vm3840_vm10, %v3836_v9, 1326507024  ;;  %v3916_v6 = vand.u32 8388607, %v3909_v5 }
 0x399   : > { %v7414_v34 = vadd.s32 4294967294, %v3769_v49  ;;  %v3847_v26 = vsel %vm3839_vm11, %v3830_v2, %v3846_v29  ;;  %v3844_v36 = vsel %vm3838_vm8, %v3841_v50, %v3843_v16  ;;  %v3851_v19 = vsel %vm3839_vm11, %v3833_v45, %v3850_v35 }
 0x39a   : > { %v3848_v11 = vsel %vm3838_vm8, %v3845_v31, %v3847_v26  ;;  %v7420_v55 = vadd.s32 4294967169, %v3913_v61  ;;  %v3852_v7 = vsel %vm3838_vm8, %v3849_v25, %v3851_v19  ;;  %v3788_v10 = vsel %vm3703_vm6, %v3787_v28, %v3763_v44 }
 0x39b   : > { %vm7415_vm9 = vcmp.lt.s32.totalorder %v7414_v34, 0  ;;  %v11795_v0 = vmul.u32.u64.low %v11769_v54, %v3848_v11  ;;  %v11796_v40 = vmul.u32.u64.high %v11769_v54, %v3848_v11, %v11795_v0  ;;  %v3691_v58 = vand.u32 3, %v11749_v63 }
 0x39c   : > { %v3772_v22 = vsel %vm7415_vm9, 0, %v7414_v34  ;;  %v11802_v46 = vmul.u32.u64.low %v11769_v54, %v3852_v7  ;;  %v11803_v8 = vmul.u32.u64.high %v11769_v54, %v3852_v7, %v11802_v46  ;;  %v3919_v60 = vadd.s32 1, %v7420_v55 }
 0x39d   : > { %v3773_v39 = vsub.s32 32, %v3772_v22  ;;  %v3774_v48 = vshll.u32 %v11765_v56, %v3772_v22  ;;  %v3777_v42 = vsub.s32 4294967266, %v3772_v22  ;;  %vm11809_vm12 = vcmp.le.f32.partialorder %v3701_v62, 0.7853982 }
 0x39e   : > { %v3860_v53 = vmul.u32 %v11769_v54, %v3844_v36  ;;  %v3863_v57 = vadd.s32 1, %v11796_v40  ;;  %vm3920_vm13 = vcmp.gt.s32.totalorder %v3919_v60, 0  ;;  %v3790_v56 = vsel %vm11809_vm12, 0, %v3788_v10 }
 0x39f   : > { %v3775_v44 = vshrl.u32 %v3757_v18, %v3773_v39  ;;  %v3778_v32 = vadd.s32 127, %v3777_v42  ;;  %vm3862_vm14 = vc.u32 %v11803_v8, %v11795_v0  ;;  %v3917_v63 = vor.u32 8388608, %v3916_v6 }
 0x3a0   : > { %v3921_v59 = vsel %vm3920_vm13, %v3919_v60, 0  ;;  %v3864_v52 = vsel %vm3862_vm14, %v3863_v57, %v11796_v40  ;;  %vm3689_vm15 = vweird.f32 %v14491_v13  ;;  %vm3692_vm1 = vcmp.lt.s32.totalorder %v3691_v58, 2 }
 0x3a1   : > { %v3776_v41 = vor.u32 %v3775_v44, %v3774_v48  ;;  %v3779_v62 = vshll.u32 %v3778_v32, 23  ;;  %v11820_v61 = vshrl.u32 %v3921_v59, 5  ;;  %v3865_v54 = vadd.s32 %v3864_v52, %v3860_v53 }
 0x3a2   : > { %v3923_v18 = vand.u32 31, %v3921_v59  ;;  %v7988_v43 = vpop.eup %7987  ;;  %vm3693_vm0 = vcmp.eq.s32.totalorder %v3691_v58, 0  ;;  %vm3696_vm2 = vcmp.eq.s32.totalorder %v3691_v58, 2  ;;  %v3794_v2 = vadd.s32 3, %v3790_v56  ;;  %v14503_v56 = vld [vmem:[#allocation34_spill] sm:$0xff] }
 0x3a3   : > { %v3780_v21 = vor.u32 4788187, %v3779_v62  ;;  %v3783_v38 = vcvt.s32.f32 %v3776_v41  ;;  %v7990_v4 = vpop.eup %7989  ;;  %v3697_v33 = vxor.u32 2147483648, %v7988_v43  ;;  %v3866_v45 = vadd.s32 536870912, %v3865_v54 }
 0x3a4   : > { %v3924_v37 = vsub.s32 32, %v3923_v18  ;;  %v3694_v12 = vxor.u32 2147483648, %v7990_v4  ;;  %vm3941_vm3 = vcmp.lt.s32.totalorder %v11820_v61, 1  ;;  %v11824_v30 = vshll.u32 %v3917_v63, 8 }
 0x3a5   : > { %v3781_v9 = vand.u32 2147483647, %v3780_v21  ;;  %v3698_v49 = vsel %vm3696_vm2, %v3697_v33, %v7990_v4  ;;  %v3867_v50 = vshrl.u32 %v3866_v45, 30  ;;  %v3926_v31 = vshll.u32 %v14417_v24, %v3923_v18 }
 0x3a6   : > { %v3927_v28 = vshrl.u32 %v14411_v14, %v3924_v37  ;;  %v3695_v16 = vsel %vm3693_vm0, %v7988_v43, %v3694_v12  ;;  %vm3807_vm5 = vcmp.lt.s32.totalorder %v14495_v47, 0  ;;  %v3929_v25 = vshll.u32 %v14411_v14, %v3923_v18 }
 0x3a7   : > { %v3784_v29 = vmul.f32 %v3783_v38, %v3781_v9  ;;  %v3930_v34 = vshrl.u32 %v14412_v20, %v3924_v37  ;;  %v3699_v26 = vsel %vm3692_vm1, %v3695_v16, %v3698_v49  ;;  %v3868_v35 = vshll.u32 %v3867_v50, 30 }
 0x3a8   : > { %v3932_v6 = vshll.u32 %v14412_v20, %v3923_v18  ;;  %v3933_v36 = vshrl.u32 %v14413_v15, %v3924_v37  ;;  %v3700_v11 = vsel %vm3689_vm15, nan, %v3699_v26  ;;  %v3891_v55 = vsub.s32 4, %v3867_v50 }
 0x3a9   : > { %v3785_v19 = vxor.u32 2147483648, %v3784_v29  ;;  %v3925_v7 = vshrl.u32 %v14417_v24, %v3924_v37  ;;  %v11838_v40 = vsub.s32 %v3865_v54, %v3868_v35  ;;  %v3928_v22 = vor.u32 %v3927_v28, %v3926_v31  ;;  %7163 = vst [vmem:[%s9691_s5 + $0xf0] sm:$0xff] %v3700_v11 }
 0x3aa   : > { %v3935_v10 = vshll.u32 %v14413_v15, %v3923_v18  ;;  %v3936_v46 = vshrl.u32 %v14414_v23, %v3924_v37  ;;  %v3931_v48 = vor.u32 %v3930_v34, %v3929_v25  ;;  %v3938_v42 = vshll.u32 %v14414_v23, %v3923_v18 }
 0x3ab   : > { %v3786_v39 = vsel %vm3703_vm6, %v3785_v19, %v3784_v29  ;;  %v3939_v13 = vshrl.u32 %v14415_v51, %v3924_v37  ;;  %vm11852_vm4 = vcmp.le.f32.partialorder %v3805_v1, 0.7853982  ;;  %v3871_v53 = vsub.s32 0, %v11838_v40 }
 0x3ac   : > { %v3789_v60 = vsel %vm11809_vm12, %v14492_v27, %v3786_v39  ;;  %v3934_v44 = vor.u32 %v3933_v36, %v3932_v6  ;;  %v3937_v32 = vor.u32 %v3936_v46, %v3935_v10  ;;  %vm3944_vm6 = vcmp.lt.s32.totalorder %v11820_v61, 4 }
 0x3ad   : > { %7991 = vcosq.f32 %v3789_v60  ;;  %v3940_v57 = vor.u32 %v3939_v13, %v3938_v42  ;;  %v4016_v63 = vand.u32 2139095040, %v14503_v56  ;;  %v7417_v3 = vmin.u32 %v3871_v53, %v11838_v40 }
 0x3ae   : > { %7993 = vsinq.f32 %v3789_v60  ;;  %vm3942_vm7 = vcmp.lt.s32.totalorder %v11820_v61, 2  ;;  %vm3943_vm10 = vcmp.lt.s32.totalorder %v11820_v61, 3  ;;  %v3945_v1 = vsel %vm3941_vm3, %v3925_v7, %v3928_v22 }
 0x3af   : > { %v3946_v59 = vsel %vm3944_vm6, %v3934_v44, 2102212464  ;;  %v3949_v41 = vsel %vm3941_vm3, %v3928_v22, %v3931_v48  ;;  %v3950_v62 = vsel %vm3944_vm6, %v3937_v32, 920167782  ;;  %v3795_v52 = vand.u32 3, %v3794_v2 }
 0x3b0   : > { %v3873_v54 = vclz %v7417_v3  ;;  %v3892_v18 = vsel %vm3807_vm5, %v3891_v55, %v3867_v50  ;;  %v3953_v43 = vsel %vm3941_vm3, %v3931_v48, %v3934_v44  ;;  %v3947_v21 = vsel %vm3943_vm10, %v3931_v48, %v3946_v59 }
 0x3b1   : > { %v3951_v38 = vsel %vm3943_vm10, %v3934_v44, %v3950_v62  ;;  %v3954_v4 = vsel %vm3944_vm6, %v3940_v57, 1326507024  ;;  %v4017_v33 = vshrl.u32 %v4016_v63, 23  ;;  %v3948_v2 = vsel %vm3942_vm7, %v3945_v1, %v3947_v21 }
 0x3b2   : > { %v7418_v45 = vadd.s32 4294967294, %v3873_v54  ;;  %v3952_v37 = vsel %vm3942_vm7, %v3949_v41, %v3951_v38  ;;  %v3955_v12 = vsel %vm3943_vm10, %v3937_v32, %v3954_v4  ;;  %v3861_v9 = vadd.s32 %v11795_v0, %v11803_v8 }
 0x3b3   : > { %v3956_v49 = vsel %vm3942_vm7, %v3953_v43, %v3955_v12  ;;  %v11891_v50 = vmul.u32.u64.low %v11824_v30, %v3952_v37  ;;  %v11892_v31 = vmul.u32.u64.high %v11824_v30, %v3952_v37, %v11891_v50  ;;  %v7424_v29 = vadd.s32 4294967169, %v4017_v33 }
 0x3b4   : > { %vm7419_vm8 = vcmp.lt.s32.totalorder %v7418_v45, 0  ;;  %v11896_v28 = vmul.u32.u64.low %v11824_v30, %v3956_v49  ;;  %v11897_v16 = vmul.u32.u64.high %v11824_v30, %v3956_v49, %v11896_v28  ;;  %v3894_v34 = vsel %vm11852_vm4, 0, %v3892_v18 }
 0x3b5   : > { %v3876_v25 = vsel %vm7419_vm8, 0, %v7418_v45  ;;  %v3964_v0 = vmul.u32 %v11824_v30, %v3948_v2  ;;  %v4013_v8 = vand.u32 2147483647, %v14503_v56  ;;  %v4023_v6 = vadd.s32 1, %v7424_v29 }
 0x3b6   : > { %v3877_v61 = vsub.s32 32, %v3876_v25  ;;  %v3878_v26 = vshll.u32 %v11838_v40, %v3876_v25  ;;  %v3881_v35 = vsub.s32 4294967266, %v3876_v25  ;;  %vm3793_vm11 = vweird.f32 %v14492_v27 }
 0x3b7   : > { %v3967_v36 = vadd.s32 1, %v11892_v31  ;;  %vm3800_vm9 = vcmp.eq.s32.totalorder %v3795_v52, 2  ;;  %vm3966_vm12 = vc.u32 %v11897_v16, %v11891_v50  ;;  %v3898_v55 = vadd.s32 3, %v3894_v34 }
 0x3b8   : > { %v3879_v11 = vshrl.u32 %v3861_v9, %v3877_v61  ;;  %v3882_v19 = vadd.s32 127, %v3881_v35  ;;  %v4020_v7 = vand.u32 8388607, %v4013_v8  ;;  %vm4024_vm13 = vcmp.gt.s32.totalorder %v4023_v6, 0 }
 0x3b9   : > { %v3968_v30 = vsel %vm3966_vm12, %v3967_v36, %v11892_v31  ;;  %v4025_v39 = vsel %vm4024_vm13, %v4023_v6, 0  ;;  %vm3796_vm14 = vcmp.lt.s32.totalorder %v3795_v52, 2  ;;  %vm3797_vm15 = vcmp.eq.s32.totalorder %v3795_v52, 0  ;;  %v14504_v52 = vld [vmem:[#allocation35_spill] sm:$0xff] }
 0x3ba   : > { %v7992_v40 = vpop.eup %7991  ;;  %v3880_v22 = vor.u32 %v3879_v11, %v3878_v26  ;;  %v3883_v10 = vshll.u32 %v3882_v19, 23  ;;  %v3969_v46 = vadd.s32 %v3968_v30, %v3964_v0  ;;  %v4027_v13 = vand.u32 31, %v4025_v39 }
 0x3bb   : > { %v7994_v48 = vpop.eup %7993  ;;  %v3801_v42 = vxor.u32 2147483648, %v7992_v40  ;;  %v11912_v63 = vand.u32 3, %v3898_v55  ;;  %v4021_v3 = vor.u32 8388608, %v4020_v7  ;;  %v4026_v37 = vshrl.u32 %v4025_v39, 5 }
 0x3bc   : > { %v3798_v60 = vxor.u32 2147483648, %v7994_v48  ;;  %v3884_v53 = vor.u32 4788187, %v3883_v10  ;;  %v3887_v44 = vcvt.s32.f32 %v3880_v22  ;;  %v3970_v32 = vadd.s32 536870912, %v3969_v46 }
 0x3bd   : > { %v3802_v57 = vsel %vm3800_vm9, %v3801_v42, %v7994_v48  ;;  %v4028_v1 = vsub.s32 32, %v4027_v13  ;;  %v4030_v54 = vshll.u32 %v14417_v24, %v4027_v13  ;;  %v4033_v21 = vshll.u32 %v14411_v14, %v4027_v13 }
 0x3be   : > { %v3799_v59 = vsel %vm3797_vm15, %v7992_v40, %v3798_v60  ;;  %v3885_v41 = vand.u32 2147483647, %v3884_v53  ;;  %v3971_v62 = vshrl.u32 %v3970_v32, 30  ;;  %v4036_v38 = vshll.u32 %v14412_v20, %v4027_v13 }
 0x3bf   : > { %v3803_v18 = vsel %vm3796_vm14, %v3799_v59, %v3802_v57  ;;  %v4031_v43 = vshrl.u32 %v14411_v14, %v4028_v1  ;;  %v4034_v2 = vshrl.u32 %v14412_v20, %v4028_v1  ;;  %v4037_v12 = vshrl.u32 %v14413_v15, %v4028_v1 }
 0x3c0   : > { %v3804_v4 = vsel %vm3793_vm11, nan, %v3803_v18  ;;  %v3888_v33 = vmul.f32 %v3887_v44, %v3885_v41  ;;  %v3972_v45 = vshll.u32 %v3971_v62, 30  ;;  %v4039_v9 = vshll.u32 %v14413_v15, %v4027_v13 }
 0x3c1   : > { %v4117_v49 = vand.u32 2147483647, %v14504_v52  ;;  %7164 = vst [vmem:[%s9691_s5 + $0xf8] sm:$0xff] %v3804_v4  ;;  %v4040_v29 = vshrl.u32 %v14414_v23, %v4028_v1  ;;  %v4120_v27 = vand.u32 2139095040, %v14504_v52  ;;  %vm3911_vm1 = vcmp.lt.s32.totalorder %v14498_v17, 0 }
 0x3c2   : > { %v3889_v31 = vxor.u32 2147483648, %v3888_v33  ;;  %v11926_v28 = vsub.s32 %v3969_v46, %v3972_v45  ;;  %v4029_v25 = vshrl.u32 %v14417_v24, %v4028_v1  ;;  %v4032_v34 = vor.u32 %v4031_v43, %v4030_v54 }
 0x3c3   : > { %v4042_v0 = vshll.u32 %v14414_v23, %v4027_v13  ;;  %v4043_v61 = vshrl.u32 %v14415_v51, %v4028_v1  ;;  %v4035_v6 = vor.u32 %v4034_v2, %v4033_v21  ;;  %v4038_v36 = vor.u32 %v4037_v12, %v4036_v38 }
 0x3c4   : > { %v3890_v26 = vsel %vm3807_vm5, %v3889_v31, %v3888_v33  ;;  %v3975_v35 = vsub.s32 0, %v11926_v28  ;;  %v4041_v19 = vor.u32 %v4040_v29, %v4039_v9  ;;  %vm4045_vm0 = vcmp.lt.s32.totalorder %v4026_v37, 1 }
 0x3c5   : > { %v3893_v11 = vsel %vm11852_vm4, %v14495_v47, %v3890_v26  ;;  %v4044_v55 = vor.u32 %v4043_v61, %v4042_v0  ;;  %vm11942_vm2 = vcmp.le.f32.partialorder %v3909_v5, 0.7853982  ;;  %v4061_v40 = vshll.u32 %v4021_v3, 8 }
 0x3c6   : > { %7995 = vcosq.f32 %v3893_v11  ;;  %v7421_v7 = vmin.u32 %v3975_v35, %v11926_v28  ;;  %v4121_v22 = vshrl.u32 %v4120_v27, 23  ;;  %v3995_v10 = vsub.s32 4, %v3971_v62 }
 0x3c7   : > { %7997 = vsinq.f32 %v3893_v11  ;;  %vm4047_vm3 = vcmp.lt.s32.totalorder %v4026_v37, 3  ;;  %vm4048_vm5 = vcmp.lt.s32.totalorder %v4026_v37, 4  ;;  %vm4046_vm4 = vcmp.lt.s32.totalorder %v4026_v37, 2 }
 0x3c8   : > { %v3977_v58 = vclz %v7421_v7  ;;  %v4049_v46 = vsel %vm4045_vm0, %v4029_v25, %v4032_v34  ;;  %v4053_v39 = vsel %vm4045_vm0, %v4032_v34, %v4035_v6  ;;  %v4050_v48 = vsel %vm4048_vm5, %v4038_v36, 2102212464 }
 0x3c9   : > { %v4054_v42 = vsel %vm4048_vm5, %v4041_v19, 920167782  ;;  %v4057_v5 = vsel %vm4045_vm0, %v4035_v6, %v4038_v36  ;;  %v4058_v13 = vsel %vm4048_vm5, %v4044_v55, 1326507024  ;;  %v4051_v53 = vsel %vm4047_vm3, %v4035_v6, %v4050_v48 }
 0x3ca   : > { %v7422_v60 = vadd.s32 4294967294, %v3977_v58  ;;  %v4055_v44 = vsel %vm4047_vm3, %v4038_v36, %v4054_v42  ;;  %v4059_v32 = vsel %vm4047_vm3, %v4041_v19, %v4058_v13  ;;  %v3965_v57 = vadd.s32 %v11891_v50, %v11897_v16 }
 0x3cb   : > { %v4056_v3 = vsel %vm4046_vm4, %v4053_v39, %v4055_v44  ;;  %v4060_v1 = vsel %vm4046_vm4, %v4057_v5, %v4059_v32  ;;  %v7428_v59 = vadd.s32 4294967169, %v4121_v22  ;;  %v3996_v41 = vsel %vm3911_vm1, %v3995_v10, %v3971_v62 }
 0x3cc   : > { %vm7423_vm6 = vcmp.lt.s32.totalorder %v7422_v60, 0  ;;  %v11956_v54 = vmul.u32.u64.low %v4061_v40, %v4060_v1  ;;  %v11957_v18 = vmul.u32.u64.high %v4061_v40, %v4060_v1, %v11956_v54  ;;  %v4052_v21 = vsel %vm4046_vm4, %v4049_v46, %v4051_v53 }
 0x3cd   : > { %v3980_v43 = vsel %vm7423_vm6, 0, %v7422_v60  ;;  %v11960_v38 = vmul.u32.u64.low %v4061_v40, %v4056_v3  ;;  %v11961_v4 = vmul.u32.u64.high %v4061_v40, %v4056_v3, %v11960_v38  ;;  %v4127_v45 = vadd.s32 1, %v7428_v59 }
 0x3ce   : > { %v3981_v50 = vsub.s32 32, %v3980_v43  ;;  %v3982_v16 = vshll.u32 %v11926_v28, %v3980_v43  ;;  %v3985_v33 = vsub.s32 4294967266, %v3980_v43  ;;  %vm3897_vm7 = vweird.f32 %v14495_v47  ;;  %v14507_v43 = vld [vmem:[#allocation36_spill] sm:$0xff] }
 0x3cf   : > { %v3998_v62 = vsel %vm11942_vm2, 0, %v3996_v41  ;;  %v4068_v9 = vmul.u32 %v4061_v40, %v4052_v21  ;;  %vm4070_vm10 = vc.u32 %v11957_v18, %v11960_v38  ;;  %vm3900_vm8 = vcmp.lt.s32.totalorder %v11912_v63, 2 }
 0x3d0   : > { %v3983_v2 = vshrl.u32 %v3965_v57, %v3981_v50  ;;  %v3986_v12 = vadd.s32 127, %v3985_v33  ;;  %v4071_v37 = vadd.s32 1, %v11961_v4  ;;  %v4124_v31 = vand.u32 8388607, %v4117_v49 }
 0x3d1   : > { %vm4128_vm11 = vcmp.gt.s32.totalorder %v4127_v45, 0  ;;  %vm3901_vm9 = vcmp.eq.s32.totalorder %v11912_v63, 0  ;;  %vm3904_vm12 = vcmp.eq.s32.totalorder %v11912_v63, 2  ;;  %v4002_v34 = vadd.s32 3, %v3998_v62 }
 0x3d2   : > { %v3984_v28 = vor.u32 %v3983_v2, %v3982_v16  ;;  %v3987_v29 = vshll.u32 %v3986_v12, 23  ;;  %v4129_v27 = vsel %vm4128_vm11, %v4127_v45, 0  ;;  %v4072_v0 = vsel %vm4070_vm10, %v4071_v37, %v11961_v4 }
 0x3d3   : > { %v7996_v25 = vpop.eup %7995  ;;  %v4131_v61 = vand.u32 31, %v4129_v27  ;;  %v4073_v11 = vadd.s32 %v4072_v0, %v4068_v9  ;;  %v4125_v55 = vor.u32 8388608, %v4124_v31  ;;  %v4130_v57 = vshrl.u32 %v4129_v27, 5 }
 0x3d4   : > { %v7998_v26 = vpop.eup %7997  ;;  %v3905_v35 = vxor.u32 2147483648, %v7996_v25  ;;  %v3988_v6 = vor.u32 4788187, %v3987_v29  ;;  %v3991_v36 = vcvt.s32.f32 %v3984_v28  ;;  %v4224_v21 = vand.u32 2139095040, %v14507_v43 }
 0x3d5   : > { %v3902_v19 = vxor.u32 2147483648, %v7998_v26  ;;  %v4132_v7 = vsub.s32 32, %v4131_v61  ;;  %v4134_v40 = vshll.u32 %v14417_v24, %v4131_v61  ;;  %v4074_v58 = vadd.s32 536870912, %v4073_v11 }
 0x3d6   : > { %v3906_v22 = vsel %vm3904_vm12, %v3905_v35, %v7998_v26  ;;  %v3989_v10 = vand.u32 2147483647, %v3988_v6  ;;  %v4137_v46 = vshll.u32 %v14411_v14, %v4131_v61  ;;  %v4140_v5 = vshll.u32 %v14412_v20, %v4131_v61 }
 0x3d7   : > { %v3903_v39 = vsel %vm3901_vm9, %v7996_v25, %v3902_v19  ;;  %v4135_v48 = vshrl.u32 %v14411_v14, %v4132_v7  ;;  %v4138_v42 = vshrl.u32 %v14412_v20, %v4132_v7  ;;  %v4075_v53 = vshrl.u32 %v4074_v58, 30 }
 0x3d8   : > { %v3907_v13 = vsel %vm3900_vm8, %v3903_v39, %v3906_v22  ;;  %v3992_v60 = vmul.f32 %v3991_v36, %v3989_v10  ;;  %v4141_v44 = vshrl.u32 %v14413_v15, %v4132_v7  ;;  %v4143_v3 = vshll.u32 %v14413_v15, %v4131_v61 }
 0x3d9   : > { %v3908_v32 = vsel %vm3897_vm7, nan, %v3907_v13  ;;  %v11990_v1 = vshll.u32 %v4125_v55, 8  ;;  %v4076_v41 = vshll.u32 %v4075_v53, 30  ;;  %v4133_v54 = vshrl.u32 %v14417_v24, %v4132_v7 }
 0x3da   : > { %v3993_v59 = vxor.u32 2147483648, %v3992_v60  ;;  %7165 = vst [vmem:[%s9691_s5 + $0x100] sm:$0xff] %v3908_v32  ;;  %v4136_v63 = vor.u32 %v4135_v48, %v4134_v40  ;;  %v4144_v4 = vshrl.u32 %v14414_v23, %v4132_v7  ;;  %v4146_v50 = vshll.u32 %v14414_v23, %v4131_v61 }
 0x3db   : > { %v4147_v47 = vshrl.u32 %v14415_v51, %v4132_v7  ;;  %v12000_v33 = vsub.s32 %v4073_v11, %v4076_v41  ;;  %v4139_v45 = vor.u32 %v4138_v42, %v4137_v46  ;;  %v4142_v62 = vor.u32 %v4141_v44, %v4140_v5 }
 0x3dc   : > { %v3994_v16 = vsel %vm3911_vm1, %v3993_v59, %v3992_v60  ;;  %v4145_v12 = vor.u32 %v4144_v4, %v4143_v3  ;;  %vm4149_vm13 = vcmp.lt.s32.totalorder %v4130_v57, 1  ;;  %vm4151_vm14 = vcmp.lt.s32.totalorder %v4130_v57, 3 }
 0x3dd   : > { %v3997_v2 = vsel %vm11942_vm2, %v14498_v17, %v3994_v16  ;;  %v4148_v9 = vor.u32 %v4147_v47, %v4146_v50  ;;  %v4079_v37 = vsub.s32 0, %v12000_v33  ;;  %v4225_v31 = vshrl.u32 %v4224_v21, 23 }
 0x3de   : > { %7999 = vcosq.f32 %v3997_v2  ;;  %vm4150_vm15 = vcmp.lt.s32.totalorder %v4130_v57, 2  ;;  %vm4152_vm0 = vcmp.lt.s32.totalorder %v4130_v57, 4  ;;  %v4153_v28 = vsel %vm4149_vm13, %v4133_v54, %v4136_v63 }
 0x3df   : > { %8001 = vsinq.f32 %v3997_v2  ;;  %v7425_v29 = vmin.u32 %v4079_v37, %v12000_v33  ;;  %v4154_v27 = vsel %vm4152_vm0, %v4142_v62, 2102212464  ;;  %v4157_v25 = vsel %vm4149_vm13, %v4136_v63, %v4139_v45 }
 0x3e0   : > { %v4158_v0 = vsel %vm4152_vm0, %v4145_v12, 920167782  ;;  %v4155_v30 = vsel %vm4151_vm14, %v4139_v45, %v4154_v27  ;;  %v4161_v26 = vsel %vm4149_vm13, %v4139_v45, %v4142_v62  ;;  %v4162_v35 = vsel %vm4152_vm0, %v4148_v9, 1326507024 }
 0x3e1   : > { %v4159_v61 = vsel %vm4151_vm14, %v4142_v62, %v4158_v0  ;;  %v4003_v6 = vand.u32 3, %v4002_v34  ;;  %v4081_v36 = vclz %v7425_v29  ;;  %v4099_v11 = vsub.s32 4, %v4075_v53  ;;  %v14510_v29 = vld [vmem:[#allocation37_spill] sm:$0xff] }
 0x3e2   : > { %v4156_v19 = vsel %vm4150_vm15, %v4153_v28, %v4155_v30  ;;  %v4160_v55 = vsel %vm4150_vm15, %v4157_v25, %v4159_v61  ;;  %v4163_v7 = vsel %vm4151_vm14, %v4145_v12, %v4162_v35  ;;  %v7432_v40 = vadd.s32 4294967169, %v4225_v31 }
 0x3e3   : > { %v7426_v22 = vadd.s32 4294967294, %v4081_v36  ;;  %v4164_v10 = vsel %vm4150_vm15, %v4161_v26, %v4163_v7  ;;  %v12014_v58 = vmul.u32.u64.low %v11990_v1, %v4160_v55  ;;  %v12015_v46 = vmul.u32.u64.high %v11990_v1, %v4160_v55, %v12014_v58 }
 0x3e4   : > { %vm4015_vm1 = vcmp.lt.s32.totalorder %v14503_v56, 0  ;;  %v12020_v34 = vmul.u32.u64.low %v11990_v1, %v4164_v10  ;;  %v12021_v39 = vmul.u32.u64.high %v11990_v1, %v4164_v10, %v12020_v34  ;;  %v4221_v48 = vand.u32 2147483647, %v14507_v43 }
 0x3e5   : > { %vm4001_vm2 = vweird.f32 %v14498_v17  ;;  %v4069_v42 = vadd.s32 %v11960_v38, %v11957_v18  ;;  %vm7427_vm3 = vcmp.lt.s32.totalorder %v7426_v22, 0  ;;  %v4100_v5 = vsel %vm4015_vm1, %v4099_v11, %v4075_v53 }
 0x3e6   : > { %v4231_v13 = vadd.s32 1, %v7432_v40  ;;  %vm4004_vm5 = vcmp.lt.s32.totalorder %v4003_v6, 2  ;;  %vm12031_vm4 = vcmp.le.f32.partialorder %v4013_v8, 0.7853982  ;;  %v4084_v44 = vsel %vm7427_vm3, 0, %v7426_v22 }
 0x3e7   : > { %v4172_v32 = vmul.u32 %v11990_v1, %v4156_v19  ;;  %v4085_v57 = vsub.s32 32, %v4084_v44  ;;  %v4086_v3 = vshll.u32 %v12000_v33, %v4084_v44  ;;  %v4089_v59 = vsub.s32 4294967266, %v4084_v44 }
 0x3e8   : > { %v4175_v18 = vadd.s32 1, %v12015_v46  ;;  %v4102_v38 = vsel %vm12031_vm4, 0, %v4100_v5  ;;  %vm4174_vm6 = vc.u32 %v12021_v39, %v12014_v58  ;;  %v4228_v8 = vand.u32 8388607, %v4221_v48 }
 0x3e9   : > { %vm4232_vm7 = vcmp.gt.s32.totalorder %v4231_v13, 0  ;;  %v4087_v53 = vshrl.u32 %v4069_v42, %v4085_v57  ;;  %v4090_v41 = vadd.s32 127, %v4089_v59  ;;  %vm4005_vm10 = vcmp.eq.s32.totalorder %v4003_v6, 0 }
 0x3ea   : > { %v4176_v1 = vsel %vm4174_vm6, %v4175_v18, %v12015_v46  ;;  %v4233_v54 = vsel %vm4232_vm7, %v4231_v13, 0  ;;  %vm4008_vm8 = vcmp.eq.s32.totalorder %v4003_v6, 2  ;;  %v12045_v45 = vadd.s32 3, %v4102_v38 }
 0x3eb   : > { %v8000_v21 = vpop.eup %7999  ;;  %v4177_v63 = vadd.s32 %v4176_v1, %v4172_v32  ;;  %v4235_v4 = vand.u32 31, %v4233_v54  ;;  %v4088_v16 = vor.u32 %v4087_v53, %v4086_v3  ;;  %v4091_v33 = vshll.u32 %v4090_v41, 23 }
 0x3ec   : > { %v8002_v50 = vpop.eup %8001  ;;  %v4009_v47 = vxor.u32 2147483648, %v8000_v21  ;;  %v4229_v12 = vor.u32 8388608, %v4228_v8  ;;  %v4325_v27 = vand.u32 2147483647, %v14510_v29  ;;  %v4234_v30 = vshrl.u32 %v4233_v54, 5 }
 0x3ed   : > { %v4006_v62 = vxor.u32 2147483648, %v8002_v50  ;;  %v4178_v2 = vadd.s32 536870912, %v4177_v63  ;;  %v4236_v9 = vsub.s32 32, %v4235_v4  ;;  %v4092_v31 = vor.u32 4788187, %v4091_v33 }
 0x3ee   : > { %v4010_v37 = vsel %vm4008_vm8, %v4009_v47, %v8002_v50  ;;  %v4095_v28 = vcvt.s32.f32 %v4088_v16  ;;  %v4328_v61 = vand.u32 2139095040, %v14510_v29  ;;  %v4238_v36 = vshll.u32 %v14417_v24, %v4235_v4 }
 0x3ef   : > { %v4007_v25 = vsel %vm4005_vm10, %v8000_v21, %v4006_v62  ;;  %v4179_v0 = vshrl.u32 %v4178_v2, 30  ;;  %v4093_v35 = vand.u32 2147483647, %v4092_v31  ;;  %v4241_v11 = vshll.u32 %v14411_v14, %v4235_v4 }
 0x3f0   : > { %v4011_v26 = vsel %vm4004_vm5, %v4007_v25, %v4010_v37  ;;  %v4239_v7 = vshrl.u32 %v14411_v14, %v4236_v9  ;;  %v4242_v40 = vshrl.u32 %v14412_v20, %v4236_v9  ;;  %v4244_v10 = vshll.u32 %v14412_v20, %v4235_v4 }
 0x3f1   : > { %v4012_v19 = vsel %vm4001_vm2, nan, %v4011_v26  ;;  %v4180_v55 = vshll.u32 %v4179_v0, 30  ;;  %v4096_v22 = vmul.f32 %v4095_v28, %v4093_v35  ;;  %v4245_v46 = vshrl.u32 %v14413_v15, %v4236_v9 }
 0x3f2   : > { %v4247_v6 = vshll.u32 %v14413_v15, %v4235_v4  ;;  %7166 = vst [vmem:[%s9691_s5 + $0x108] sm:$0xff] %v4012_v19  ;;  %v4248_v42 = vshrl.u32 %v14414_v23, %v4236_v9  ;;  %v4250_v17 = vshll.u32 %v14414_v23, %v4235_v4  ;;  %v12065_v5 = vshll.u32 %v4229_v12, 8 }
 0x3f3   : > { %v12061_v34 = vsub.s32 %v4177_v63, %v4180_v55  ;;  %v4097_v13 = vxor.u32 2147483648, %v4096_v22  ;;  %v4173_v44 = vadd.s32 %v12014_v58, %v12021_v39  ;;  %v4251_v32 = vshrl.u32 %v14415_v51, %v4236_v9 }
 0x3f4   : > { %v4329_v57 = vshrl.u32 %v4328_v61, 23  ;;  %vm4119_vm11 = vcmp.lt.s32.totalorder %v14504_v52, 0  ;;  %v4237_v59 = vshrl.u32 %v14417_v24, %v4236_v9  ;;  %v4240_v18 = vor.u32 %v4239_v7, %v4238_v36 }
 0x3f5   : > { %v4183_v3 = vsub.s32 0, %v12061_v34  ;;  %v4243_v38 = vor.u32 %v4242_v40, %v4241_v11  ;;  %v4098_v8 = vsel %vm4015_vm1, %v4097_v13, %v4096_v22  ;;  %v4246_v53 = vor.u32 %v4245_v46, %v4244_v10 }
 0x3f6   : > { %v4249_v41 = vor.u32 %v4248_v42, %v4247_v6  ;;  %vm4253_vm9 = vcmp.lt.s32.totalorder %v4234_v30, 1  ;;  %v4101_v58 = vsel %vm12031_vm4, %v14503_v56, %v4098_v8  ;;  %v4252_v1 = vor.u32 %v4251_v32, %v4250_v17 }
 0x3f7   : > { %v7429_v39 = vmin.u32 %v4183_v3, %v12061_v34  ;;  %vm4256_vm12 = vcmp.lt.s32.totalorder %v4234_v30, 4  ;;  %8003 = vcosq.f32 %v4101_v58  ;;  %vm4254_vm13 = vcmp.lt.s32.totalorder %v4234_v30, 2 }
 0x3f8   : > { %vm4255_vm14 = vcmp.lt.s32.totalorder %v4234_v30, 3  ;;  %v4258_v54 = vsel %vm4256_vm12, %v4246_v53, 2102212464  ;;  %8005 = vsinq.f32 %v4101_v58  ;;  %v4257_v63 = vsel %vm4253_vm9, %v4237_v59, %v4240_v18 }
 0x3f9   : > { %v4185_v21 = vclz %v7429_v39  ;;  %v4261_v4 = vsel %vm4253_vm9, %v4240_v18, %v4243_v38  ;;  %v4203_v50 = vsub.s32 4, %v4179_v0  ;;  %v4259_v47 = vsel %vm4255_vm14, %v4243_v38, %v4258_v54 }
 0x3fa   : > { %v4262_v16 = vsel %vm4256_vm12, %v4249_v41, 920167782  ;;  %v4265_v60 = vsel %vm4253_vm9, %v4243_v38, %v4246_v53  ;;  %v4266_v2 = vsel %vm4256_vm12, %v4252_v1, 1326507024  ;;  %v4332_v12 = vand.u32 8388607, %v4325_v27 }
 0x3fb   : > { %v7430_v33 = vadd.s32 4294967294, %v4185_v21  ;;  %v4263_v62 = vsel %vm4255_vm14, %v4246_v53, %v4262_v16  ;;  %v4260_v9 = vsel %vm4254_vm13, %v4257_v63, %v4259_v47  ;;  %v4267_v31 = vsel %vm4255_vm14, %v4249_v41, %v4266_v2 }
 0x3fc   : > { %v4264_v37 = vsel %vm4254_vm13, %v4261_v4, %v4263_v62  ;;  %v7436_v28 = vadd.s32 4294967169, %v4329_v57  ;;  %v4268_v25 = vsel %vm4254_vm13, %v4265_v60, %v4267_v31  ;;  %v4204_v36 = vsel %vm4119_vm11, %v4203_v50, %v4179_v0 }
 0x3fd   : > { %vm7431_vm15 = vcmp.lt.s32.totalorder %v7430_v33, 0  ;;  %v12091_v61 = vmul.u32.u64.low %v12065_v5, %v4264_v37  ;;  %v12092_v26 = vmul.u32.u64.high %v12065_v5, %v4264_v37, %v12091_v61  ;;  %v4107_v30 = vand.u32 3, %v12045_v45 }
 0x3fe   : > { %v4188_v35 = vsel %vm7431_vm15, 0, %v7430_v33  ;;  %v12098_v11 = vmul.u32.u64.low %v12065_v5, %v4268_v25  ;;  %v12099_v19 = vmul.u32.u64.high %v12065_v5, %v4268_v25, %v12098_v11  ;;  %v4335_v22 = vadd.s32 1, %v7436_v28 }
 0x3ff   : > { %v4189_v55 = vsub.s32 32, %v4188_v35  ;;  %v4190_v7 = vshll.u32 %v12061_v34, %v4188_v35  ;;  %v4193_v40 = vsub.s32 4294967266, %v4188_v35  ;;  %vm12105_vm0 = vcmp.le.f32.partialorder %v4117_v49, 0.7853982 }
 0x400   : > { %v4276_v46 = vmul.u32 %v12065_v5, %v4260_v9  ;;  %v4279_v42 = vadd.s32 1, %v12092_v26  ;;  %vm4336_vm1 = vcmp.gt.s32.totalorder %v4335_v22, 0  ;;  %v4206_v34 = vsel %vm12105_vm0, 0, %v4204_v36 }
 0x401   : > { %v4191_v0 = vshrl.u32 %v4173_v44, %v4189_v55  ;;  %v4194_v6 = vadd.s32 127, %v4193_v40  ;;  %vm4278_vm2 = vc.u32 %v12099_v19, %v12091_v61  ;;  %v4333_v45 = vor.u32 8388608, %v4332_v12 }
 0x402   : > { %v4337_v17 = vsel %vm4336_vm1, %v4335_v22, 0  ;;  %v4280_v32 = vsel %vm4278_vm2, %v4279_v42, %v12092_v26  ;;  %vm4105_vm3 = vweird.f32 %v14503_v56  ;;  %vm4108_vm5 = vcmp.lt.s32.totalorder %v4107_v30, 2 }
 0x403   : > { %v4192_v13 = vor.u32 %v4191_v0, %v4190_v7  ;;  %v4195_v49 = vshll.u32 %v4194_v6, 23  ;;  %v12116_v57 = vshrl.u32 %v4337_v17, 5  ;;  %v4281_v5 = vadd.s32 %v4280_v32, %v4276_v46 }
 0x404   : > { %v4339_v44 = vand.u32 31, %v4337_v17  ;;  %v8004_v3 = vpop.eup %8003  ;;  %vm4109_vm4 = vcmp.eq.s32.totalorder %v4107_v30, 0  ;;  %vm4112_vm6 = vcmp.eq.s32.totalorder %v4107_v30, 2  ;;  %v4210_v53 = vadd.s32 3, %v4206_v34  ;;  %v14515_v34 = vld [vmem:[#allocation38_spill] sm:$0xff] }
 0x405   : > { %v4196_v59 = vor.u32 4788187, %v4195_v49  ;;  %v4199_v18 = vcvt.s32.f32 %v4192_v13  ;;  %v8006_v38 = vpop.eup %8005  ;;  %v4113_v8 = vxor.u32 2147483648, %v8004_v3  ;;  %v4282_v41 = vadd.s32 536870912, %v4281_v5 }
 0x406   : > { %v4340_v58 = vsub.s32 32, %v4339_v44  ;;  %v4110_v39 = vxor.u32 2147483648, %v8006_v38  ;;  %vm4357_vm7 = vcmp.lt.s32.totalorder %v12116_v57, 1  ;;  %v12120_v54 = vshll.u32 %v4333_v45, 8 }
 0x407   : > { %v4197_v1 = vand.u32 2147483647, %v4196_v59  ;;  %v4114_v21 = vsel %vm4112_vm6, %v4113_v8, %v8006_v38  ;;  %v4283_v63 = vshrl.u32 %v4282_v41, 30  ;;  %v4342_v4 = vshll.u32 %v14417_v24, %v4339_v44 }
 0x408   : > { %v4343_v50 = vshrl.u32 %v14411_v14, %v4340_v58  ;;  %v4111_v47 = vsel %vm4109_vm4, %v8004_v3, %v4110_v39  ;;  %vm4223_vm10 = vcmp.lt.s32.totalorder %v14507_v43, 0  ;;  %v4345_v60 = vshll.u32 %v14411_v14, %v4339_v44 }
 0x409   : > { %v4200_v16 = vmul.f32 %v4199_v18, %v4197_v1  ;;  %v4346_v33 = vshrl.u32 %v14412_v20, %v4340_v58  ;;  %v4115_v62 = vsel %vm4108_vm5, %v4111_v47, %v4114_v21  ;;  %v4284_v2 = vshll.u32 %v4283_v63, 30 }
 0x40a   : > { %v4348_v12 = vshll.u32 %v14412_v20, %v4339_v44  ;;  %v4349_v9 = vshrl.u32 %v14413_v15, %v4340_v58  ;;  %v4116_v37 = vsel %vm4105_vm3, nan, %v4115_v62  ;;  %v4307_v28 = vsub.s32 4, %v4283_v63 }
 0x40b   : > { %v4201_v31 = vxor.u32 2147483648, %v4200_v16  ;;  %v4341_v25 = vshrl.u32 %v14417_v24, %v4340_v58  ;;  %v12134_v26 = vsub.s32 %v4281_v5, %v4284_v2  ;;  %v4344_v35 = vor.u32 %v4343_v50, %v4342_v4  ;;  %7167 = vst [vmem:[%s9691_s5 + $0x110] sm:$0xff] %v4116_v37 }
 0x40c   : > { %v4351_v36 = vshll.u32 %v14413_v15, %v4339_v44  ;;  %v4352_v11 = vshrl.u32 %v14414_v23, %v4340_v58  ;;  %v4347_v7 = vor.u32 %v4346_v33, %v4345_v60  ;;  %v4354_v40 = vshll.u32 %v14414_v23, %v4339_v44 }
 0x40d   : > { %v4202_v55 = vsel %vm4119_vm11, %v4201_v31, %v4200_v16  ;;  %v4355_v56 = vshrl.u32 %v14415_v51, %v4340_v58  ;;  %vm12148_vm8 = vcmp.le.f32.partialorder %v4221_v48, 0.7853982  ;;  %v4287_v46 = vsub.s32 0, %v12134_v26 }
 0x40e   : > { %v4205_v22 = vsel %vm12105_vm0, %v14504_v52, %v4202_v55  ;;  %v4350_v0 = vor.u32 %v4349_v9, %v4348_v12  ;;  %v4353_v6 = vor.u32 %v4352_v11, %v4351_v36  ;;  %vm4360_vm11 = vcmp.lt.s32.totalorder %v12116_v57, 4 }
 0x40f   : > { %8007 = vcosq.f32 %v4205_v22  ;;  %v4356_v42 = vor.u32 %v4355_v56, %v4354_v40  ;;  %v4432_v45 = vand.u32 2139095040, %v14515_v34  ;;  %v7433_v10 = vmin.u32 %v4287_v46, %v12134_v26 }
 0x410   : > { %8009 = vsinq.f32 %v4205_v22  ;;  %vm4358_vm9 = vcmp.lt.s32.totalorder %v12116_v57, 2  ;;  %vm4359_vm12 = vcmp.lt.s32.totalorder %v12116_v57, 3  ;;  %v4361_v48 = vsel %vm4357_vm7, %v4341_v25, %v4344_v35 }
 0x411   : > { %v4362_v17 = vsel %vm4360_vm11, %v4350_v0, 2102212464  ;;  %v4365_v13 = vsel %vm4357_vm7, %v4344_v35, %v4347_v7  ;;  %v4366_v49 = vsel %vm4360_vm11, %v4353_v6, 920167782  ;;  %v4211_v32 = vand.u32 3, %v4210_v53 }
 0x412   : > { %v4289_v5 = vclz %v7433_v10  ;;  %v4308_v44 = vsel %vm4223_vm10, %v4307_v28, %v4283_v63  ;;  %v4369_v3 = vsel %vm4357_vm7, %v4347_v7, %v4350_v0  ;;  %v4363_v59 = vsel %vm4359_vm12, %v4347_v7, %v4362_v17 }
 0x413   : > { %v4367_v18 = vsel %vm4359_vm12, %v4350_v0, %v4366_v49  ;;  %v4370_v38 = vsel %vm4360_vm11, %v4356_v42, 1326507024  ;;  %v4433_v8 = vshrl.u32 %v4432_v45, 23  ;;  %v4364_v53 = vsel %vm4358_vm9, %v4361_v48, %v4363_v59 }
 0x414   : > { %v7434_v41 = vadd.s32 4294967294, %v4289_v5  ;;  %v4368_v58 = vsel %vm4358_vm9, %v4365_v13, %v4367_v18  ;;  %v4371_v39 = vsel %vm4359_vm12, %v4353_v6, %v4370_v38  ;;  %v4277_v1 = vadd.s32 %v12091_v61, %v12099_v19 }
 0x415   : > { %v4372_v21 = vsel %vm4358_vm9, %v4369_v3, %v4371_v39  ;;  %v12187_v63 = vmul.u32.u64.low %v12120_v54, %v4368_v58  ;;  %v12188_v4 = vmul.u32.u64.high %v12120_v54, %v4368_v58, %v12187_v63  ;;  %v7440_v16 = vadd.s32 4294967169, %v4433_v8 }
 0x416   : > { %vm7435_vm13 = vcmp.lt.s32.totalorder %v7434_v41, 0  ;;  %v12192_v50 = vmul.u32.u64.low %v12120_v54, %v4372_v21  ;;  %v12193_v47 = vmul.u32.u64.high %v12120_v54, %v4372_v21, %v12192_v50  ;;  %v4310_v33 = vsel %vm12148_vm8, 0, %v4308_v44 }
 0x417   : > { %v4292_v60 = vsel %vm7435_vm13, 0, %v7434_v41  ;;  %v4380_v61 = vmul.u32 %v12120_v54, %v4364_v53  ;;  %v4429_v19 = vand.u32 2147483647, %v14515_v34  ;;  %v4439_v12 = vadd.s32 1, %v7440_v16 }
 0x418   : > { %v4293_v57 = vsub.s32 32, %v4292_v60  ;;  %v4294_v62 = vshll.u32 %v12134_v26, %v4292_v60  ;;  %v4297_v2 = vsub.s32 4294967266, %v4292_v60  ;;  %vm4209_vm14 = vweird.f32 %v14504_v52 }
 0x419   : > { %v4383_v9 = vadd.s32 1, %v12188_v4  ;;  %vm4216_vm15 = vcmp.eq.s32.totalorder %v4211_v32, 2  ;;  %vm4382_vm0 = vc.u32 %v12193_v47, %v12187_v63  ;;  %v4314_v28 = vadd.s32 3, %v4310_v33 }
 0x41a   : > { %v4295_v37 = vshrl.u32 %v4277_v1, %v4293_v57  ;;  %v4298_v31 = vadd.s32 127, %v4297_v2  ;;  %v4436_v25 = vand.u32 8388607, %v4429_v19  ;;  %vm4440_vm1 = vcmp.gt.s32.totalorder %v4439_v12, 0 }
 0x41b   : > { %v4384_v54 = vsel %vm4382_vm0, %v4383_v9, %v12188_v4  ;;  %v4441_v55 = vsel %vm4440_vm1, %v4439_v12, 0  ;;  %vm4212_vm2 = vcmp.lt.s32.totalorder %v4211_v32, 2  ;;  %vm4213_vm3 = vcmp.eq.s32.totalorder %v4211_v32, 0  ;;  %v14516_v32 = vld [vmem:[#allocation39_spill] sm:$0xff] }
 0x41c   : > { %v8008_v26 = vpop.eup %8007  ;;  %v4296_v35 = vor.u32 %v4295_v37, %v4294_v62  ;;  %v4299_v36 = vshll.u32 %v4298_v31, 23  ;;  %v4385_v11 = vadd.s32 %v4384_v54, %v4380_v61  ;;  %v4443_v56 = vand.u32 31, %v4441_v55 }
 0x41d   : > { %v8010_v7 = vpop.eup %8009  ;;  %v4217_v40 = vxor.u32 2147483648, %v8008_v26  ;;  %v12208_v45 = vand.u32 3, %v4314_v28  ;;  %v4437_v10 = vor.u32 8388608, %v4436_v25  ;;  %v4442_v58 = vshrl.u32 %v4441_v55, 5 }
 0x41e   : > { %v4214_v22 = vxor.u32 2147483648, %v8010_v7  ;;  %v4300_v46 = vor.u32 4788187, %v4299_v36  ;;  %v4303_v0 = vcvt.s32.f32 %v4296_v35  ;;  %v4386_v6 = vadd.s32 536870912, %v4385_v11 }
 0x41f   : > { %v4218_v42 = vsel %vm4216_vm15, %v4217_v40, %v8010_v7  ;;  %v4444_v48 = vsub.s32 32, %v4443_v56  ;;  %v4446_v5 = vshll.u32 %v14417_v24, %v4443_v56  ;;  %v4449_v59 = vshll.u32 %v14411_v14, %v4443_v56 }
 0x420   : > { %v4215_v17 = vsel %vm4213_vm3, %v8008_v26, %v4214_v22  ;;  %v4301_v13 = vand.u32 2147483647, %v4300_v46  ;;  %v4387_v49 = vshrl.u32 %v4386_v6, 30  ;;  %v4452_v18 = vshll.u32 %v14412_v20, %v4443_v56 }
 0x421   : > { %v4219_v44 = vsel %vm4212_vm2, %v4215_v17, %v4218_v42  ;;  %v4447_v3 = vshrl.u32 %v14411_v14, %v4444_v48  ;;  %v4450_v53 = vshrl.u32 %v14412_v20, %v4444_v48  ;;  %v4453_v39 = vshrl.u32 %v14413_v15, %v4444_v48 }
 0x422   : > { %v4220_v38 = vsel %vm4209_vm14, nan, %v4219_v44  ;;  %v4304_v8 = vmul.f32 %v4303_v0, %v4301_v13  ;;  %v4388_v41 = vshll.u32 %v4387_v49, 30  ;;  %v4455_v1 = vshll.u32 %v14413_v15, %v4443_v56 }
 0x423   : > { %v4533_v21 = vand.u32 2147483647, %v14516_v32  ;;  %7168 = vst [vmem:[%s9691_s5 + $0x118] sm:$0xff] %v4220_v38  ;;  %v4456_v16 = vshrl.u32 %v14414_v23, %v4444_v48  ;;  %v4536_v52 = vand.u32 2139095040, %v14516_v32  ;;  %vm4327_vm5 = vcmp.lt.s32.totalorder %v14510_v29, 0 }
 0x424   : > { %v4305_v4 = vxor.u32 2147483648, %v4304_v8  ;;  %v12222_v50 = vsub.s32 %v4385_v11, %v4388_v41  ;;  %v4445_v60 = vshrl.u32 %v14417_v24, %v4444_v48  ;;  %v4448_v33 = vor.u32 %v4447_v3, %v4446_v5 }
 0x425   : > { %v4458_v61 = vshll.u32 %v14414_v23, %v4443_v56  ;;  %v4459_v57 = vshrl.u32 %v14415_v51, %v4444_v48  ;;  %v4451_v12 = vor.u32 %v4450_v53, %v4449_v59  ;;  %v4454_v9 = vor.u32 %v4453_v39, %v4452_v18 }
 0x426   : > { %v4306_v62 = vsel %vm4223_vm10, %v4305_v4, %v4304_v8  ;;  %v4391_v2 = vsub.s32 0, %v12222_v50  ;;  %v4457_v31 = vor.u32 %v4456_v16, %v4455_v1  ;;  %vm4461_vm4 = vcmp.lt.s32.totalorder %v4442_v58, 1 }
 0x427   : > { %v4309_v37 = vsel %vm12148_vm8, %v14507_v43, %v4306_v62  ;;  %v4460_v28 = vor.u32 %v4459_v57, %v4458_v61  ;;  %vm12238_vm6 = vcmp.le.f32.partialorder %v4325_v27, 0.7853982  ;;  %v4477_v26 = vshll.u32 %v4437_v10, 8 }
 0x428   : > { %8011 = vcosq.f32 %v4309_v37  ;;  %v7437_v25 = vmin.u32 %v4391_v2, %v12222_v50  ;;  %v4537_v35 = vshrl.u32 %v4536_v52, 23  ;;  %v4411_v36 = vsub.s32 4, %v4387_v49 }
 0x429   : > { %8013 = vsinq.f32 %v4309_v37  ;;  %vm4463_vm7 = vcmp.lt.s32.totalorder %v4442_v58, 3  ;;  %vm4464_vm10 = vcmp.lt.s32.totalorder %v4442_v58, 4  ;;  %vm4462_vm8 = vcmp.lt.s32.totalorder %v4442_v58, 2 }
 0x42a   : > { %v4393_v30 = vclz %v7437_v25  ;;  %v4465_v11 = vsel %vm4461_vm4, %v4445_v60, %v4448_v33  ;;  %v4469_v55 = vsel %vm4461_vm4, %v4448_v33, %v4451_v12  ;;  %v4466_v7 = vsel %vm4464_vm10, %v4454_v9, 2102212464 }
 0x42b   : > { %v4470_v40 = vsel %vm4464_vm10, %v4457_v31, 920167782  ;;  %v4473_v27 = vsel %vm4461_vm4, %v4451_v12, %v4454_v9  ;;  %v4474_v56 = vsel %vm4464_vm10, %v4460_v28, 1326507024  ;;  %v4467_v46 = vsel %vm4463_vm7, %v4451_v12, %v4466_v7 }
 0x42c   : > { %v7438_v22 = vadd.s32 4294967294, %v4393_v30  ;;  %v4471_v0 = vsel %vm4463_vm7, %v4454_v9, %v4470_v40  ;;  %v4475_v6 = vsel %vm4463_vm7, %v4457_v31, %v4474_v56  ;;  %v4381_v42 = vadd.s32 %v12187_v63, %v12193_v47 }
 0x42d   : > { %v4472_v10 = vsel %vm4462_vm8, %v4469_v55, %v4471_v0  ;;  %v4476_v48 = vsel %vm4462_vm8, %v4473_v27, %v4475_v6  ;;  %v7444_v17 = vadd.s32 4294967169, %v4537_v35  ;;  %v4412_v13 = vsel %vm4327_vm5, %v4411_v36, %v4387_v49 }
 0x42e   : > { %vm7439_vm11 = vcmp.lt.s32.totalorder %v7438_v22, 0  ;;  %v12252_v5 = vmul.u32.u64.low %v4477_v26, %v4476_v48  ;;  %v12253_v44 = vmul.u32.u64.high %v4477_v26, %v4476_v48, %v12252_v5  ;;  %v4468_v59 = vsel %vm4462_vm8, %v4465_v11, %v4467_v46 }
 0x42f   : > { %v4396_v3 = vsel %vm7439_vm11, 0, %v7438_v22  ;;  %v12256_v18 = vmul.u32.u64.low %v4477_v26, %v4472_v10  ;;  %v12257_v38 = vmul.u32.u64.high %v4477_v26, %v4472_v10, %v12256_v18  ;;  %v4543_v41 = vadd.s32 1, %v7444_v17 }
 0x430   : > { %v4397_v63 = vsub.s32 32, %v4396_v3  ;;  %v4398_v47 = vshll.u32 %v12222_v50, %v4396_v3  ;;  %v4401_v8 = vsub.s32 4294967266, %v4396_v3  ;;  %vm4313_vm9 = vweird.f32 %v14507_v43  ;;  %v14519_v3 = vld [vmem:[#allocation40_spill] sm:$0xff] }
 0x431   : > { %v4414_v49 = vsel %vm12238_vm6, 0, %v4412_v13  ;;  %v4484_v1 = vmul.u32 %v4477_v26, %v4468_v59  ;;  %vm4486_vm12 = vc.u32 %v12253_v44, %v12256_v18  ;;  %vm4316_vm13 = vcmp.lt.s32.totalorder %v12208_v45, 2 }
 0x432   : > { %v4399_v53 = vshrl.u32 %v4381_v42, %v4397_v63  ;;  %v4402_v39 = vadd.s32 127, %v4401_v8  ;;  %v4487_v58 = vadd.s32 1, %v12257_v38  ;;  %v4540_v4 = vand.u32 8388607, %v4533_v21 }
 0x433   : > { %vm4544_vm14 = vcmp.gt.s32.totalorder %v4543_v41, 0  ;;  %vm4317_vm15 = vcmp.eq.s32.totalorder %v12208_v45, 0  ;;  %vm4320_vm0 = vcmp.eq.s32.totalorder %v12208_v45, 2  ;;  %v4418_v33 = vadd.s32 3, %v4414_v49 }
 0x434   : > { %v4400_v50 = vor.u32 %v4399_v53, %v4398_v47  ;;  %v4403_v16 = vshll.u32 %v4402_v39, 23  ;;  %v4545_v52 = vsel %vm4544_vm14, %v4543_v41, 0  ;;  %v4488_v61 = vsel %vm4486_vm12, %v4487_v58, %v12257_v38 }
 0x435   : > { %v8012_v60 = vpop.eup %8011  ;;  %v4547_v57 = vand.u32 31, %v4545_v52  ;;  %v4489_v37 = vadd.s32 %v4488_v61, %v4484_v1  ;;  %v4541_v28 = vor.u32 8388608, %v4540_v4  ;;  %v4546_v42 = vshrl.u32 %v4545_v52, 5 }
 0x436   : > { %v8014_v62 = vpop.eup %8013  ;;  %v4321_v2 = vxor.u32 2147483648, %v8012_v60  ;;  %v4404_v12 = vor.u32 4788187, %v4403_v16  ;;  %v4407_v9 = vcvt.s32.f32 %v4400_v50  ;;  %v4640_v59 = vand.u32 2139095040, %v14519_v3 }
 0x437   : > { %v4318_v31 = vxor.u32 2147483648, %v8014_v62  ;;  %v4548_v25 = vsub.s32 32, %v4547_v57  ;;  %v4550_v26 = vshll.u32 %v14417_v24, %v4547_v57  ;;  %v4490_v30 = vadd.s32 536870912, %v4489_v37 }
 0x438   : > { %v4322_v35 = vsel %vm4320_vm0, %v4321_v2, %v8014_v62  ;;  %v4405_v36 = vand.u32 2147483647, %v4404_v12  ;;  %v4553_v11 = vshll.u32 %v14411_v14, %v4547_v57  ;;  %v4556_v27 = vshll.u32 %v14412_v20, %v4547_v57 }
 0x439   : > { %v4319_v55 = vsel %vm4317_vm15, %v8012_v60, %v4318_v31  ;;  %v4551_v7 = vshrl.u32 %v14411_v14, %v4548_v25  ;;  %v4554_v40 = vshrl.u32 %v14412_v20, %v4548_v25  ;;  %v4491_v46 = vshrl.u32 %v4490_v30, 30 }
 0x43a   : > { %v4323_v56 = vsel %vm4316_vm13, %v4319_v55, %v4322_v35  ;;  %v4408_v22 = vmul.f32 %v4407_v9, %v4405_v36  ;;  %v4557_v0 = vshrl.u32 %v14413_v15, %v4548_v25  ;;  %v4559_v10 = vshll.u32 %v14413_v15, %v4547_v57 }
 0x43b   : > { %v4324_v6 = vsel %vm4313_vm9, nan, %v4323_v56  ;;  %v12286_v48 = vshll.u32 %v4541_v28, 8  ;;  %v4492_v13 = vshll.u32 %v4491_v46, 30  ;;  %v4549_v5 = vshrl.u32 %v14417_v24, %v4548_v25 }
 0x43c   : > { %v4409_v17 = vxor.u32 2147483648, %v4408_v22  ;;  %7169 = vst [vmem:[%s9691_s5 + $0x120] sm:$0xff] %v4324_v6  ;;  %v4552_v45 = vor.u32 %v4551_v7, %v4550_v26  ;;  %v4560_v38 = vshrl.u32 %v14414_v23, %v4548_v25  ;;  %v4562_v63 = vshll.u32 %v14414_v23, %v4547_v57 }
 0x43d   : > { %v4563_v43 = vshrl.u32 %v14415_v51, %v4548_v25  ;;  %v12296_v8 = vsub.s32 %v4489_v37, %v4492_v13  ;;  %v4555_v41 = vor.u32 %v4554_v40, %v4553_v11  ;;  %v4558_v49 = vor.u32 %v4557_v0, %v4556_v27 }
 0x43e   : > { %v4410_v47 = vsel %vm4327_vm5, %v4409_v17, %v4408_v22  ;;  %v4561_v39 = vor.u32 %v4560_v38, %v4559_v10  ;;  %vm4565_vm1 = vcmp.lt.s32.totalorder %v4546_v42, 1  ;;  %vm4567_vm2 = vcmp.lt.s32.totalorder %v4546_v42, 3 }
 0x43f   : > { %v4413_v53 = vsel %vm12238_vm6, %v14510_v29, %v4410_v47  ;;  %v4564_v1 = vor.u32 %v4563_v43, %v4562_v63  ;;  %v4495_v58 = vsub.s32 0, %v12296_v8  ;;  %v4641_v4 = vshrl.u32 %v4640_v59, 23 }
 0x440   : > { %8015 = vcosq.f32 %v4413_v53  ;;  %vm4566_vm3 = vcmp.lt.s32.totalorder %v4546_v42, 2  ;;  %vm4568_vm4 = vcmp.lt.s32.totalorder %v4546_v42, 4  ;;  %v4569_v50 = vsel %vm4565_vm1, %v4549_v5, %v4552_v45 }
 0x441   : > { %8017 = vsinq.f32 %v4413_v53  ;;  %v7441_v16 = vmin.u32 %v4495_v58, %v12296_v8  ;;  %v4570_v52 = vsel %vm4568_vm4, %v4558_v49, 2102212464  ;;  %v4573_v60 = vsel %vm4565_vm1, %v4552_v45, %v4555_v41 }
 0x442   : > { %v4574_v61 = vsel %vm4568_vm4, %v4561_v39, 920167782  ;;  %v4571_v54 = vsel %vm4567_vm2, %v4555_v41, %v4570_v52  ;;  %v4577_v62 = vsel %vm4565_vm1, %v4555_v41, %v4558_v49  ;;  %v4578_v2 = vsel %vm4568_vm4, %v4564_v1, 1326507024 }
 0x443   : > { %v4575_v57 = vsel %vm4567_vm2, %v4558_v49, %v4574_v61  ;;  %v4419_v12 = vand.u32 3, %v4418_v33  ;;  %v4497_v9 = vclz %v7441_v16  ;;  %v4515_v37 = vsub.s32 4, %v4491_v46  ;;  %v14522_v16 = vld [vmem:[#allocation25_spill] sm:$0xff] }
 0x444   : > { %v4572_v31 = vsel %vm4566_vm3, %v4569_v50, %v4571_v54  ;;  %v4576_v28 = vsel %vm4566_vm3, %v4573_v60, %v4575_v57  ;;  %v4579_v25 = vsel %vm4567_vm2, %v4561_v39, %v4578_v2  ;;  %v7448_v26 = vadd.s32 4294967169, %v4641_v4 }
 0x445   : > { %v7442_v35 = vadd.s32 4294967294, %v4497_v9  ;;  %v4580_v36 = vsel %vm4566_vm3, %v4577_v62, %v4579_v25  ;;  %v12310_v30 = vmul.u32.u64.low %v12286_v48, %v4576_v28  ;;  %v12311_v11 = vmul.u32.u64.high %v12286_v48, %v4576_v28, %v12310_v30 }
 0x446   : > { %vm4431_vm5 = vcmp.lt.s32.totalorder %v14515_v34, 0  ;;  %v12316_v33 = vmul.u32.u64.low %v12286_v48, %v4580_v36  ;;  %v12317_v55 = vmul.u32.u64.high %v12286_v48, %v4580_v36, %v12316_v33  ;;  %v4637_v7 = vand.u32 2147483647, %v14519_v3 }
 0x447   : > { %vm4417_vm6 = vweird.f32 %v14510_v29  ;;  %v4485_v40 = vadd.s32 %v12256_v18, %v12253_v44  ;;  %vm7443_vm7 = vcmp.lt.s32.totalorder %v7442_v35, 0  ;;  %v4516_v27 = vsel %vm4431_vm5, %v4515_v37, %v4491_v46 }
 0x448   : > { %v4647_v56 = vadd.s32 1, %v7448_v26  ;;  %vm4420_vm10 = vcmp.lt.s32.totalorder %v4419_v12, 2  ;;  %vm12327_vm8 = vcmp.le.f32.partialorder %v4429_v19, 0.7853982  ;;  %v4500_v0 = vsel %vm7443_vm7, 0, %v7442_v35 }
 0x449   : > { %v4588_v6 = vmul.u32 %v12286_v48, %v4572_v31  ;;  %v4501_v42 = vsub.s32 32, %v4500_v0  ;;  %v4502_v10 = vshll.u32 %v12296_v8, %v4500_v0  ;;  %v4505_v17 = vsub.s32 4294967266, %v4500_v0 }
 0x44a   : > { %v4591_v44 = vadd.s32 1, %v12311_v11  ;;  %v4518_v18 = vsel %vm12327_vm8, 0, %v4516_v27  ;;  %vm4590_vm11 = vc.u32 %v12317_v55, %v12310_v30  ;;  %v4644_v19 = vand.u32 8388607, %v4637_v7 }
 0x44b   : > { %vm4648_vm9 = vcmp.gt.s32.totalorder %v4647_v56, 0  ;;  %v4503_v46 = vshrl.u32 %v4485_v40, %v4501_v42  ;;  %v4506_v13 = vadd.s32 127, %v4505_v17  ;;  %vm4421_vm12 = vcmp.eq.s32.totalorder %v4419_v12, 0 }
 0x44c   : > { %v4592_v48 = vsel %vm4590_vm11, %v4591_v44, %v12311_v11  ;;  %v4649_v5 = vsel %vm4648_vm9, %v4647_v56, 0  ;;  %vm4424_vm13 = vcmp.eq.s32.totalorder %v4419_v12, 2  ;;  %v12341_v41 = vadd.s32 3, %v4518_v18 }
 0x44d   : > { %v8016_v59 = vpop.eup %8015  ;;  %v4593_v45 = vadd.s32 %v4592_v48, %v4588_v6  ;;  %v4651_v38 = vand.u32 31, %v4649_v5  ;;  %v4504_v47 = vor.u32 %v4503_v46, %v4502_v10  ;;  %v4507_v8 = vshll.u32 %v4506_v13, 23 }
 0x44e   : > { %v8018_v63 = vpop.eup %8017  ;;  %v4425_v43 = vxor.u32 2147483648, %v8016_v59  ;;  %v4645_v39 = vor.u32 8388608, %v4644_v19  ;;  %v4741_v52 = vand.u32 2147483647, %v14522_v16  ;;  %v4650_v54 = vshrl.u32 %v4649_v5, 5 }
 0x44f   : > { %v4422_v49 = vxor.u32 2147483648, %v8018_v63  ;;  %v4594_v53 = vadd.s32 536870912, %v4593_v45  ;;  %v4652_v1 = vsub.s32 32, %v4651_v38  ;;  %v4508_v4 = vor.u32 4788187, %v4507_v8 }
 0x450   : > { %v4426_v58 = vsel %vm4424_vm13, %v4425_v43, %v8018_v63  ;;  %v4511_v50 = vcvt.s32.f32 %v4504_v47  ;;  %v4744_v57 = vand.u32 2139095040, %v14522_v16  ;;  %v4654_v9 = vshll.u32 %v14417_v24, %v4651_v38 }
 0x451   : > { %v4423_v60 = vsel %vm4421_vm12, %v8016_v59, %v4422_v49  ;;  %v4595_v61 = vshrl.u32 %v4594_v53, 30  ;;  %v4509_v2 = vand.u32 2147483647, %v4508_v4  ;;  %v4657_v37 = vshll.u32 %v14411_v14, %v4651_v38 }
 0x452   : > { %v4427_v62 = vsel %vm4420_vm10, %v4423_v60, %v4426_v58  ;;  %v4655_v25 = vshrl.u32 %v14411_v14, %v4652_v1  ;;  %v4658_v26 = vshrl.u32 %v14412_v20, %v4652_v1  ;;  %v4660_v36 = vshll.u32 %v14412_v20, %v4651_v38 }
 0x453   : > { %v4428_v31 = vsel %vm4417_vm6, nan, %v4427_v62  ;;  %v4596_v28 = vshll.u32 %v4595_v61, 30  ;;  %v4512_v35 = vmul.f32 %v4511_v50, %v4509_v2  ;;  %v4661_v11 = vshrl.u32 %v14413_v15, %v4652_v1 }
 0x454   : > { %v4663_v12 = vshll.u32 %v14413_v15, %v4651_v38  ;;  %7170 = vst [vmem:[%s9691_s5 + $0x128] sm:$0xff] %v4428_v31  ;;  %v4664_v40 = vshrl.u32 %v14414_v23, %v4652_v1  ;;  %v4666_v29 = vshll.u32 %v14414_v23, %v4651_v38  ;;  %v12361_v27 = vshll.u32 %v4645_v39, 8 }
 0x455   : > { %v12357_v33 = vsub.s32 %v4593_v45, %v4596_v28  ;;  %v4513_v56 = vxor.u32 2147483648, %v4512_v35  ;;  %v4589_v0 = vadd.s32 %v12310_v30, %v12317_v55  ;;  %v4667_v6 = vshrl.u32 %v14415_v51, %v4652_v1 }
 0x456   : > { %v4745_v42 = vshrl.u32 %v4744_v57, 23  ;;  %vm4535_vm14 = vcmp.lt.s32.totalorder %v14516_v32, 0  ;;  %v4653_v17 = vshrl.u32 %v14417_v24, %v4652_v1  ;;  %v4656_v44 = vor.u32 %v4655_v25, %v4654_v9 }
 0x457   : > { %v4599_v10 = vsub.s32 0, %v12357_v33  ;;  %v4659_v18 = vor.u32 %v4658_v26, %v4657_v37  ;;  %v4514_v19 = vsel %vm4431_vm5, %v4513_v56, %v4512_v35  ;;  %v4662_v46 = vor.u32 %v4661_v11, %v4660_v36 }
 0x458   : > { %v4665_v13 = vor.u32 %v4664_v40, %v4663_v12  ;;  %vm4669_vm15 = vcmp.lt.s32.totalorder %v4650_v54, 1  ;;  %v4517_v30 = vsel %vm12327_vm8, %v14515_v34, %v4514_v19  ;;  %v4668_v48 = vor.u32 %v4667_v6, %v4666_v29 }
 0x459   : > { %v7445_v55 = vmin.u32 %v4599_v10, %v12357_v33  ;;  %vm4672_vm0 = vcmp.lt.s32.totalorder %v4650_v54, 4  ;;  %8019 = vcosq.f32 %v4517_v30  ;;  %vm4670_vm1 = vcmp.lt.s32.totalorder %v4650_v54, 2 }
 0x45a   : > { %vm4671_vm2 = vcmp.lt.s32.totalorder %v4650_v54, 3  ;;  %v4674_v5 = vsel %vm4672_vm0, %v4662_v46, 2102212464  ;;  %8021 = vsinq.f32 %v4517_v30  ;;  %v4673_v45 = vsel %vm4669_vm15, %v4653_v17, %v4656_v44 }
 0x45b   : > { %v4601_v59 = vclz %v7445_v55  ;;  %v4677_v38 = vsel %vm4669_vm15, %v4656_v44, %v4659_v18  ;;  %v4619_v63 = vsub.s32 4, %v4595_v61  ;;  %v4675_v43 = vsel %vm4671_vm2, %v4659_v18, %v4674_v5 }
 0x45c   : > { %v4678_v47 = vsel %vm4672_vm0, %v4665_v13, 920167782  ;;  %v4681_v22 = vsel %vm4669_vm15, %v4659_v18, %v4662_v46  ;;  %v4682_v53 = vsel %vm4672_vm0, %v4668_v48, 1326507024  ;;  %v4748_v39 = vand.u32 8388607, %v4741_v52 }
 0x45d   : > { %v7446_v8 = vadd.s32 4294967294, %v4601_v59  ;;  %v4679_v49 = vsel %vm4671_vm2, %v4662_v46, %v4678_v47  ;;  %v4676_v1 = vsel %vm4670_vm1, %v4673_v45, %v4675_v43  ;;  %v4683_v4 = vsel %vm4671_vm2, %v4665_v13, %v4682_v53 }
 0x45e   : > { %v4680_v58 = vsel %vm4670_vm1, %v4677_v38, %v4679_v49  ;;  %v7452_v50 = vadd.s32 4294967169, %v4745_v42  ;;  %v4684_v60 = vsel %vm4670_vm1, %v4681_v22, %v4683_v4  ;;  %v4620_v9 = vsel %vm4535_vm14, %v4619_v63, %v4595_v61 }
 0x45f   : > { %vm7447_vm3 = vcmp.lt.s32.totalorder %v7446_v8, 0  ;;  %v12387_v57 = vmul.u32.u64.low %v12361_v27, %v4680_v58  ;;  %v12388_v62 = vmul.u32.u64.high %v12361_v27, %v4680_v58, %v12387_v57  ;;  %v4523_v54 = vand.u32 3, %v12341_v41 }
 0x460   : > { %v4604_v2 = vsel %vm7447_vm3, 0, %v7446_v8  ;;  %v12394_v37 = vmul.u32.u64.low %v12361_v27, %v4684_v60  ;;  %v12395_v31 = vmul.u32.u64.high %v12361_v27, %v4684_v60, %v12394_v37  ;;  %v4751_v35 = vadd.s32 1, %v7452_v50 }
 0x461   : > { %v4605_v28 = vsub.s32 32, %v4604_v2  ;;  %v4606_v25 = vshll.u32 %v12357_v33, %v4604_v2  ;;  %v4609_v26 = vsub.s32 4294967266, %v4604_v2  ;;  %vm12401_vm4 = vcmp.le.f32.partialorder %v4533_v21, 0.7853982 }
 0x462   : > { %v4692_v11 = vmul.u32 %v12361_v27, %v4676_v1  ;;  %v4695_v40 = vadd.s32 1, %v12388_v62  ;;  %vm4752_vm5 = vcmp.gt.s32.totalorder %v4751_v35, 0  ;;  %v4622_v33 = vsel %vm12401_vm4, 0, %v4620_v9 }
 0x463   : > { %v4607_v61 = vshrl.u32 %v4589_v0, %v4605_v28  ;;  %v4610_v12 = vadd.s32 127, %v4609_v26  ;;  %vm4694_vm6 = vc.u32 %v12395_v31, %v12387_v57  ;;  %v4749_v41 = vor.u32 8388608, %v4748_v39 }
 0x464   : > { %v4753_v29 = vsel %vm4752_vm5, %v4751_v35, 0  ;;  %v4696_v6 = vsel %vm4694_vm6, %v4695_v40, %v12388_v62  ;;  %vm4521_vm7 = vweird.f32 %v14515_v34  ;;  %vm4524_vm10 = vcmp.lt.s32.totalorder %v4523_v54, 2 }
 0x465   : > { %v4608_v56 = vor.u32 %v4607_v61, %v4606_v25  ;;  %v4611_v21 = vshll.u32 %v4610_v12, 23  ;;  %v12412_v42 = vshrl.u32 %v4753_v29, 5  ;;  %v4697_v27 = vadd.s32 %v4696_v6, %v4692_v11 }
 0x466   : > { %v4755_v0 = vand.u32 31, %v4753_v29  ;;  %v8020_v10 = vpop.eup %8019  ;;  %vm4525_vm8 = vcmp.eq.s32.totalorder %v4523_v54, 0  ;;  %vm4528_vm11 = vcmp.eq.s32.totalorder %v4523_v54, 2  ;;  %v4626_v46 = vadd.s32 3, %v4622_v33  ;;  %v14527_v33 = vld [vmem:[#allocation26_spill] sm:$0xff] }
 0x467   : > { %v4612_v17 = vor.u32 4788187, %v4611_v21  ;;  %v4615_v44 = vcvt.s32.f32 %v4608_v56  ;;  %v8022_v18 = vpop.eup %8021  ;;  %v4529_v19 = vxor.u32 2147483648, %v8020_v10  ;;  %v4698_v13 = vadd.s32 536870912, %v4697_v27 }
 0x468   : > { %v4756_v30 = vsub.s32 32, %v4755_v0  ;;  %v4526_v55 = vxor.u32 2147483648, %v8022_v18  ;;  %vm4773_vm9 = vcmp.lt.s32.totalorder %v12412_v42, 1  ;;  %v12416_v5 = vshll.u32 %v4749_v41, 8 }
 0x469   : > { %v4613_v48 = vand.u32 2147483647, %v4612_v17  ;;  %v4530_v59 = vsel %vm4528_vm11, %v4529_v19, %v8022_v18  ;;  %v4699_v45 = vshrl.u32 %v4698_v13, 30  ;;  %v4758_v38 = vshll.u32 %v14417_v24, %v4755_v0 }
 0x46a   : > { %v4759_v63 = vshrl.u32 %v14411_v14, %v4756_v30  ;;  %v4527_v43 = vsel %vm4525_vm8, %v8020_v10, %v4526_v55  ;;  %vm4639_vm12 = vcmp.lt.s32.totalorder %v14519_v3, 0  ;;  %v4761_v22 = vshll.u32 %v14411_v14, %v4755_v0 }
 0x46b   : > { %v4616_v47 = vmul.f32 %v4615_v44, %v4613_v48  ;;  %v4762_v8 = vshrl.u32 %v14412_v20, %v4756_v30  ;;  %v4531_v49 = vsel %vm4524_vm10, %v4527_v43, %v4530_v59  ;;  %v4700_v53 = vshll.u32 %v4699_v45, 30 }
 0x46c   : > { %v4764_v39 = vshll.u32 %v14412_v20, %v4755_v0  ;;  %v4765_v1 = vshrl.u32 %v14413_v15, %v4756_v30  ;;  %v4532_v58 = vsel %vm4521_vm7, nan, %v4531_v49  ;;  %v4723_v50 = vsub.s32 4, %v4699_v45 }
 0x46d   : > { %v4617_v4 = vxor.u32 2147483648, %v4616_v47  ;;  %v4757_v60 = vshrl.u32 %v14417_v24, %v4756_v30  ;;  %v12430_v62 = vsub.s32 %v4697_v27, %v4700_v53  ;;  %v4760_v2 = vor.u32 %v4759_v63, %v4758_v38  ;;  %7171 = vst [vmem:[%s9691_s5 + $0x130] sm:$0xff] %v4532_v58 }
 0x46e   : > { %v4767_v9 = vshll.u32 %v14413_v15, %v4755_v0  ;;  %v4768_v37 = vshrl.u32 %v14414_v23, %v4756_v30  ;;  %v4763_v25 = vor.u32 %v4762_v8, %v4761_v22  ;;  %v4770_v26 = vshll.u32 %v14414_v23, %v4755_v0 }
 0x46f   : > { %v4618_v28 = vsel %vm4535_vm14, %v4617_v4, %v4616_v47  ;;  %v4771_v34 = vshrl.u32 %v14415_v51, %v4756_v30  ;;  %vm12444_vm13 = vcmp.le.f32.partialorder %v4637_v7, 0.7853982  ;;  %v4703_v11 = vsub.s32 0, %v12430_v62 }
 0x470   : > { %v4621_v35 = vsel %vm12401_vm4, %v14516_v32, %v4618_v28  ;;  %v4766_v61 = vor.u32 %v4765_v1, %v4764_v39  ;;  %v4769_v12 = vor.u32 %v4768_v37, %v4767_v9  ;;  %vm4776_vm14 = vcmp.lt.s32.totalorder %v12412_v42, 4 }
 0x471   : > { %8023 = vcosq.f32 %v4621_v35  ;;  %v4772_v40 = vor.u32 %v4771_v34, %v4770_v26  ;;  %v4848_v41 = vand.u32 2139095040, %v14527_v33  ;;  %v7449_v36 = vmin.u32 %v4703_v11, %v12430_v62 }
 0x472   : > { %8025 = vsinq.f32 %v4621_v35  ;;  %vm4774_vm15 = vcmp.lt.s32.totalorder %v12412_v42, 2  ;;  %vm4775_vm0 = vcmp.lt.s32.totalorder %v12412_v42, 3  ;;  %v4777_v7 = vsel %vm4773_vm9, %v4757_v60, %v4760_v2 }
 0x473   : > { %v4778_v29 = vsel %vm4776_vm14, %v4766_v61, 2102212464  ;;  %v4781_v56 = vsel %vm4773_vm9, %v4760_v2, %v4763_v25  ;;  %v4782_v21 = vsel %vm4776_vm14, %v4769_v12, 920167782  ;;  %v4627_v6 = vand.u32 3, %v4626_v46 }
 0x474   : > { %v4705_v27 = vclz %v7449_v36  ;;  %v4724_v0 = vsel %vm4639_vm12, %v4723_v50, %v4699_v45  ;;  %v4785_v10 = vsel %vm4773_vm9, %v4763_v25, %v4766_v61  ;;  %v4779_v17 = vsel %vm4775_vm0, %v4763_v25, %v4778_v29 }
 0x475   : > { %v4783_v44 = vsel %vm4775_vm0, %v4766_v61, %v4782_v21  ;;  %v4786_v18 = vsel %vm4776_vm14, %v4772_v40, 1326507024  ;;  %v4849_v19 = vshrl.u32 %v4848_v41, 23  ;;  %v4780_v46 = vsel %vm4774_vm15, %v4777_v7, %v4779_v17 }
 0x476   : > { %v7450_v13 = vadd.s32 4294967294, %v4705_v27  ;;  %v4784_v30 = vsel %vm4774_vm15, %v4781_v56, %v4783_v44  ;;  %v4787_v55 = vsel %vm4775_vm0, %v4769_v12, %v4786_v18  ;;  %v4693_v48 = vadd.s32 %v12387_v57, %v12395_v31 }
 0x477   : > { %v4788_v59 = vsel %vm4774_vm15, %v4785_v10, %v4787_v55  ;;  %v12483_v45 = vmul.u32.u64.low %v12416_v5, %v4784_v30  ;;  %v12484_v38 = vmul.u32.u64.high %v12416_v5, %v4784_v30, %v12483_v45  ;;  %v7456_v47 = vadd.s32 4294967169, %v4849_v19 }
 0x478   : > { %vm7451_vm1 = vcmp.lt.s32.totalorder %v7450_v13, 0  ;;  %v12488_v63 = vmul.u32.u64.low %v12416_v5, %v4788_v59  ;;  %v12489_v43 = vmul.u32.u64.high %v12416_v5, %v4788_v59, %v12488_v63  ;;  %v4726_v8 = vsel %vm12444_vm13, 0, %v4724_v0 }
 0x479   : > { %v4708_v22 = vsel %vm7451_vm1, 0, %v7450_v13  ;;  %v4796_v57 = vmul.u32 %v12416_v5, %v4780_v46  ;;  %v4845_v31 = vand.u32 2147483647, %v14527_v33  ;;  %v4855_v39 = vadd.s32 1, %v7456_v47 }
 0x47a   : > { %v4709_v42 = vsub.s32 32, %v4708_v22  ;;  %v4710_v49 = vshll.u32 %v12430_v62, %v4708_v22  ;;  %v4713_v53 = vsub.s32 4294967266, %v4708_v22  ;;  %vm4625_vm2 = vweird.f32 %v14516_v32 }
 0x47b   : > { %v4799_v1 = vadd.s32 1, %v12484_v38  ;;  %vm4632_vm3 = vcmp.eq.s32.totalorder %v4627_v6, 2  ;;  %vm4798_vm4 = vc.u32 %v12489_v43, %v12483_v45  ;;  %v4730_v50 = vadd.s32 3, %v4726_v8 }
 0x47c   : > { %v4711_v58 = vshrl.u32 %v4693_v48, %v4709_v42  ;;  %v4714_v4 = vadd.s32 127, %v4713_v53  ;;  %v4852_v60 = vand.u32 8388607, %v4845_v31  ;;  %vm4856_vm5 = vcmp.gt.s32.totalorder %v4855_v39, 0 }
 0x47d   : > { %v4800_v5 = vsel %vm4798_vm4, %v4799_v1, %v12484_v38  ;;  %v4857_v28 = vsel %vm4856_vm5, %v4855_v39, 0  ;;  %vm4628_vm6 = vcmp.lt.s32.totalorder %v4627_v6, 2  ;;  %vm4629_vm7 = vcmp.eq.s32.totalorder %v4627_v6, 0  ;;  %v14528_v6 = vld [vmem:[#allocation10_spill] sm:$0xff] }
 0x47e   : > { %v8024_v62 = vpop.eup %8023  ;;  %v4712_v2 = vor.u32 %v4711_v58, %v4710_v49  ;;  %v4715_v9 = vshll.u32 %v4714_v4, 23  ;;  %v4801_v37 = vadd.s32 %v4800_v5, %v4796_v57  ;;  %v4859_v34 = vand.u32 31, %v4857_v28 }
 0x47f   : > { %v8026_v25 = vpop.eup %8025  ;;  %v4633_v26 = vxor.u32 2147483648, %v8024_v62  ;;  %v12504_v41 = vand.u32 3, %v4730_v50  ;;  %v4853_v36 = vor.u32 8388608, %v4852_v60  ;;  %v4858_v30 = vshrl.u32 %v4857_v28, 5 }
 0x480   : > { %v4630_v35 = vxor.u32 2147483648, %v8026_v25  ;;  %v4716_v11 = vor.u32 4788187, %v4715_v9  ;;  %v4719_v61 = vcvt.s32.f32 %v4712_v2  ;;  %v4802_v12 = vadd.s32 536870912, %v4801_v37 }
 0x481   : > { %v4634_v40 = vsel %vm4632_vm3, %v4633_v26, %v8026_v25  ;;  %v4860_v7 = vsub.s32 32, %v4859_v34  ;;  %v4862_v27 = vshll.u32 %v14417_v24, %v4859_v34  ;;  %v4865_v17 = vshll.u32 %v14411_v14, %v4859_v34 }
 0x482   : > { %v4631_v29 = vsel %vm4629_vm7, %v8024_v62, %v4630_v35  ;;  %v4717_v56 = vand.u32 2147483647, %v4716_v11  ;;  %v4803_v21 = vshrl.u32 %v4802_v12, 30  ;;  %v4868_v44 = vshll.u32 %v14412_v20, %v4859_v34 }
 0x483   : > { %v4635_v0 = vsel %vm4628_vm6, %v4631_v29, %v4634_v40  ;;  %v4863_v10 = vshrl.u32 %v14411_v14, %v4860_v7  ;;  %v4866_v46 = vshrl.u32 %v14412_v20, %v4860_v7  ;;  %v4869_v55 = vshrl.u32 %v14413_v15, %v4860_v7 }
 0x484   : > { %v4636_v18 = vsel %vm4625_vm2, nan, %v4635_v0  ;;  %v4720_v19 = vmul.f32 %v4719_v61, %v4717_v56  ;;  %v4804_v13 = vshll.u32 %v4803_v21, 30  ;;  %v4871_v48 = vshll.u32 %v14413_v15, %v4859_v34 }
 0x485   : > { %v4949_v59 = vand.u32 2147483647, %v14528_v6  ;;  %7172 = vst [vmem:[%s9691_s5 + $0x138] sm:$0xff] %v4636_v18  ;;  %v4872_v47 = vshrl.u32 %v14414_v23, %v4860_v7  ;;  %v4952_v32 = vand.u32 2139095040, %v14528_v6  ;;  %vm4743_vm10 = vcmp.lt.s32.totalorder %v14522_v16, 0 }
 0x486   : > { %v4721_v38 = vxor.u32 2147483648, %v4720_v19  ;;  %v12518_v63 = vsub.s32 %v4801_v37, %v4804_v13  ;;  %v4861_v22 = vshrl.u32 %v14417_v24, %v4860_v7  ;;  %v4864_v8 = vor.u32 %v4863_v10, %v4862_v27 }
 0x487   : > { %v4874_v57 = vshll.u32 %v14414_v23, %v4859_v34  ;;  %v4875_v42 = vshrl.u32 %v14415_v51, %v4860_v7  ;;  %v4867_v39 = vor.u32 %v4866_v46, %v4865_v17  ;;  %v4870_v1 = vor.u32 %v4869_v55, %v4868_v44 }
 0x488   : > { %v4722_v49 = vsel %vm4639_vm12, %v4721_v38, %v4720_v19  ;;  %v4807_v53 = vsub.s32 0, %v12518_v63  ;;  %v4873_v4 = vor.u32 %v4872_v47, %v4871_v48  ;;  %vm4877_vm8 = vcmp.lt.s32.totalorder %v4858_v30, 1 }
 0x489   : > { %v4725_v58 = vsel %vm12444_vm13, %v14519_v3, %v4722_v49  ;;  %v4876_v50 = vor.u32 %v4875_v42, %v4874_v57  ;;  %vm12534_vm11 = vcmp.le.f32.partialorder %v4741_v52, 0.7853982  ;;  %v4893_v62 = vshll.u32 %v4853_v36, 8 }
 0x48a   : > { %8027 = vcosq.f32 %v4725_v58  ;;  %v7453_v60 = vmin.u32 %v4807_v53, %v12518_v63  ;;  %v4953_v2 = vshrl.u32 %v4952_v32, 23  ;;  %v4827_v9 = vsub.s32 4, %v4803_v21 }
 0x48b   : > { %8029 = vsinq.f32 %v4725_v58  ;;  %vm4879_vm9 = vcmp.lt.s32.totalorder %v4858_v30, 3  ;;  %vm4880_vm12 = vcmp.lt.s32.totalorder %v4858_v30, 4  ;;  %vm4878_vm13 = vcmp.lt.s32.totalorder %v4858_v30, 2 }
 0x48c   : > { %v4809_v54 = vclz %v7453_v60  ;;  %v4881_v37 = vsel %vm4877_vm8, %v4861_v22, %v4864_v8  ;;  %v4885_v28 = vsel %vm4877_vm8, %v4864_v8, %v4867_v39  ;;  %v4882_v25 = vsel %vm4880_vm12, %v4870_v1, 2102212464 }
 0x48d   : > { %v4886_v26 = vsel %vm4880_vm12, %v4873_v4, 920167782  ;;  %v4889_v52 = vsel %vm4877_vm8, %v4867_v39, %v4870_v1  ;;  %v4890_v34 = vsel %vm4880_vm12, %v4876_v50, 1326507024  ;;  %v4883_v11 = vsel %vm4879_vm9, %v4867_v39, %v4882_v25 }
 0x48e   : > { %v7454_v35 = vadd.s32 4294967294, %v4809_v54  ;;  %v4887_v61 = vsel %vm4879_vm9, %v4870_v1, %v4886_v26  ;;  %v4891_v12 = vsel %vm4879_vm9, %v4873_v4, %v4890_v34  ;;  %v4797_v40 = vadd.s32 %v12483_v45, %v12489_v43 }
 0x48f   : > { %v4888_v36 = vsel %vm4878_vm13, %v4885_v28, %v4887_v61  ;;  %v4892_v7 = vsel %vm4878_vm13, %v4889_v52, %v4891_v12  ;;  %v7460_v29 = vadd.s32 4294967169, %v4953_v2  ;;  %v4828_v56 = vsel %vm4743_vm10, %v4827_v9, %v4803_v21 }
 0x490   : > { %vm7455_vm14 = vcmp.lt.s32.totalorder %v7454_v35, 0  ;;  %v12548_v27 = vmul.u32.u64.low %v4893_v62, %v4892_v7  ;;  %v12549_v0 = vmul.u32.u64.high %v4893_v62, %v4892_v7, %v12548_v27  ;;  %v4884_v17 = vsel %vm4878_vm13, %v4881_v37, %v4883_v11 }
 0x491   : > { %v4812_v10 = vsel %vm7455_vm14, 0, %v7454_v35  ;;  %v12552_v44 = vmul.u32.u64.low %v4893_v62, %v4888_v36  ;;  %v12553_v18 = vmul.u32.u64.high %v4893_v62, %v4888_v36, %v12552_v44  ;;  %v4959_v13 = vadd.s32 1, %v7460_v29 }
 0x492   : > { %v4813_v45 = vsub.s32 32, %v4812_v10  ;;  %v4814_v43 = vshll.u32 %v12518_v63, %v4812_v10  ;;  %v4817_v19 = vsub.s32 4294967266, %v4812_v10  ;;  %vm4729_vm15 = vweird.f32 %v14519_v3  ;;  %v14531_v10 = vld [vmem:[#allocation41_spill] sm:$0xff] }
 0x493   : > { %v4830_v21 = vsel %vm12534_vm11, 0, %v4828_v56  ;;  %v4900_v48 = vmul.u32 %v4893_v62, %v4884_v17  ;;  %vm4902_vm0 = vc.u32 %v12549_v0, %v12552_v44  ;;  %vm4732_vm1 = vcmp.lt.s32.totalorder %v12504_v41, 2 }
 0x494   : > { %v4815_v46 = vshrl.u32 %v4797_v40, %v4813_v45  ;;  %v4818_v55 = vadd.s32 127, %v4817_v19  ;;  %v4903_v30 = vadd.s32 1, %v12553_v18  ;;  %v4956_v38 = vand.u32 8388607, %v4949_v59 }
 0x495   : > { %vm4960_vm2 = vcmp.gt.s32.totalorder %v4959_v13, 0  ;;  %vm4733_vm3 = vcmp.eq.s32.totalorder %v12504_v41, 0  ;;  %vm4736_vm4 = vcmp.eq.s32.totalorder %v12504_v41, 2  ;;  %v4834_v8 = vadd.s32 3, %v4830_v21 }
 0x496   : > { %v4816_v63 = vor.u32 %v4815_v46, %v4814_v43  ;;  %v4819_v47 = vshll.u32 %v4818_v55, 23  ;;  %v4961_v32 = vsel %vm4960_vm2, %v4959_v13, 0  ;;  %v4904_v57 = vsel %vm4902_vm0, %v4903_v30, %v12553_v18 }
 0x497   : > { %v8028_v22 = vpop.eup %8027  ;;  %v4963_v42 = vand.u32 31, %v4961_v32  ;;  %v4905_v58 = vadd.s32 %v4904_v57, %v4900_v48  ;;  %v4957_v50 = vor.u32 8388608, %v4956_v38  ;;  %v4962_v40 = vshrl.u32 %v4961_v32, 5 }
 0x498   : > { %v8030_v49 = vpop.eup %8029  ;;  %v4737_v53 = vxor.u32 2147483648, %v8028_v22  ;;  %v4820_v39 = vor.u32 4788187, %v4819_v47  ;;  %v4823_v1 = vcvt.s32.f32 %v4816_v63  ;;  %v5056_v17 = vand.u32 2139095040, %v14531_v10 }
 0x499   : > { %v4734_v4 = vxor.u32 2147483648, %v8030_v49  ;;  %v4964_v60 = vsub.s32 32, %v4963_v42  ;;  %v4966_v62 = vshll.u32 %v14417_v24, %v4963_v42  ;;  %v4906_v54 = vadd.s32 536870912, %v4905_v58 }
 0x49a   : > { %v4738_v2 = vsel %vm4736_vm4, %v4737_v53, %v8030_v49  ;;  %v4821_v9 = vand.u32 2147483647, %v4820_v39  ;;  %v4969_v37 = vshll.u32 %v14411_v14, %v4963_v42  ;;  %v4972_v52 = vshll.u32 %v14412_v20, %v4963_v42 }
 0x49b   : > { %v4735_v28 = vsel %vm4733_vm3, %v8028_v22, %v4734_v4  ;;  %v4967_v25 = vshrl.u32 %v14411_v14, %v4964_v60  ;;  %v4970_v26 = vshrl.u32 %v14412_v20, %v4964_v60  ;;  %v4907_v11 = vshrl.u32 %v4906_v54, 30 }
 0x49c   : > { %v4739_v34 = vsel %vm4732_vm1, %v4735_v28, %v4738_v2  ;;  %v4824_v35 = vmul.f32 %v4823_v1, %v4821_v9  ;;  %v4973_v61 = vshrl.u32 %v14413_v15, %v4964_v60  ;;  %v4975_v36 = vshll.u32 %v14413_v15, %v4963_v42 }
 0x49d   : > { %v4740_v12 = vsel %vm4729_vm15, nan, %v4739_v34  ;;  %v12582_v7 = vshll.u32 %v4957_v50, 8  ;;  %v4908_v56 = vshll.u32 %v4907_v11, 30  ;;  %v4965_v27 = vshrl.u32 %v14417_v24, %v4964_v60 }
 0x49e   : > { %v4825_v29 = vxor.u32 2147483648, %v4824_v35  ;;  %7173 = vst [vmem:[%s9691_s5 + $0x140] sm:$0xff] %v4740_v12  ;;  %v4968_v41 = vor.u32 %v4967_v25, %v4966_v62  ;;  %v4976_v18 = vshrl.u32 %v14414_v23, %v4964_v60  ;;  %v4978_v45 = vshll.u32 %v14414_v23, %v4963_v42 }
 0x49f   : > { %v4979_v3 = vshrl.u32 %v14415_v51, %v4964_v60  ;;  %v12592_v19 = vsub.s32 %v4905_v58, %v4908_v56  ;;  %v4971_v13 = vor.u32 %v4970_v26, %v4969_v37  ;;  %v4974_v21 = vor.u32 %v4973_v61, %v4972_v52 }
 0x4a0   : > { %v4826_v43 = vsel %vm4743_vm10, %v4825_v29, %v4824_v35  ;;  %v4977_v55 = vor.u32 %v4976_v18, %v4975_v36  ;;  %vm4981_vm5 = vcmp.lt.s32.totalorder %v4962_v40, 1  ;;  %vm4983_vm6 = vcmp.lt.s32.totalorder %v4962_v40, 3 }
 0x4a1   : > { %v4829_v46 = vsel %vm12534_vm11, %v14522_v16, %v4826_v43  ;;  %v4980_v48 = vor.u32 %v4979_v3, %v4978_v45  ;;  %v4911_v30 = vsub.s32 0, %v12592_v19  ;;  %v5057_v38 = vshrl.u32 %v5056_v17, 23 }
 0x4a2   : > { %8031 = vcosq.f32 %v4829_v46  ;;  %vm4982_vm7 = vcmp.lt.s32.totalorder %v4962_v40, 2  ;;  %vm4984_vm8 = vcmp.lt.s32.totalorder %v4962_v40, 4  ;;  %v4985_v63 = vsel %vm4981_vm5, %v4965_v27, %v4968_v41 }
 0x4a3   : > { %8033 = vsinq.f32 %v4829_v46  ;;  %v7457_v47 = vmin.u32 %v4911_v30, %v12592_v19  ;;  %v4986_v32 = vsel %vm4984_vm8, %v4974_v21, 2102212464  ;;  %v4989_v22 = vsel %vm4981_vm5, %v4968_v41, %v4971_v13 }
 0x4a4   : > { %v4990_v57 = vsel %vm4984_vm8, %v4977_v55, 920167782  ;;  %v4987_v5 = vsel %vm4983_vm6, %v4971_v13, %v4986_v32  ;;  %v4993_v49 = vsel %vm4981_vm5, %v4971_v13, %v4974_v21  ;;  %v4994_v53 = vsel %vm4984_vm8, %v4980_v48, 1326507024 }
 0x4a5   : > { %v4991_v42 = vsel %vm4983_vm6, %v4974_v21, %v4990_v57  ;;  %v4835_v39 = vand.u32 3, %v4834_v8  ;;  %v4913_v1 = vclz %v7457_v47  ;;  %v4931_v58 = vsub.s32 4, %v4907_v11  ;;  %v14534_v47 = vld [vmem:[#allocation11_spill] sm:$0xff] }
 0x4a6   : > { %v4988_v4 = vsel %vm4982_vm7, %v4985_v63, %v4987_v5  ;;  %v4992_v50 = vsel %vm4982_vm7, %v4989_v22, %v4991_v42  ;;  %v4995_v60 = vsel %vm4983_vm6, %v4977_v55, %v4994_v53  ;;  %v7464_v62 = vadd.s32 4294967169, %v5057_v38 }
 0x4a7   : > { %v7458_v2 = vadd.s32 4294967294, %v4913_v1  ;;  %v4996_v9 = vsel %vm4982_vm7, %v4993_v49, %v4995_v60  ;;  %v12606_v54 = vmul.u32.u64.low %v12582_v7, %v4992_v50  ;;  %v12607_v37 = vmul.u32.u64.high %v12582_v7, %v4992_v50, %v12606_v54 }
 0x4a8   : > { %vm4847_vm10 = vcmp.lt.s32.totalorder %v14527_v33, 0  ;;  %v12612_v8 = vmul.u32.u64.low %v12582_v7, %v4996_v9  ;;  %v12613_v28 = vmul.u32.u64.high %v12582_v7, %v4996_v9, %v12612_v8  ;;  %v5053_v25 = vand.u32 2147483647, %v14531_v10 }
 0x4a9   : > { %vm4833_vm11 = vweird.f32 %v14522_v16  ;;  %v4901_v26 = vadd.s32 %v12552_v44, %v12549_v0  ;;  %vm7459_vm9 = vcmp.lt.s32.totalorder %v7458_v2, 0  ;;  %v4932_v52 = vsel %vm4847_vm10, %v4931_v58, %v4907_v11 }
 0x4aa   : > { %v5063_v34 = vadd.s32 1, %v7464_v62  ;;  %vm4836_vm12 = vcmp.lt.s32.totalorder %v4835_v39, 2  ;;  %vm12623_vm13 = vcmp.le.f32.partialorder %v4845_v31, 0.7853982  ;;  %v4916_v61 = vsel %vm7459_vm9, 0, %v7458_v2 }
 0x4ab   : > { %v5004_v12 = vmul.u32 %v12582_v7, %v4988_v4  ;;  %v4917_v40 = vsub.s32 32, %v4916_v61  ;;  %v4918_v36 = vshll.u32 %v12592_v19, %v4916_v61  ;;  %v4921_v29 = vsub.s32 4294967266, %v4916_v61 }
 0x4ac   : > { %v5007_v0 = vadd.s32 1, %v12607_v37  ;;  %v4934_v44 = vsel %vm12623_vm13, 0, %v4932_v52  ;;  %vm5006_vm14 = vc.u32 %v12613_v28, %v12606_v54  ;;  %v5060_v31 = vand.u32 8388607, %v5053_v25 }
 0x4ad   : > { %vm5064_vm15 = vcmp.gt.s32.totalorder %v5063_v34, 0  ;;  %v4919_v11 = vshrl.u32 %v4901_v26, %v4917_v40  ;;  %v4922_v56 = vadd.s32 127, %v4921_v29  ;;  %vm4837_vm0 = vcmp.eq.s32.totalorder %v4835_v39, 0 }
 0x4ae   : > { %v5008_v7 = vsel %vm5006_vm14, %v5007_v0, %v12607_v37  ;;  %v5065_v27 = vsel %vm5064_vm15, %v5063_v34, 0  ;;  %vm4840_vm1 = vcmp.eq.s32.totalorder %v4835_v39, 2  ;;  %v12637_v13 = vadd.s32 3, %v4934_v44 }
 0x4af   : > { %v8032_v17 = vpop.eup %8031  ;;  %v5009_v41 = vadd.s32 %v5008_v7, %v5004_v12  ;;  %v5067_v18 = vand.u32 31, %v5065_v27  ;;  %v4920_v43 = vor.u32 %v4919_v11, %v4918_v36  ;;  %v4923_v19 = vshll.u32 %v4922_v56, 23 }
 0x4b0   : > { %v8034_v45 = vpop.eup %8033  ;;  %v4841_v3 = vxor.u32 2147483648, %v8032_v17  ;;  %v5061_v55 = vor.u32 8388608, %v5060_v31  ;;  %v5157_v32 = vand.u32 2147483647, %v14534_v47  ;;  %v5066_v5 = vshrl.u32 %v5065_v27, 5 }
 0x4b1   : > { %v4838_v21 = vxor.u32 2147483648, %v8034_v45  ;;  %v5010_v46 = vadd.s32 536870912, %v5009_v41  ;;  %v5068_v48 = vsub.s32 32, %v5067_v18  ;;  %v4924_v38 = vor.u32 4788187, %v4923_v19 }
 0x4b2   : > { %v4842_v30 = vsel %vm4840_vm1, %v4841_v3, %v8034_v45  ;;  %v4927_v63 = vcvt.s32.f32 %v4920_v43  ;;  %v5160_v42 = vand.u32 2139095040, %v14534_v47  ;;  %v5070_v1 = vshll.u32 %v14417_v24, %v5067_v18 }
 0x4b3   : > { %v4839_v22 = vsel %vm4837_vm0, %v8032_v17, %v4838_v21  ;;  %v5011_v57 = vshrl.u32 %v5010_v46, 30  ;;  %v4925_v53 = vand.u32 2147483647, %v4924_v38  ;;  %v5073_v58 = vshll.u32 %v14411_v14, %v5067_v18 }
 0x4b4   : > { %v4843_v49 = vsel %vm4836_vm12, %v4839_v22, %v4842_v30  ;;  %v5071_v60 = vshrl.u32 %v14411_v14, %v5068_v48  ;;  %v5074_v62 = vshrl.u32 %v14412_v20, %v5068_v48  ;;  %v5076_v9 = vshll.u32 %v14412_v20, %v5067_v18 }
 0x4b5   : > { %v4844_v4 = vsel %vm4833_vm11, nan, %v4843_v49  ;;  %v5012_v50 = vshll.u32 %v5011_v57, 30  ;;  %v4928_v2 = vmul.f32 %v4927_v63, %v4925_v53  ;;  %v5077_v37 = vshrl.u32 %v14413_v15, %v5068_v48 }
 0x4b6   : > { %v5079_v39 = vshll.u32 %v14413_v15, %v5067_v18  ;;  %7174 = vst [vmem:[%s9691_s5 + $0x148] sm:$0xff] %v4844_v4  ;;  %v5080_v26 = vshrl.u32 %v14414_v23, %v5068_v48  ;;  %v5082_v16 = vshll.u32 %v14414_v23, %v5067_v18  ;;  %v12657_v52 = vshll.u32 %v5061_v55, 8 }
 0x4b7   : > { %v12653_v8 = vsub.s32 %v5009_v41, %v5012_v50  ;;  %v4929_v34 = vxor.u32 2147483648, %v4928_v2  ;;  %v5005_v61 = vadd.s32 %v12606_v54, %v12613_v28  ;;  %v5083_v12 = vshrl.u32 %v14415_v51, %v5068_v48 }
 0x4b8   : > { %v5161_v40 = vshrl.u32 %v5160_v42, 23  ;;  %vm4951_vm2 = vcmp.lt.s32.totalorder %v14528_v6, 0  ;;  %v5069_v29 = vshrl.u32 %v14417_v24, %v5068_v48  ;;  %v5072_v0 = vor.u32 %v5071_v60, %v5070_v1 }
 0x4b9   : > { %v5015_v36 = vsub.s32 0, %v12653_v8  ;;  %v5075_v44 = vor.u32 %v5074_v62, %v5073_v58  ;;  %v4930_v31 = vsel %vm4847_vm10, %v4929_v34, %v4928_v2  ;;  %v5078_v11 = vor.u32 %v5077_v37, %v5076_v9 }
 0x4ba   : > { %v5081_v56 = vor.u32 %v5080_v26, %v5079_v39  ;;  %vm5085_vm3 = vcmp.lt.s32.totalorder %v5066_v5, 1  ;;  %v4933_v54 = vsel %vm12623_vm13, %v14527_v33, %v4930_v31  ;;  %v5084_v7 = vor.u32 %v5083_v12, %v5082_v16 }
 0x4bb   : > { %v7461_v28 = vmin.u32 %v5015_v36, %v12653_v8  ;;  %vm5088_vm4 = vcmp.lt.s32.totalorder %v5066_v5, 4  ;;  %8035 = vcosq.f32 %v4933_v54  ;;  %vm5086_vm5 = vcmp.lt.s32.totalorder %v5066_v5, 2 }
 0x4bc   : > { %vm5087_vm6 = vcmp.lt.s32.totalorder %v5066_v5, 3  ;;  %v5090_v27 = vsel %vm5088_vm4, %v5078_v11, 2102212464  ;;  %8037 = vsinq.f32 %v4933_v54  ;;  %v5089_v41 = vsel %vm5085_vm3, %v5069_v29, %v5072_v0 }
 0x4bd   : > { %v5017_v17 = vclz %v7461_v28  ;;  %v5093_v18 = vsel %vm5085_vm3, %v5072_v0, %v5075_v44  ;;  %v5035_v45 = vsub.s32 4, %v5011_v57  ;;  %v5091_v3 = vsel %vm5087_vm6, %v5075_v44, %v5090_v27 }
 0x4be   : > { %v5094_v43 = vsel %vm5088_vm4, %v5081_v56, 920167782  ;;  %v5097_v35 = vsel %vm5085_vm3, %v5075_v44, %v5078_v11  ;;  %v5098_v46 = vsel %vm5088_vm4, %v5084_v7, 1326507024  ;;  %v5164_v55 = vand.u32 8388607, %v5157_v32 }
 0x4bf   : > { %v7462_v19 = vadd.s32 4294967294, %v5017_v17  ;;  %v5095_v21 = vsel %vm5087_vm6, %v5078_v11, %v5094_v43  ;;  %v5092_v48 = vsel %vm5086_vm5, %v5089_v41, %v5091_v3  ;;  %v5099_v38 = vsel %vm5087_vm6, %v5081_v56, %v5098_v46 }
 0x4c0   : > { %v5096_v30 = vsel %vm5086_vm5, %v5093_v18, %v5095_v21  ;;  %v7468_v63 = vadd.s32 4294967169, %v5161_v40  ;;  %v5100_v22 = vsel %vm5086_vm5, %v5097_v35, %v5099_v38  ;;  %v5036_v1 = vsel %vm4951_vm2, %v5035_v45, %v5011_v57 }
 0x4c1   : > { %vm7463_vm7 = vcmp.lt.s32.totalorder %v7462_v19, 0  ;;  %v12683_v42 = vmul.u32.u64.low %v12657_v52, %v5096_v30  ;;  %v12684_v49 = vmul.u32.u64.high %v12657_v52, %v5096_v30, %v12683_v42  ;;  %v4939_v5 = vand.u32 3, %v12637_v13 }
 0x4c2   : > { %v5020_v53 = vsel %vm7463_vm7, 0, %v7462_v19  ;;  %v12690_v58 = vmul.u32.u64.low %v12657_v52, %v5100_v22  ;;  %v12691_v4 = vmul.u32.u64.high %v12657_v52, %v5100_v22, %v12690_v58  ;;  %v5167_v2 = vadd.s32 1, %v7468_v63 }
 0x4c3   : > { %v5021_v50 = vsub.s32 32, %v5020_v53  ;;  %v5022_v60 = vshll.u32 %v12653_v8, %v5020_v53  ;;  %v5025_v62 = vsub.s32 4294967266, %v5020_v53  ;;  %vm12697_vm8 = vcmp.le.f32.partialorder %v4949_v59, 0.7853982 }
 0x4c4   : > { %v5108_v37 = vmul.u32 %v12657_v52, %v5092_v48  ;;  %v5111_v26 = vadd.s32 1, %v12684_v49  ;;  %vm5168_vm10 = vcmp.gt.s32.totalorder %v5167_v2, 0  ;;  %v5038_v8 = vsel %vm12697_vm8, 0, %v5036_v1 }
 0x4c5   : > { %v5023_v57 = vshrl.u32 %v5005_v61, %v5021_v50  ;;  %v5026_v39 = vadd.s32 127, %v5025_v62  ;;  %vm5110_vm11 = vc.u32 %v12691_v4, %v12683_v42  ;;  %v5165_v13 = vor.u32 8388608, %v5164_v55 }
 0x4c6   : > { %v5169_v16 = vsel %vm5168_vm10, %v5167_v2, 0  ;;  %v5112_v12 = vsel %vm5110_vm11, %v5111_v26, %v12684_v49  ;;  %vm4937_vm9 = vweird.f32 %v14527_v33  ;;  %vm4940_vm12 = vcmp.lt.s32.totalorder %v4939_v5, 2 }
 0x4c7   : > { %v5024_v34 = vor.u32 %v5023_v57, %v5022_v60  ;;  %v5027_v59 = vshll.u32 %v5026_v39, 23  ;;  %v12708_v40 = vshrl.u32 %v5169_v16, 5  ;;  %v5113_v52 = vadd.s32 %v5112_v12, %v5108_v37 }
 0x4c8   : > { %v5171_v61 = vand.u32 31, %v5169_v16  ;;  %v8036_v36 = vpop.eup %8035  ;;  %vm4941_vm13 = vcmp.eq.s32.totalorder %v4939_v5, 0  ;;  %vm4944_vm14 = vcmp.eq.s32.totalorder %v4939_v5, 2  ;;  %v5042_v11 = vadd.s32 3, %v5038_v8  ;;  %v14539_v8 = vld [vmem:[#allocation12_spill] sm:$0xff] }
 0x4c9   : > { %v5028_v29 = vor.u32 4788187, %v5027_v59  ;;  %v5031_v0 = vcvt.s32.f32 %v5024_v34  ;;  %v8038_v44 = vpop.eup %8037  ;;  %v4945_v31 = vxor.u32 2147483648, %v8036_v36  ;;  %v5114_v56 = vadd.s32 536870912, %v5113_v52 }
 0x4ca   : > { %v5172_v54 = vsub.s32 32, %v5171_v61  ;;  %v4942_v28 = vxor.u32 2147483648, %v8038_v44  ;;  %vm5189_vm15 = vcmp.lt.s32.totalorder %v12708_v40, 1  ;;  %v12712_v27 = vshll.u32 %v5165_v13, 8 }
 0x4cb   : > { %v5029_v7 = vand.u32 2147483647, %v5028_v29  ;;  %v4946_v17 = vsel %vm4944_vm14, %v4945_v31, %v8038_v44  ;;  %v5115_v41 = vshrl.u32 %v5114_v56, 30  ;;  %v5174_v18 = vshll.u32 %v14417_v24, %v5171_v61 }
 0x4cc   : > { %v5175_v45 = vshrl.u32 %v14411_v14, %v5172_v54  ;;  %v4943_v3 = vsel %vm4941_vm13, %v8036_v36, %v4942_v28  ;;  %vm5055_vm0 = vcmp.lt.s32.totalorder %v14531_v10, 0  ;;  %v5177_v35 = vshll.u32 %v14411_v14, %v5171_v61 }
 0x4cd   : > { %v5032_v43 = vmul.f32 %v5031_v0, %v5029_v7  ;;  %v5178_v19 = vshrl.u32 %v14412_v20, %v5172_v54  ;;  %v4947_v21 = vsel %vm4940_vm12, %v4943_v3, %v4946_v17  ;;  %v5116_v46 = vshll.u32 %v5115_v41, 30 }
 0x4ce   : > { %v5180_v55 = vshll.u32 %v14412_v20, %v5171_v61  ;;  %v5181_v48 = vshrl.u32 %v14413_v15, %v5172_v54  ;;  %v4948_v30 = vsel %vm4937_vm9, nan, %v4947_v21  ;;  %v5139_v63 = vsub.s32 4, %v5115_v41 }
 0x4cf   : > { %v5033_v38 = vxor.u32 2147483648, %v5032_v43  ;;  %v5173_v22 = vshrl.u32 %v14417_v24, %v5172_v54  ;;  %v12726_v49 = vsub.s32 %v5113_v52, %v5116_v46  ;;  %v5176_v53 = vor.u32 %v5175_v45, %v5174_v18  ;;  %7175 = vst [vmem:[%s9691_s5 + $0x150] sm:$0xff] %v4948_v30 }
 0x4d0   : > { %v5183_v1 = vshll.u32 %v14413_v15, %v5171_v61  ;;  %v5184_v58 = vshrl.u32 %v14414_v23, %v5172_v54  ;;  %v5179_v60 = vor.u32 %v5178_v19, %v5177_v35  ;;  %v5186_v62 = vshll.u32 %v14414_v23, %v5171_v61 }
 0x4d1   : > { %v5034_v50 = vsel %vm4951_vm2, %v5033_v38, %v5032_v43  ;;  %v5187_v33 = vshrl.u32 %v14415_v51, %v5172_v54  ;;  %vm12740_vm1 = vcmp.le.f32.partialorder %v5053_v25, 0.7853982  ;;  %v5119_v37 = vsub.s32 0, %v12726_v49 }
 0x4d2   : > { %v5037_v2 = vsel %vm12697_vm8, %v14528_v6, %v5034_v50  ;;  %v5182_v57 = vor.u32 %v5181_v48, %v5180_v55  ;;  %v5185_v39 = vor.u32 %v5184_v58, %v5183_v1  ;;  %vm5192_vm2 = vcmp.lt.s32.totalorder %v12708_v40, 4 }
 0x4d3   : > { %8039 = vcosq.f32 %v5037_v2  ;;  %v5188_v26 = vor.u32 %v5187_v33, %v5186_v62  ;;  %v5264_v13 = vand.u32 2139095040, %v14539_v8  ;;  %v7465_v9 = vmin.u32 %v5119_v37, %v12726_v49 }
 0x4d4   : > { %8041 = vsinq.f32 %v5037_v2  ;;  %vm5190_vm3 = vcmp.lt.s32.totalorder %v12708_v40, 2  ;;  %vm5191_vm4 = vcmp.lt.s32.totalorder %v12708_v40, 3  ;;  %v5193_v25 = vsel %vm5189_vm15, %v5173_v22, %v5176_v53 }
 0x4d5   : > { %v5194_v16 = vsel %vm5192_vm2, %v5182_v57, 2102212464  ;;  %v5197_v34 = vsel %vm5189_vm15, %v5176_v53, %v5179_v60  ;;  %v5198_v59 = vsel %vm5192_vm2, %v5185_v39, 920167782  ;;  %v5043_v12 = vand.u32 3, %v5042_v11 }
 0x4d6   : > { %v5121_v52 = vclz %v7465_v9  ;;  %v5140_v61 = vsel %vm5055_vm0, %v5139_v63, %v5115_v41  ;;  %v5201_v36 = vsel %vm5189_vm15, %v5179_v60, %v5182_v57  ;;  %v5195_v29 = vsel %vm5191_vm4, %v5179_v60, %v5194_v16 }
 0x4d7   : > { %v5199_v0 = vsel %vm5191_vm4, %v5182_v57, %v5198_v59  ;;  %v5202_v44 = vsel %vm5192_vm2, %v5188_v26, 1326507024  ;;  %v5265_v31 = vshrl.u32 %v5264_v13, 23  ;;  %v5196_v11 = vsel %vm5190_vm3, %v5193_v25, %v5195_v29 }
 0x4d8   : > { %v7466_v56 = vadd.s32 4294967294, %v5121_v52  ;;  %v5200_v54 = vsel %vm5190_vm3, %v5197_v34, %v5199_v0  ;;  %v5203_v28 = vsel %vm5191_vm4, %v5185_v39, %v5202_v44  ;;  %v5109_v7 = vadd.s32 %v12683_v42, %v12691_v4 }
 0x4d9   : > { %v5204_v17 = vsel %vm5190_vm3, %v5201_v36, %v5203_v28  ;;  %v12779_v41 = vmul.u32.u64.low %v12712_v27, %v5200_v54  ;;  %v12780_v18 = vmul.u32.u64.high %v12712_v27, %v5200_v54, %v12779_v41  ;;  %v7472_v43 = vadd.s32 4294967169, %v5265_v31 }
 0x4da   : > { %vm7467_vm5 = vcmp.lt.s32.totalorder %v7466_v56, 0  ;;  %v12784_v45 = vmul.u32.u64.low %v12712_v27, %v5204_v17  ;;  %v12785_v3 = vmul.u32.u64.high %v12712_v27, %v5204_v17, %v12784_v45  ;;  %v5142_v19 = vsel %vm12740_vm1, 0, %v5140_v61 }
 0x4db   : > { %v5124_v35 = vsel %vm7467_vm5, 0, %v7466_v56  ;;  %v5212_v42 = vmul.u32 %v12712_v27, %v5196_v11  ;;  %v5261_v4 = vand.u32 2147483647, %v14539_v8  ;;  %v5271_v55 = vadd.s32 1, %v7472_v43 }
 0x4dc   : > { %v5125_v40 = vsub.s32 32, %v5124_v35  ;;  %v5126_v21 = vshll.u32 %v12726_v49, %v5124_v35  ;;  %v5129_v46 = vsub.s32 4294967266, %v5124_v35  ;;  %vm5041_vm6 = vweird.f32 %v14528_v6 }
 0x4dd   : > { %v5215_v48 = vadd.s32 1, %v12780_v18  ;;  %vm5048_vm7 = vcmp.eq.s32.totalorder %v5043_v12, 2  ;;  %vm5214_vm8 = vc.u32 %v12785_v3, %v12779_v41  ;;  %v5146_v63 = vadd.s32 3, %v5142_v19 }
 0x4de   : > { %v5127_v30 = vshrl.u32 %v5109_v7, %v5125_v40  ;;  %v5130_v38 = vadd.s32 127, %v5129_v46  ;;  %v5268_v22 = vand.u32 8388607, %v5261_v4  ;;  %vm5272_vm10 = vcmp.gt.s32.totalorder %v5271_v55, 0 }
 0x4df   : > { %v5216_v27 = vsel %vm5214_vm8, %v5215_v48, %v12780_v18  ;;  %v5273_v50 = vsel %vm5272_vm10, %v5271_v55, 0  ;;  %vm5044_vm11 = vcmp.lt.s32.totalorder %v5043_v12, 2  ;;  %vm5045_vm9 = vcmp.eq.s32.totalorder %v5043_v12, 0  ;;  %v14540_v12 = vld [vmem:[#allocation13_spill] sm:$0xff] }
 0x4e0   : > { %v8040_v49 = vpop.eup %8039  ;;  %v5128_v53 = vor.u32 %v5127_v30, %v5126_v21  ;;  %v5131_v1 = vshll.u32 %v5130_v38, 23  ;;  %v5217_v58 = vadd.s32 %v5216_v27, %v5212_v42  ;;  %v5275_v33 = vand.u32 31, %v5273_v50 }
 0x4e1   : > { %v8042_v60 = vpop.eup %8041  ;;  %v5049_v62 = vxor.u32 2147483648, %v8040_v49  ;;  %v12800_v13 = vand.u32 3, %v5146_v63  ;;  %v5269_v9 = vor.u32 8388608, %v5268_v22  ;;  %v5274_v54 = vshrl.u32 %v5273_v50, 5 }
 0x4e2   : > { %v5046_v2 = vxor.u32 2147483648, %v8042_v60  ;;  %v5132_v37 = vor.u32 4788187, %v5131_v1  ;;  %v5135_v57 = vcvt.s32.f32 %v5128_v53  ;;  %v5218_v39 = vadd.s32 536870912, %v5217_v58 }
 0x4e3   : > { %v5050_v26 = vsel %vm5048_vm7, %v5049_v62, %v8042_v60  ;;  %v5276_v25 = vsub.s32 32, %v5275_v33  ;;  %v5278_v52 = vshll.u32 %v14417_v24, %v5275_v33  ;;  %v5281_v29 = vshll.u32 %v14411_v14, %v5275_v33 }
 0x4e4   : > { %v5047_v16 = vsel %vm5045_vm9, %v8040_v49, %v5046_v2  ;;  %v5133_v34 = vand.u32 2147483647, %v5132_v37  ;;  %v5219_v59 = vshrl.u32 %v5218_v39, 30  ;;  %v5284_v0 = vshll.u32 %v14412_v20, %v5275_v33 }
 0x4e5   : > { %v5051_v61 = vsel %vm5044_vm11, %v5047_v16, %v5050_v26  ;;  %v5279_v36 = vshrl.u32 %v14411_v14, %v5276_v25  ;;  %v5282_v11 = vshrl.u32 %v14412_v20, %v5276_v25  ;;  %v5285_v28 = vshrl.u32 %v14413_v15, %v5276_v25 }
 0x4e6   : > { %v5052_v44 = vsel %vm5041_vm6, nan, %v5051_v61  ;;  %v5136_v31 = vmul.f32 %v5135_v57, %v5133_v34  ;;  %v5220_v56 = vshll.u32 %v5219_v59, 30  ;;  %v5287_v7 = vshll.u32 %v14413_v15, %v5275_v33 }
 0x4e7   : > { %v5365_v17 = vand.u32 2147483647, %v14540_v12  ;;  %7176 = vst [vmem:[%s9691_s5 + $0x158] sm:$0xff] %v5052_v44  ;;  %v5288_v43 = vshrl.u32 %v14414_v23, %v5276_v25  ;;  %v5368_v6 = vand.u32 2139095040, %v14540_v12  ;;  %vm5159_vm12 = vcmp.lt.s32.totalorder %v14534_v47, 0 }
 0x4e8   : > { %v5137_v18 = vxor.u32 2147483648, %v5136_v31  ;;  %v12814_v45 = vsub.s32 %v5217_v58, %v5220_v56  ;;  %v5277_v35 = vshrl.u32 %v14417_v24, %v5276_v25  ;;  %v5280_v19 = vor.u32 %v5279_v36, %v5278_v52 }
 0x4e9   : > { %v5290_v42 = vshll.u32 %v14414_v23, %v5275_v33  ;;  %v5291_v40 = vshrl.u32 %v14415_v51, %v5276_v25  ;;  %v5283_v55 = vor.u32 %v5282_v11, %v5281_v29  ;;  %v5286_v48 = vor.u32 %v5285_v28, %v5284_v0 }
 0x4ea   : > { %v5138_v21 = vsel %vm5055_vm0, %v5137_v18, %v5136_v31  ;;  %v5223_v46 = vsub.s32 0, %v12814_v45  ;;  %v5289_v38 = vor.u32 %v5288_v43, %v5287_v7  ;;  %vm5293_vm13 = vcmp.lt.s32.totalorder %v5274_v54, 1 }
 0x4eb   : > { %v5141_v30 = vsel %vm12740_vm1, %v14531_v10, %v5138_v21  ;;  %v5292_v63 = vor.u32 %v5291_v40, %v5290_v42  ;;  %vm12830_vm14 = vcmp.le.f32.partialorder %v5157_v32, 0.7853982  ;;  %v5309_v49 = vshll.u32 %v5269_v9, 8 }
 0x4ec   : > { %8043 = vcosq.f32 %v5141_v30  ;;  %v7469_v22 = vmin.u32 %v5223_v46, %v12814_v45  ;;  %v5369_v53 = vshrl.u32 %v5368_v6, 23  ;;  %v5243_v1 = vsub.s32 4, %v5219_v59 }
 0x4ed   : > { %8045 = vsinq.f32 %v5141_v30  ;;  %vm5295_vm15 = vcmp.lt.s32.totalorder %v5274_v54, 3  ;;  %vm5296_vm0 = vcmp.lt.s32.totalorder %v5274_v54, 4  ;;  %vm5294_vm1 = vcmp.lt.s32.totalorder %v5274_v54, 2 }
 0x4ee   : > { %v5225_v5 = vclz %v7469_v22  ;;  %v5297_v58 = vsel %vm5293_vm13, %v5277_v35, %v5280_v19  ;;  %v5301_v50 = vsel %vm5293_vm13, %v5280_v19, %v5283_v55  ;;  %v5298_v60 = vsel %vm5296_vm0, %v5286_v48, 2102212464 }
 0x4ef   : > { %v5302_v62 = vsel %vm5296_vm0, %v5289_v38, 920167782  ;;  %v5305_v32 = vsel %vm5293_vm13, %v5283_v55, %v5286_v48  ;;  %v5306_v33 = vsel %vm5296_vm0, %v5292_v63, 1326507024  ;;  %v5299_v37 = vsel %vm5295_vm15, %v5283_v55, %v5298_v60 }
 0x4f0   : > { %v7470_v2 = vadd.s32 4294967294, %v5225_v5  ;;  %v5303_v57 = vsel %vm5295_vm15, %v5286_v48, %v5302_v62  ;;  %v5307_v39 = vsel %vm5295_vm15, %v5289_v38, %v5306_v33  ;;  %v5213_v26 = vadd.s32 %v12779_v41, %v12785_v3 }
 0x4f1   : > { %v5304_v9 = vsel %vm5294_vm1, %v5301_v50, %v5303_v57  ;;  %v5308_v25 = vsel %vm5294_vm1, %v5305_v32, %v5307_v39  ;;  %v7476_v16 = vadd.s32 4294967169, %v5369_v53  ;;  %v5244_v34 = vsel %vm5159_vm12, %v5243_v1, %v5219_v59 }
 0x4f2   : > { %vm7471_vm2 = vcmp.lt.s32.totalorder %v7470_v2, 0  ;;  %v12844_v52 = vmul.u32.u64.low %v5309_v49, %v5308_v25  ;;  %v12845_v61 = vmul.u32.u64.high %v5309_v49, %v5308_v25, %v12844_v52  ;;  %v5300_v29 = vsel %vm5294_vm1, %v5297_v58, %v5299_v37 }
 0x4f3   : > { %v5228_v36 = vsel %vm7471_vm2, 0, %v7470_v2  ;;  %v12848_v0 = vmul.u32.u64.low %v5309_v49, %v5304_v9  ;;  %v12849_v44 = vmul.u32.u64.high %v5309_v49, %v5304_v9, %v12848_v0  ;;  %v5375_v56 = vadd.s32 1, %v7476_v16 }
 0x4f4   : > { %v5229_v41 = vsub.s32 32, %v5228_v36  ;;  %v5230_v3 = vshll.u32 %v12814_v45, %v5228_v36  ;;  %v5233_v31 = vsub.s32 4294967266, %v5228_v36  ;;  %vm5145_vm3 = vweird.f32 %v14531_v10  ;;  %v14543_v36 = vld [vmem:[#allocation42_spill] sm:$0xff] }
 0x4f5   : > { %v5246_v59 = vsel %vm12830_vm14, 0, %v5244_v34  ;;  %v5316_v7 = vmul.u32 %v5309_v49, %v5300_v29  ;;  %vm5318_vm4 = vc.u32 %v12845_v61, %v12848_v0  ;;  %vm5148_vm5 = vcmp.lt.s32.totalorder %v12800_v13, 2 }
 0x4f6   : > { %v5231_v11 = vshrl.u32 %v5213_v26, %v5229_v41  ;;  %v5234_v28 = vadd.s32 127, %v5233_v31  ;;  %v5319_v54 = vadd.s32 1, %v12849_v44  ;;  %v5372_v18 = vand.u32 8388607, %v5365_v17 }
 0x4f7   : > { %vm5376_vm6 = vcmp.gt.s32.totalorder %v5375_v56, 0  ;;  %vm5149_vm7 = vcmp.eq.s32.totalorder %v12800_v13, 0  ;;  %vm5152_vm8 = vcmp.eq.s32.totalorder %v12800_v13, 2  ;;  %v5250_v19 = vadd.s32 3, %v5246_v59 }
 0x4f8   : > { %v5232_v45 = vor.u32 %v5231_v11, %v5230_v3  ;;  %v5235_v43 = vshll.u32 %v5234_v28, 23  ;;  %v5377_v6 = vsel %vm5376_vm6, %v5375_v56, 0  ;;  %v5320_v42 = vsel %vm5318_vm4, %v5319_v54, %v12849_v44 }
 0x4f9   : > { %v8044_v35 = vpop.eup %8043  ;;  %v5379_v40 = vand.u32 31, %v5377_v6  ;;  %v5321_v30 = vadd.s32 %v5320_v42, %v5316_v7  ;;  %v5373_v63 = vor.u32 8388608, %v5372_v18  ;;  %v5378_v26 = vshrl.u32 %v5377_v6, 5 }
 0x4fa   : > { %v8046_v21 = vpop.eup %8045  ;;  %v5153_v46 = vxor.u32 2147483648, %v8044_v35  ;;  %v5236_v55 = vor.u32 4788187, %v5235_v43  ;;  %v5239_v48 = vcvt.s32.f32 %v5232_v45  ;;  %v5472_v29 = vand.u32 2139095040, %v14543_v36 }
 0x4fb   : > { %v5150_v38 = vxor.u32 2147483648, %v8046_v21  ;;  %v5380_v22 = vsub.s32 32, %v5379_v40  ;;  %v5382_v49 = vshll.u32 %v14417_v24, %v5379_v40  ;;  %v5322_v5 = vadd.s32 536870912, %v5321_v30 }
 0x4fc   : > { %v5154_v53 = vsel %vm5152_vm8, %v5153_v46, %v8046_v21  ;;  %v5237_v1 = vand.u32 2147483647, %v5236_v55  ;;  %v5385_v58 = vshll.u32 %v14411_v14, %v5379_v40  ;;  %v5388_v32 = vshll.u32 %v14412_v20, %v5379_v40 }
 0x4fd   : > { %v5151_v50 = vsel %vm5149_vm7, %v8044_v35, %v5150_v38  ;;  %v5383_v60 = vshrl.u32 %v14411_v14, %v5380_v22  ;;  %v5386_v62 = vshrl.u32 %v14412_v20, %v5380_v22  ;;  %v5323_v37 = vshrl.u32 %v5322_v5, 30 }
 0x4fe   : > { %v5155_v33 = vsel %vm5148_vm5, %v5151_v50, %v5154_v53  ;;  %v5240_v2 = vmul.f32 %v5239_v48, %v5237_v1  ;;  %v5389_v57 = vshrl.u32 %v14413_v15, %v5380_v22  ;;  %v5391_v9 = vshll.u32 %v14413_v15, %v5379_v40 }
 0x4ff   : > { %v5156_v39 = vsel %vm5145_vm3, nan, %v5155_v33  ;;  %v12878_v25 = vshll.u32 %v5373_v63, 8  ;;  %v5324_v34 = vshll.u32 %v5323_v37, 30  ;;  %v5381_v52 = vshrl.u32 %v14417_v24, %v5380_v22 }
 0x500   : > { %v5241_v16 = vxor.u32 2147483648, %v5240_v2  ;;  %7177 = vst [vmem:[%s9691_s5 + $0x160] sm:$0xff] %v5156_v39  ;;  %v5384_v13 = vor.u32 %v5383_v60, %v5382_v49  ;;  %v5392_v44 = vshrl.u32 %v14414_v23, %v5380_v22  ;;  %v5394_v41 = vshll.u32 %v14414_v23, %v5379_v40 }
 0x501   : > { %v5395_v10 = vshrl.u32 %v14415_v51, %v5380_v22  ;;  %v12888_v31 = vsub.s32 %v5321_v30, %v5324_v34  ;;  %v5387_v56 = vor.u32 %v5386_v62, %v5385_v58  ;;  %v5390_v59 = vor.u32 %v5389_v57, %v5388_v32 }
 0x502   : > { %v5242_v3 = vsel %vm5159_vm12, %v5241_v16, %v5240_v2  ;;  %v5393_v28 = vor.u32 %v5392_v44, %v5391_v9  ;;  %vm5397_vm10 = vcmp.lt.s32.totalorder %v5378_v26, 1  ;;  %vm5399_vm11 = vcmp.lt.s32.totalorder %v5378_v26, 3 }
 0x503   : > { %v5245_v11 = vsel %vm12830_vm14, %v14534_v47, %v5242_v3  ;;  %v5396_v7 = vor.u32 %v5395_v10, %v5394_v41  ;;  %v5327_v54 = vsub.s32 0, %v12888_v31  ;;  %v5473_v18 = vshrl.u32 %v5472_v29, 23 }
 0x504   : > { %8047 = vcosq.f32 %v5245_v11  ;;  %vm5398_vm9 = vcmp.lt.s32.totalorder %v5378_v26, 2  ;;  %vm5400_vm13 = vcmp.lt.s32.totalorder %v5378_v26, 4  ;;  %v5401_v45 = vsel %vm5397_vm10, %v5381_v52, %v5384_v13 }
 0x505   : > { %8049 = vsinq.f32 %v5245_v11  ;;  %v7473_v43 = vmin.u32 %v5327_v54, %v12888_v31  ;;  %v5402_v6 = vsel %vm5400_vm13, %v5390_v59, 2102212464  ;;  %v5405_v35 = vsel %vm5397_vm10, %v5384_v13, %v5387_v56 }
 0x506   : > { %v5406_v42 = vsel %vm5400_vm13, %v5393_v28, 920167782  ;;  %v5403_v27 = vsel %vm5399_vm11, %v5387_v56, %v5402_v6  ;;  %v5409_v21 = vsel %vm5397_vm10, %v5387_v56, %v5390_v59  ;;  %v5410_v46 = vsel %vm5400_vm13, %v5396_v7, 1326507024 }
 0x507   : > { %v5407_v40 = vsel %vm5399_vm11, %v5390_v59, %v5406_v42  ;;  %v5251_v55 = vand.u32 3, %v5250_v19  ;;  %v5329_v48 = vclz %v7473_v43  ;;  %v5347_v30 = vsub.s32 4, %v5323_v37  ;;  %v14546_v43 = vld [vmem:[#allocation14_spill] sm:$0xff] }
 0x508   : > { %v5404_v38 = vsel %vm5398_vm9, %v5401_v45, %v5403_v27  ;;  %v5408_v63 = vsel %vm5398_vm9, %v5405_v35, %v5407_v40  ;;  %v5411_v22 = vsel %vm5399_vm11, %v5393_v28, %v5410_v46  ;;  %v7480_v49 = vadd.s32 4294967169, %v5473_v18 }
 0x509   : > { %v7474_v53 = vadd.s32 4294967294, %v5329_v48  ;;  %v5412_v1 = vsel %vm5398_vm9, %v5409_v21, %v5411_v22  ;;  %v12902_v5 = vmul.u32.u64.low %v12878_v25, %v5408_v63  ;;  %v12903_v58 = vmul.u32.u64.high %v12878_v25, %v5408_v63, %v12902_v5 }
 0x50a   : > { %vm5263_vm12 = vcmp.lt.s32.totalorder %v14539_v8, 0  ;;  %v12908_v19 = vmul.u32.u64.low %v12878_v25, %v5412_v1  ;;  %v12909_v50 = vmul.u32.u64.high %v12878_v25, %v5412_v1, %v12908_v19  ;;  %v5469_v60 = vand.u32 2147483647, %v14543_v36 }
 0x50b   : > { %vm5249_vm14 = vweird.f32 %v14534_v47  ;;  %v5317_v62 = vadd.s32 %v12848_v0, %v12845_v61  ;;  %vm7475_vm15 = vcmp.lt.s32.totalorder %v7474_v53, 0  ;;  %v5348_v32 = vsel %vm5263_vm12, %v5347_v30, %v5323_v37 }
 0x50c   : > { %v5479_v33 = vadd.s32 1, %v7480_v49  ;;  %vm5252_vm0 = vcmp.lt.s32.totalorder %v5251_v55, 2  ;;  %vm12919_vm1 = vcmp.le.f32.partialorder %v5261_v4, 0.7853982  ;;  %v5332_v57 = vsel %vm7475_vm15, 0, %v7474_v53 }
 0x50d   : > { %v5420_v39 = vmul.u32 %v12878_v25, %v5404_v38  ;;  %v5333_v26 = vsub.s32 32, %v5332_v57  ;;  %v5334_v9 = vshll.u32 %v12888_v31, %v5332_v57  ;;  %v5337_v16 = vsub.s32 4294967266, %v5332_v57 }
 0x50e   : > { %v5423_v61 = vadd.s32 1, %v12903_v58  ;;  %v5350_v0 = vsel %vm12919_vm1, 0, %v5348_v32  ;;  %vm5422_vm2 = vc.u32 %v12909_v50, %v12902_v5  ;;  %v5476_v4 = vand.u32 8388607, %v5469_v60 }
 0x50f   : > { %vm5480_vm3 = vcmp.gt.s32.totalorder %v5479_v33, 0  ;;  %v5335_v37 = vshrl.u32 %v5317_v62, %v5333_v26  ;;  %v5338_v34 = vadd.s32 127, %v5337_v16  ;;  %vm5253_vm4 = vcmp.eq.s32.totalorder %v5251_v55, 0 }
 0x510   : > { %v5424_v25 = vsel %vm5422_vm2, %v5423_v61, %v12903_v58  ;;  %v5481_v52 = vsel %vm5480_vm3, %v5479_v33, 0  ;;  %vm5256_vm5 = vcmp.eq.s32.totalorder %v5251_v55, 2  ;;  %v12933_v56 = vadd.s32 3, %v5350_v0 }
 0x511   : > { %v8048_v29 = vpop.eup %8047  ;;  %v5425_v13 = vadd.s32 %v5424_v25, %v5420_v39  ;;  %v5483_v44 = vand.u32 31, %v5481_v52  ;;  %v5336_v3 = vor.u32 %v5335_v37, %v5334_v9  ;;  %v5339_v31 = vshll.u32 %v5338_v34, 23 }
 0x512   : > { %v8050_v41 = vpop.eup %8049  ;;  %v5257_v10 = vxor.u32 2147483648, %v8048_v29  ;;  %v5477_v28 = vor.u32 8388608, %v5476_v4  ;;  %v5573_v6 = vand.u32 2147483647, %v14546_v43  ;;  %v5482_v27 = vshrl.u32 %v5481_v52, 5 }
 0x513   : > { %v5254_v59 = vxor.u32 2147483648, %v8050_v41  ;;  %v5426_v11 = vadd.s32 536870912, %v5425_v13  ;;  %v5484_v7 = vsub.s32 32, %v5483_v44  ;;  %v5340_v18 = vor.u32 4788187, %v5339_v31 }
 0x514   : > { %v5258_v54 = vsel %vm5256_vm5, %v5257_v10, %v8050_v41  ;;  %v5343_v45 = vcvt.s32.f32 %v5336_v3  ;;  %v5576_v40 = vand.u32 2139095040, %v14546_v43  ;;  %v5486_v48 = vshll.u32 %v14417_v24, %v5483_v44 }
 0x515   : > { %v5255_v35 = vsel %vm5253_vm4, %v8048_v29, %v5254_v59  ;;  %v5427_v42 = vshrl.u32 %v5426_v11, 30  ;;  %v5341_v46 = vand.u32 2147483647, %v5340_v18  ;;  %v5489_v30 = vshll.u32 %v14411_v14, %v5483_v44 }
 0x516   : > { %v5259_v21 = vsel %vm5252_vm0, %v5255_v35, %v5258_v54  ;;  %v5487_v22 = vshrl.u32 %v14411_v14, %v5484_v7  ;;  %v5490_v49 = vshrl.u32 %v14412_v20, %v5484_v7  ;;  %v5492_v1 = vshll.u32 %v14412_v20, %v5483_v44 }
 0x517   : > { %v5260_v38 = vsel %vm5249_vm14, nan, %v5259_v21  ;;  %v5428_v63 = vshll.u32 %v5427_v42, 30  ;;  %v5344_v53 = vmul.f32 %v5343_v45, %v5341_v46  ;;  %v5493_v58 = vshrl.u32 %v14413_v15, %v5484_v7 }
 0x518   : > { %v5495_v55 = vshll.u32 %v14413_v15, %v5483_v44  ;;  %7178 = vst [vmem:[%s9691_s5 + $0x168] sm:$0xff] %v5260_v38  ;;  %v5496_v62 = vshrl.u32 %v14414_v23, %v5484_v7  ;;  %v5498_v47 = vshll.u32 %v14414_v23, %v5483_v44  ;;  %v12953_v32 = vshll.u32 %v5477_v28, 8 }
 0x519   : > { %v12949_v19 = vsub.s32 %v5425_v13, %v5428_v63  ;;  %v5345_v33 = vxor.u32 2147483648, %v5344_v53  ;;  %v5421_v57 = vadd.s32 %v12902_v5, %v12909_v50  ;;  %v5499_v39 = vshrl.u32 %v14415_v51, %v5484_v7 }
 0x51a   : > { %v5577_v26 = vshrl.u32 %v5576_v40, 23  ;;  %vm5367_vm6 = vcmp.lt.s32.totalorder %v14540_v12, 0  ;;  %v5485_v16 = vshrl.u32 %v14417_v24, %v5484_v7  ;;  %v5488_v61 = vor.u32 %v5487_v22, %v5486_v48 }
 0x51b   : > { %v5431_v9 = vsub.s32 0, %v12949_v19  ;;  %v5491_v0 = vor.u32 %v5490_v49, %v5489_v30  ;;  %v5346_v4 = vsel %vm5263_vm12, %v5345_v33, %v5344_v53  ;;  %v5494_v37 = vor.u32 %v5493_v58, %v5492_v1 }
 0x51c   : > { %v5497_v34 = vor.u32 %v5496_v62, %v5495_v55  ;;  %vm5501_vm7 = vcmp.lt.s32.totalorder %v5482_v27, 1  ;;  %v5349_v5 = vsel %vm12919_vm1, %v14539_v8, %v5346_v4  ;;  %v5500_v25 = vor.u32 %v5499_v39, %v5498_v47 }
 0x51d   : > { %v7477_v50 = vmin.u32 %v5431_v9, %v12949_v19  ;;  %vm5504_vm8 = vcmp.lt.s32.totalorder %v5482_v27, 4  ;;  %8051 = vcosq.f32 %v5349_v5  ;;  %vm5502_vm10 = vcmp.lt.s32.totalorder %v5482_v27, 2 }
 0x51e   : > { %vm5503_vm11 = vcmp.lt.s32.totalorder %v5482_v27, 3  ;;  %v5506_v52 = vsel %vm5504_vm8, %v5494_v37, 2102212464  ;;  %8053 = vsinq.f32 %v5349_v5  ;;  %v5505_v13 = vsel %vm5501_vm7, %v5485_v16, %v5488_v61 }
 0x51f   : > { %v5433_v29 = vclz %v7477_v50  ;;  %v5509_v44 = vsel %vm5501_vm7, %v5488_v61, %v5491_v0  ;;  %v5451_v41 = vsub.s32 4, %v5427_v42  ;;  %v5507_v10 = vsel %vm5503_vm11, %v5491_v0, %v5506_v52 }
 0x520   : > { %v5510_v3 = vsel %vm5504_vm8, %v5497_v34, 920167782  ;;  %v5513_v2 = vsel %vm5501_vm7, %v5491_v0, %v5494_v37  ;;  %v5514_v11 = vsel %vm5504_vm8, %v5500_v25, 1326507024  ;;  %v5580_v28 = vand.u32 8388607, %v5573_v6 }
 0x521   : > { %v7478_v31 = vadd.s32 4294967294, %v5433_v29  ;;  %v5511_v59 = vsel %vm5503_vm11, %v5494_v37, %v5510_v3  ;;  %v5508_v7 = vsel %vm5502_vm10, %v5505_v13, %v5507_v10  ;;  %v5515_v18 = vsel %vm5503_vm11, %v5497_v34, %v5514_v11 }
 0x522   : > { %v5512_v54 = vsel %vm5502_vm10, %v5509_v44, %v5511_v59  ;;  %v7484_v45 = vadd.s32 4294967169, %v5577_v26  ;;  %v5516_v35 = vsel %vm5502_vm10, %v5513_v2, %v5515_v18  ;;  %v5452_v48 = vsel %vm5367_vm6, %v5451_v41, %v5427_v42 }
 0x523   : > { %vm7479_vm9 = vcmp.lt.s32.totalorder %v7478_v31, 0  ;;  %v12979_v40 = vmul.u32.u64.low %v12953_v32, %v5512_v54  ;;  %v12980_v21 = vmul.u32.u64.high %v12953_v32, %v5512_v54, %v12979_v40  ;;  %v5355_v27 = vand.u32 3, %v12933_v56 }
 0x524   : > { %v5436_v46 = vsel %vm7479_vm9, 0, %v7478_v31  ;;  %v12986_v30 = vmul.u32.u64.low %v12953_v32, %v5516_v35  ;;  %v12987_v38 = vmul.u32.u64.high %v12953_v32, %v5516_v35, %v12986_v30  ;;  %v5583_v53 = vadd.s32 1, %v7484_v45 }
 0x525   : > { %v5437_v63 = vsub.s32 32, %v5436_v46  ;;  %v5438_v22 = vshll.u32 %v12949_v19, %v5436_v46  ;;  %v5441_v49 = vsub.s32 4294967266, %v5436_v46  ;;  %vm12993_vm13 = vcmp.le.f32.partialorder %v5365_v17, 0.7853982 }
 0x526   : > { %v5524_v58 = vmul.u32 %v12953_v32, %v5508_v7  ;;  %v5527_v62 = vadd.s32 1, %v12980_v21  ;;  %vm5584_vm12 = vcmp.gt.s32.totalorder %v5583_v53, 0  ;;  %v5454_v19 = vsel %vm12993_vm13, 0, %v5452_v48 }
 0x527   : > { %v5439_v42 = vshrl.u32 %v5421_v57, %v5437_v63  ;;  %v5442_v55 = vadd.s32 127, %v5441_v49  ;;  %vm5526_vm14 = vc.u32 %v12987_v38, %v12979_v40  ;;  %v5581_v56 = vor.u32 8388608, %v5580_v28 }
 0x528   : > { %v5585_v47 = vsel %vm5584_vm12, %v5583_v53, 0  ;;  %v5528_v39 = vsel %vm5526_vm14, %v5527_v62, %v12980_v21  ;;  %vm5353_vm15 = vweird.f32 %v14539_v8  ;;  %vm5356_vm0 = vcmp.lt.s32.totalorder %v5355_v27, 2 }
 0x529   : > { %v5440_v33 = vor.u32 %v5439_v42, %v5438_v22  ;;  %v5443_v17 = vshll.u32 %v5442_v55, 23  ;;  %v13004_v26 = vshrl.u32 %v5585_v47, 5  ;;  %v5529_v32 = vadd.s32 %v5528_v39, %v5524_v58 }
 0x52a   : > { %v5587_v57 = vand.u32 31, %v5585_v47  ;;  %v8052_v9 = vpop.eup %8051  ;;  %vm5357_vm1 = vcmp.eq.s32.totalorder %v5355_v27, 0  ;;  %vm5360_vm2 = vcmp.eq.s32.totalorder %v5355_v27, 2  ;;  %v5458_v37 = vadd.s32 3, %v5454_v19  ;;  %v14551_v19 = vld [vmem:[#allocation43_spill] sm:$0xff] }
 0x52b   : > { %v5444_v16 = vor.u32 4788187, %v5443_v17  ;;  %v5447_v61 = vcvt.s32.f32 %v5440_v33  ;;  %v8054_v0 = vpop.eup %8053  ;;  %v5361_v4 = vxor.u32 2147483648, %v8052_v9  ;;  %v5530_v34 = vadd.s32 536870912, %v5529_v32 }
 0x52c   : > { %v5588_v5 = vsub.s32 32, %v5587_v57  ;;  %v5358_v50 = vxor.u32 2147483648, %v8054_v0  ;;  %vm5605_vm3 = vcmp.lt.s32.totalorder %v13004_v26, 1  ;;  %v13008_v52 = vshll.u32 %v5581_v56, 8 }
 0x52d   : > { %v5445_v25 = vand.u32 2147483647, %v5444_v16  ;;  %v5362_v29 = vsel %vm5360_vm2, %v5361_v4, %v8054_v0  ;;  %v5531_v13 = vshrl.u32 %v5530_v34, 30  ;;  %v5590_v44 = vshll.u32 %v14417_v24, %v5587_v57 }
 0x52e   : > { %v5591_v41 = vshrl.u32 %v14411_v14, %v5588_v5  ;;  %v5359_v10 = vsel %vm5357_vm1, %v8052_v9, %v5358_v50  ;;  %vm5471_vm4 = vcmp.lt.s32.totalorder %v14543_v36, 0  ;;  %v5593_v2 = vshll.u32 %v14411_v14, %v5587_v57 }
 0x52f   : > { %v5448_v3 = vmul.f32 %v5447_v61, %v5445_v25  ;;  %v5594_v31 = vshrl.u32 %v14412_v20, %v5588_v5  ;;  %v5363_v59 = vsel %vm5356_vm0, %v5359_v10, %v5362_v29  ;;  %v5532_v11 = vshll.u32 %v5531_v13, 30 }
 0x530   : > { %v5596_v28 = vshll.u32 %v14412_v20, %v5587_v57  ;;  %v5597_v7 = vshrl.u32 %v14413_v15, %v5588_v5  ;;  %v5364_v54 = vsel %vm5353_vm15, nan, %v5363_v59  ;;  %v5555_v45 = vsub.s32 4, %v5531_v13 }
 0x531   : > { %v5449_v18 = vxor.u32 2147483648, %v5448_v3  ;;  %v5589_v35 = vshrl.u32 %v14417_v24, %v5588_v5  ;;  %v13022_v21 = vsub.s32 %v5529_v32, %v5532_v11  ;;  %v5592_v46 = vor.u32 %v5591_v41, %v5590_v44  ;;  %7179 = vst [vmem:[%s9691_s5 + $0x170] sm:$0xff] %v5364_v54 }
 0x532   : > { %v5599_v48 = vshll.u32 %v14413_v15, %v5587_v57  ;;  %v5600_v30 = vshrl.u32 %v14414_v23, %v5588_v5  ;;  %v5595_v22 = vor.u32 %v5594_v31, %v5593_v2  ;;  %v5602_v49 = vshll.u32 %v14414_v23, %v5587_v57 }
 0x533   : > { %v5450_v63 = vsel %vm5367_vm6, %v5449_v18, %v5448_v3  ;;  %v5603_v8 = vshrl.u32 %v14415_v51, %v5588_v5  ;;  %vm13036_vm5 = vcmp.le.f32.partialorder %v5469_v60, 0.7853982  ;;  %v5535_v58 = vsub.s32 0, %v13022_v21 }
 0x534   : > { %v5453_v53 = vsel %vm12993_vm13, %v14540_v12, %v5450_v63  ;;  %v5598_v42 = vor.u32 %v5597_v7, %v5596_v28  ;;  %v5601_v55 = vor.u32 %v5600_v30, %v5599_v48  ;;  %vm5608_vm6 = vcmp.lt.s32.totalorder %v13004_v26, 4 }
 0x535   : > { %8055 = vcosq.f32 %v5453_v53  ;;  %v5604_v62 = vor.u32 %v5603_v8, %v5602_v49  ;;  %v5680_v56 = vand.u32 2139095040, %v14551_v19  ;;  %v7481_v1 = vmin.u32 %v5535_v58, %v13022_v21 }
 0x536   : > { %8057 = vsinq.f32 %v5453_v53  ;;  %vm5606_vm7 = vcmp.lt.s32.totalorder %v13004_v26, 2  ;;  %vm5607_vm8 = vcmp.lt.s32.totalorder %v13004_v26, 3  ;;  %v5609_v60 = vsel %vm5605_vm3, %v5589_v35, %v5592_v46 }
 0x537   : > { %v5610_v47 = vsel %vm5608_vm6, %v5598_v42, 2102212464  ;;  %v5613_v33 = vsel %vm5605_vm3, %v5592_v46, %v5595_v22  ;;  %v5614_v17 = vsel %vm5608_vm6, %v5601_v55, 920167782  ;;  %v5459_v39 = vand.u32 3, %v5458_v37 }
 0x538   : > { %v5537_v32 = vclz %v7481_v1  ;;  %v5556_v57 = vsel %vm5471_vm4, %v5555_v45, %v5531_v13  ;;  %v5617_v9 = vsel %vm5605_vm3, %v5595_v22, %v5598_v42  ;;  %v5611_v16 = vsel %vm5607_vm8, %v5595_v22, %v5610_v47 }
 0x539   : > { %v5615_v61 = vsel %vm5607_vm8, %v5598_v42, %v5614_v17  ;;  %v5618_v0 = vsel %vm5608_vm6, %v5604_v62, 1326507024  ;;  %v5681_v4 = vshrl.u32 %v5680_v56, 23  ;;  %v5612_v37 = vsel %vm5606_vm7, %v5609_v60, %v5611_v16 }
 0x53a   : > { %v7482_v34 = vadd.s32 4294967294, %v5537_v32  ;;  %v5616_v5 = vsel %vm5606_vm7, %v5613_v33, %v5615_v61  ;;  %v5619_v50 = vsel %vm5607_vm8, %v5601_v55, %v5618_v0  ;;  %v5525_v25 = vadd.s32 %v12979_v40, %v12987_v38 }
 0x53b   : > { %v5620_v29 = vsel %vm5606_vm7, %v5617_v9, %v5619_v50  ;;  %v13075_v13 = vmul.u32.u64.low %v13008_v52, %v5616_v5  ;;  %v13076_v44 = vmul.u32.u64.high %v13008_v52, %v5616_v5, %v13075_v13  ;;  %v7488_v3 = vadd.s32 4294967169, %v5681_v4 }
 0x53c   : > { %vm7483_vm10 = vcmp.lt.s32.totalorder %v7482_v34, 0  ;;  %v13080_v41 = vmul.u32.u64.low %v13008_v52, %v5620_v29  ;;  %v13081_v10 = vmul.u32.u64.high %v13008_v52, %v5620_v29, %v13080_v41  ;;  %v5558_v31 = vsel %vm13036_vm5, 0, %v5556_v57 }
 0x53d   : > { %v5540_v2 = vsel %vm7483_vm10, 0, %v7482_v34  ;;  %v5628_v40 = vmul.u32 %v13008_v52, %v5612_v37  ;;  %v5677_v38 = vand.u32 2147483647, %v14551_v19  ;;  %v5687_v28 = vadd.s32 1, %v7488_v3 }
 0x53e   : > { %v5541_v26 = vsub.s32 32, %v5540_v2  ;;  %v5542_v59 = vshll.u32 %v13022_v21, %v5540_v2  ;;  %v5545_v11 = vsub.s32 4294967266, %v5540_v2  ;;  %vm5457_vm11 = vweird.f32 %v14540_v12 }
 0x53f   : > { %v5631_v7 = vadd.s32 1, %v13076_v44  ;;  %vm5464_vm9 = vcmp.eq.s32.totalorder %v5459_v39, 2  ;;  %vm5630_vm13 = vc.u32 %v13081_v10, %v13075_v13  ;;  %v5562_v45 = vadd.s32 3, %v5558_v31 }
 0x540   : > { %v5543_v54 = vshrl.u32 %v5525_v25, %v5541_v26  ;;  %v5546_v18 = vadd.s32 127, %v5545_v11  ;;  %v5684_v35 = vand.u32 8388607, %v5677_v38  ;;  %vm5688_vm12 = vcmp.gt.s32.totalorder %v5687_v28, 0 }
 0x541   : > { %v5632_v52 = vsel %vm5630_vm13, %v5631_v7, %v13076_v44  ;;  %v5689_v63 = vsel %vm5688_vm12, %v5687_v28, 0  ;;  %vm5460_vm14 = vcmp.lt.s32.totalorder %v5459_v39, 2  ;;  %vm5461_vm15 = vcmp.eq.s32.totalorder %v5459_v39, 0  ;;  %v14552_v39 = vld [vmem:[#allocation44_spill] sm:$0xff] }
 0x542   : > { %v8056_v21 = vpop.eup %8055  ;;  %v5544_v46 = vor.u32 %v5543_v54, %v5542_v59  ;;  %v5547_v48 = vshll.u32 %v5546_v18, 23  ;;  %v5633_v30 = vadd.s32 %v5632_v52, %v5628_v40  ;;  %v5691_v8 = vand.u32 31, %v5689_v63 }
 0x543   : > { %v8058_v22 = vpop.eup %8057  ;;  %v5465_v49 = vxor.u32 2147483648, %v8056_v21  ;;  %v13096_v56 = vand.u32 3, %v5562_v45  ;;  %v5685_v1 = vor.u32 8388608, %v5684_v35  ;;  %v5690_v5 = vshrl.u32 %v5689_v63, 5 }
 0x544   : > { %v5462_v53 = vxor.u32 2147483648, %v8058_v22  ;;  %v5548_v58 = vor.u32 4788187, %v5547_v48  ;;  %v5551_v42 = vcvt.s32.f32 %v5544_v46  ;;  %v5634_v55 = vadd.s32 536870912, %v5633_v30 }
 0x545   : > { %v5466_v62 = vsel %vm5464_vm9, %v5465_v49, %v8058_v22  ;;  %v5692_v60 = vsub.s32 32, %v5691_v8  ;;  %v5694_v32 = vshll.u32 %v14417_v24, %v5691_v8  ;;  %v5697_v16 = vshll.u32 %v14411_v14, %v5691_v8 }
 0x546   : > { %v5463_v47 = vsel %vm5461_vm15, %v8056_v21, %v5462_v53  ;;  %v5549_v33 = vand.u32 2147483647, %v5548_v58  ;;  %v5635_v17 = vshrl.u32 %v5634_v55, 30  ;;  %v5700_v61 = vshll.u32 %v14412_v20, %v5691_v8 }
 0x547   : > { %v5467_v57 = vsel %vm5460_vm14, %v5463_v47, %v5466_v62  ;;  %v5695_v9 = vshrl.u32 %v14411_v14, %v5692_v60  ;;  %v5698_v37 = vshrl.u32 %v14412_v20, %v5692_v60  ;;  %v5701_v50 = vshrl.u32 %v14413_v15, %v5692_v60 }
 0x548   : > { %v5468_v0 = vsel %vm5457_vm11, nan, %v5467_v57  ;;  %v5552_v4 = vmul.f32 %v5551_v42, %v5549_v33  ;;  %v5636_v34 = vshll.u32 %v5635_v17, 30  ;;  %v5703_v25 = vshll.u32 %v14413_v15, %v5691_v8 }
 0x549   : > { %v5781_v29 = vand.u32 2147483647, %v14552_v39  ;;  %7180 = vst [vmem:[%s9691_s5 + $0x178] sm:$0xff] %v5468_v0  ;;  %v5704_v3 = vshrl.u32 %v14414_v23, %v5692_v60  ;;  %v5784_v12 = vand.u32 2139095040, %v14552_v39  ;;  %vm5575_vm0 = vcmp.lt.s32.totalorder %v14546_v43, 0 }
 0x54a   : > { %v5553_v44 = vxor.u32 2147483648, %v5552_v4  ;;  %v13110_v41 = vsub.s32 %v5633_v30, %v5636_v34  ;;  %v5693_v2 = vshrl.u32 %v14417_v24, %v5692_v60  ;;  %v5696_v31 = vor.u32 %v5695_v9, %v5694_v32 }
 0x54b   : > { %v5706_v40 = vshll.u32 %v14414_v23, %v5691_v8  ;;  %v5707_v26 = vshrl.u32 %v14415_v51, %v5692_v60  ;;  %v5699_v28 = vor.u32 %v5698_v37, %v5697_v16  ;;  %v5702_v7 = vor.u32 %v5701_v50, %v5700_v61 }
 0x54c   : > { %v5554_v59 = vsel %vm5471_vm4, %v5553_v44, %v5552_v4  ;;  %v5639_v11 = vsub.s32 0, %v13110_v41  ;;  %v5705_v18 = vor.u32 %v5704_v3, %v5703_v25  ;;  %vm5709_vm1 = vcmp.lt.s32.totalorder %v5690_v5, 1 }
 0x54d   : > { %v5557_v54 = vsel %vm13036_vm5, %v14543_v36, %v5554_v59  ;;  %v5708_v45 = vor.u32 %v5707_v26, %v5706_v40  ;;  %vm13126_vm2 = vcmp.le.f32.partialorder %v5573_v6, 0.7853982  ;;  %v5725_v21 = vshll.u32 %v5685_v1, 8 }
 0x54e   : > { %8059 = vcosq.f32 %v5557_v54  ;;  %v7485_v35 = vmin.u32 %v5639_v11, %v13110_v41  ;;  %v5785_v46 = vshrl.u32 %v5784_v12, 23  ;;  %v5659_v48 = vsub.s32 4, %v5635_v17 }
 0x54f   : > { %8061 = vsinq.f32 %v5557_v54  ;;  %vm5711_vm3 = vcmp.lt.s32.totalorder %v5690_v5, 3  ;;  %vm5712_vm4 = vcmp.lt.s32.totalorder %v5690_v5, 4  ;;  %vm5710_vm5 = vcmp.lt.s32.totalorder %v5690_v5, 2 }
 0x550   : > { %v5641_v27 = vclz %v7485_v35  ;;  %v5713_v30 = vsel %vm5709_vm1, %v5693_v2, %v5696_v31  ;;  %v5717_v63 = vsel %vm5709_vm1, %v5696_v31, %v5699_v28  ;;  %v5714_v22 = vsel %vm5712_vm4, %v5702_v7, 2102212464 }
 0x551   : > { %v5718_v49 = vsel %vm5712_vm4, %v5705_v18, 920167782  ;;  %v5721_v6 = vsel %vm5709_vm1, %v5699_v28, %v5702_v7  ;;  %v5722_v8 = vsel %vm5712_vm4, %v5708_v45, 1326507024  ;;  %v5715_v58 = vsel %vm5711_vm3, %v5699_v28, %v5714_v22 }
 0x552   : > { %v7486_v53 = vadd.s32 4294967294, %v5641_v27  ;;  %v5719_v42 = vsel %vm5711_vm3, %v5702_v7, %v5718_v49  ;;  %v5723_v55 = vsel %vm5711_vm3, %v5705_v18, %v5722_v8  ;;  %v5629_v62 = vadd.s32 %v13075_v13, %v13081_v10 }
 0x553   : > { %v5720_v1 = vsel %vm5710_vm5, %v5717_v63, %v5719_v42  ;;  %v5724_v60 = vsel %vm5710_vm5, %v5721_v6, %v5723_v55  ;;  %v7492_v47 = vadd.s32 4294967169, %v5785_v46  ;;  %v5660_v33 = vsel %vm5575_vm0, %v5659_v48, %v5635_v17 }
 0x554   : > { %vm7487_vm6 = vcmp.lt.s32.totalorder %v7486_v53, 0  ;;  %v13140_v32 = vmul.u32.u64.low %v5725_v21, %v5724_v60  ;;  %v13141_v57 = vmul.u32.u64.high %v5725_v21, %v5724_v60, %v13140_v32  ;;  %v5716_v16 = vsel %vm5710_vm5, %v5713_v30, %v5715_v58 }
 0x555   : > { %v5644_v9 = vsel %vm7487_vm6, 0, %v7486_v53  ;;  %v13144_v61 = vmul.u32.u64.low %v5725_v21, %v5720_v1  ;;  %v13145_v0 = vmul.u32.u64.high %v5725_v21, %v5720_v1, %v13144_v61  ;;  %v5791_v34 = vadd.s32 1, %v7492_v47 }
 0x556   : > { %v5645_v13 = vsub.s32 32, %v5644_v9  ;;  %v5646_v10 = vshll.u32 %v13110_v41, %v5644_v9  ;;  %v5649_v4 = vsub.s32 4294967266, %v5644_v9  ;;  %vm5561_vm7 = vweird.f32 %v14543_v36  ;;  %v14555_v9 = vld [vmem:[#allocation45_spill] sm:$0xff] }
 0x557   : > { %v5662_v17 = vsel %vm13126_vm2, 0, %v5660_v33  ;;  %v5732_v25 = vmul.u32 %v5725_v21, %v5716_v16  ;;  %vm5734_vm8 = vc.u32 %v13141_v57, %v13144_v61  ;;  %vm5564_vm10 = vcmp.lt.s32.totalorder %v13096_v56, 2 }
 0x558   : > { %v5647_v37 = vshrl.u32 %v5629_v62, %v5645_v13  ;;  %v5650_v50 = vadd.s32 127, %v5649_v4  ;;  %v5735_v5 = vadd.s32 1, %v13145_v0  ;;  %v5788_v44 = vand.u32 8388607, %v5781_v29 }
 0x559   : > { %vm5792_vm11 = vcmp.gt.s32.totalorder %v5791_v34, 0  ;;  %vm5565_vm9 = vcmp.eq.s32.totalorder %v13096_v56, 0  ;;  %vm5568_vm13 = vcmp.eq.s32.totalorder %v13096_v56, 2  ;;  %v5666_v31 = vadd.s32 3, %v5662_v17 }
 0x55a   : > { %v5648_v41 = vor.u32 %v5647_v37, %v5646_v10  ;;  %v5651_v3 = vshll.u32 %v5650_v50, 23  ;;  %v5793_v12 = vsel %vm5792_vm11, %v5791_v34, 0  ;;  %v5736_v40 = vsel %vm5734_vm8, %v5735_v5, %v13145_v0 }
 0x55b   : > { %v8060_v2 = vpop.eup %8059  ;;  %v5795_v26 = vand.u32 31, %v5793_v12  ;;  %v5737_v54 = vadd.s32 %v5736_v40, %v5732_v25  ;;  %v5789_v45 = vor.u32 8388608, %v5788_v44  ;;  %v5794_v62 = vshrl.u32 %v5793_v12, 5 }
 0x55c   : > { %v8062_v59 = vpop.eup %8061  ;;  %v5569_v11 = vxor.u32 2147483648, %v8060_v2  ;;  %v5652_v28 = vor.u32 4788187, %v5651_v3  ;;  %v5655_v7 = vcvt.s32.f32 %v5648_v41  ;;  %v5888_v16 = vand.u32 2139095040, %v14555_v9 }
 0x55d   : > { %v5566_v18 = vxor.u32 2147483648, %v8062_v59  ;;  %v5796_v35 = vsub.s32 32, %v5795_v26  ;;  %v5798_v21 = vshll.u32 %v14417_v24, %v5795_v26  ;;  %v5738_v27 = vadd.s32 536870912, %v5737_v54 }
 0x55e   : > { %v5570_v46 = vsel %vm5568_vm13, %v5569_v11, %v8062_v59  ;;  %v5653_v48 = vand.u32 2147483647, %v5652_v28  ;;  %v5801_v30 = vshll.u32 %v14411_v14, %v5795_v26  ;;  %v5804_v6 = vshll.u32 %v14412_v20, %v5795_v26 }
 0x55f   : > { %v5567_v63 = vsel %vm5565_vm9, %v8060_v2, %v5566_v18  ;;  %v5799_v22 = vshrl.u32 %v14411_v14, %v5796_v35  ;;  %v5802_v49 = vshrl.u32 %v14412_v20, %v5796_v35  ;;  %v5739_v58 = vshrl.u32 %v5738_v27, 30 }
 0x560   : > { %v5571_v8 = vsel %vm5564_vm10, %v5567_v63, %v5570_v46  ;;  %v5656_v53 = vmul.f32 %v5655_v7, %v5653_v48  ;;  %v5805_v42 = vshrl.u32 %v14413_v15, %v5796_v35  ;;  %v5807_v1 = vshll.u32 %v14413_v15, %v5795_v26 }
 0x561   : > { %v5572_v55 = vsel %vm5561_vm7, nan, %v5571_v8  ;;  %v13174_v60 = vshll.u32 %v5789_v45, 8  ;;  %v5740_v33 = vshll.u32 %v5739_v58, 30  ;;  %v5797_v32 = vshrl.u32 %v14417_v24, %v5796_v35 }
 0x562   : > { %v5657_v47 = vxor.u32 2147483648, %v5656_v53  ;;  %7181 = vst [vmem:[%s9691_s5 + $0x180] sm:$0xff] %v5572_v55  ;;  %v5800_v56 = vor.u32 %v5799_v22, %v5798_v21  ;;  %v5808_v0 = vshrl.u32 %v14414_v23, %v5796_v35  ;;  %v5810_v13 = vshll.u32 %v14414_v23, %v5795_v26 }
 0x563   : > { %v5811_v36 = vshrl.u32 %v14415_v51, %v5796_v35  ;;  %v13184_v4 = vsub.s32 %v5737_v54, %v5740_v33  ;;  %v5803_v34 = vor.u32 %v5802_v49, %v5801_v30  ;;  %v5806_v17 = vor.u32 %v5805_v42, %v5804_v6 }
 0x564   : > { %v5658_v10 = vsel %vm5575_vm0, %v5657_v47, %v5656_v53  ;;  %v5809_v50 = vor.u32 %v5808_v0, %v5807_v1  ;;  %vm5813_vm12 = vcmp.lt.s32.totalorder %v5794_v62, 1  ;;  %vm5815_vm14 = vcmp.lt.s32.totalorder %v5794_v62, 3 }
 0x565   : > { %v5661_v37 = vsel %vm13126_vm2, %v14546_v43, %v5658_v10  ;;  %v5812_v25 = vor.u32 %v5811_v36, %v5810_v13  ;;  %v5743_v5 = vsub.s32 0, %v13184_v4  ;;  %v5889_v44 = vshrl.u32 %v5888_v16, 23 }
 0x566   : > { %8063 = vcosq.f32 %v5661_v37  ;;  %vm5814_vm15 = vcmp.lt.s32.totalorder %v5794_v62, 2  ;;  %vm5816_vm1 = vcmp.lt.s32.totalorder %v5794_v62, 4  ;;  %v5817_v41 = vsel %vm5813_vm12, %v5797_v32, %v5800_v56 }
 0x567   : > { %8065 = vsinq.f32 %v5661_v37  ;;  %v7489_v3 = vmin.u32 %v5743_v5, %v13184_v4  ;;  %v5818_v12 = vsel %vm5816_vm1, %v5806_v17, 2102212464  ;;  %v5821_v2 = vsel %vm5813_vm12, %v5800_v56, %v5803_v34 }
 0x568   : > { %v5822_v40 = vsel %vm5816_vm1, %v5809_v50, 920167782  ;;  %v5819_v52 = vsel %vm5815_vm14, %v5803_v34, %v5818_v12  ;;  %v5825_v59 = vsel %vm5813_vm12, %v5803_v34, %v5806_v17  ;;  %v5826_v11 = vsel %vm5816_vm1, %v5812_v25, 1326507024 }
 0x569   : > { %v5823_v26 = vsel %vm5815_vm14, %v5806_v17, %v5822_v40  ;;  %v5667_v28 = vand.u32 3, %v5666_v31  ;;  %v5745_v7 = vclz %v7489_v3  ;;  %v5763_v54 = vsub.s32 4, %v5739_v58  ;;  %v14558_v3 = vld [vmem:[#allocation46_spill] sm:$0xff] }
 0x56a   : > { %v5820_v18 = vsel %vm5814_vm15, %v5817_v41, %v5819_v52  ;;  %v5824_v45 = vsel %vm5814_vm15, %v5821_v2, %v5823_v26  ;;  %v5827_v35 = vsel %vm5815_vm14, %v5809_v50, %v5826_v11  ;;  %v7496_v21 = vadd.s32 4294967169, %v5889_v44 }
 0x56b   : > { %v7490_v46 = vadd.s32 4294967294, %v5745_v7  ;;  %v5828_v48 = vsel %vm5814_vm15, %v5825_v59, %v5827_v35  ;;  %v13198_v27 = vmul.u32.u64.low %v13174_v60, %v5824_v45  ;;  %v13199_v30 = vmul.u32.u64.high %v13174_v60, %v5824_v45, %v13198_v27 }
 0x56c   : > { %vm5679_vm0 = vcmp.lt.s32.totalorder %v14551_v19, 0  ;;  %v13204_v31 = vmul.u32.u64.low %v13174_v60, %v5828_v48  ;;  %v13205_v63 = vmul.u32.u64.high %v13174_v60, %v5828_v48, %v13204_v31  ;;  %v5885_v22 = vand.u32 2147483647, %v14555_v9 }
 0x56d   : > { %vm5665_vm2 = vweird.f32 %v14546_v43  ;;  %v5733_v49 = vadd.s32 %v13144_v61, %v13141_v57  ;;  %vm7491_vm3 = vcmp.lt.s32.totalorder %v7490_v46, 0  ;;  %v5764_v6 = vsel %vm5679_vm0, %v5763_v54, %v5739_v58 }
 0x56e   : > { %v5895_v8 = vadd.s32 1, %v7496_v21  ;;  %vm5668_vm4 = vcmp.lt.s32.totalorder %v5667_v28, 2  ;;  %vm13215_vm5 = vcmp.le.f32.partialorder %v5677_v38, 0.7853982  ;;  %v5748_v42 = vsel %vm7491_vm3, 0, %v7490_v46 }
 0x56f   : > { %v5836_v55 = vmul.u32 %v13174_v60, %v5820_v18  ;;  %v5749_v62 = vsub.s32 32, %v5748_v42  ;;  %v5750_v1 = vshll.u32 %v13184_v4, %v5748_v42  ;;  %v5753_v47 = vsub.s32 4294967266, %v5748_v42 }
 0x570   : > { %v5839_v57 = vadd.s32 1, %v13199_v30  ;;  %v5766_v61 = vsel %vm13215_vm5, 0, %v5764_v6  ;;  %vm5838_vm6 = vc.u32 %v13205_v63, %v13198_v27  ;;  %v5892_v38 = vand.u32 8388607, %v5885_v22 }
 0x571   : > { %vm5896_vm7 = vcmp.gt.s32.totalorder %v5895_v8, 0  ;;  %v5751_v58 = vshrl.u32 %v5733_v49, %v5749_v62  ;;  %v5754_v33 = vadd.s32 127, %v5753_v47  ;;  %vm5669_vm8 = vcmp.eq.s32.totalorder %v5667_v28, 0 }
 0x572   : > { %v5840_v60 = vsel %vm5838_vm6, %v5839_v57, %v13199_v30  ;;  %v5897_v32 = vsel %vm5896_vm7, %v5895_v8, 0  ;;  %vm5672_vm10 = vcmp.eq.s32.totalorder %v5667_v28, 2  ;;  %v13229_v34 = vadd.s32 3, %v5766_v61 }
 0x573   : > { %v8064_v16 = vpop.eup %8063  ;;  %v5841_v56 = vadd.s32 %v5840_v60, %v5836_v55  ;;  %v5899_v0 = vand.u32 31, %v5897_v32  ;;  %v5752_v10 = vor.u32 %v5751_v58, %v5750_v1  ;;  %v5755_v4 = vshll.u32 %v5754_v33, 23 }
 0x574   : > { %v8066_v13 = vpop.eup %8065  ;;  %v5673_v36 = vxor.u32 2147483648, %v8064_v16  ;;  %v5893_v50 = vor.u32 8388608, %v5892_v38  ;;  %v5989_v12 = vand.u32 2147483647, %v14558_v3  ;;  %v5898_v52 = vshrl.u32 %v5897_v32, 5 }
 0x575   : > { %v5670_v17 = vxor.u32 2147483648, %v8066_v13  ;;  %v5842_v37 = vadd.s32 536870912, %v5841_v56  ;;  %v5900_v25 = vsub.s32 32, %v5899_v0  ;;  %v5756_v44 = vor.u32 4788187, %v5755_v4 }
 0x576   : > { %v5674_v5 = vsel %vm5672_vm10, %v5673_v36, %v8066_v13  ;;  %v5759_v41 = vcvt.s32.f32 %v5752_v10  ;;  %v5992_v26 = vand.u32 2139095040, %v14558_v3  ;;  %v5902_v7 = vshll.u32 %v14417_v24, %v5899_v0 }
 0x577   : > { %v5671_v2 = vsel %vm5669_vm8, %v8064_v16, %v5670_v17  ;;  %v5843_v40 = vshrl.u32 %v5842_v37, 30  ;;  %v5757_v11 = vand.u32 2147483647, %v5756_v44  ;;  %v5905_v54 = vshll.u32 %v14411_v14, %v5899_v0 }
 0x578   : > { %v5675_v59 = vsel %vm5668_vm4, %v5671_v2, %v5674_v5  ;;  %v5903_v35 = vshrl.u32 %v14411_v14, %v5900_v25  ;;  %v5906_v21 = vshrl.u32 %v14412_v20, %v5900_v25  ;;  %v5908_v48 = vshll.u32 %v14412_v20, %v5899_v0 }
 0x579   : > { %v5676_v18 = vsel %vm5665_vm2, nan, %v5675_v59  ;;  %v5844_v45 = vshll.u32 %v5843_v40, 30  ;;  %v5760_v46 = vmul.f32 %v5759_v41, %v5757_v11  ;;  %v5909_v30 = vshrl.u32 %v14413_v15, %v5900_v25 }
 0x57a   : > { %v5911_v28 = vshll.u32 %v14413_v15, %v5899_v0  ;;  %7182 = vst [vmem:[%s9691_s5 + $0x188] sm:$0xff] %v5676_v18  ;;  %v5912_v49 = vshrl.u32 %v14414_v23, %v5900_v25  ;;  %v5914_v43 = vshll.u32 %v14414_v23, %v5899_v0  ;;  %v13249_v6 = vshll.u32 %v5893_v50, 8 }
 0x57b   : > { %v13245_v31 = vsub.s32 %v5841_v56, %v5844_v45  ;;  %v5761_v8 = vxor.u32 2147483648, %v5760_v46  ;;  %v5837_v42 = vadd.s32 %v13198_v27, %v13205_v63  ;;  %v5915_v55 = vshrl.u32 %v14415_v51, %v5900_v25 }
 0x57c   : > { %v5993_v62 = vshrl.u32 %v5992_v26, 23  ;;  %vm5783_vm11 = vcmp.lt.s32.totalorder %v14552_v39, 0  ;;  %v5901_v47 = vshrl.u32 %v14417_v24, %v5900_v25  ;;  %v5904_v57 = vor.u32 %v5903_v35, %v5902_v7 }
 0x57d   : > { %v5847_v1 = vsub.s32 0, %v13245_v31  ;;  %v5907_v61 = vor.u32 %v5906_v21, %v5905_v54  ;;  %v5762_v38 = vsel %vm5679_vm0, %v5761_v8, %v5760_v46  ;;  %v5910_v58 = vor.u32 %v5909_v30, %v5908_v48 }
 0x57e   : > { %v5913_v33 = vor.u32 %v5912_v49, %v5911_v28  ;;  %vm5917_vm9 = vcmp.lt.s32.totalorder %v5898_v52, 1  ;;  %v5765_v27 = vsel %vm13215_vm5, %v14551_v19, %v5762_v38  ;;  %v5916_v60 = vor.u32 %v5915_v55, %v5914_v43 }
 0x57f   : > { %v7493_v63 = vmin.u32 %v5847_v1, %v13245_v31  ;;  %vm5920_vm13 = vcmp.lt.s32.totalorder %v5898_v52, 4  ;;  %8067 = vcosq.f32 %v5765_v27  ;;  %vm5918_vm12 = vcmp.lt.s32.totalorder %v5898_v52, 2 }
 0x580   : > { %vm5919_vm14 = vcmp.lt.s32.totalorder %v5898_v52, 3  ;;  %v5922_v32 = vsel %vm5920_vm13, %v5910_v58, 2102212464  ;;  %8069 = vsinq.f32 %v5765_v27  ;;  %v5921_v56 = vsel %vm5917_vm9, %v5901_v47, %v5904_v57 }
 0x581   : > { %v5849_v16 = vclz %v7493_v63  ;;  %v5925_v0 = vsel %vm5917_vm9, %v5904_v57, %v5907_v61  ;;  %v5867_v13 = vsub.s32 4, %v5843_v40  ;;  %v5923_v36 = vsel %vm5919_vm14, %v5907_v61, %v5922_v32 }
 0x582   : > { %v5926_v10 = vsel %vm5920_vm13, %v5913_v33, 920167782  ;;  %v5929_v53 = vsel %vm5917_vm9, %v5907_v61, %v5910_v58  ;;  %v5930_v37 = vsel %vm5920_vm13, %v5916_v60, 1326507024  ;;  %v5996_v50 = vand.u32 8388607, %v5989_v12 }
 0x583   : > { %v7494_v4 = vadd.s32 4294967294, %v5849_v16  ;;  %v5927_v17 = vsel %vm5919_vm14, %v5910_v58, %v5926_v10  ;;  %v5924_v25 = vsel %vm5918_vm12, %v5921_v56, %v5923_v36  ;;  %v5931_v44 = vsel %vm5919_vm14, %v5913_v33, %v5930_v37 }
 0x584   : > { %v5928_v5 = vsel %vm5918_vm12, %v5925_v0, %v5927_v17  ;;  %v7500_v41 = vadd.s32 4294967169, %v5993_v62  ;;  %v5932_v2 = vsel %vm5918_vm12, %v5929_v53, %v5931_v44  ;;  %v5868_v7 = vsel %vm5783_vm11, %v5867_v13, %v5843_v40 }
 0x585   : > { %vm7495_vm15 = vcmp.lt.s32.totalorder %v7494_v4, 0  ;;  %v13275_v26 = vmul.u32.u64.low %v13249_v6, %v5928_v5  ;;  %v13276_v59 = vmul.u32.u64.high %v13249_v6, %v5928_v5, %v13275_v26  ;;  %v5771_v52 = vand.u32 3, %v13229_v34 }
 0x586   : > { %v5852_v11 = vsel %vm7495_vm15, 0, %v7494_v4  ;;  %v13282_v54 = vmul.u32.u64.low %v13249_v6, %v5932_v2  ;;  %v13283_v18 = vmul.u32.u64.high %v13249_v6, %v5932_v2, %v13282_v54  ;;  %v5999_v46 = vadd.s32 1, %v7500_v41 }
 0x587   : > { %v5853_v45 = vsub.s32 32, %v5852_v11  ;;  %v5854_v35 = vshll.u32 %v13245_v31, %v5852_v11  ;;  %v5857_v21 = vsub.s32 4294967266, %v5852_v11  ;;  %vm13289_vm1 = vcmp.le.f32.partialorder %v5781_v29, 0.7853982 }
 0x588   : > { %v5940_v30 = vmul.u32 %v13249_v6, %v5924_v25  ;;  %v5943_v49 = vadd.s32 1, %v13276_v59  ;;  %vm6000_vm0 = vcmp.gt.s32.totalorder %v5999_v46, 0  ;;  %v5870_v31 = vsel %vm13289_vm1, 0, %v5868_v7 }
 0x589   : > { %v5855_v40 = vshrl.u32 %v5837_v42, %v5853_v45  ;;  %v5858_v28 = vadd.s32 127, %v5857_v21  ;;  %vm5942_vm2 = vc.u32 %v13283_v18, %v13275_v26  ;;  %v5997_v34 = vor.u32 8388608, %v5996_v50 }
 0x58a   : > { %v6001_v43 = vsel %vm6000_vm0, %v5999_v46, 0  ;;  %v5944_v55 = vsel %vm5942_vm2, %v5943_v49, %v13276_v59  ;;  %vm5769_vm3 = vweird.f32 %v14551_v19  ;;  %vm5772_vm4 = vcmp.lt.s32.totalorder %v5771_v52, 2 }
 0x58b   : > { %v5856_v8 = vor.u32 %v5855_v40, %v5854_v35  ;;  %v5859_v29 = vshll.u32 %v5858_v28, 23  ;;  %v13300_v62 = vshrl.u32 %v6001_v43, 5  ;;  %v5945_v6 = vadd.s32 %v5944_v55, %v5940_v30 }
 0x58c   : > { %v6003_v42 = vand.u32 31, %v6001_v43  ;;  %v8068_v1 = vpop.eup %8067  ;;  %vm5773_vm5 = vcmp.eq.s32.totalorder %v5771_v52, 0  ;;  %vm5776_vm6 = vcmp.eq.s32.totalorder %v5771_v52, 2  ;;  %v5874_v58 = vadd.s32 3, %v5870_v31  ;;  %v14563_v31 = vld [vmem:[#allocation16_spill] sm:$0xff] }
 0x58d   : > { %v5860_v47 = vor.u32 4788187, %v5859_v29  ;;  %v5863_v57 = vcvt.s32.f32 %v5856_v8  ;;  %v8070_v61 = vpop.eup %8069  ;;  %v5777_v38 = vxor.u32 2147483648, %v8068_v1  ;;  %v5946_v33 = vadd.s32 536870912, %v5945_v6 }
 0x58e   : > { %v6004_v27 = vsub.s32 32, %v6003_v42  ;;  %v5774_v63 = vxor.u32 2147483648, %v8070_v61  ;;  %vm6021_vm7 = vcmp.lt.s32.totalorder %v13300_v62, 1  ;;  %v13304_v32 = vshll.u32 %v5997_v34, 8 }
 0x58f   : > { %v5861_v60 = vand.u32 2147483647, %v5860_v47  ;;  %v5778_v16 = vsel %vm5776_vm6, %v5777_v38, %v8070_v61  ;;  %v5947_v56 = vshrl.u32 %v5946_v33, 30  ;;  %v6006_v0 = vshll.u32 %v14417_v24, %v6003_v42 }
 0x590   : > { %v6007_v13 = vshrl.u32 %v14411_v14, %v6004_v27  ;;  %v5775_v36 = vsel %vm5773_vm5, %v8068_v1, %v5774_v63  ;;  %vm5887_vm8 = vcmp.lt.s32.totalorder %v14555_v9, 0  ;;  %v6009_v53 = vshll.u32 %v14411_v14, %v6003_v42 }
 0x591   : > { %v5864_v10 = vmul.f32 %v5863_v57, %v5861_v60  ;;  %v6010_v4 = vshrl.u32 %v14412_v20, %v6004_v27  ;;  %v5779_v17 = vsel %vm5772_vm4, %v5775_v36, %v5778_v16  ;;  %v5948_v37 = vshll.u32 %v5947_v56, 30 }
 0x592   : > { %v6012_v50 = vshll.u32 %v14412_v20, %v6003_v42  ;;  %v6013_v25 = vshrl.u32 %v14413_v15, %v6004_v27  ;;  %v5780_v5 = vsel %vm5769_vm3, nan, %v5779_v17  ;;  %v5971_v41 = vsub.s32 4, %v5947_v56 }
 0x593   : > { %v5865_v44 = vxor.u32 2147483648, %v5864_v10  ;;  %v6005_v2 = vshrl.u32 %v14417_v24, %v6004_v27  ;;  %v13318_v59 = vsub.s32 %v5945_v6, %v5948_v37  ;;  %v6008_v11 = vor.u32 %v6007_v13, %v6006_v0  ;;  %7183 = vst [vmem:[%s9691_s5 + $0x190] sm:$0xff] %v5780_v5 }
 0x594   : > { %v6015_v7 = vshll.u32 %v14413_v15, %v6003_v42  ;;  %v6016_v54 = vshrl.u32 %v14414_v23, %v6004_v27  ;;  %v6011_v35 = vor.u32 %v6010_v4, %v6009_v53  ;;  %v6018_v21 = vshll.u32 %v14414_v23, %v6003_v42 }
 0x595   : > { %v5866_v45 = vsel %vm5783_vm11, %v5865_v44, %v5864_v10  ;;  %v6019_v19 = vshrl.u32 %v14415_v51, %v6004_v27  ;;  %vm13332_vm10 = vcmp.le.f32.partialorder %v5885_v22, 0.7853982  ;;  %v5951_v30 = vsub.s32 0, %v13318_v59 }
 0x596   : > { %v5869_v46 = vsel %vm13289_vm1, %v14552_v39, %v5866_v45  ;;  %v6014_v40 = vor.u32 %v6013_v25, %v6012_v50  ;;  %v6017_v28 = vor.u32 %v6016_v54, %v6015_v7  ;;  %vm6024_vm11 = vcmp.lt.s32.totalorder %v13300_v62, 4 }
 0x597   : > { %8071 = vcosq.f32 %v5869_v46  ;;  %v6020_v49 = vor.u32 %v6019_v19, %v6018_v21  ;;  %v6096_v34 = vand.u32 2139095040, %v14563_v31  ;;  %v7497_v48 = vmin.u32 %v5951_v30, %v13318_v59 }
 0x598   : > { %8073 = vsinq.f32 %v5869_v46  ;;  %vm6022_vm9 = vcmp.lt.s32.totalorder %v13300_v62, 2  ;;  %vm6023_vm13 = vcmp.lt.s32.totalorder %v13300_v62, 3  ;;  %v6025_v22 = vsel %vm6021_vm7, %v6005_v2, %v6008_v11 }
 0x599   : > { %v6026_v43 = vsel %vm6024_vm11, %v6014_v40, 2102212464  ;;  %v6029_v8 = vsel %vm6021_vm7, %v6008_v11, %v6011_v35  ;;  %v6030_v29 = vsel %vm6024_vm11, %v6017_v28, 920167782  ;;  %v5875_v55 = vand.u32 3, %v5874_v58 }
 0x59a   : > { %v5953_v6 = vclz %v7497_v48  ;;  %v5972_v42 = vsel %vm5887_vm8, %v5971_v41, %v5947_v56  ;;  %v6033_v1 = vsel %vm6021_vm7, %v6011_v35, %v6014_v40  ;;  %v6027_v47 = vsel %vm6023_vm13, %v6011_v35, %v6026_v43 }
 0x59b   : > { %v6031_v57 = vsel %vm6023_vm13, %v6014_v40, %v6030_v29  ;;  %v6034_v61 = vsel %vm6024_vm11, %v6020_v49, 1326507024  ;;  %v6097_v38 = vshrl.u32 %v6096_v34, 23  ;;  %v6028_v58 = vsel %vm6022_vm9, %v6025_v22, %v6027_v47 }
 0x59c   : > { %v7498_v33 = vadd.s32 4294967294, %v5953_v6  ;;  %v6032_v27 = vsel %vm6022_vm9, %v6029_v8, %v6031_v57  ;;  %v6035_v63 = vsel %vm6023_vm13, %v6017_v28, %v6034_v61  ;;  %v5941_v60 = vadd.s32 %v13275_v26, %v13283_v18 }
 0x59d   : > { %v6036_v16 = vsel %vm6022_vm9, %v6033_v1, %v6035_v63  ;;  %v13371_v56 = vmul.u32.u64.low %v13304_v32, %v6032_v27  ;;  %v13372_v0 = vmul.u32.u64.high %v13304_v32, %v6032_v27, %v13371_v56  ;;  %v7504_v10 = vadd.s32 4294967169, %v6097_v38 }
 0x59e   : > { %vm7499_vm12 = vcmp.lt.s32.totalorder %v7498_v33, 0  ;;  %v13376_v13 = vmul.u32.u64.low %v13304_v32, %v6036_v16  ;;  %v13377_v36 = vmul.u32.u64.high %v13304_v32, %v6036_v16, %v13376_v13  ;;  %v5974_v4 = vsel %vm13332_vm10, 0, %v5972_v42 }
 0x59f   : > { %v5956_v53 = vsel %vm7499_vm12, 0, %v7498_v33  ;;  %v6044_v26 = vmul.u32 %v13304_v32, %v6028_v58  ;;  %v6093_v18 = vand.u32 2147483647, %v14563_v31  ;;  %v6103_v50 = vadd.s32 1, %v7504_v10 }
 0x5a0   : > { %v5957_v62 = vsub.s32 32, %v5956_v53  ;;  %v5958_v17 = vshll.u32 %v13318_v59, %v5956_v53  ;;  %v5961_v37 = vsub.s32 4294967266, %v5956_v53  ;;  %vm5873_vm14 = vweird.f32 %v14552_v39 }
 0x5a1   : > { %v6047_v25 = vadd.s32 1, %v13372_v0  ;;  %vm5880_vm15 = vcmp.eq.s32.totalorder %v5875_v55, 2  ;;  %vm6046_vm1 = vc.u32 %v13377_v36, %v13371_v56  ;;  %v5978_v41 = vadd.s32 3, %v5974_v4 }
 0x5a2   : > { %v5959_v5 = vshrl.u32 %v5941_v60, %v5957_v62  ;;  %v5962_v44 = vadd.s32 127, %v5961_v37  ;;  %v6100_v2 = vand.u32 8388607, %v6093_v18  ;;  %vm6104_vm0 = vcmp.gt.s32.totalorder %v6103_v50, 0 }
 0x5a3   : > { %v6048_v32 = vsel %vm6046_vm1, %v6047_v25, %v13372_v0  ;;  %v6105_v45 = vsel %vm6104_vm0, %v6103_v50, 0  ;;  %vm5876_vm2 = vcmp.lt.s32.totalorder %v5875_v55, 2  ;;  %vm5877_vm3 = vcmp.eq.s32.totalorder %v5875_v55, 0  ;;  %v14564_v55 = vld [vmem:[#allocation17_spill] sm:$0xff] }
 0x5a4   : > { %v8072_v59 = vpop.eup %8071  ;;  %v5960_v11 = vor.u32 %v5959_v5, %v5958_v17  ;;  %v5963_v7 = vshll.u32 %v5962_v44, 23  ;;  %v6049_v54 = vadd.s32 %v6048_v32, %v6044_v26  ;;  %v6107_v19 = vand.u32 31, %v6105_v45 }
 0x5a5   : > { %v8074_v35 = vpop.eup %8073  ;;  %v5881_v21 = vxor.u32 2147483648, %v8072_v59  ;;  %v13392_v34 = vand.u32 3, %v5978_v41  ;;  %v6101_v48 = vor.u32 8388608, %v6100_v2  ;;  %v6106_v27 = vshrl.u32 %v6105_v45, 5 }
 0x5a6   : > { %v5878_v46 = vxor.u32 2147483648, %v8074_v35  ;;  %v5964_v30 = vor.u32 4788187, %v5963_v7  ;;  %v5967_v40 = vcvt.s32.f32 %v5960_v11  ;;  %v6050_v28 = vadd.s32 536870912, %v6049_v54 }
 0x5a7   : > { %v5882_v49 = vsel %vm5880_vm15, %v5881_v21, %v8074_v35  ;;  %v6108_v22 = vsub.s32 32, %v6107_v19  ;;  %v6110_v6 = vshll.u32 %v14417_v24, %v6107_v19  ;;  %v6113_v47 = vshll.u32 %v14411_v14, %v6107_v19 }
 0x5a8   : > { %v5879_v43 = vsel %vm5877_vm3, %v8072_v59, %v5878_v46  ;;  %v5965_v8 = vand.u32 2147483647, %v5964_v30  ;;  %v6051_v29 = vshrl.u32 %v6050_v28, 30  ;;  %v6116_v57 = vshll.u32 %v14412_v20, %v6107_v19 }
 0x5a9   : > { %v5883_v42 = vsel %vm5876_vm2, %v5879_v43, %v5882_v49  ;;  %v6111_v1 = vshrl.u32 %v14411_v14, %v6108_v22  ;;  %v6114_v58 = vshrl.u32 %v14412_v20, %v6108_v22  ;;  %v6117_v63 = vshrl.u32 %v14413_v15, %v6108_v22 }
 0x5aa   : > { %v5884_v61 = vsel %vm5873_vm14, nan, %v5883_v42  ;;  %v5968_v38 = vmul.f32 %v5967_v40, %v5965_v8  ;;  %v6052_v33 = vshll.u32 %v6051_v29, 30  ;;  %v6119_v60 = vshll.u32 %v14413_v15, %v6107_v19 }
 0x5ab   : > { %v6197_v16 = vand.u32 2147483647, %v14564_v55  ;;  %7184 = vst [vmem:[%s9691_s5 + $0x198] sm:$0xff] %v5884_v61  ;;  %v6120_v10 = vshrl.u32 %v14414_v23, %v6108_v22  ;;  %v6200_v39 = vand.u32 2139095040, %v14564_v55  ;;  %vm5991_vm4 = vcmp.lt.s32.totalorder %v14558_v3, 0 }
 0x5ac   : > { %v5969_v0 = vxor.u32 2147483648, %v5968_v38  ;;  %v13406_v13 = vsub.s32 %v6049_v54, %v6052_v33  ;;  %v6109_v53 = vshrl.u32 %v14417_v24, %v6108_v22  ;;  %v6112_v4 = vor.u32 %v6111_v1, %v6110_v6 }
 0x5ad   : > { %v6122_v26 = vshll.u32 %v14414_v23, %v6107_v19  ;;  %v6123_v62 = vshrl.u32 %v14415_v51, %v6108_v22  ;;  %v6115_v50 = vor.u32 %v6114_v58, %v6113_v47  ;;  %v6118_v25 = vor.u32 %v6117_v63, %v6116_v57 }
 0x5ae   : > { %v5970_v17 = vsel %vm5887_vm8, %v5969_v0, %v5968_v38  ;;  %v6055_v37 = vsub.s32 0, %v13406_v13  ;;  %v6121_v44 = vor.u32 %v6120_v10, %v6119_v60  ;;  %vm6125_vm5 = vcmp.lt.s32.totalorder %v6106_v27, 1 }
 0x5af   : > { %v5973_v5 = vsel %vm13332_vm10, %v14555_v9, %v5970_v17  ;;  %v6124_v41 = vor.u32 %v6123_v62, %v6122_v26  ;;  %vm13422_vm6 = vcmp.le.f32.partialorder %v5989_v12, 0.7853982  ;;  %v6141_v59 = vshll.u32 %v6101_v48, 8 }
 0x5b0   : > { %8075 = vcosq.f32 %v5973_v5  ;;  %v7501_v2 = vmin.u32 %v6055_v37, %v13406_v13  ;;  %v6201_v11 = vshrl.u32 %v6200_v39, 23  ;;  %v6075_v7 = vsub.s32 4, %v6051_v29 }
 0x5b1   : > { %8077 = vsinq.f32 %v5973_v5  ;;  %vm6127_vm7 = vcmp.lt.s32.totalorder %v6106_v27, 3  ;;  %vm6128_vm8 = vcmp.lt.s32.totalorder %v6106_v27, 4  ;;  %vm6126_vm10 = vcmp.lt.s32.totalorder %v6106_v27, 2 }
 0x5b2   : > { %v6057_v52 = vclz %v7501_v2  ;;  %v6129_v54 = vsel %vm6125_vm5, %v6109_v53, %v6112_v4  ;;  %v6133_v45 = vsel %vm6125_vm5, %v6112_v4, %v6115_v50  ;;  %v6130_v35 = vsel %vm6128_vm8, %v6118_v25, 2102212464 }
 0x5b3   : > { %v6134_v21 = vsel %vm6128_vm8, %v6121_v44, 920167782  ;;  %v6137_v12 = vsel %vm6125_vm5, %v6115_v50, %v6118_v25  ;;  %v6138_v19 = vsel %vm6128_vm8, %v6124_v41, 1326507024  ;;  %v6131_v30 = vsel %vm6127_vm7, %v6115_v50, %v6130_v35 }
 0x5b4   : > { %v7502_v46 = vadd.s32 4294967294, %v6057_v52  ;;  %v6135_v40 = vsel %vm6127_vm7, %v6118_v25, %v6134_v21  ;;  %v6139_v28 = vsel %vm6127_vm7, %v6121_v44, %v6138_v19  ;;  %v6045_v49 = vadd.s32 %v13371_v56, %v13377_v36 }
 0x5b5   : > { %v6136_v48 = vsel %vm6126_vm10, %v6133_v45, %v6135_v40  ;;  %v6140_v22 = vsel %vm6126_vm10, %v6137_v12, %v6139_v28  ;;  %v7508_v43 = vadd.s32 4294967169, %v6201_v11  ;;  %v6076_v8 = vsel %vm5991_vm4, %v6075_v7, %v6051_v29 }
 0x5b6   : > { %vm7503_vm11 = vcmp.lt.s32.totalorder %v7502_v46, 0  ;;  %v13436_v6 = vmul.u32.u64.low %v6141_v59, %v6140_v22  ;;  %v13437_v42 = vmul.u32.u64.high %v6141_v59, %v6140_v22, %v13436_v6  ;;  %v6132_v47 = vsel %vm6126_vm10, %v6129_v54, %v6131_v30 }
 0x5b7   : > { %v6060_v1 = vsel %vm7503_vm11, 0, %v7502_v46  ;;  %v13440_v57 = vmul.u32.u64.low %v6141_v59, %v6136_v48  ;;  %v13441_v61 = vmul.u32.u64.high %v6141_v59, %v6136_v48, %v13440_v57  ;;  %v6207_v33 = vadd.s32 1, %v7508_v43 }
 0x5b8   : > { %v6061_v56 = vsub.s32 32, %v6060_v1  ;;  %v6062_v36 = vshll.u32 %v13406_v13, %v6060_v1  ;;  %v6065_v38 = vsub.s32 4294967266, %v6060_v1  ;;  %vm5977_vm9 = vweird.f32 %v14555_v9  ;;  %v14567_v1 = vld [vmem:[#allocation18_spill] sm:$0xff] }
 0x5b9   : > { %v6078_v29 = vsel %vm13422_vm6, 0, %v6076_v8  ;;  %v6148_v60 = vmul.u32 %v6141_v59, %v6132_v47  ;;  %vm6150_vm13 = vc.u32 %v13437_v42, %v13440_v57  ;;  %vm5980_vm12 = vcmp.lt.s32.totalorder %v13392_v34, 2 }
 0x5ba   : > { %v6063_v58 = vshrl.u32 %v6045_v49, %v6061_v56  ;;  %v6066_v63 = vadd.s32 127, %v6065_v38  ;;  %v6151_v27 = vadd.s32 1, %v13441_v61  ;;  %v6204_v0 = vand.u32 8388607, %v6197_v16 }
 0x5bb   : > { %vm6208_vm14 = vcmp.gt.s32.totalorder %v6207_v33, 0  ;;  %vm5981_vm15 = vcmp.eq.s32.totalorder %v13392_v34, 0  ;;  %vm5984_vm1 = vcmp.eq.s32.totalorder %v13392_v34, 2  ;;  %v6082_v4 = vadd.s32 3, %v6078_v29 }
 0x5bc   : > { %v6064_v13 = vor.u32 %v6063_v58, %v6062_v36  ;;  %v6067_v10 = vshll.u32 %v6066_v63, 23  ;;  %v6209_v39 = vsel %vm6208_vm14, %v6207_v33, 0  ;;  %v6152_v26 = vsel %vm6150_vm13, %v6151_v27, %v13441_v61 }
 0x5bd   : > { %v8076_v53 = vpop.eup %8075  ;;  %v6211_v62 = vand.u32 31, %v6209_v39  ;;  %v6153_v5 = vadd.s32 %v6152_v26, %v6148_v60  ;;  %v6205_v41 = vor.u32 8388608, %v6204_v0  ;;  %v6210_v49 = vshrl.u32 %v6209_v39, 5 }
 0x5be   : > { %v8078_v17 = vpop.eup %8077  ;;  %v5985_v37 = vxor.u32 2147483648, %v8076_v53  ;;  %v6068_v50 = vor.u32 4788187, %v6067_v10  ;;  %v6071_v25 = vcvt.s32.f32 %v6064_v13  ;;  %v6304_v47 = vand.u32 2139095040, %v14567_v1 }
 0x5bf   : > { %v5982_v44 = vxor.u32 2147483648, %v8078_v17  ;;  %v6212_v2 = vsub.s32 32, %v6211_v62  ;;  %v6214_v59 = vshll.u32 %v14417_v24, %v6211_v62  ;;  %v6154_v52 = vadd.s32 536870912, %v6153_v5 }
 0x5c0   : > { %v5986_v11 = vsel %vm5984_vm1, %v5985_v37, %v8078_v17  ;;  %v6069_v7 = vand.u32 2147483647, %v6068_v50  ;;  %v6217_v54 = vshll.u32 %v14411_v14, %v6211_v62  ;;  %v6220_v12 = vshll.u32 %v14412_v20, %v6211_v62 }
 0x5c1   : > { %v5983_v45 = vsel %vm5981_vm15, %v8076_v53, %v5982_v44  ;;  %v6215_v35 = vshrl.u32 %v14411_v14, %v6212_v2  ;;  %v6218_v21 = vshrl.u32 %v14412_v20, %v6212_v2  ;;  %v6155_v30 = vshrl.u32 %v6154_v52, 30 }
 0x5c2   : > { %v5987_v19 = vsel %vm5980_vm12, %v5983_v45, %v5986_v11  ;;  %v6072_v46 = vmul.f32 %v6071_v25, %v6069_v7  ;;  %v6221_v40 = vshrl.u32 %v14413_v15, %v6212_v2  ;;  %v6223_v48 = vshll.u32 %v14413_v15, %v6211_v62 }
 0x5c3   : > { %v5988_v28 = vsel %vm5977_vm9, nan, %v5987_v19  ;;  %v13470_v22 = vshll.u32 %v6205_v41, 8  ;;  %v6156_v8 = vshll.u32 %v6155_v30, 30  ;;  %v6213_v6 = vshrl.u32 %v14417_v24, %v6212_v2 }
 0x5c4   : > { %v6073_v43 = vxor.u32 2147483648, %v6072_v46  ;;  %7185 = vst [vmem:[%s9691_s5 + $0x1a0] sm:$0xff] %v5988_v28  ;;  %v6216_v34 = vor.u32 %v6215_v35, %v6214_v59  ;;  %v6224_v61 = vshrl.u32 %v14414_v23, %v6212_v2  ;;  %v6226_v56 = vshll.u32 %v14414_v23, %v6211_v62 }
 0x5c5   : > { %v6227_v9 = vshrl.u32 %v14415_v51, %v6212_v2  ;;  %v13480_v38 = vsub.s32 %v6153_v5, %v6156_v8  ;;  %v6219_v33 = vor.u32 %v6218_v21, %v6217_v54  ;;  %v6222_v29 = vor.u32 %v6221_v40, %v6220_v12 }
 0x5c6   : > { %v6074_v36 = vsel %vm5991_vm4, %v6073_v43, %v6072_v46  ;;  %v6225_v63 = vor.u32 %v6224_v61, %v6223_v48  ;;  %vm6229_vm0 = vcmp.lt.s32.totalorder %v6210_v49, 1  ;;  %vm6231_vm2 = vcmp.lt.s32.totalorder %v6210_v49, 3 }
 0x5c7   : > { %v6077_v58 = vsel %vm13422_vm6, %v14558_v3, %v6074_v36  ;;  %v6228_v60 = vor.u32 %v6227_v9, %v6226_v56  ;;  %v6159_v27 = vsub.s32 0, %v13480_v38  ;;  %v6305_v0 = vshrl.u32 %v6304_v47, 23 }
 0x5c8   : > { %8079 = vcosq.f32 %v6077_v58  ;;  %vm6230_vm3 = vcmp.lt.s32.totalorder %v6210_v49, 2  ;;  %vm6232_vm5 = vcmp.lt.s32.totalorder %v6210_v49, 4  ;;  %v6233_v13 = vsel %vm6229_vm0, %v6213_v6, %v6216_v34 }
 0x5c9   : > { %8081 = vsinq.f32 %v6077_v58  ;;  %v7505_v10 = vmin.u32 %v6159_v27, %v13480_v38  ;;  %v6234_v39 = vsel %vm6232_vm5, %v6222_v29, 2102212464  ;;  %v6237_v53 = vsel %vm6229_vm0, %v6216_v34, %v6219_v33 }
 0x5ca   : > { %v6238_v26 = vsel %vm6232_vm5, %v6225_v63, 920167782  ;;  %v6235_v32 = vsel %vm6231_vm2, %v6219_v33, %v6234_v39  ;;  %v6241_v17 = vsel %vm6229_vm0, %v6219_v33, %v6222_v29  ;;  %v6242_v37 = vsel %vm6232_vm5, %v6228_v60, 1326507024 }
 0x5cb   : > { %v6239_v62 = vsel %vm6231_vm2, %v6222_v29, %v6238_v26  ;;  %v6083_v50 = vand.u32 3, %v6082_v4  ;;  %v6161_v25 = vclz %v7505_v10  ;;  %v6179_v5 = vsub.s32 4, %v6155_v30  ;;  %v14570_v10 = vld [vmem:[#allocation47_spill] sm:$0xff] }
 0x5cc   : > { %v6236_v44 = vsel %vm6230_vm3, %v6233_v13, %v6235_v32  ;;  %v6240_v41 = vsel %vm6230_vm3, %v6237_v53, %v6239_v62  ;;  %v6243_v2 = vsel %vm6231_vm2, %v6225_v63, %v6242_v37  ;;  %v7512_v59 = vadd.s32 4294967169, %v6305_v0 }
 0x5cd   : > { %v7506_v11 = vadd.s32 4294967294, %v6161_v25  ;;  %v6244_v7 = vsel %vm6230_vm3, %v6241_v17, %v6243_v2  ;;  %v13494_v52 = vmul.u32.u64.low %v13470_v22, %v6240_v41  ;;  %v13495_v54 = vmul.u32.u64.high %v13470_v22, %v6240_v41, %v13494_v52 }
 0x5ce   : > { %vm6095_vm4 = vcmp.lt.s32.totalorder %v14563_v31, 0  ;;  %v13500_v4 = vmul.u32.u64.low %v13470_v22, %v6244_v7  ;;  %v13501_v45 = vmul.u32.u64.high %v13470_v22, %v6244_v7, %v13500_v4  ;;  %v6301_v35 = vand.u32 2147483647, %v14567_v1 }
 0x5cf   : > { %vm6081_vm6 = vweird.f32 %v14558_v3  ;;  %v6149_v21 = vadd.s32 %v13440_v57, %v13437_v42  ;;  %vm7507_vm7 = vcmp.lt.s32.totalorder %v7506_v11, 0  ;;  %v6180_v12 = vsel %vm6095_vm4, %v6179_v5, %v6155_v30 }
 0x5d0   : > { %v6311_v19 = vadd.s32 1, %v7512_v59  ;;  %vm6084_vm8 = vcmp.lt.s32.totalorder %v6083_v50, 2  ;;  %vm13511_vm10 = vcmp.le.f32.partialorder %v6093_v18, 0.7853982  ;;  %v6164_v40 = vsel %vm7507_vm7, 0, %v7506_v11 }
 0x5d1   : > { %v6252_v28 = vmul.u32 %v13470_v22, %v6236_v44  ;;  %v6165_v49 = vsub.s32 32, %v6164_v40  ;;  %v6166_v48 = vshll.u32 %v13480_v38, %v6164_v40  ;;  %v6169_v43 = vsub.s32 4294967266, %v6164_v40 }
 0x5d2   : > { %v6255_v42 = vadd.s32 1, %v13495_v54  ;;  %v6182_v57 = vsel %vm13511_vm10, 0, %v6180_v12  ;;  %vm6254_vm11 = vc.u32 %v13501_v45, %v13494_v52  ;;  %v6308_v18 = vand.u32 8388607, %v6301_v35 }
 0x5d3   : > { %vm6312_vm9 = vcmp.gt.s32.totalorder %v6311_v19, 0  ;;  %v6167_v30 = vshrl.u32 %v6149_v21, %v6165_v49  ;;  %v6170_v8 = vadd.s32 127, %v6169_v43  ;;  %vm6085_vm13 = vcmp.eq.s32.totalorder %v6083_v50, 0 }
 0x5d4   : > { %v6256_v22 = vsel %vm6254_vm11, %v6255_v42, %v13495_v54  ;;  %v6313_v6 = vsel %vm6312_vm9, %v6311_v19, 0  ;;  %vm6088_vm12 = vcmp.eq.s32.totalorder %v6083_v50, 2  ;;  %v13525_v33 = vadd.s32 3, %v6182_v57 }
 0x5d5   : > { %v8080_v47 = vpop.eup %8079  ;;  %v6257_v34 = vadd.s32 %v6256_v22, %v6252_v28  ;;  %v6315_v61 = vand.u32 31, %v6313_v6  ;;  %v6168_v36 = vor.u32 %v6167_v30, %v6166_v48  ;;  %v6171_v38 = vshll.u32 %v6170_v8, 23 }
 0x5d6   : > { %v8082_v56 = vpop.eup %8081  ;;  %v6089_v9 = vxor.u32 2147483648, %v8080_v47  ;;  %v6309_v63 = vor.u32 8388608, %v6308_v18  ;;  %v6405_v39 = vand.u32 2147483647, %v14570_v10  ;;  %v6314_v32 = vshrl.u32 %v6313_v6, 5 }
 0x5d7   : > { %v6086_v29 = vxor.u32 2147483648, %v8082_v56  ;;  %v6258_v58 = vadd.s32 536870912, %v6257_v34  ;;  %v6316_v60 = vsub.s32 32, %v6315_v61  ;;  %v6172_v0 = vor.u32 4788187, %v6171_v38 }
 0x5d8   : > { %v6090_v27 = vsel %vm6088_vm12, %v6089_v9, %v8082_v56  ;;  %v6175_v13 = vcvt.s32.f32 %v6168_v36  ;;  %v6408_v62 = vand.u32 2139095040, %v14570_v10  ;;  %v6318_v25 = vshll.u32 %v14417_v24, %v6315_v61 }
 0x5d9   : > { %v6087_v53 = vsel %vm6085_vm13, %v8080_v47, %v6086_v29  ;;  %v6259_v26 = vshrl.u32 %v6258_v58, 30  ;;  %v6173_v37 = vand.u32 2147483647, %v6172_v0  ;;  %v6321_v5 = vshll.u32 %v14411_v14, %v6315_v61 }
 0x5da   : > { %v6091_v17 = vsel %vm6084_vm8, %v6087_v53, %v6090_v27  ;;  %v6319_v2 = vshrl.u32 %v14411_v14, %v6316_v60  ;;  %v6322_v59 = vshrl.u32 %v14412_v20, %v6316_v60  ;;  %v6324_v7 = vshll.u32 %v14412_v20, %v6315_v61 }
 0x5db   : > { %v6092_v44 = vsel %vm6081_vm6, nan, %v6091_v17  ;;  %v6260_v41 = vshll.u32 %v6259_v26, 30  ;;  %v6176_v11 = vmul.f32 %v6175_v13, %v6173_v37  ;;  %v6325_v54 = vshrl.u32 %v14413_v15, %v6316_v60 }
 0x5dc   : > { %v6327_v50 = vshll.u32 %v14413_v15, %v6315_v61  ;;  %7186 = vst [vmem:[%s9691_s5 + $0x1a8] sm:$0xff] %v6092_v44  ;;  %v6328_v21 = vshrl.u32 %v14414_v23, %v6316_v60  ;;  %v6330_v3 = vshll.u32 %v14414_v23, %v6315_v61  ;;  %v13545_v12 = vshll.u32 %v6309_v63, 8 }
 0x5dd   : > { %v13541_v4 = vsub.s32 %v6257_v34, %v6260_v41  ;;  %v6177_v19 = vxor.u32 2147483648, %v6176_v11  ;;  %v6253_v40 = vadd.s32 %v13494_v52, %v13501_v45  ;;  %v6331_v28 = vshrl.u32 %v14415_v51, %v6316_v60 }
 0x5de   : > { %v6409_v49 = vshrl.u32 %v6408_v62, 23  ;;  %vm6199_vm14 = vcmp.lt.s32.totalorder %v14564_v55, 0  ;;  %v6317_v43 = vshrl.u32 %v14417_v24, %v6316_v60  ;;  %v6320_v42 = vor.u32 %v6319_v2, %v6318_v25 }
 0x5df   : > { %v6263_v48 = vsub.s32 0, %v13541_v4  ;;  %v6323_v57 = vor.u32 %v6322_v59, %v6321_v5  ;;  %v6178_v18 = vsel %vm6095_vm4, %v6177_v19, %v6176_v11  ;;  %v6326_v30 = vor.u32 %v6325_v54, %v6324_v7 }
 0x5e0   : > { %v6329_v8 = vor.u32 %v6328_v21, %v6327_v50  ;;  %vm6333_vm15 = vcmp.lt.s32.totalorder %v6314_v32, 1  ;;  %v6181_v52 = vsel %vm13511_vm10, %v14563_v31, %v6178_v18  ;;  %v6332_v22 = vor.u32 %v6331_v28, %v6330_v3 }
 0x5e1   : > { %v7509_v45 = vmin.u32 %v6263_v48, %v13541_v4  ;;  %vm6336_vm1 = vcmp.lt.s32.totalorder %v6314_v32, 4  ;;  %8083 = vcosq.f32 %v6181_v52  ;;  %vm6334_vm0 = vcmp.lt.s32.totalorder %v6314_v32, 2 }
 0x5e2   : > { %vm6335_vm2 = vcmp.lt.s32.totalorder %v6314_v32, 3  ;;  %v6338_v6 = vsel %vm6336_vm1, %v6326_v30, 2102212464  ;;  %8085 = vsinq.f32 %v6181_v52  ;;  %v6337_v34 = vsel %vm6333_vm15, %v6317_v43, %v6320_v42 }
 0x5e3   : > { %v6265_v47 = vclz %v7509_v45  ;;  %v6341_v61 = vsel %vm6333_vm15, %v6320_v42, %v6323_v57  ;;  %v6283_v56 = vsub.s32 4, %v6259_v26  ;;  %v6339_v9 = vsel %vm6335_vm2, %v6323_v57, %v6338_v6 }
 0x5e4   : > { %v6342_v36 = vsel %vm6336_vm1, %v6329_v8, 920167782  ;;  %v6345_v46 = vsel %vm6333_vm15, %v6323_v57, %v6326_v30  ;;  %v6346_v58 = vsel %vm6336_vm1, %v6332_v22, 1326507024  ;;  %v6412_v63 = vand.u32 8388607, %v6405_v39 }
 0x5e5   : > { %v7510_v38 = vadd.s32 4294967294, %v6265_v47  ;;  %v6343_v29 = vsel %vm6335_vm2, %v6326_v30, %v6342_v36  ;;  %v6340_v60 = vsel %vm6334_vm0, %v6337_v34, %v6339_v9  ;;  %v6347_v0 = vsel %vm6335_vm2, %v6329_v8, %v6346_v58 }
 0x5e6   : > { %v6344_v27 = vsel %vm6334_vm0, %v6341_v61, %v6343_v29  ;;  %v7516_v13 = vadd.s32 4294967169, %v6409_v49  ;;  %v6348_v53 = vsel %vm6334_vm0, %v6345_v46, %v6347_v0  ;;  %v6284_v25 = vsel %vm6199_vm14, %v6283_v56, %v6259_v26 }
 0x5e7   : > { %vm7511_vm3 = vcmp.lt.s32.totalorder %v7510_v38, 0  ;;  %v13571_v62 = vmul.u32.u64.low %v13545_v12, %v6344_v27  ;;  %v13572_v17 = vmul.u32.u64.high %v13545_v12, %v6344_v27, %v13571_v62  ;;  %v6187_v32 = vand.u32 3, %v13525_v33 }
 0x5e8   : > { %v6268_v37 = vsel %vm7511_vm3, 0, %v7510_v38  ;;  %v13578_v5 = vmul.u32.u64.low %v13545_v12, %v6348_v53  ;;  %v13579_v44 = vmul.u32.u64.high %v13545_v12, %v6348_v53, %v13578_v5  ;;  %v6415_v11 = vadd.s32 1, %v7516_v13 }
 0x5e9   : > { %v6269_v41 = vsub.s32 32, %v6268_v37  ;;  %v6270_v2 = vshll.u32 %v13541_v4, %v6268_v37  ;;  %v6273_v59 = vsub.s32 4294967266, %v6268_v37  ;;  %vm13585_vm5 = vcmp.le.f32.partialorder %v6197_v16, 0.7853982 }
 0x5ea   : > { %v6356_v54 = vmul.u32 %v13545_v12, %v6340_v60  ;;  %v6359_v21 = vadd.s32 1, %v13572_v17  ;;  %vm6416_vm4 = vcmp.gt.s32.totalorder %v6415_v11, 0  ;;  %v6286_v4 = vsel %vm13585_vm5, 0, %v6284_v25 }
 0x5eb   : > { %v6271_v26 = vshrl.u32 %v6253_v40, %v6269_v41  ;;  %v6274_v50 = vadd.s32 127, %v6273_v59  ;;  %vm6358_vm6 = vc.u32 %v13579_v44, %v13571_v62  ;;  %v6413_v33 = vor.u32 8388608, %v6412_v63 }
 0x5ec   : > { %v6417_v3 = vsel %vm6416_vm4, %v6415_v11, 0  ;;  %v6360_v28 = vsel %vm6358_vm6, %v6359_v21, %v13572_v17  ;;  %vm6185_vm7 = vweird.f32 %v14563_v31  ;;  %vm6188_vm8 = vcmp.lt.s32.totalorder %v6187_v32, 2 }
 0x5ed   : > { %v6272_v19 = vor.u32 %v6271_v26, %v6270_v2  ;;  %v6275_v16 = vshll.u32 %v6274_v50, 23  ;;  %v13596_v49 = vshrl.u32 %v6417_v3, 5  ;;  %v6361_v12 = vadd.s32 %v6360_v28, %v6356_v54 }
 0x5ee   : > { %v6419_v40 = vand.u32 31, %v6417_v3  ;;  %v8084_v48 = vpop.eup %8083  ;;  %vm6189_vm10 = vcmp.eq.s32.totalorder %v6187_v32, 0  ;;  %vm6192_vm11 = vcmp.eq.s32.totalorder %v6187_v32, 2  ;;  %v6290_v30 = vadd.s32 3, %v6286_v4  ;;  %v14575_v4 = vld [vmem:[#allocation48_spill] sm:$0xff] }
 0x5ef   : > { %v6276_v43 = vor.u32 4788187, %v6275_v16  ;;  %v6279_v42 = vcvt.s32.f32 %v6272_v19  ;;  %v8086_v57 = vpop.eup %8085  ;;  %v6193_v18 = vxor.u32 2147483648, %v8084_v48  ;;  %v6362_v8 = vadd.s32 536870912, %v6361_v12 }
 0x5f0   : > { %v6420_v52 = vsub.s32 32, %v6419_v40  ;;  %v6190_v45 = vxor.u32 2147483648, %v8086_v57  ;;  %vm6437_vm9 = vcmp.lt.s32.totalorder %v13596_v49, 1  ;;  %v13600_v6 = vshll.u32 %v6413_v33, 8 }
 0x5f1   : > { %v6277_v22 = vand.u32 2147483647, %v6276_v43  ;;  %v6194_v47 = vsel %vm6192_vm11, %v6193_v18, %v8086_v57  ;;  %v6363_v34 = vshrl.u32 %v6362_v8, 30  ;;  %v6422_v61 = vshll.u32 %v14417_v24, %v6419_v40 }
 0x5f2   : > { %v6423_v56 = vshrl.u32 %v14411_v14, %v6420_v52  ;;  %v6191_v9 = vsel %vm6189_vm10, %v8084_v48, %v6190_v45  ;;  %vm6303_vm13 = vcmp.lt.s32.totalorder %v14567_v1, 0  ;;  %v6425_v46 = vshll.u32 %v14411_v14, %v6419_v40 }
 0x5f3   : > { %v6280_v36 = vmul.f32 %v6279_v42, %v6277_v22  ;;  %v6426_v38 = vshrl.u32 %v14412_v20, %v6420_v52  ;;  %v6195_v29 = vsel %vm6188_vm8, %v6191_v9, %v6194_v47  ;;  %v6364_v58 = vshll.u32 %v6363_v34, 30 }
 0x5f4   : > { %v6428_v63 = vshll.u32 %v14412_v20, %v6419_v40  ;;  %v6429_v60 = vshrl.u32 %v14413_v15, %v6420_v52  ;;  %v6196_v27 = vsel %vm6185_vm7, nan, %v6195_v29  ;;  %v6387_v13 = vsub.s32 4, %v6363_v34 }
 0x5f5   : > { %v6281_v0 = vxor.u32 2147483648, %v6280_v36  ;;  %v6421_v53 = vshrl.u32 %v14417_v24, %v6420_v52  ;;  %v13614_v17 = vsub.s32 %v6361_v12, %v6364_v58  ;;  %v6424_v37 = vor.u32 %v6423_v56, %v6422_v61  ;;  %7187 = vst [vmem:[%s9691_s5 + $0x1b0] sm:$0xff] %v6196_v27 }
 0x5f6   : > { %v6431_v25 = vshll.u32 %v14413_v15, %v6419_v40  ;;  %v6432_v5 = vshrl.u32 %v14414_v23, %v6420_v52  ;;  %v6427_v2 = vor.u32 %v6426_v38, %v6425_v46  ;;  %v6434_v59 = vshll.u32 %v14414_v23, %v6419_v40 }
 0x5f7   : > { %v6282_v41 = vsel %vm6199_vm14, %v6281_v0, %v6280_v36  ;;  %v6435_v31 = vshrl.u32 %v14415_v51, %v6420_v52  ;;  %vm13628_vm12 = vcmp.le.f32.partialorder %v6301_v35, 0.7853982  ;;  %v6367_v54 = vsub.s32 0, %v13614_v17 }
 0x5f8   : > { %v6285_v11 = vsel %vm13585_vm5, %v14564_v55, %v6282_v41  ;;  %v6430_v26 = vor.u32 %v6429_v60, %v6428_v63  ;;  %v6433_v50 = vor.u32 %v6432_v5, %v6431_v25  ;;  %vm6440_vm14 = vcmp.lt.s32.totalorder %v13596_v49, 4 }
 0x5f9   : > { %8087 = vcosq.f32 %v6285_v11  ;;  %v6436_v21 = vor.u32 %v6435_v31, %v6434_v59  ;;  %v6512_v33 = vand.u32 2139095040, %v14575_v4  ;;  %v7513_v7 = vmin.u32 %v6367_v54, %v13614_v17 }
 0x5fa   : > { %8089 = vsinq.f32 %v6285_v11  ;;  %vm6438_vm15 = vcmp.lt.s32.totalorder %v13596_v49, 2  ;;  %vm6439_vm1 = vcmp.lt.s32.totalorder %v13596_v49, 3  ;;  %v6441_v35 = vsel %vm6437_vm9, %v6421_v53, %v6424_v37 }
 0x5fb   : > { %v6442_v3 = vsel %vm6440_vm14, %v6430_v26, 2102212464  ;;  %v6445_v19 = vsel %vm6437_vm9, %v6424_v37, %v6427_v2  ;;  %v6446_v16 = vsel %vm6440_vm14, %v6433_v50, 920167782  ;;  %v6291_v28 = vand.u32 3, %v6290_v30 }
 0x5fc   : > { %v6369_v12 = vclz %v7513_v7  ;;  %v6388_v40 = vsel %vm6303_vm13, %v6387_v13, %v6363_v34  ;;  %v6449_v48 = vsel %vm6437_vm9, %v6427_v2, %v6430_v26  ;;  %v6443_v43 = vsel %vm6439_vm1, %v6427_v2, %v6442_v3 }
 0x5fd   : > { %v6447_v42 = vsel %vm6439_vm1, %v6430_v26, %v6446_v16  ;;  %v6450_v57 = vsel %vm6440_vm14, %v6436_v21, 1326507024  ;;  %v6513_v18 = vshrl.u32 %v6512_v33, 23  ;;  %v6444_v30 = vsel %vm6438_vm15, %v6441_v35, %v6443_v43 }
 0x5fe   : > { %v7514_v8 = vadd.s32 4294967294, %v6369_v12  ;;  %v6448_v52 = vsel %vm6438_vm15, %v6445_v19, %v6447_v42  ;;  %v6451_v45 = vsel %vm6439_vm1, %v6433_v50, %v6450_v57  ;;  %v6357_v22 = vadd.s32 %v13571_v62, %v13579_v44 }
 0x5ff   : > { %v6452_v47 = vsel %vm6438_vm15, %v6449_v48, %v6451_v45  ;;  %v13667_v34 = vmul.u32.u64.low %v13600_v6, %v6448_v52  ;;  %v13668_v61 = vmul.u32.u64.high %v13600_v6, %v6448_v52, %v13667_v34  ;;  %v7520_v36 = vadd.s32 4294967169, %v6513_v18 }
 0x600   : > { %vm7515_vm0 = vcmp.lt.s32.totalorder %v7514_v8, 0  ;;  %v13672_v56 = vmul.u32.u64.low %v13600_v6, %v6452_v47  ;;  %v13673_v9 = vmul.u32.u64.high %v13600_v6, %v6452_v47, %v13672_v56  ;;  %v6390_v38 = vsel %vm13628_vm12, 0, %v6388_v40 }
 0x601   : > { %v6372_v46 = vsel %vm7515_vm0, 0, %v7514_v8  ;;  %v6460_v62 = vmul.u32 %v13600_v6, %v6444_v30  ;;  %v6509_v44 = vand.u32 2147483647, %v14575_v4  ;;  %v6519_v63 = vadd.s32 1, %v7520_v36 }
 0x602   : > { %v6373_v49 = vsub.s32 32, %v6372_v46  ;;  %v6374_v29 = vshll.u32 %v13614_v17, %v6372_v46  ;;  %v6377_v58 = vsub.s32 4294967266, %v6372_v46  ;;  %vm6289_vm2 = vweird.f32 %v14564_v55 }
 0x603   : > { %v6463_v60 = vadd.s32 1, %v13668_v61  ;;  %vm6296_vm3 = vcmp.eq.s32.totalorder %v6291_v28, 2  ;;  %vm6462_vm5 = vc.u32 %v13673_v9, %v13667_v34  ;;  %v6394_v13 = vadd.s32 3, %v6390_v38 }
 0x604   : > { %v6375_v27 = vshrl.u32 %v6357_v22, %v6373_v49  ;;  %v6378_v0 = vadd.s32 127, %v6377_v58  ;;  %v6516_v53 = vand.u32 8388607, %v6509_v44  ;;  %vm6520_vm4 = vcmp.gt.s32.totalorder %v6519_v63, 0 }
 0x605   : > { %v6464_v6 = vsel %vm6462_vm5, %v6463_v60, %v13668_v61  ;;  %v6521_v41 = vsel %vm6520_vm4, %v6519_v63, 0  ;;  %vm6292_vm6 = vcmp.lt.s32.totalorder %v6291_v28, 2  ;;  %vm6293_vm7 = vcmp.eq.s32.totalorder %v6291_v28, 0  ;;  %v14576_v28 = vld [vmem:[#allocation49_spill] sm:$0xff] }
 0x606   : > { %v8088_v17 = vpop.eup %8087  ;;  %v6376_v37 = vor.u32 %v6375_v27, %v6374_v29  ;;  %v6379_v25 = vshll.u32 %v6378_v0, 23  ;;  %v6465_v5 = vadd.s32 %v6464_v6, %v6460_v62  ;;  %v6523_v31 = vand.u32 31, %v6521_v41 }
 0x607   : > { %v8090_v2 = vpop.eup %8089  ;;  %v6297_v59 = vxor.u32 2147483648, %v8088_v17  ;;  %v13688_v33 = vand.u32 3, %v6394_v13  ;;  %v6517_v7 = vor.u32 8388608, %v6516_v53  ;;  %v6522_v52 = vshrl.u32 %v6521_v41, 5 }
 0x608   : > { %v6294_v11 = vxor.u32 2147483648, %v8090_v2  ;;  %v6380_v54 = vor.u32 4788187, %v6379_v25  ;;  %v6383_v26 = vcvt.s32.f32 %v6376_v37  ;;  %v6466_v50 = vadd.s32 536870912, %v6465_v5 }
 0x609   : > { %v6298_v21 = vsel %vm6296_vm3, %v6297_v59, %v8090_v2  ;;  %v6524_v35 = vsub.s32 32, %v6523_v31  ;;  %v6526_v12 = vshll.u32 %v14417_v24, %v6523_v31  ;;  %v6529_v43 = vshll.u32 %v14411_v14, %v6523_v31 }
 0x60a   : > { %v6295_v3 = vsel %vm6293_vm7, %v8088_v17, %v6294_v11  ;;  %v6381_v19 = vand.u32 2147483647, %v6380_v54  ;;  %v6467_v16 = vshrl.u32 %v6466_v50, 30  ;;  %v6532_v42 = vshll.u32 %v14412_v20, %v6523_v31 }
 0x60b   : > { %v6299_v40 = vsel %vm6292_vm6, %v6295_v3, %v6298_v21  ;;  %v6527_v48 = vshrl.u32 %v14411_v14, %v6524_v35  ;;  %v6530_v30 = vshrl.u32 %v14412_v20, %v6524_v35  ;;  %v6533_v45 = vshrl.u32 %v14413_v15, %v6524_v35 }
 0x60c   : > { %v6300_v57 = vsel %vm6289_vm2, nan, %v6299_v40  ;;  %v6384_v18 = vmul.f32 %v6383_v26, %v6381_v19  ;;  %v6468_v8 = vshll.u32 %v6467_v16, 30  ;;  %v6535_v22 = vshll.u32 %v14413_v15, %v6523_v31 }
 0x60d   : > { %v6613_v47 = vand.u32 2147483647, %v14576_v28  ;;  %7188 = vst [vmem:[%s9691_s5 + $0x1b8] sm:$0xff] %v6300_v57  ;;  %v6536_v36 = vshrl.u32 %v14414_v23, %v6524_v35  ;;  %v6616_v55 = vand.u32 2139095040, %v14576_v28  ;;  %vm6407_vm8 = vcmp.lt.s32.totalorder %v14570_v10, 0 }
 0x60e   : > { %v6385_v61 = vxor.u32 2147483648, %v6384_v18  ;;  %v13702_v56 = vsub.s32 %v6465_v5, %v6468_v8  ;;  %v6525_v46 = vshrl.u32 %v14417_v24, %v6524_v35  ;;  %v6528_v38 = vor.u32 %v6527_v48, %v6526_v12 }
 0x60f   : > { %v6538_v62 = vshll.u32 %v14414_v23, %v6523_v31  ;;  %v6539_v49 = vshrl.u32 %v14415_v51, %v6524_v35  ;;  %v6531_v63 = vor.u32 %v6530_v30, %v6529_v43  ;;  %v6534_v60 = vor.u32 %v6533_v45, %v6532_v42 }
 0x610   : > { %v6386_v29 = vsel %vm6303_vm13, %v6385_v61, %v6384_v18  ;;  %v6471_v58 = vsub.s32 0, %v13702_v56  ;;  %v6537_v0 = vor.u32 %v6536_v36, %v6535_v22  ;;  %vm6541_vm10 = vcmp.lt.s32.totalorder %v6522_v52, 1 }
 0x611   : > { %v6389_v27 = vsel %vm13628_vm12, %v14567_v1, %v6386_v29  ;;  %v6540_v13 = vor.u32 %v6539_v49, %v6538_v62  ;;  %vm13718_vm11 = vcmp.le.f32.partialorder %v6405_v39, 0.7853982  ;;  %v6557_v17 = vshll.u32 %v6517_v7, 8 }
 0x612   : > { %8091 = vcosq.f32 %v6389_v27  ;;  %v7517_v53 = vmin.u32 %v6471_v58, %v13702_v56  ;;  %v6617_v37 = vshrl.u32 %v6616_v55, 23  ;;  %v6491_v25 = vsub.s32 4, %v6467_v16 }
 0x613   : > { %8093 = vsinq.f32 %v6389_v27  ;;  %vm6543_vm9 = vcmp.lt.s32.totalorder %v6522_v52, 3  ;;  %vm6544_vm13 = vcmp.lt.s32.totalorder %v6522_v52, 4  ;;  %vm6542_vm12 = vcmp.lt.s32.totalorder %v6522_v52, 2 }
 0x614   : > { %v6473_v32 = vclz %v7517_v53  ;;  %v6545_v5 = vsel %vm6541_vm10, %v6525_v46, %v6528_v38  ;;  %v6549_v41 = vsel %vm6541_vm10, %v6528_v38, %v6531_v63  ;;  %v6546_v2 = vsel %vm6544_vm13, %v6534_v60, 2102212464 }
 0x615   : > { %v6550_v59 = vsel %vm6544_vm13, %v6537_v0, 920167782  ;;  %v6553_v39 = vsel %vm6541_vm10, %v6531_v63, %v6534_v60  ;;  %v6554_v31 = vsel %vm6544_vm13, %v6540_v13, 1326507024  ;;  %v6547_v54 = vsel %vm6543_vm9, %v6531_v63, %v6546_v2 }
 0x616   : > { %v7518_v11 = vadd.s32 4294967294, %v6473_v32  ;;  %v6551_v26 = vsel %vm6543_vm9, %v6534_v60, %v6550_v59  ;;  %v6555_v50 = vsel %vm6543_vm9, %v6537_v0, %v6554_v31  ;;  %v6461_v21 = vadd.s32 %v13667_v34, %v13673_v9 }
 0x617   : > { %v6552_v7 = vsel %vm6542_vm12, %v6549_v41, %v6551_v26  ;;  %v6556_v35 = vsel %vm6542_vm12, %v6553_v39, %v6555_v50  ;;  %v7524_v3 = vadd.s32 4294967169, %v6617_v37  ;;  %v6492_v19 = vsel %vm6407_vm8, %v6491_v25, %v6467_v16 }
 0x618   : > { %vm7519_vm14 = vcmp.lt.s32.totalorder %v7518_v11, 0  ;;  %v13732_v12 = vmul.u32.u64.low %v6557_v17, %v6556_v35  ;;  %v13733_v40 = vmul.u32.u64.high %v6557_v17, %v6556_v35, %v13732_v12  ;;  %v6548_v43 = vsel %vm6542_vm12, %v6545_v5, %v6547_v54 }
 0x619   : > { %v6476_v48 = vsel %vm7519_vm14, 0, %v7518_v11  ;;  %v13736_v42 = vmul.u32.u64.low %v6557_v17, %v6552_v7  ;;  %v13737_v57 = vmul.u32.u64.high %v6557_v17, %v6552_v7, %v13736_v42  ;;  %v6623_v8 = vadd.s32 1, %v7524_v3 }
 0x61a   : > { %v6477_v34 = vsub.s32 32, %v6476_v48  ;;  %v6478_v9 = vshll.u32 %v13702_v56, %v6476_v48  ;;  %v6481_v18 = vsub.s32 4294967266, %v6476_v48  ;;  %vm6393_vm15 = vweird.f32 %v14567_v1  ;;  %v14579_v48 = vld [vmem:[#allocation19_spill] sm:$0xff] }
 0x61b   : > { %v6494_v16 = vsel %vm13718_vm11, 0, %v6492_v19  ;;  %v6564_v22 = vmul.u32 %v6557_v17, %v6548_v43  ;;  %vm6566_vm1 = vc.u32 %v13733_v40, %v13736_v42  ;;  %vm6396_vm0 = vcmp.lt.s32.totalorder %v13688_v33, 2 }
 0x61c   : > { %v6479_v30 = vshrl.u32 %v6461_v21, %v6477_v34  ;;  %v6482_v45 = vadd.s32 127, %v6481_v18  ;;  %v6567_v52 = vadd.s32 1, %v13737_v57  ;;  %v6620_v61 = vand.u32 8388607, %v6613_v47 }
 0x61d   : > { %vm6624_vm2 = vcmp.gt.s32.totalorder %v6623_v8, 0  ;;  %vm6397_vm3 = vcmp.eq.s32.totalorder %v13688_v33, 0  ;;  %vm6400_vm5 = vcmp.eq.s32.totalorder %v13688_v33, 2  ;;  %v6498_v38 = vadd.s32 3, %v6494_v16 }
 0x61e   : > { %v6480_v56 = vor.u32 %v6479_v30, %v6478_v9  ;;  %v6483_v36 = vshll.u32 %v6482_v45, 23  ;;  %v6625_v55 = vsel %vm6624_vm2, %v6623_v8, 0  ;;  %v6568_v62 = vsel %vm6566_vm1, %v6567_v52, %v13737_v57 }
 0x61f   : > { %v8092_v46 = vpop.eup %8091  ;;  %v6627_v49 = vand.u32 31, %v6625_v55  ;;  %v6569_v27 = vadd.s32 %v6568_v62, %v6564_v22  ;;  %v6621_v13 = vor.u32 8388608, %v6620_v61  ;;  %v6626_v21 = vshrl.u32 %v6625_v55, 5 }
 0x620   : > { %v8094_v29 = vpop.eup %8093  ;;  %v6401_v58 = vxor.u32 2147483648, %v8092_v46  ;;  %v6484_v63 = vor.u32 4788187, %v6483_v36  ;;  %v6487_v60 = vcvt.s32.f32 %v6480_v56  ;;  %v6720_v43 = vand.u32 2139095040, %v14579_v48 }
 0x621   : > { %v6398_v0 = vxor.u32 2147483648, %v8094_v29  ;;  %v6628_v53 = vsub.s32 32, %v6627_v49  ;;  %v6630_v17 = vshll.u32 %v14417_v24, %v6627_v49  ;;  %v6570_v32 = vadd.s32 536870912, %v6569_v27 }
 0x622   : > { %v6402_v37 = vsel %vm6400_vm5, %v6401_v58, %v8094_v29  ;;  %v6485_v25 = vand.u32 2147483647, %v6484_v63  ;;  %v6633_v5 = vshll.u32 %v14411_v14, %v6627_v49  ;;  %v6636_v39 = vshll.u32 %v14412_v20, %v6627_v49 }
 0x623   : > { %v6399_v41 = vsel %vm6397_vm3, %v8092_v46, %v6398_v0  ;;  %v6631_v2 = vshrl.u32 %v14411_v14, %v6628_v53  ;;  %v6634_v59 = vshrl.u32 %v14412_v20, %v6628_v53  ;;  %v6571_v54 = vshrl.u32 %v6570_v32, 30 }
 0x624   : > { %v6403_v31 = vsel %vm6396_vm0, %v6399_v41, %v6402_v37  ;;  %v6488_v11 = vmul.f32 %v6487_v60, %v6485_v25  ;;  %v6637_v26 = vshrl.u32 %v14413_v15, %v6628_v53  ;;  %v6639_v7 = vshll.u32 %v14413_v15, %v6627_v49 }
 0x625   : > { %v6404_v50 = vsel %vm6393_vm15, nan, %v6403_v31  ;;  %v13766_v35 = vshll.u32 %v6621_v13, 8  ;;  %v6572_v19 = vshll.u32 %v6571_v54, 30  ;;  %v6629_v12 = vshrl.u32 %v14417_v24, %v6628_v53 }
 0x626   : > { %v6489_v3 = vxor.u32 2147483648, %v6488_v11  ;;  %7189 = vst [vmem:[%s9691_s5 + $0x1c0] sm:$0xff] %v6404_v50  ;;  %v6632_v33 = vor.u32 %v6631_v2, %v6630_v17  ;;  %v6640_v57 = vshrl.u32 %v14414_v23, %v6628_v53  ;;  %v6642_v34 = vshll.u32 %v14414_v23, %v6627_v49 }
 0x627   : > { %v6643_v1 = vshrl.u32 %v14415_v51, %v6628_v53  ;;  %v13776_v18 = vsub.s32 %v6569_v27, %v6572_v19  ;;  %v6635_v8 = vor.u32 %v6634_v59, %v6633_v5  ;;  %v6638_v16 = vor.u32 %v6637_v26, %v6636_v39 }
 0x628   : > { %v6490_v9 = vsel %vm6407_vm8, %v6489_v3, %v6488_v11  ;;  %v6641_v45 = vor.u32 %v6640_v57, %v6639_v7  ;;  %vm6645_vm4 = vcmp.lt.s32.totalorder %v6626_v21, 1  ;;  %vm6647_vm6 = vcmp.lt.s32.totalorder %v6626_v21, 3 }
 0x629   : > { %v6493_v30 = vsel %vm13718_vm11, %v14570_v10, %v6490_v9  ;;  %v6644_v22 = vor.u32 %v6643_v1, %v6642_v34  ;;  %v6575_v52 = vsub.s32 0, %v13776_v18  ;;  %v6721_v61 = vshrl.u32 %v6720_v43, 23 }
 0x62a   : > { %8095 = vcosq.f32 %v6493_v30  ;;  %vm6646_vm7 = vcmp.lt.s32.totalorder %v6626_v21, 2  ;;  %vm6648_vm10 = vcmp.lt.s32.totalorder %v6626_v21, 4  ;;  %v6649_v56 = vsel %vm6645_vm4, %v6629_v12, %v6632_v33 }
 0x62b   : > { %8097 = vsinq.f32 %v6493_v30  ;;  %v7521_v36 = vmin.u32 %v6575_v52, %v13776_v18  ;;  %v6650_v55 = vsel %vm6648_vm10, %v6638_v16, 2102212464  ;;  %v6653_v46 = vsel %vm6645_vm4, %v6632_v33, %v6635_v8 }
 0x62c   : > { %v6654_v62 = vsel %vm6648_vm10, %v6641_v45, 920167782  ;;  %v6651_v6 = vsel %vm6647_vm6, %v6635_v8, %v6650_v55  ;;  %v6657_v29 = vsel %vm6645_vm4, %v6635_v8, %v6638_v16  ;;  %v6658_v58 = vsel %vm6648_vm10, %v6644_v22, 1326507024 }
 0x62d   : > { %v6655_v49 = vsel %vm6647_vm6, %v6638_v16, %v6654_v62  ;;  %v6499_v63 = vand.u32 3, %v6498_v38  ;;  %v6577_v60 = vclz %v7521_v36  ;;  %v6595_v27 = vsub.s32 4, %v6571_v54  ;;  %v14582_v36 = vld [vmem:[#allocation50_spill] sm:$0xff] }
 0x62e   : > { %v6652_v0 = vsel %vm6646_vm7, %v6649_v56, %v6651_v6  ;;  %v6656_v13 = vsel %vm6646_vm7, %v6653_v46, %v6655_v49  ;;  %v6659_v53 = vsel %vm6647_vm6, %v6641_v45, %v6658_v58  ;;  %v7528_v17 = vadd.s32 4294967169, %v6721_v61 }
 0x62f   : > { %v7522_v37 = vadd.s32 4294967294, %v6577_v60  ;;  %v6660_v25 = vsel %vm6646_vm7, %v6657_v29, %v6659_v53  ;;  %v13790_v32 = vmul.u32.u64.low %v13766_v35, %v6656_v13  ;;  %v13791_v5 = vmul.u32.u64.high %v13766_v35, %v6656_v13, %v13790_v32 }
 0x630   : > { %vm6511_vm8 = vcmp.lt.s32.totalorder %v14575_v4, 0  ;;  %v13796_v38 = vmul.u32.u64.low %v13766_v35, %v6660_v25  ;;  %v13797_v41 = vmul.u32.u64.high %v13766_v35, %v6660_v25, %v13796_v38  ;;  %v6717_v2 = vand.u32 2147483647, %v14579_v48 }
 0x631   : > { %vm6497_vm11 = vweird.f32 %v14570_v10  ;;  %v6565_v59 = vadd.s32 %v13736_v42, %v13733_v40  ;;  %vm7523_vm9 = vcmp.lt.s32.totalorder %v7522_v37, 0  ;;  %v6596_v39 = vsel %vm6511_vm8, %v6595_v27, %v6571_v54 }
 0x632   : > { %v6727_v31 = vadd.s32 1, %v7528_v17  ;;  %vm6500_vm13 = vcmp.lt.s32.totalorder %v6499_v63, 2  ;;  %vm13807_vm12 = vcmp.le.f32.partialorder %v6509_v44, 0.7853982  ;;  %v6580_v26 = vsel %vm7523_vm9, 0, %v7522_v37 }
 0x633   : > { %v6668_v50 = vmul.u32 %v13766_v35, %v6652_v0  ;;  %v6581_v21 = vsub.s32 32, %v6580_v26  ;;  %v6582_v7 = vshll.u32 %v13776_v18, %v6580_v26  ;;  %v6585_v3 = vsub.s32 4294967266, %v6580_v26 }
 0x634   : > { %v6671_v40 = vadd.s32 1, %v13791_v5  ;;  %v6598_v42 = vsel %vm13807_vm12, 0, %v6596_v39  ;;  %vm6670_vm14 = vc.u32 %v13797_v41, %v13790_v32  ;;  %v6724_v44 = vand.u32 8388607, %v6717_v2 }
 0x635   : > { %vm6728_vm15 = vcmp.gt.s32.totalorder %v6727_v31, 0  ;;  %v6583_v54 = vshrl.u32 %v6565_v59, %v6581_v21  ;;  %v6586_v19 = vadd.s32 127, %v6585_v3  ;;  %vm6501_vm1 = vcmp.eq.s32.totalorder %v6499_v63, 0 }
 0x636   : > { %v6672_v35 = vsel %vm6670_vm14, %v6671_v40, %v13791_v5  ;;  %v6729_v12 = vsel %vm6728_vm15, %v6727_v31, 0  ;;  %vm6504_vm0 = vcmp.eq.s32.totalorder %v6499_v63, 2  ;;  %v13821_v8 = vadd.s32 3, %v6598_v42 }
 0x637   : > { %v8096_v43 = vpop.eup %8095  ;;  %v6673_v33 = vadd.s32 %v6672_v35, %v6668_v50  ;;  %v6731_v57 = vand.u32 31, %v6729_v12  ;;  %v6584_v9 = vor.u32 %v6583_v54, %v6582_v7  ;;  %v6587_v18 = vshll.u32 %v6586_v19, 23 }
 0x638   : > { %v8098_v34 = vpop.eup %8097  ;;  %v6505_v1 = vxor.u32 2147483648, %v8096_v43  ;;  %v6725_v45 = vor.u32 8388608, %v6724_v44  ;;  %v6821_v55 = vand.u32 2147483647, %v14582_v36  ;;  %v6730_v6 = vshrl.u32 %v6729_v12, 5 }
 0x639   : > { %v6502_v16 = vxor.u32 2147483648, %v8098_v34  ;;  %v6674_v30 = vadd.s32 536870912, %v6673_v33  ;;  %v6732_v22 = vsub.s32 32, %v6731_v57  ;;  %v6588_v61 = vor.u32 4788187, %v6587_v18 }
 0x63a   : > { %v6506_v52 = vsel %vm6504_vm0, %v6505_v1, %v8098_v34  ;;  %v6591_v56 = vcvt.s32.f32 %v6584_v9  ;;  %v6824_v49 = vand.u32 2139095040, %v14582_v36  ;;  %v6734_v60 = vshll.u32 %v14417_v24, %v6731_v57 }
 0x63b   : > { %v6503_v46 = vsel %vm6501_vm1, %v8096_v43, %v6502_v16  ;;  %v6675_v62 = vshrl.u32 %v6674_v30, 30  ;;  %v6589_v58 = vand.u32 2147483647, %v6588_v61  ;;  %v6737_v27 = vshll.u32 %v14411_v14, %v6731_v57 }
 0x63c   : > { %v6507_v29 = vsel %vm6500_vm13, %v6503_v46, %v6506_v52  ;;  %v6735_v53 = vshrl.u32 %v14411_v14, %v6732_v22  ;;  %v6738_v17 = vshrl.u32 %v14412_v20, %v6732_v22  ;;  %v6740_v25 = vshll.u32 %v14412_v20, %v6731_v57 }
 0x63d   : > { %v6508_v0 = vsel %vm6497_vm11, nan, %v6507_v29  ;;  %v6676_v13 = vshll.u32 %v6675_v62, 30  ;;  %v6592_v37 = vmul.f32 %v6591_v56, %v6589_v58  ;;  %v6741_v5 = vshrl.u32 %v14413_v15, %v6732_v22 }
 0x63e   : > { %v6743_v63 = vshll.u32 %v14413_v15, %v6731_v57  ;;  %7190 = vst [vmem:[%s9691_s5 + $0x1c8] sm:$0xff] %v6508_v0  ;;  %v6744_v59 = vshrl.u32 %v14414_v23, %v6732_v22  ;;  %v6746_v10 = vshll.u32 %v14414_v23, %v6731_v57  ;;  %v13841_v39 = vshll.u32 %v6725_v45, 8 }
 0x63f   : > { %v13837_v38 = vsub.s32 %v6673_v33, %v6676_v13  ;;  %v6593_v31 = vxor.u32 2147483648, %v6592_v37  ;;  %v6669_v26 = vadd.s32 %v13790_v32, %v13797_v41  ;;  %v6747_v50 = vshrl.u32 %v14415_v51, %v6732_v22 }
 0x640   : > { %v6825_v21 = vshrl.u32 %v6824_v49, 23  ;;  %vm6615_vm2 = vcmp.lt.s32.totalorder %v14576_v28, 0  ;;  %v6733_v3 = vshrl.u32 %v14417_v24, %v6732_v22  ;;  %v6736_v40 = vor.u32 %v6735_v53, %v6734_v60 }
 0x641   : > { %v6679_v7 = vsub.s32 0, %v13837_v38  ;;  %v6739_v42 = vor.u32 %v6738_v17, %v6737_v27  ;;  %v6594_v44 = vsel %vm6511_vm8, %v6593_v31, %v6592_v37  ;;  %v6742_v54 = vor.u32 %v6741_v5, %v6740_v25 }
 0x642   : > { %v6745_v19 = vor.u32 %v6744_v59, %v6743_v63  ;;  %vm6749_vm3 = vcmp.lt.s32.totalorder %v6730_v6, 1  ;;  %v6597_v32 = vsel %vm13807_vm12, %v14575_v4, %v6594_v44  ;;  %v6748_v35 = vor.u32 %v6747_v50, %v6746_v10 }
 0x643   : > { %v7525_v41 = vmin.u32 %v6679_v7, %v13837_v38  ;;  %vm6752_vm5 = vcmp.lt.s32.totalorder %v6730_v6, 4  ;;  %8099 = vcosq.f32 %v6597_v32  ;;  %vm6750_vm4 = vcmp.lt.s32.totalorder %v6730_v6, 2 }
 0x644   : > { %vm6751_vm6 = vcmp.lt.s32.totalorder %v6730_v6, 3  ;;  %v6754_v12 = vsel %vm6752_vm5, %v6742_v54, 2102212464  ;;  %8101 = vsinq.f32 %v6597_v32  ;;  %v6753_v33 = vsel %vm6749_vm3, %v6733_v3, %v6736_v40 }
 0x645   : > { %v6681_v43 = vclz %v7525_v41  ;;  %v6757_v57 = vsel %vm6749_vm3, %v6736_v40, %v6739_v42  ;;  %v6699_v34 = vsub.s32 4, %v6675_v62  ;;  %v6755_v1 = vsel %vm6751_vm6, %v6739_v42, %v6754_v12 }
 0x646   : > { %v6758_v9 = vsel %vm6752_vm5, %v6745_v19, 920167782  ;;  %v6761_v11 = vsel %vm6749_vm3, %v6739_v42, %v6742_v54  ;;  %v6762_v30 = vsel %vm6752_vm5, %v6748_v35, 1326507024  ;;  %v6828_v45 = vand.u32 8388607, %v6821_v55 }
 0x647   : > { %v7526_v18 = vadd.s32 4294967294, %v6681_v43  ;;  %v6759_v16 = vsel %vm6751_vm6, %v6742_v54, %v6758_v9  ;;  %v6756_v22 = vsel %vm6750_vm4, %v6753_v33, %v6755_v1  ;;  %v6763_v61 = vsel %vm6751_vm6, %v6745_v19, %v6762_v30 }
 0x648   : > { %v6760_v52 = vsel %vm6750_vm4, %v6757_v57, %v6759_v16  ;;  %v7532_v56 = vadd.s32 4294967169, %v6825_v21  ;;  %v6764_v46 = vsel %vm6750_vm4, %v6761_v11, %v6763_v61  ;;  %v6700_v60 = vsel %vm6615_vm2, %v6699_v34, %v6675_v62 }
 0x649   : > { %vm7527_vm7 = vcmp.lt.s32.totalorder %v7526_v18, 0  ;;  %v13867_v49 = vmul.u32.u64.low %v13841_v39, %v6760_v52  ;;  %v13868_v29 = vmul.u32.u64.high %v13841_v39, %v6760_v52, %v13867_v49  ;;  %v6603_v6 = vand.u32 3, %v13821_v8 }
 0x64a   : > { %v6684_v58 = vsel %vm7527_vm7, 0, %v7526_v18  ;;  %v13874_v27 = vmul.u32.u64.low %v13841_v39, %v6764_v46  ;;  %v13875_v0 = vmul.u32.u64.high %v13841_v39, %v6764_v46, %v13874_v27  ;;  %v6831_v37 = vadd.s32 1, %v7532_v56 }
 0x64b   : > { %v6685_v13 = vsub.s32 32, %v6684_v58  ;;  %v6686_v53 = vshll.u32 %v13837_v38, %v6684_v58  ;;  %v6689_v17 = vsub.s32 4294967266, %v6684_v58  ;;  %vm13881_vm10 = vcmp.le.f32.partialorder %v6613_v47, 0.7853982 }
 0x64c   : > { %v6772_v5 = vmul.u32 %v13841_v39, %v6756_v22  ;;  %v6775_v59 = vadd.s32 1, %v13868_v29  ;;  %vm6832_vm8 = vcmp.gt.s32.totalorder %v6831_v37, 0  ;;  %v6702_v38 = vsel %vm13881_vm10, 0, %v6700_v60 }
 0x64d   : > { %v6687_v62 = vshrl.u32 %v6669_v26, %v6685_v13  ;;  %v6690_v63 = vadd.s32 127, %v6689_v17  ;;  %vm6774_vm11 = vc.u32 %v13875_v0, %v13867_v49  ;;  %v6833_v8 = vsel %vm6832_vm8, %v6831_v37, 0 }
 0x64e   : > { %v6776_v47 = vsel %vm6774_vm11, %v6775_v59, %v13868_v29  ;;  %v6829_v50 = vor.u32 8388608, %v6828_v45  ;;  %vm6601_vm9 = vweird.f32 %v14575_v4  ;;  %vm6604_vm13 = vcmp.lt.s32.totalorder %v6603_v6, 2 }
 0x64f   : > { %v6688_v10 = vor.u32 %v6687_v62, %v6686_v53  ;;  %v6691_v31 = vshll.u32 %v6690_v63, 23  ;;  %v6777_v39 = vadd.s32 %v6776_v47, %v6772_v5  ;;  %v6835_v26 = vand.u32 31, %v6833_v8  ;;  %v14585_v63 = vld [vmem:[#allocation51_spill] sm:$0xff] }
 0x650   : > { %v8100_v21 = vpop.eup %8099  ;;  %vm6605_vm12 = vcmp.eq.s32.totalorder %v6603_v6, 0  ;;  %vm6608_vm14 = vcmp.eq.s32.totalorder %v6603_v6, 2  ;;  %v6706_v44 = vadd.s32 3, %v6702_v38  ;;  %v6834_v35 = vshrl.u32 %v6833_v8, 5 }
 0x651   : > { %v6692_v7 = vor.u32 4788187, %v6691_v31  ;;  %v6695_v3 = vcvt.s32.f32 %v6688_v10  ;;  %v8102_v40 = vpop.eup %8101  ;;  %v6609_v42 = vxor.u32 2147483648, %v8100_v21  ;;  %v6778_v54 = vadd.s32 536870912, %v6777_v39 }
 0x652   : > { %v6836_v19 = vsub.s32 32, %v6835_v26  ;;  %v6606_v32 = vxor.u32 2147483648, %v8102_v40  ;;  %v13893_v12 = vshll.u32 %v6829_v50, 8  ;;  %v6838_v57 = vshll.u32 %v14417_v24, %v6835_v26 }
 0x653   : > { %v6693_v41 = vand.u32 2147483647, %v6692_v7  ;;  %v6610_v43 = vsel %vm6608_vm14, %v6609_v42, %v8102_v40  ;;  %v13895_v33 = vshrl.u32 %v6778_v54, 30  ;;  %v6841_v11 = vshll.u32 %v14411_v14, %v6835_v26 }
 0x654   : > { %v6839_v34 = vshrl.u32 %v14411_v14, %v6836_v19  ;;  %v6607_v1 = vsel %vm6605_vm12, %v8100_v21, %v6606_v32  ;;  %v6842_v18 = vshrl.u32 %v14412_v20, %v6836_v19  ;;  %v6844_v45 = vshll.u32 %v14412_v20, %v6835_v26 }
 0x655   : > { %v6696_v9 = vmul.f32 %v6695_v3, %v6693_v41  ;;  %v6611_v16 = vsel %vm6604_vm13, %v6607_v1, %v6610_v43  ;;  %v6780_v30 = vshll.u32 %v13895_v33, 30  ;;  %v6845_v22 = vshrl.u32 %v14413_v15, %v6836_v19 }
 0x656   : > { %v6612_v52 = vsel %vm6601_vm9, nan, %v6611_v16  ;;  %v6837_v56 = vshrl.u32 %v14417_v24, %v6836_v19  ;;  %vm6853_vm15 = vcmp.lt.s32.totalorder %v6834_v35, 1  ;;  %v6840_v29 = vor.u32 %v6839_v34, %v6838_v57 }
 0x657   : > { %v6697_v61 = vxor.u32 2147483648, %v6696_v9  ;;  %v13909_v46 = vsub.s32 %v6777_v39, %v6780_v30  ;;  %v6847_v58 = vshll.u32 %v14413_v15, %v6835_v26  ;;  %v6848_v60 = vshrl.u32 %v14414_v23, %v6836_v19  ;;  %7191 = vst [vmem:[%s9691_s5 + $0x1d0] sm:$0xff] %v6612_v52 }
 0x658   : > { %v6843_v13 = vor.u32 %v6842_v18, %v6841_v11  ;;  %v6850_v53 = vshll.u32 %v14414_v23, %v6835_v26  ;;  %v6851_v4 = vshrl.u32 %v14415_v51, %v6836_v19  ;;  %v6846_v6 = vor.u32 %v6845_v22, %v6844_v45 }
 0x659   : > { %v6698_v27 = vsel %vm6615_vm2, %v6697_v61, %v6696_v9  ;;  %v6783_v37 = vsub.s32 0, %v13909_v46  ;;  %v6849_v5 = vor.u32 %v6848_v60, %v6847_v58  ;;  %vm6856_vm1 = vcmp.lt.s32.totalorder %v6834_v35, 4 }
 0x65a   : > { %v6701_v17 = vsel %vm13881_vm10, %v14576_v28, %v6698_v27  ;;  %v6852_v62 = vor.u32 %v6851_v4, %v6850_v53  ;;  %v6928_v59 = vand.u32 2139095040, %v14585_v63  ;;  %vm6854_vm0 = vcmp.lt.s32.totalorder %v6834_v35, 2 }
 0x65b   : > { %8103 = vcosq.f32 %v6701_v17  ;;  %v7529_v38 = vmin.u32 %v6783_v37, %v13909_v46  ;;  %vm6855_vm2 = vcmp.lt.s32.totalorder %v6834_v35, 3  ;;  %v6857_v8 = vsel %vm6853_vm15, %v6837_v56, %v6840_v29 }
 0x65c   : > { %8105 = vsinq.f32 %v6701_v17  ;;  %v6858_v10 = vsel %vm6856_vm1, %v6846_v6, 2102212464  ;;  %v6861_v25 = vsel %vm6853_vm15, %v6840_v29, %v6843_v13  ;;  %v6862_v31 = vsel %vm6856_vm1, %v6849_v5, 920167782 }
 0x65d   : > { %v6707_v47 = vand.u32 3, %v6706_v44  ;;  %v6785_v50 = vclz %v7529_v38  ;;  %v6865_v39 = vsel %vm6853_vm15, %v6843_v13, %v6846_v6  ;;  %v6859_v26 = vsel %vm6855_vm2, %v6843_v13, %v6858_v10 }
 0x65e   : > { %v6863_v21 = vsel %vm6855_vm2, %v6846_v6, %v6862_v31  ;;  %v6866_v7 = vsel %vm6856_vm1, %v6852_v62, 1326507024  ;;  %v6929_v3 = vshrl.u32 %v6928_v59, 23  ;;  %v6860_v42 = vsel %vm6854_vm0, %v6857_v8, %v6859_v26 }
 0x65f   : > { %v7530_v40 = vadd.s32 4294967294, %v6785_v50  ;;  %v6864_v54 = vsel %vm6854_vm0, %v6861_v25, %v6863_v21  ;;  %v6867_v19 = vsel %vm6855_vm2, %v6849_v5, %v6866_v7  ;;  %v6773_v32 = vadd.s32 %v13867_v49, %v13875_v0 }
 0x660   : > { %v6868_v41 = vsel %vm6854_vm0, %v6865_v39, %v6867_v19  ;;  %v13933_v44 = vmul.u32.u64.low %v13893_v12, %v6864_v54  ;;  %v13934_v43 = vmul.u32.u64.high %v13893_v12, %v6864_v54, %v13933_v44  ;;  %v7536_v1 = vadd.s32 4294967169, %v6929_v3 }
 0x661   : > { %vm7531_vm3 = vcmp.lt.s32.totalorder %v7530_v40, 0  ;;  %v13938_v57 = vmul.u32.u64.low %v13893_v12, %v6868_v41  ;;  %v13939_v34 = vmul.u32.u64.high %v13893_v12, %v6868_v41, %v13938_v57  ;;  %v6803_v11 = vsub.s32 4, %v13895_v33 }
 0x662   : > { %v6788_v9 = vsel %vm7531_vm3, 0, %v7530_v40  ;;  %v6876_v18 = vmul.u32 %v13893_v12, %v6860_v42  ;;  %v6935_v35 = vadd.s32 1, %v7536_v1  ;;  %vm6705_vm5 = vweird.f32 %v14576_v28  ;;  %v14588_v57 = vld [vmem:[#allocation52_spill] sm:$0xff] }
 0x663   : > { %v6789_v16 = vsub.s32 32, %v6788_v9  ;;  %v6790_v49 = vshll.u32 %v13909_v46, %v6788_v9  ;;  %v6793_v0 = vsub.s32 4294967266, %v6788_v9  ;;  %vm13947_vm4 = vcmp.le.f32.partialorder %v6717_v2, 0.7853982 }
 0x664   : > { %vm6719_vm6 = vcmp.lt.s32.totalorder %v14579_v48, 0  ;;  %v6879_v45 = vadd.s32 1, %v13934_v43  ;;  %vm6712_vm7 = vcmp.eq.s32.totalorder %v6707_v47, 2  ;;  %vm6878_vm10 = vc.u32 %v13939_v34, %v13933_v44 }
 0x665   : > { %v6791_v22 = vshrl.u32 %v6773_v32, %v6789_v16  ;;  %v6794_v12 = vadd.s32 127, %v6793_v0  ;;  %v6804_v52 = vsel %vm6719_vm6, %v6803_v11, %v13895_v33  ;;  %v6925_v2 = vand.u32 2147483647, %v14585_v63 }
 0x666   : > { %v6880_v61 = vsel %vm6878_vm10, %v6879_v45, %v13934_v43  ;;  %vm6936_vm8 = vcmp.gt.s32.totalorder %v6935_v35, 0  ;;  %vm6708_vm11 = vcmp.lt.s32.totalorder %v6707_v47, 2  ;;  %vm6709_vm9 = vcmp.eq.s32.totalorder %v6707_v47, 0 }
 0x667   : > { %v6792_v46 = vor.u32 %v6791_v22, %v6790_v49  ;;  %v6795_v29 = vshll.u32 %v6794_v12, 23  ;;  %v6881_v58 = vadd.s32 %v6880_v61, %v6876_v18  ;;  %v6937_v60 = vsel %vm6936_vm8, %v6935_v35, 0 }
 0x668   : > { %v8104_v56 = vpop.eup %8103  ;;  %v6939_v53 = vand.u32 31, %v6937_v60  ;;  %v6806_v5 = vsel %vm13947_vm4, 0, %v6804_v52  ;;  %v6932_v62 = vand.u32 8388607, %v6925_v2  ;;  %v6938_v54 = vshrl.u32 %v6937_v60, 5 }
 0x669   : > { %v8106_v27 = vpop.eup %8105  ;;  %v6713_v13 = vxor.u32 2147483648, %v8104_v56  ;;  %v6796_v17 = vor.u32 4788187, %v6795_v29  ;;  %v6799_v37 = vcvt.s32.f32 %v6792_v46  ;;  %v6882_v6 = vadd.s32 536870912, %v6881_v58 }
 0x66a   : > { %v6710_v4 = vxor.u32 2147483648, %v8106_v27  ;;  %v6940_v59 = vsub.s32 32, %v6939_v53  ;;  %v6942_v25 = vshll.u32 %v14417_v24, %v6939_v53  ;;  %v6945_v39 = vshll.u32 %v14411_v14, %v6939_v53 }
 0x66b   : > { %v6714_v33 = vsel %vm6712_vm7, %v6713_v13, %v8106_v27  ;;  %v6797_v8 = vand.u32 2147483647, %v6796_v17  ;;  %v13965_v10 = vshrl.u32 %v6882_v6, 30  ;;  %v6948_v26 = vshll.u32 %v14412_v20, %v6939_v53 }
 0x66c   : > { %v6711_v38 = vsel %vm6709_vm9, %v8104_v56, %v6710_v4  ;;  %v6943_v50 = vshrl.u32 %v14411_v14, %v6940_v59  ;;  %v6946_v40 = vshrl.u32 %v14412_v20, %v6940_v59  ;;  %v6933_v42 = vor.u32 8388608, %v6932_v62 }
 0x66d   : > { %v6715_v31 = vsel %vm6708_vm11, %v6711_v38, %v6714_v33  ;;  %v6800_v7 = vmul.f32 %v6799_v37, %v6797_v8  ;;  %v6884_v3 = vshll.u32 %v13965_v10, 30  ;;  %v6949_v19 = vshrl.u32 %v14413_v15, %v6940_v59 }
 0x66e   : > { %v6716_v21 = vsel %vm6705_vm5, nan, %v6715_v31  ;;  %v6951_v47 = vshll.u32 %v14413_v15, %v6939_v53  ;;  %v6952_v43 = vshrl.u32 %v14414_v23, %v6940_v59  ;;  %v7032_v28 = vand.u32 2139095040, %v14588_v57 }
 0x66f   : > { %7192 = vst [vmem:[%s9691_s5 + $0x1d8] sm:$0xff] %v6716_v21  ;;  %v6801_v32 = vxor.u32 2147483648, %v6800_v7  ;;  %v13979_v41 = vsub.s32 %v6881_v58, %v6884_v3  ;;  %v6941_v1 = vshrl.u32 %v14417_v24, %v6940_v59  ;;  %v6944_v9 = vor.u32 %v6943_v50, %v6942_v25 }
 0x670   : > { %v6954_v11 = vshll.u32 %v14414_v23, %v6939_v53  ;;  %v6955_v18 = vshrl.u32 %v14415_v51, %v6940_v59  ;;  %v6947_v0 = vor.u32 %v6946_v40, %v6945_v39  ;;  %v6950_v35 = vor.u32 %v6949_v19, %v6948_v26 }
 0x671   : > { %v6802_v16 = vsel %vm6719_vm6, %v6801_v32, %v6800_v7  ;;  %v6887_v49 = vsub.s32 0, %v13979_v41  ;;  %v6953_v22 = vor.u32 %v6952_v43, %v6951_v47  ;;  %vm6957_vm13 = vcmp.lt.s32.totalorder %v6938_v54, 1 }
 0x672   : > { %v6805_v45 = vsel %vm13947_vm4, %v14579_v48, %v6802_v16  ;;  %v6956_v12 = vor.u32 %v6955_v18, %v6954_v11  ;;  %v6810_v52 = vadd.s32 3, %v6806_v5  ;;  %v6973_v56 = vshll.u32 %v6933_v42, 8 }
 0x673   : > { %8107 = vcosq.f32 %v6805_v45  ;;  %v7533_v61 = vmin.u32 %v6887_v49, %v13979_v41  ;;  %vm6959_vm12 = vcmp.lt.s32.totalorder %v6938_v54, 3  ;;  %vm6960_vm14 = vcmp.lt.s32.totalorder %v6938_v54, 4 }
 0x674   : > { %8109 = vsinq.f32 %v6805_v45  ;;  %v7033_v46 = vshrl.u32 %v7032_v28, 23  ;;  %vm6958_vm15 = vcmp.lt.s32.totalorder %v6938_v54, 2  ;;  %v6961_v58 = vsel %vm6957_vm13, %v6941_v1, %v6944_v9 }
 0x675   : > { %v6889_v29 = vclz %v7533_v61  ;;  %v6965_v60 = vsel %vm6957_vm13, %v6944_v9, %v6947_v0  ;;  %v6962_v27 = vsel %vm6960_vm14, %v6950_v35, 2102212464  ;;  %v6966_v13 = vsel %vm6960_vm14, %v6953_v22, 920167782 }
 0x676   : > { %v6969_v30 = vsel %vm6957_vm13, %v6947_v0, %v6950_v35  ;;  %v6970_v53 = vsel %vm6960_vm14, %v6956_v12, 1326507024  ;;  %v6963_v17 = vsel %vm6959_vm12, %v6947_v0, %v6962_v27  ;;  %v6967_v37 = vsel %vm6959_vm12, %v6950_v35, %v6966_v13 }
 0x677   : > { %v7534_v4 = vadd.s32 4294967294, %v6889_v29  ;;  %v6971_v6 = vsel %vm6959_vm12, %v6953_v22, %v6970_v53  ;;  %v6811_v33 = vand.u32 3, %v6810_v52  ;;  %v6968_v5 = vsel %vm6958_vm15, %v6965_v60, %v6967_v37 }
 0x678   : > { %v6972_v62 = vsel %vm6958_vm15, %v6969_v30, %v6971_v6  ;;  %v7540_v59 = vadd.s32 4294967169, %v7033_v46  ;;  %v6877_v38 = vadd.s32 %v13933_v44, %v13939_v34  ;;  %v6964_v50 = vsel %vm6958_vm15, %v6961_v58, %v6963_v17 }
 0x679   : > { %vm7535_vm1 = vcmp.lt.s32.totalorder %v7534_v4, 0  ;;  %v13997_v8 = vmul.u32.u64.low %v6973_v56, %v6972_v62  ;;  %v13998_v25 = vmul.u32.u64.high %v6973_v56, %v6972_v62, %v13997_v8  ;;  %vm6809_vm0 = vweird.f32 %v14579_v48 }
 0x67a   : > { %v6892_v31 = vsel %vm7535_vm1, 0, %v7534_v4  ;;  %v14001_v39 = vmul.u32.u64.low %v6973_v56, %v6968_v5  ;;  %v14002_v26 = vmul.u32.u64.high %v6973_v56, %v6968_v5, %v14001_v39  ;;  %v7039_v40 = vadd.s32 1, %v7540_v59 }
 0x67b   : > { %v6893_v21 = vsub.s32 32, %v6892_v31  ;;  %v6894_v7 = vshll.u32 %v13979_v41, %v6892_v31  ;;  %v6897_v3 = vsub.s32 4294967266, %v6892_v31  ;;  %vm6823_vm2 = vcmp.lt.s32.totalorder %v14582_v36, 0 }
 0x67c   : > { %v7029_v44 = vand.u32 2147483647, %v14588_v57  ;;  %vm14011_vm3 = vcmp.le.f32.partialorder %v6821_v55, 0.7853982  ;;  %v6980_v19 = vmul.u32 %v6973_v56, %v6964_v50  ;;  %vm6982_vm5 = vc.u32 %v13998_v25, %v14001_v39 }
 0x67d   : > { %v6895_v42 = vshrl.u32 %v6877_v38, %v6893_v21  ;;  %v6898_v54 = vadd.s32 127, %v6897_v3  ;;  %vm6812_vm4 = vcmp.lt.s32.totalorder %v6811_v33, 2  ;;  %v6907_v47 = vsub.s32 4, %v13965_v10 }
 0x67e   : > { %v6983_v32 = vadd.s32 1, %v14002_v26  ;;  %vm7040_vm6 = vcmp.gt.s32.totalorder %v7039_v40, 0  ;;  %vm6813_vm7 = vcmp.eq.s32.totalorder %v6811_v33, 0  ;;  %vm6816_vm10 = vcmp.eq.s32.totalorder %v6811_v33, 2 }
 0x67f   : > { %v6896_v41 = vor.u32 %v6895_v42, %v6894_v7  ;;  %v6899_v43 = vshll.u32 %v6898_v54, 23  ;;  %v7041_v28 = vsel %vm7040_vm6, %v7039_v40, 0  ;;  %v7036_v9 = vand.u32 8388607, %v7029_v44 }
 0x680   : > { %v8108_v55 = vpop.eup %8107  ;;  %v6984_v1 = vsel %vm6982_vm5, %v6983_v32, %v14002_v26  ;;  %v7043_v11 = vand.u32 31, %v7041_v28  ;;  %v6908_v22 = vsel %vm6823_vm2, %v6907_v47, %v13965_v10  ;;  %v7042_v6 = vshrl.u32 %v7041_v28, 5 }
 0x681   : > { %v8110_v18 = vpop.eup %8109  ;;  %v6817_v16 = vxor.u32 2147483648, %v8108_v55  ;;  %v6900_v49 = vor.u32 4788187, %v6899_v43  ;;  %v6903_v0 = vcvt.s32.f32 %v6896_v41  ;;  %v6985_v35 = vadd.s32 %v6984_v1, %v6980_v19 }
 0x682   : > { %v6814_v45 = vxor.u32 2147483648, %v8110_v18  ;;  %v7044_v12 = vsub.s32 32, %v7043_v11  ;;  %v7046_v52 = vshll.u32 %v14417_v24, %v7043_v11  ;;  %v7049_v29 = vshll.u32 %v14411_v14, %v7043_v11 }
 0x683   : > { %v6818_v61 = vsel %vm6816_vm10, %v6817_v16, %v8110_v18  ;;  %v6901_v56 = vand.u32 2147483647, %v6900_v49  ;;  %v6986_v46 = vadd.s32 536870912, %v6985_v35  ;;  %v7052_v13 = vshll.u32 %v14412_v20, %v7043_v11 }
 0x684   : > { %v6815_v58 = vsel %vm6813_vm7, %v8108_v55, %v6814_v45  ;;  %v7047_v60 = vshrl.u32 %v14411_v14, %v7044_v12  ;;  %v7050_v27 = vshrl.u32 %v14412_v20, %v7044_v12  ;;  %v7053_v4 = vshrl.u32 %v14413_v15, %v7044_v12 }
 0x685   : > { %v6819_v30 = vsel %vm6812_vm4, %v6815_v58, %v6818_v61  ;;  %v6904_v10 = vmul.f32 %v6903_v0, %v6901_v56  ;;  %v14032_v53 = vshrl.u32 %v6986_v46, 30  ;;  %v6910_v37 = vsel %vm14011_vm3, 0, %v6908_v22 }
 0x686   : > { %v6820_v17 = vsel %vm6809_vm0, nan, %v6819_v30  ;;  %v7055_v14 = vshll.u32 %v14413_v15, %v7043_v11  ;;  %v7037_v20 = vor.u32 8388608, %v7036_v9  ;;  %v7045_v33 = vshrl.u32 %v14417_v24, %v7044_v12 }
 0x687   : > { %v6905_v5 = vxor.u32 2147483648, %v6904_v10  ;;  %v6988_v62 = vshll.u32 %v14032_v53, 30  ;;  %7193 = vst [vmem:[%s9691_s5 + $0x1e0] sm:$0xff] %v6820_v17  ;;  %v7048_v59 = vor.u32 %v7047_v60, %v7046_v52  ;;  %v7056_v38 = vshrl.u32 %v14414_v23, %v7044_v12 }
 0x688   : > { %v7058_v8 = vshll.u32 %v14414_v23, %v7043_v11  ;;  %v7059_v48 = vshrl.u32 %v14415_v51, %v7044_v12  ;;  %v7051_v26 = vor.u32 %v7050_v27, %v7049_v29  ;;  %v7054_v15 = vor.u32 %v7053_v4, %v7052_v13 }
 0x689   : > { %v6906_v31 = vsel %vm6823_vm2, %v6905_v5, %v6904_v10  ;;  %v6989_v50 = vsub.s32 %v6985_v35, %v6988_v62  ;;  %v7057_v7 = vor.u32 %v7056_v38, %v7055_v14  ;;  %vm7061_vm8 = vcmp.lt.s32.totalorder %v7042_v6, 1 }
 0x68a   : > { %v6909_v21 = vsel %vm14011_vm3, %v14582_v36, %v6906_v31  ;;  %v7060_v24 = vor.u32 %v7059_v48, %v7058_v8  ;;  %vm7063_vm11 = vcmp.lt.s32.totalorder %v7042_v6, 3  ;;  %v7077_v40 = vshll.u32 %v7037_v20, 8 }
 0x68b   : > { %8111 = vcosq.f32 %v6909_v21  ;;  %v6991_v3 = vsub.s32 0, %v6989_v50  ;;  %vm7062_vm9 = vcmp.lt.s32.totalorder %v7042_v6, 2  ;;  %vm7064_vm13 = vcmp.lt.s32.totalorder %v7042_v6, 4 }
 0x68c   : > { %8113 = vsinq.f32 %v6909_v21  ;;  %v7065_v23 = vsel %vm7061_vm8, %v7045_v33, %v7048_v59  ;;  %v7066_v42 = vsel %vm7064_vm13, %v7054_v15, 2102212464  ;;  %v7069_v54 = vsel %vm7061_vm8, %v7048_v59, %v7051_v26 }
 0x68d   : > { %v7537_v51 = vmin.u32 %v6991_v3, %v6989_v50  ;;  %v7070_v19 = vsel %vm7064_vm13, %v7057_v7, 920167782  ;;  %v7067_v47 = vsel %vm7063_vm11, %v7051_v26, %v7066_v42  ;;  %v7073_v32 = vsel %vm7061_vm8, %v7051_v26, %v7054_v15 }
 0x68e   : > { %v7071_v34 = vsel %vm7063_vm11, %v7054_v15, %v7070_v19  ;;  %v7074_v41 = vsel %vm7064_vm13, %v7060_v24, 1326507024  ;;  %v6914_v28 = vadd.s32 3, %v6910_v37  ;;  %v7068_v55 = vsel %vm7062_vm9, %v7065_v23, %v7067_v47 }
 0x68f   : > { %v6993_v43 = vclz %v7537_v51  ;;  %v7072_v1 = vsel %vm7062_vm9, %v7069_v54, %v7071_v34  ;;  %v7075_v9 = vsel %vm7063_vm11, %v7057_v7, %v7074_v41  ;;  %v6981_v45 = vadd.s32 %v14001_v39, %v13998_v25 }
 0x690   : > { %v7076_v18 = vsel %vm7062_vm9, %v7073_v32, %v7075_v9  ;;  %v14057_v16 = vmul.u32.u64.low %v7077_v40, %v7072_v1  ;;  %v14058_v49 = vmul.u32.u64.high %v7077_v40, %v7072_v1, %v14057_v16  ;;  %v6915_v22 = vand.u32 3, %v6914_v28 }
 0x691   : > { %v7538_v11 = vadd.s32 4294967294, %v6993_v43  ;;  %v14060_v0 = vmul.u32.u64.low %v7077_v40, %v7076_v18  ;;  %v14061_v35 = vmul.u32.u64.high %v7077_v40, %v7076_v18, %v14060_v0  ;;  %v7084_v52 = vmul.u32 %v7077_v40, %v7068_v55 }
 0x692   : > { %v7087_v29 = vadd.s32 1, %v14058_v49  ;;  %vm6920_vm15 = vcmp.eq.s32.totalorder %v6915_v22, 2  ;;  %vm6917_vm1 = vcmp.eq.s32.totalorder %v6915_v22, 0  ;;  %vm6916_vm0 = vcmp.lt.s32.totalorder %v6915_v22, 2 }
 0x693   : > { %vm7539_vm12 = vcmp.lt.s32.totalorder %v7538_v11, 0  ;;  %vm7086_vm14 = vc.u32 %v14061_v35, %v14057_v16  ;;  %vm6913_vm2 = vweird.f32 %v14582_v36  ;;  %vm6927_vm3 = vcmp.lt.s32.totalorder %v14585_v63, 0 }
 0x694   : > { %v6996_v12 = vsel %vm7539_vm12, 0, %v7538_v11  ;;  %v7088_v27 = vsel %vm7086_vm14, %v7087_v29, %v14058_v49  ;;  %v7011_v31 = vsub.s32 4, %v14032_v53  ;;  %vm6926_vm5 = vcmp.le.f32.partialorder %v6925_v2, 0.7853982 }
 0x695   : > { %v6997_v61 = vsub.s32 32, %v6996_v12  ;;  %v6998_v56 = vshll.u32 %v6989_v50, %v6996_v12  ;;  %v7001_v46 = vsub.s32 4294967266, %v6996_v12  ;;  %v7089_v30 = vadd.s32 %v7088_v27, %v7084_v52 }
 0x696   : > { %v7012_v21 = vsel %vm6927_vm3, %v7011_v31, %v14032_v53  ;;  %v7085_v42 = vadd.s32 %v14057_v16, %v14061_v35  ;;  %vm7017_vm8 = vweird.f32 %v14585_v63  ;;  %vm7031_vm11 = vcmp.lt.s32.totalorder %v14588_v57, 0 }
 0x697   : > { %v6999_v58 = vshrl.u32 %v6981_v45, %v6997_v61  ;;  %v7002_v60 = vadd.s32 127, %v7001_v46  ;;  %v7090_v37 = vadd.s32 536870912, %v7089_v30  ;;  %v7014_v40 = vsel %vm6926_vm5, 0, %v7012_v21 }
 0x698   : > { %v8112_v13 = vpop.eup %8111  ;;  %v7018_v51 = vadd.s32 3, %v7014_v40  ;;  %vm7030_vm9 = vcmp.le.f32.partialorder %v7029_v44, 0.7853982 }
 0x699   : > { %v8114_v10 = vpop.eup %8113  ;;  %v6921_v25 = vxor.u32 2147483648, %v8112_v13  ;;  %v7000_v39 = vor.u32 %v6999_v58, %v6998_v56  ;;  %v7003_v4 = vshll.u32 %v7002_v60, 23  ;;  %v7091_v20 = vshrl.u32 %v7090_v37, 30 }
 0x69a   : > { %v6918_v17 = vxor.u32 2147483648, %v8114_v10  ;;  %v7019_v34 = vand.u32 3, %v7018_v51 }
 0x69b   : > { %v6922_v6 = vsel %vm6920_vm15, %v6921_v25, %v8114_v10  ;;  %v7004_v14 = vor.u32 4788187, %v7003_v4  ;;  %v7007_v5 = vcvt.s32.f32 %v7000_v39  ;;  %v7092_v8 = vshll.u32 %v7091_v20, 30 }
 0x69c   : > { %v6919_v62 = vsel %vm6917_vm1, %v8112_v13, %v6918_v17  ;;  %vm7024_vm6 = vcmp.eq.s32.totalorder %v7019_v34, 2  ;;  %vm7021_vm7 = vcmp.eq.s32.totalorder %v7019_v34, 0  ;;  %vm7020_vm10 = vcmp.lt.s32.totalorder %v7019_v34, 2 }
 0x69d   : > { %v6923_v33 = vsel %vm6916_vm0, %v6919_v62, %v6922_v6  ;;  %v7005_v59 = vand.u32 2147483647, %v7004_v14  ;;  %v7093_v50 = vsub.s32 %v7089_v30, %v7092_v8  ;;  %v7115_v22 = vsub.s32 4, %v7091_v20 }
 0x69e   : > { %v6924_v38 = vsel %vm6913_vm2, nan, %v6923_v33  ;;  %vm7121_vm15 = vweird.f32 %v14588_v57 }
 0x69f   : > { %v7008_v48 = vmul.f32 %v7007_v5, %v7005_v59  ;;  %7194 = vst [vmem:[%s9691_s5 + $0x1e8] sm:$0xff] %v6924_v38  ;;  %v7095_v26 = vsub.s32 0, %v7093_v50  ;;  %v7116_v56 = vsel %vm7031_vm11, %v7115_v22, %v7091_v20 }
 0x6a1   : > { %v7009_v36 = vxor.u32 2147483648, %v7008_v48  ;;  %v7541_v24 = vmin.u32 %v7095_v26, %v7093_v50 }
 0x6a3   : > { %v7010_v15 = vsel %vm6927_vm3, %v7009_v36, %v7008_v48  ;;  %v7097_v3 = vclz %v7541_v24 }
 0x6a4   : > { %v7013_v7 = vsel %vm6926_vm5, %v14585_v63, %v7010_v15  ;;  %v7118_v63 = vsel %vm7030_vm9, 0, %v7116_v56 }
 0x6a5   : > { %8115 = vcosq.f32 %v7013_v7  ;;  %v7542_v23 = vadd.s32 4294967294, %v7097_v3  ;;  %v7122_v29 = vadd.s32 3, %v7118_v63 }
 0x6a6   : > { %8117 = vsinq.f32 %v7013_v7 }
 0x6a7   : > { %vm7543_vm4 = vcmp.lt.s32.totalorder %v7542_v23, 0  ;;  %v7123_v58 = vand.u32 3, %v7122_v29 }
 0x6a8   : > { %v7100_v54 = vsel %vm7543_vm4, 0, %v7542_v23 }
 0x6a9   : > { %v7101_v19 = vsub.s32 32, %v7100_v54  ;;  %v7102_v2 = vshll.u32 %v7093_v50, %v7100_v54  ;;  %v7105_v47 = vsub.s32 4294967266, %v7100_v54  ;;  %vm7128_vm13 = vcmp.eq.s32.totalorder %v7123_v58, 2 }
 0x6aa   : > { %vm7125_vm12 = vcmp.eq.s32.totalorder %v7123_v58, 0  ;;  %vm7124_vm14 = vcmp.lt.s32.totalorder %v7123_v58, 2 }
 0x6ab   : > { %v7103_v32 = vshrl.u32 %v7085_v42, %v7101_v19  ;;  %v7106_v41 = vadd.s32 127, %v7105_v47 }
 0x6ad   : > { %v7104_v53 = vor.u32 %v7103_v32, %v7102_v2  ;;  %v7107_v43 = vshll.u32 %v7106_v41, 23 }
 0x6af   : > { %v7108_v55 = vor.u32 4788187, %v7107_v43  ;;  %v7111_v1 = vcvt.s32.f32 %v7104_v53 }
 0x6b1   : > { %v7109_v16 = vand.u32 2147483647, %v7108_v55 }
 0x6b2   : > { %v8116_v28 = vpop.eup %8115 }
 0x6b3   : > { %v8118_v9 = vpop.eup %8117  ;;  %v7025_v11 = vxor.u32 2147483648, %v8116_v28  ;;  %v7112_v35 = vmul.f32 %v7111_v1, %v7109_v16 }
 0x6b4   : > { %v7022_v18 = vxor.u32 2147483648, %v8118_v9 }
 0x6b5   : > { %v7026_v49 = vsel %vm7024_vm6, %v7025_v11, %v8118_v9  ;;  %v7113_v52 = vxor.u32 2147483648, %v7112_v35 }
 0x6b6   : > { %v7023_v0 = vsel %vm7021_vm7, %v8116_v28, %v7022_v18 }
 0x6b7   : > { %v7027_v45 = vsel %vm7020_vm10, %v7023_v0, %v7026_v49  ;;  %v7114_v61 = vsel %vm7031_vm11, %v7113_v52, %v7112_v35 }
 0x6b8   : > { %v7028_v12 = vsel %vm7017_vm8, nan, %v7027_v45  ;;  %v7117_v46 = vsel %vm7030_vm9, %v14588_v57, %v7114_v61 }
 0x6b9   : > { %7195 = vst [vmem:[%s9691_s5 + $0x1f0] sm:$0xff] %v7028_v12  ;;  %8119 = vcosq.f32 %v7117_v46 }
 0x6ba   : > { %8121 = vsinq.f32 %v7117_v46 }
 0x6c6   : > { %v8120_v60 = vpop.eup %8119 }
 0x6c7   : > { %v8122_v27 = vpop.eup %8121  ;;  %v7129_v13 = vxor.u32 2147483648, %v8120_v60 }
 0x6c8   : > { %v7126_v44 = vxor.u32 2147483648, %v8122_v27 }
 0x6c9   : > { %v7130_v30 = vsel %vm7128_vm13, %v7129_v13, %v8122_v27  ;;  %7204 = sbr.rel (!%p8278_p5) target bundleno = 1769 (0x6e9), region = 36 }
 0x6ca   : > { %v7127_v10 = vsel %vm7125_vm12, %v8120_v60, %v7126_v44 }
 0x6cb   : > { %v7131_v25 = vsel %vm7124_vm14, %v7127_v10, %v7130_v30 }
 0x6cc   : > { %v7132_v39 = vsel %vm7121_vm15, nan, %v7131_v25 }
 0x6cd   : > { %7196 = vst [vmem:[%s9691_s5 + $0x1f8] sm:$0xff] %v7132_v39 }
 0x6ce   : > { %s14596_s8 = smov (!%p7207_p9, %s7206_s8), 64 }
 0x6cf   : > { %s14092_s14 = sshll.u32 %s14596_s8, 7 }
 0x6d0   : > { %s7211_s16 = ssub.s32 8192, %s14092_s14 }
 0x6d1   : > { %7212 = vsyncadd %s14087_s6, %s7211_s16  ;;  %p7547_p10 = scmp.ne.s32.totalorder %s14092_s14, 0  ;;  %s7553_s17 = sshll.u32 %s8261_s13, 13 }
 0x6d2   : > { %s14101_s22 = scalar_lea.hbm %s14149_s2, %s7553_s17  ;;  %s7217_s23 = sshll.u32 %s9691_s5, 4  ;;  %s14104_s23 = int_to_ptr.vmem [resolvable:$true] %s7217_s23 }
 0x6d3   : > { %s8149_s24 = scalar_lea.vmem %s14104_s23, %s14092_s14  ;;  %s8222_s25 = smov [#allocation5]  }
 0x6d4   : > { %p8150_p5 = scmp.ne.s32.totalorder %s14104_s23, %s8149_s24  ;;  %s8153_s26 = sshll.u32 %s8222_s25, 4  ;;  %s8154_s26 = int_to_ptr.vmem [resolvable:$false] %s8153_s26 }
 0x6d5   : > { %s8155_s13 = scalar_lea.vmem %s8154_s26, 16384  ;;  %p8156_p13 = scmp.lt.s32.totalorder %s14104_s23, %s8154_s26 }
 0x6d6   : > { %p8151_p11 = pnand %p8150_p5, %p7547_p10  ;;  %p8157_p0 = scmp.lt.s32.totalorder %s8155_s13, %s8149_s24 }
 0x6d8   : > { %p8152_p12 = pneg %p8151_p11  ;;  %p8158_p1 = por %p8157_p0, %p8156_p13 }
 0x6da   : > { %p8159_p2 = pnand %p8158_p1, %p8152_p12 }
 0x6dc   : > { %8162 = shalt.err (!%p8159_p2)
}
 0x6dd   : > { %s8163_s27 = scalar_lea.hbm %s14101_s22, %s14092_s14  ;;  %s8167_s30 = scalar_lea.hbm %s14149_s2, 20096 }
 0x6de   : > { %p8164_p3 = scmp.ne.s32.totalorder %s14101_s22, %s8163_s27  ;;  %p8168_p8 = scmp.lt.s32.totalorder %s14101_s22, %s14149_s2 }
 0x6df   : > { %p8169_p9 = scmp.lt.s32.totalorder %s8167_s30, %s8163_s27 }
 0x6e0   : > { %p8165_p4 = pnand %p8164_p3, %p7547_p10 }
 0x6e1   : > { %p8170_p5 = por %p8169_p9, %p8168_p8 }
 0x6e2   : > { %p8166_p7 = pneg %p8165_p4 }
 0x6e4   : > { %p8171_p11 = pnand %p8170_p5, %p8166_p7 }
 0x6e6   : > { %8174 = shalt.err (!%p8171_p11)
}
 0x6e7   : > { %s8223_s5 = smov 128   ;;  %s8224_s7 = smov 8  }
 0x6e8   : > { %7223 = dma.vmem_to_hbm [thread:$0]  (%p7547_p10), %s14104_s23, %s14092_s14, %s14101_s22, %s14087_s6, %s8223_s5, %s8223_s5, %s8224_s7  }
 0x6e9 PF: > { %p7825_p12 = scmp.ge.s32.totalorder %s8213_s12, 2  ;;  %s7232_s8 = sand.u32 1, %s8201_s9  }
 0x6ea   : > { %s7233_s16 = scalar_lea.sflag [#allocation4], %s7232_s8 }
 0x6eb   : > { %p7820_p13 = pnand %p7825_p12, %p8282_p6 }
 0x6ed   : > { %p7821_p0 = pneg %p7820_p13 }
 0x6ef   : > { %8196 = dma.done.wait (%p7821_p0), %s7233_s16, 8192  }
 0x6f0   : > { %8198 = vsyncadd (%p7821_p0), %s7233_s16, 4294959104  ;;  %p13_p1 = scmp.ge.s32.totalorder %s8265_s15, 5   ;;  %s14591_s9 = smov %s8205_s10 }
 0x6f1   : > { %s14592_s10 = smov %s8209_s11  ;;  %s14593_s11 = smov %s8276_s18 }
 0x6f2   : > { %s14594_s12 = smov %s8265_s15  ;;  %15 = sbr.rel (!%p13_p1) target bundleno = 4 (0x4), region = 65 }
 0x6f7   :  { %7238 = vsyncpa [#allocation3], 1 }
 0x6f8   :  { %7240 = vsyncpa [#allocation3 + $0x1], 1 }
 0x6f9   :  { %7241 = vsyncpa [#allocation4], 1 }
 0x6fa   :  { %7243 = vsyncpa [#allocation4 + $0x1], 1 }

</bundles_post_ra>
